<compile_context>
chip_gen: v5e
topology: v5e:2x2
jax: 0.10.0
libtpu: 0.0.40
codegen_flags: <defaults>
</compile_context>

<pallas_src>
import functools

import jax
import jax.numpy as jnp
from jax.experimental import pallas as pl
from jax.experimental.pallas import tpu as pltpu


# ---------------------------------------------------------------------------
# In-kernel building blocks
# ---------------------------------------------------------------------------
def _conv3x3_bn_relu(a, w_ref, b_ref, hw):
    """3x3 conv (pad=1, BN scale pre-folded into weights) + bias + ReLU.

    a:     (B*hw*hw, Cin) f32 activation, rows in (b, h, w) row-major order.
    w_ref: (9*Cin, Cout) bf16 weight, K ordered tap-major (kh*3+kw) then Cin.
    b_ref: (1, Cout) f32 folded BatchNorm/conv bias.
    """
    n = a.shape[0]
    shift_bits = hw.bit_length() - 1                     # hw is a power of two
    ridx = jax.lax.broadcasted_iota(jnp.int32, (n, 1), 0)
    w_coord = ridx & (hw - 1)                            # w of each row
    h_coord = (ridx >> shift_bits) & (hw - 1)            # h of each row
    # boundary masks hoisted out of the 9-tap loop
    m_w = {-1: w_coord >= 1, 0: None, 1: w_coord <= hw - 2}
    m_h = {-1: h_coord >= 1, 0: None, 1: h_coord <= hw - 2}

    taps = []
    for kh in range(3):
        for kw in range(3):
            dh, dw = kh - 1, kw - 1
            shift = dh * hw + dw
            # row i of `at` holds input row i + shift (wrap rows get masked)
            at = a if shift == 0 else pltpu.roll(a, (-shift) % n, axis=0)
            mh, mw = m_h[dh], m_w[dw]
            m = mh if mw is None else (mw if mh is None
                                       else jnp.logical_and(mh, mw))
            if m is not None:
                at = jnp.where(m, at, 0.0)
            taps.append(at.astype(jnp.bfloat16))
    a9 = jnp.concatenate(taps, axis=1)                   # (n, 9*Cin) bf16
    acc = jnp.dot(a9, w_ref[...], preferred_element_type=jnp.float32)
    return jnp.maximum(acc + b_ref[...], 0.0)


def _maxpool2x2(y, hw, p_ref, batch):
    """2x2 / stride-2 max pool on (B*hw*hw, C) row-major rows.

    p_ref is a per-image 0/1 (hw^2/4, hw^2) bf16 selection matrix compacting
    the (even h, even w) rows (batch independent -> no B^2 scaling).
    """
    n = y.shape[0]
    t = jnp.maximum(y, pltpu.roll(y, n - 1, axis=0))     # max over the w pair
    t = jnp.maximum(t, pltpu.roll(t, n - hw, axis=0))    # max over the h pair
    t = t.astype(jnp.bfloat16)
    n_img = hw * hw
    outs = [jnp.dot(p_ref[...], t[b * n_img:(b + 1) * n_img, :],
                    preferred_element_type=jnp.float32)
            for b in range(batch)]
    return outs[0] if batch == 1 else jnp.concatenate(outs, axis=0)


# ---------------------------------------------------------------------------
# Fused forward kernel (backbone + all three heads)
# ---------------------------------------------------------------------------
def _multitask_kernel(x_ref,
                      w1_ref, b1_ref, p1_ref,
                      w2_ref, b2_ref, p2_ref,
                      w3_ref, b3_ref, p3_ref,
                      b4_ref, p4_ref,
                      b5_ref,
                      bt_ref, wcb_ref, bcb_ref, m_ref,
                      bh1_ref, w2b_ref, b2b_ref,
                      w4_hbm, w5_hbm, wt_hbm, wh1_hbm,
                      seg_ref, head_ref,
                      w4_buf, w5_buf, wt_buf, wh1_buf, dma_sem,
                      *, batch):
    f32, bf16 = jnp.float32, jnp.bfloat16

    # ---- kick off DMA of the big late-stage weights; layers 1-3 hide it ---
    cp_w4 = pltpu.make_async_copy(w4_hbm, w4_buf, dma_sem.at[0])
    cp_w5 = pltpu.make_async_copy(w5_hbm, w5_buf, dma_sem.at[1])
    cp_wt = pltpu.make_async_copy(wt_hbm, wt_buf, dma_sem.at[2])
    cp_wh1 = pltpu.make_async_copy(wh1_hbm, wh1_buf, dma_sem.at[3])
    cp_w4.start()
    cp_w5.start()
    cp_wt.start()
    cp_wh1.start()

    # ---- layer 1: wrapper-side im2col -> one (B*256,16)@(16,32) matmul ----
    a = jnp.dot(x_ref[...], w1_ref[...], preferred_element_type=f32)
    a = jnp.maximum(a + b1_ref[...], 0.0)
    a = _maxpool2x2(a, 16, p1_ref, batch)                    # (B*64, 32)

    # ---- layers 2-4: K-concatenated 9-tap convs ----------------------------
    a = _conv3x3_bn_relu(a, w2_ref, b2_ref, 8)
    a = _maxpool2x2(a, 8, p2_ref, batch)                     # (B*16, 64)
    a = _conv3x3_bn_relu(a, w3_ref, b3_ref, 4)
    a = _maxpool2x2(a, 4, p3_ref, batch)                     # (B*4, 128)
    cp_w4.wait()
    a = _conv3x3_bn_relu(a, w4_buf, b4_ref, 2)
    a = _maxpool2x2(a, 2, p4_ref, batch)                     # (B, 256)

    # ---- layer 5: 1x1 spatial -> only the center 3x3 tap contributes; -----
    # ---- AdaptiveAvgPool2d((1,1)) on a 1x1 map is the identity.       -----
    cp_w5.wait()
    f = jnp.dot(a.astype(bf16), w5_buf[...], preferred_element_type=f32)
    f = jnp.maximum(f + b5_ref[...], 0.0)                    # (B, 512)
    f_bf = f.astype(bf16)

    # ---- segmentation head (fully batched, lane-dense output) --------------
    cp_wt.wait()
    z = jnp.dot(f_bf, wt_buf[...], preferred_element_type=f32)   # (B, 1024)
    act = jnp.maximum(z + bt_ref[...], 0.0)                       # BN + ReLU
    # block-diagonal per-position 1x1 conv, then bilinear 2x2->16x16 as one
    # block-diagonal matmul -> seg written as a single (B, ncls*256) store.
    s_cat = jnp.dot(act.astype(bf16), wcb_ref[...],
                    preferred_element_type=f32) + bcb_ref[...]    # (B, 4*ncls)
    seg_ref[...] = jnp.dot(s_cat.astype(bf16), m_ref[...],
                           preferred_element_type=f32)            # (B, ncls*256)

    # ---- classification / localization heads (packed output) ---------------
    # (the two first Linear layers were fused into one 512x512 matmul and the
    #  two second layers into one block-diagonal (512, 1+bbox) matmul;
    #  Dropout(0.5) is identity in eval mode)
    cp_wh1.wait()
    h = jnp.maximum(jnp.dot(f_bf, wh1_buf[...], preferred_element_type=f32)
                    + bh1_ref[...], 0.0)                          # (B, 512)
    head_ref[...] = (jnp.dot(h.astype(bf16), w2b_ref[...],
                             preferred_element_type=f32) + b2b_ref[...])


# ---------------------------------------------------------------------------
# Wrapper
# ---------------------------------------------------------------------------
def multitask_cnn_forward(x_nchw, params):
    """x_nchw: (B, 1, 16, 16) f32. Returns (seg (B,C,16,16), cls (B,1), loc (B,4))."""
    B, cin, H0, W0 = x_nchw.shape
    assert cin == 1 and H0 == 16 and W0 == 16, "kernel specialized to 1x16x16"
    ncls = params["m"].shape[0] // 4
    nbox = params["w2b"].shape[1] - 1

    # Layer-1 im2col (Cin=1) built in the wrapper: (B*256, 9) -> 16 lanes, bf16.
    xp = jnp.pad(x_nchw[:, 0].astype(jnp.float32), ((0, 0), (1, 1), (1, 1)))
    cols = [xp[:, kh:kh + 16, kw:kw + 16] for kh in range(3) for kw in range(3)]
    x_im2col = jnp.stack(cols, axis=-1).reshape(B * 256, 9)
    x_im2col = jnp.pad(x_im2col, ((0, 0), (0, 7))).astype(jnp.bfloat16)

    vmem_args = [x_im2col,
                 params["w1"], params["b1"], params["p1"],
                 params["w2"], params["b2"], params["p2"],
                 params["w3"], params["b3"], params["p3"],
                 params["b4"], params["p4"],
                 params["b5"],
                 params["bt"], params["wcb"], params["bcb"], params["m"],
                 params["bh1"], params["w2b"], params["b2b"]]
    hbm_args = [params["w4"], params["w5"], params["wt"], params["wh1"]]

    vmem_spec = pl.BlockSpec(memory_space=pltpu.MemorySpace.VMEM)
    hbm_spec = pl.BlockSpec(memory_space=pl.ANY)

    seg_flat, heads = pl.pallas_call(
        functools.partial(_multitask_kernel, batch=B),
        out_shape=(jax.ShapeDtypeStruct((B, ncls * 256), jnp.float32),
                   jax.ShapeDtypeStruct((B, 1 + nbox), jnp.float32)),
        in_specs=[vmem_spec] * len(vmem_args) + [hbm_spec] * len(hbm_args),
        out_specs=(vmem_spec, vmem_spec),
        scratch_shapes=[
            pltpu.VMEM(params["w4"].shape, jnp.bfloat16),
            pltpu.VMEM(params["w5"].shape, jnp.bfloat16),
            pltpu.VMEM(params["wt"].shape, jnp.bfloat16),
            pltpu.VMEM(params["wh1"].shape, jnp.bfloat16),
            pltpu.SemaphoreType.DMA((4,)),
        ],
        compiler_params=pltpu.CompilerParams(
            vmem_limit_bytes=32 * 1024 * 1024),
    )(*vmem_args, *hbm_args)

    seg = seg_flat.reshape(B, ncls, 16, 16)
    return seg, heads[:, :1], heads[:, 1:]


# ---------------------------------------------------------------------------
# Parameter construction (PyTorch layouts -> kernel layouts)
# ---------------------------------------------------------------------------
def _interp_weights(out_size, in_size):
    """Bilinear interpolation weights, PyTorch align_corners=False semantics."""
    scale = in_size / out_size
    o = jnp.arange(out_size, dtype=jnp.float32)
    src = jnp.maximum(scale * (o + 0.5) - 0.5, 0.0)
    i0 = jnp.clip(jnp.floor(src).astype(jnp.int32), 0, in_size - 1)
    i1 = jnp.minimum(i0 + 1, in_size - 1)
    l1 = src - i0.astype(jnp.float32)
    l0 = 1.0 - l1
    idx = jnp.arange(out_size)
    w = jnp.zeros((out_size, in_size), jnp.float32)
    w = w.at[idx, i0].add(l0)
    w = w.at[idx, i1].add(l1)
    return w


def _pool_selector(hw):
    """Per-image 0/1 matrix selecting (even h, even w) rows of an (h, w) map."""
    ho = hw // 2
    j = jnp.arange(ho * ho)
    src = (j // ho) * (2 * hw) + (j % ho) * 2
    return (src[:, None] == jnp.arange(hw * hw)[None, :]).astype(jnp.bfloat16)


def init_params(key, input_channels=1, num_classes=13, bbox_size=4, eps=1e-5):
    chans = [(input_channels, 32), (32, 64), (64, 128), (128, 256), (256, 512)]
    keys = iter(jax.random.split(key, 64))

    def rnd(shape, scale=0.1):
        return scale * jax.random.normal(next(keys), shape, jnp.float32)

    p = {}
    # --- backbone: Conv2d(3x3, pad=1) + BatchNorm2d (eval stats folded) ----
    for li, (cin, cout) in enumerate(chans):
        w_t = rnd((cout, cin, 3, 3))                 # PyTorch Conv2d layout
        conv_b = rnd((cout,))
        gamma, beta = 1.0 + rnd((cout,)), rnd((cout,))
        mean, var = jnp.zeros((cout,)), jnp.ones((cout,))
        s = gamma / jnp.sqrt(var + eps)              # BN scale -> folded into W
        bias = (conv_b - mean) * s + beta            # conv bias folded into BN
        if li == 0:                                  # layer 1: im2col weight
            w9 = jnp.transpose(w_t[:, 0], (1, 2, 0)).reshape(9, cout) * s[None, :]
            p["w1"] = jnp.pad(w9, ((0, 7), (0, 0))).astype(jnp.bfloat16)  # (16,32)
        elif li < 4:                                 # layers 2-4: K-concat weight
            w9 = (jnp.transpose(w_t, (2, 3, 1, 0)).reshape(9 * cin, cout)
                  * s[None, :])
            p[f"w{li + 1}"] = w9.astype(jnp.bfloat16)                     # (9Cin,Cout)
        else:                                        # layer 5: center tap only
            w5 = jnp.transpose(w_t[:, :, 1, 1], (1, 0)) * s[None, :]      # (256,512)
            p["w5"] = w5.astype(jnp.bfloat16)
        p[f"b{li + 1}"] = bias.reshape(1, cout)

    # per-image 2x2 max-pool row selectors (batch independent)
    for li, hw in enumerate([16, 8, 4, 2]):
        p[f"p{li + 1}"] = _pool_selector(hw)

    # --- segmentation head: ConvTranspose2d(512,256,2,2) + BN + ReLU + 1x1 --
    wt_t = rnd((512, 256, 2, 2))                     # PyTorch (Cin, Cout, kH, kW)
    bt_b = rnd((256,))
    gamma_s, beta_s = 1.0 + rnd((256,)), rnd((256,))
    s_seg = gamma_s / jnp.sqrt(jnp.ones((256,)) + eps)
    b_seg = (bt_b - jnp.zeros((256,))) * s_seg + beta_s
    wt_mat = jnp.transpose(wt_t, (0, 2, 3, 1)).reshape(512, 4 * 256)
    p["wt"] = (wt_mat * jnp.tile(s_seg, 4)[None, :]).astype(jnp.bfloat16)  # (512,1024)
    p["bt"] = jnp.tile(b_seg, 4).reshape(1, 4 * 256)
    wct = rnd((num_classes, 256, 1, 1))[:, :, 0, 0]                        # (ncls,256)
    p["wcb"] = jnp.kron(jnp.eye(4), wct.T).astype(jnp.bfloat16)            # (1024,4*ncls)
    p["bcb"] = jnp.tile(rnd((num_classes,)), 4).reshape(1, 4 * num_classes)
    # bilinear (2,2)->(16,16) interpolation, block-diagonal over classes so the
    # whole seg output is one lane-dense matmul: (4*ncls, ncls*256)
    wy = _interp_weights(16, 2)
    wx = _interp_weights(16, 2)
    mt = jnp.einsum("yi,xj->ijyx", wy, wx).reshape(4, 256)
    p["m"] = jnp.einsum("pk,cd->pcdk", mt, jnp.eye(num_classes)).reshape(
        4 * num_classes, num_classes * 256).astype(jnp.bfloat16)

    # --- classification / localization heads (PyTorch Linear = (out, in)) --
    w1c_t, b1c = rnd((256, 512)), rnd((256,))
    w2c_t, b2c = rnd((1, 256)), rnd((1,))
    w1l_t, b1l = rnd((256, 512)), rnd((256,))
    w2l_t, b2l = rnd((bbox_size, 256)), rnd((bbox_size,))
    p["wh1"] = jnp.concatenate([w1c_t.T, w1l_t.T], axis=1).astype(jnp.bfloat16)
    p["bh1"] = jnp.concatenate([b1c, b1l]).reshape(1, 512)
    w2b = jnp.zeros((512, 1 + bbox_size), jnp.float32)
    w2b = w2b.at[:256, :1].set(w2c_t.T)
    w2b = w2b.at[256:, 1:].set(w2l_t.T)
    p["w2b"] = w2b.astype(jnp.bfloat16)
    p["b2b"] = jnp.concatenate([b2c, b2l]).reshape(1, 1 + bbox_size)
    return p


# ---------------------------------------------------------------------------
if __name__ == "__main__":
    B, num_classes, bbox_size = 2, 13, 4
    key = jax.random.PRNGKey(0)
    kx, kp = jax.random.split(key)
    x = jax.random.normal(kx, (B, 1, 16, 16), jnp.float32)
    params = init_params(kp, input_channels=1, num_classes=num_classes,
                         bbox_size=bbox_size)

    fwd = jax.jit(multitask_cnn_forward)
    seg_out, cls_out, loc_out = fwd(x, params)
    jax.block_until_ready((seg_out, cls_out, loc_out))

    assert seg_out.shape == (B, num_classes, 16, 16)
    assert cls_out.shape == (B, 1)
    assert loc_out.shape == (B, bbox_size)
    assert bool(jnp.isfinite(seg_out).all())
    assert bool(jnp.isfinite(cls_out).all())
    assert bool(jnp.isfinite(loc_out).all())
    print("KERNEL_OK")
</pallas_src>

<mosaic_0001>
module attributes {stable_mosaic.version = 11 : i64} {
  func.func @_multitask_kernel(%arg0: memref<512x16xbf16, #tpu.memory_space<vmem>>, %arg1: memref<16x32xbf16, #tpu.memory_space<vmem>>, %arg2: memref<1x32xf32, #tpu.memory_space<vmem>>, %arg3: memref<64x256xbf16, #tpu.memory_space<vmem>>, %arg4: memref<288x64xbf16, #tpu.memory_space<vmem>>, %arg5: memref<1x64xf32, #tpu.memory_space<vmem>>, %arg6: memref<16x64xbf16, #tpu.memory_space<vmem>>, %arg7: memref<576x128xbf16, #tpu.memory_space<vmem>>, %arg8: memref<1x128xf32, #tpu.memory_space<vmem>>, %arg9: memref<4x16xbf16, #tpu.memory_space<vmem>>, %arg10: memref<1x256xf32, #tpu.memory_space<vmem>>, %arg11: memref<1x4xbf16, #tpu.memory_space<vmem>>, %arg12: memref<1x512xf32, #tpu.memory_space<vmem>>, %arg13: memref<1x1024xf32, #tpu.memory_space<vmem>>, %arg14: memref<1024x52xbf16, #tpu.memory_space<vmem>>, %arg15: memref<1x52xf32, #tpu.memory_space<vmem>>, %arg16: memref<52x3328xbf16, #tpu.memory_space<vmem>>, %arg17: memref<1x512xf32, #tpu.memory_space<vmem>>, %arg18: memref<512x5xbf16, #tpu.memory_space<vmem>>, %arg19: memref<1x5xf32, #tpu.memory_space<vmem>>, %arg20: memref<1152x256xbf16, #tpu.memory_space<any>>, %arg21: memref<256x512xbf16, #tpu.memory_space<any>>, %arg22: memref<512x1024xbf16, #tpu.memory_space<any>>, %arg23: memref<512x512xbf16, #tpu.memory_space<any>>, %arg24: memref<2x3328xf32, #tpu.memory_space<vmem>>, %arg25: memref<2x5xf32, #tpu.memory_space<vmem>>, %arg26: memref<1152x256xbf16, #tpu.memory_space<vmem>>, %arg27: memref<256x512xbf16, #tpu.memory_space<vmem>>, %arg28: memref<512x1024xbf16, #tpu.memory_space<vmem>>, %arg29: memref<512x512xbf16, #tpu.memory_space<vmem>>, %arg30: memref<4x!tpu.dma_semaphore, #tpu.memory_space<semaphore_mem>>) attributes {dimension_semantics = [], scalar_prefetch = 0 : i64, scratch_operands = 5 : i64, tpu.core_type = #tpu.core_type<tc>} {
    %c0_i32 = arith.constant 0 : i32
    %0 = tpu.memref_slice %arg30[%c0_i32] : memref<4x!tpu.dma_semaphore, #tpu.memory_space<semaphore_mem>> -> memref<1x!tpu.dma_semaphore, #tpu.memory_space<semaphore_mem>>
    %1 = tpu.memref_squeeze %0 : memref<1x!tpu.dma_semaphore, #tpu.memory_space<semaphore_mem>> -> memref<!tpu.dma_semaphore, #tpu.memory_space<semaphore_mem>>
    tpu.enqueue_dma source(%arg20 : memref<1152x256xbf16, #tpu.memory_space<any>>) target(%arg26 : memref<1152x256xbf16, #tpu.memory_space<vmem>>) target_semaphore(%1 : memref<!tpu.dma_semaphore, #tpu.memory_space<semaphore_mem>>)
    %c1_i32 = arith.constant 1 : i32
    %2 = tpu.memref_slice %arg30[%c1_i32] : memref<4x!tpu.dma_semaphore, #tpu.memory_space<semaphore_mem>> -> memref<1x!tpu.dma_semaphore, #tpu.memory_space<semaphore_mem>>
    %3 = tpu.memref_squeeze %2 : memref<1x!tpu.dma_semaphore, #tpu.memory_space<semaphore_mem>> -> memref<!tpu.dma_semaphore, #tpu.memory_space<semaphore_mem>>
    tpu.enqueue_dma source(%arg21 : memref<256x512xbf16, #tpu.memory_space<any>>) target(%arg27 : memref<256x512xbf16, #tpu.memory_space<vmem>>) target_semaphore(%3 : memref<!tpu.dma_semaphore, #tpu.memory_space<semaphore_mem>>)
    %c2_i32 = arith.constant 2 : i32
    %4 = tpu.memref_slice %arg30[%c2_i32] : memref<4x!tpu.dma_semaphore, #tpu.memory_space<semaphore_mem>> -> memref<1x!tpu.dma_semaphore, #tpu.memory_space<semaphore_mem>>
    %5 = tpu.memref_squeeze %4 : memref<1x!tpu.dma_semaphore, #tpu.memory_space<semaphore_mem>> -> memref<!tpu.dma_semaphore, #tpu.memory_space<semaphore_mem>>
    tpu.enqueue_dma source(%arg22 : memref<512x1024xbf16, #tpu.memory_space<any>>) target(%arg28 : memref<512x1024xbf16, #tpu.memory_space<vmem>>) target_semaphore(%5 : memref<!tpu.dma_semaphore, #tpu.memory_space<semaphore_mem>>)
    %c3_i32 = arith.constant 3 : i32
    %6 = tpu.memref_slice %arg30[%c3_i32] : memref<4x!tpu.dma_semaphore, #tpu.memory_space<semaphore_mem>> -> memref<1x!tpu.dma_semaphore, #tpu.memory_space<semaphore_mem>>
    %7 = tpu.memref_squeeze %6 : memref<1x!tpu.dma_semaphore, #tpu.memory_space<semaphore_mem>> -> memref<!tpu.dma_semaphore, #tpu.memory_space<semaphore_mem>>
    tpu.enqueue_dma source(%arg23 : memref<512x512xbf16, #tpu.memory_space<any>>) target(%arg29 : memref<512x512xbf16, #tpu.memory_space<vmem>>) target_semaphore(%7 : memref<!tpu.dma_semaphore, #tpu.memory_space<semaphore_mem>>)
    %c0 = arith.constant 0 : index
    %c0_0 = arith.constant 0 : index
    %8 = vector.load %arg0[%c0, %c0_0] : memref<512x16xbf16, #tpu.memory_space<vmem>>, vector<512x16xbf16>
    %c0_1 = arith.constant 0 : index
    %c0_2 = arith.constant 0 : index
    %9 = vector.load %arg1[%c0_1, %c0_2] : memref<16x32xbf16, #tpu.memory_space<vmem>>, vector<16x32xbf16>
    %cst = arith.constant dense<0.000000e+00> : vector<512x32xf32>
    %10 = tpu.matmul %8, %9, %cst {dimension_numbers = #tpu.dot_dimension_numbers<[1], [0], [0], [1], [0, 0, 1, 1], [], []>} : vector<512x16xbf16>, vector<16x32xbf16>, vector<512x32xf32> -> vector<512x32xf32>
    %c0_3 = arith.constant 0 : index
    %c0_4 = arith.constant 0 : index
    %11 = vector.load %arg2[%c0_3, %c0_4] : memref<1x32xf32, #tpu.memory_space<vmem>>, vector<1x32xf32>
    %12 = vector.broadcast %11 : vector<1x32xf32> to vector<512x32xf32>
    %13 = arith.addf %10, %12 : vector<512x32xf32>
    %cst_5 = arith.constant 0.000000e+00 : f32
    %14 = vector.broadcast %cst_5 : f32 to vector<512x32xf32>
    %15 = arith.maximumf %13, %14 : vector<512x32xf32>
    %c511_i32 = arith.constant 511 : i32
    %16 = tpu.dynamic_rotate %15 by %c511_i32 dim 0 : vector<512x32xf32>, i32 -> vector<512x32xf32>
    %17 = arith.maximumf %15, %16 : vector<512x32xf32>
    %c496_i32 = arith.constant 496 : i32
    %18 = tpu.dynamic_rotate %17 by %c496_i32 dim 0 : vector<512x32xf32>, i32 -> vector<512x32xf32>
    %19 = arith.maximumf %17, %18 : vector<512x32xf32>
    %20 = arith.truncf %19 : vector<512x32xf32> to vector<512x32xbf16>
    %c0_6 = arith.constant 0 : index
    %c0_7 = arith.constant 0 : index
    %21 = vector.load %arg3[%c0_6, %c0_7] : memref<64x256xbf16, #tpu.memory_space<vmem>>, vector<64x256xbf16>
    %22 = vector.extract_strided_slice %20 {offsets = [0, 0], sizes = [256, 32], strides = [1, 1]} : vector<512x32xbf16> to vector<256x32xbf16>
    %cst_8 = arith.constant dense<0.000000e+00> : vector<64x32xf32>
    %23 = tpu.matmul %21, %22, %cst_8 {dimension_numbers = #tpu.dot_dimension_numbers<[1], [0], [0], [1], [0, 0, 1, 1], [], []>} : vector<64x256xbf16>, vector<256x32xbf16>, vector<64x32xf32> -> vector<64x32xf32>
    %c0_9 = arith.constant 0 : index
    %c0_10 = arith.constant 0 : index
    %24 = vector.load %arg3[%c0_9, %c0_10] : memref<64x256xbf16, #tpu.memory_space<vmem>>, vector<64x256xbf16>
    %25 = vector.extract_strided_slice %20 {offsets = [256, 0], sizes = [256, 32], strides = [1, 1]} : vector<512x32xbf16> to vector<256x32xbf16>
    %cst_11 = arith.constant dense<0.000000e+00> : vector<64x32xf32>
    %26 = tpu.matmul %24, %25, %cst_11 {dimension_numbers = #tpu.dot_dimension_numbers<[1], [0], [0], [1], [0, 0, 1, 1], [], []>} : vector<64x256xbf16>, vector<256x32xbf16>, vector<64x32xf32> -> vector<64x32xf32>
    %27 = tpu.concatenate %23, %26 in 0 : vector<64x32xf32>, vector<64x32xf32> -> vector<128x32xf32>
    %28 = tpu.iota {dimensions = array<i32: 0>} : vector<128x1xi32>
    %c7_i32 = arith.constant 7 : i32
    %29 = vector.broadcast %c7_i32 : i32 to vector<128x1xi32>
    %30 = arith.andi %28, %29 : vector<128x1xi32>
    %c3_i32_12 = arith.constant 3 : i32
    %31 = vector.broadcast %c3_i32_12 : i32 to vector<128x1xi32>
    %32 = arith.shrsi %28, %31 : vector<128x1xi32>
    %c7_i32_13 = arith.constant 7 : i32
    %33 = vector.broadcast %c7_i32_13 : i32 to vector<128x1xi32>
    %34 = arith.andi %32, %33 : vector<128x1xi32>
    %c1_i32_14 = arith.constant 1 : i32
    %35 = vector.broadcast %c1_i32_14 : i32 to vector<128x1xi32>
    %36 = arith.cmpi sge, %30, %35 : vector<128x1xi32>
    %c6_i32 = arith.constant 6 : i32
    %37 = vector.broadcast %c6_i32 : i32 to vector<128x1xi32>
    %38 = arith.cmpi sle, %30, %37 : vector<128x1xi32>
    %c1_i32_15 = arith.constant 1 : i32
    %39 = vector.broadcast %c1_i32_15 : i32 to vector<128x1xi32>
    %40 = arith.cmpi sge, %34, %39 : vector<128x1xi32>
    %c6_i32_16 = arith.constant 6 : i32
    %41 = vector.broadcast %c6_i32_16 : i32 to vector<128x1xi32>
    %42 = arith.cmpi sle, %34, %41 : vector<128x1xi32>
    %c9_i32 = arith.constant 9 : i32
    %43 = tpu.dynamic_rotate %27 by %c9_i32 dim 0 : vector<128x32xf32>, i32 -> vector<128x32xf32>
    %44 = arith.andi %40, %36 : vector<128x1xi1>
    %cst_17 = arith.constant 0.000000e+00 : f32
    %45 = vector.shape_cast %44 : vector<128x1xi1> to vector<128x1xi1>
    %46 = vector.broadcast %45 : vector<128x1xi1> to vector<128x32xi1>
    %47 = vector.broadcast %cst_17 : f32 to vector<128x32xf32>
    %48 = arith.select %46, %43, %47 : vector<128x32xi1>, vector<128x32xf32>
    %49 = arith.truncf %48 : vector<128x32xf32> to vector<128x32xbf16>
    %c8_i32 = arith.constant 8 : i32
    %50 = tpu.dynamic_rotate %27 by %c8_i32 dim 0 : vector<128x32xf32>, i32 -> vector<128x32xf32>
    %cst_18 = arith.constant 0.000000e+00 : f32
    %51 = vector.shape_cast %40 : vector<128x1xi1> to vector<128x1xi1>
    %52 = vector.broadcast %51 : vector<128x1xi1> to vector<128x32xi1>
    %53 = vector.broadcast %cst_18 : f32 to vector<128x32xf32>
    %54 = arith.select %52, %50, %53 : vector<128x32xi1>, vector<128x32xf32>
    %55 = arith.truncf %54 : vector<128x32xf32> to vector<128x32xbf16>
    %c7_i32_19 = arith.constant 7 : i32
    %56 = tpu.dynamic_rotate %27 by %c7_i32_19 dim 0 : vector<128x32xf32>, i32 -> vector<128x32xf32>
    %57 = arith.andi %40, %38 : vector<128x1xi1>
    %cst_20 = arith.constant 0.000000e+00 : f32
    %58 = vector.shape_cast %57 : vector<128x1xi1> to vector<128x1xi1>
    %59 = vector.broadcast %58 : vector<128x1xi1> to vector<128x32xi1>
    %60 = vector.broadcast %cst_20 : f32 to vector<128x32xf32>
    %61 = arith.select %59, %56, %60 : vector<128x32xi1>, vector<128x32xf32>
    %62 = arith.truncf %61 : vector<128x32xf32> to vector<128x32xbf16>
    %c1_i32_21 = arith.constant 1 : i32
    %63 = tpu.dynamic_rotate %27 by %c1_i32_21 dim 0 : vector<128x32xf32>, i32 -> vector<128x32xf32>
    %cst_22 = arith.constant 0.000000e+00 : f32
    %64 = vector.shape_cast %36 : vector<128x1xi1> to vector<128x1xi1>
    %65 = vector.broadcast %64 : vector<128x1xi1> to vector<128x32xi1>
    %66 = vector.broadcast %cst_22 : f32 to vector<128x32xf32>
    %67 = arith.select %65, %63, %66 : vector<128x32xi1>, vector<128x32xf32>
    %68 = arith.truncf %67 : vector<128x32xf32> to vector<128x32xbf16>
    %69 = arith.truncf %27 : vector<128x32xf32> to vector<128x32xbf16>
    %c127_i32 = arith.constant 127 : i32
    %70 = tpu.dynamic_rotate %27 by %c127_i32 dim 0 : vector<128x32xf32>, i32 -> vector<128x32xf32>
    %cst_23 = arith.constant 0.000000e+00 : f32
    %71 = vector.shape_cast %38 : vector<128x1xi1> to vector<128x1xi1>
    %72 = vector.broadcast %71 : vector<128x1xi1> to vector<128x32xi1>
    %73 = vector.broadcast %cst_23 : f32 to vector<128x32xf32>
    %74 = arith.select %72, %70, %73 : vector<128x32xi1>, vector<128x32xf32>
    %75 = arith.truncf %74 : vector<128x32xf32> to vector<128x32xbf16>
    %c121_i32 = arith.constant 121 : i32
    %76 = tpu.dynamic_rotate %27 by %c121_i32 dim 0 : vector<128x32xf32>, i32 -> vector<128x32xf32>
    %77 = arith.andi %42, %36 : vector<128x1xi1>
    %cst_24 = arith.constant 0.000000e+00 : f32
    %78 = vector.shape_cast %77 : vector<128x1xi1> to vector<128x1xi1>
    %79 = vector.broadcast %78 : vector<128x1xi1> to vector<128x32xi1>
    %80 = vector.broadcast %cst_24 : f32 to vector<128x32xf32>
    %81 = arith.select %79, %76, %80 : vector<128x32xi1>, vector<128x32xf32>
    %82 = arith.truncf %81 : vector<128x32xf32> to vector<128x32xbf16>
    %c120_i32 = arith.constant 120 : i32
    %83 = tpu.dynamic_rotate %27 by %c120_i32 dim 0 : vector<128x32xf32>, i32 -> vector<128x32xf32>
    %cst_25 = arith.constant 0.000000e+00 : f32
    %84 = vector.shape_cast %42 : vector<128x1xi1> to vector<128x1xi1>
    %85 = vector.broadcast %84 : vector<128x1xi1> to vector<128x32xi1>
    %86 = vector.broadcast %cst_25 : f32 to vector<128x32xf32>
    %87 = arith.select %85, %83, %86 : vector<128x32xi1>, vector<128x32xf32>
    %88 = arith.truncf %87 : vector<128x32xf32> to vector<128x32xbf16>
    %c119_i32 = arith.constant 119 : i32
    %89 = tpu.dynamic_rotate %27 by %c119_i32 dim 0 : vector<128x32xf32>, i32 -> vector<128x32xf32>
    %90 = arith.andi %42, %38 : vector<128x1xi1>
    %cst_26 = arith.constant 0.000000e+00 : f32
    %91 = vector.shape_cast %90 : vector<128x1xi1> to vector<128x1xi1>
    %92 = vector.broadcast %91 : vector<128x1xi1> to vector<128x32xi1>
    %93 = vector.broadcast %cst_26 : f32 to vector<128x32xf32>
    %94 = arith.select %92, %89, %93 : vector<128x32xi1>, vector<128x32xf32>
    %95 = arith.truncf %94 : vector<128x32xf32> to vector<128x32xbf16>
    %96 = tpu.concatenate %49, %55, %62, %68, %69, %75, %82, %88, %95 in 1 : vector<128x32xbf16>, vector<128x32xbf16>, vector<128x32xbf16>, vector<128x32xbf16>, vector<128x32xbf16>, vector<128x32xbf16>, vector<128x32xbf16>, vector<128x32xbf16>, vector<128x32xbf16> -> vector<128x288xbf16>
    %c0_27 = arith.constant 0 : index
    %c0_28 = arith.constant 0 : index
    %97 = vector.load %arg4[%c0_27, %c0_28] : memref<288x64xbf16, #tpu.memory_space<vmem>>, vector<288x64xbf16>
    %cst_29 = arith.constant dense<0.000000e+00> : vector<128x64xf32>
    %98 = tpu.matmul %96, %97, %cst_29 {dimension_numbers = #tpu.dot_dimension_numbers<[1], [0], [0], [1], [0, 0, 1, 1], [], []>} : vector<128x288xbf16>, vector<288x64xbf16>, vector<128x64xf32> -> vector<128x64xf32>
    %c0_30 = arith.constant 0 : index
    %c0_31 = arith.constant 0 : index
    %99 = vector.load %arg5[%c0_30, %c0_31] : memref<1x64xf32, #tpu.memory_space<vmem>>, vector<1x64xf32>
    %100 = vector.broadcast %99 : vector<1x64xf32> to vector<128x64xf32>
    %101 = arith.addf %98, %100 : vector<128x64xf32>
    %cst_32 = arith.constant 0.000000e+00 : f32
    %102 = vector.broadcast %cst_32 : f32 to vector<128x64xf32>
    %103 = arith.maximumf %101, %102 : vector<128x64xf32>
    %c127_i32_33 = arith.constant 127 : i32
    %104 = tpu.dynamic_rotate %103 by %c127_i32_33 dim 0 : vector<128x64xf32>, i32 -> vector<128x64xf32>
    %105 = arith.maximumf %103, %104 : vector<128x64xf32>
    %c120_i32_34 = arith.constant 120 : i32
    %106 = tpu.dynamic_rotate %105 by %c120_i32_34 dim 0 : vector<128x64xf32>, i32 -> vector<128x64xf32>
    %107 = arith.maximumf %105, %106 : vector<128x64xf32>
    %108 = arith.truncf %107 : vector<128x64xf32> to vector<128x64xbf16>
    %c0_35 = arith.constant 0 : index
    %c0_36 = arith.constant 0 : index
    %109 = vector.load %arg6[%c0_35, %c0_36] : memref<16x64xbf16, #tpu.memory_space<vmem>>, vector<16x64xbf16>
    %110 = vector.extract_strided_slice %108 {offsets = [0, 0], sizes = [64, 64], strides = [1, 1]} : vector<128x64xbf16> to vector<64x64xbf16>
    %cst_37 = arith.constant dense<0.000000e+00> : vector<16x64xf32>
    %111 = tpu.matmul %109, %110, %cst_37 {dimension_numbers = #tpu.dot_dimension_numbers<[1], [0], [0], [1], [0, 0, 1, 1], [], []>} : vector<16x64xbf16>, vector<64x64xbf16>, vector<16x64xf32> -> vector<16x64xf32>
    %c0_38 = arith.constant 0 : index
    %c0_39 = arith.constant 0 : index
    %112 = vector.load %arg6[%c0_38, %c0_39] : memref<16x64xbf16, #tpu.memory_space<vmem>>, vector<16x64xbf16>
    %113 = vector.extract_strided_slice %108 {offsets = [64, 0], sizes = [64, 64], strides = [1, 1]} : vector<128x64xbf16> to vector<64x64xbf16>
    %cst_40 = arith.constant dense<0.000000e+00> : vector<16x64xf32>
    %114 = tpu.matmul %112, %113, %cst_40 {dimension_numbers = #tpu.dot_dimension_numbers<[1], [0], [0], [1], [0, 0, 1, 1], [], []>} : vector<16x64xbf16>, vector<64x64xbf16>, vector<16x64xf32> -> vector<16x64xf32>
    %115 = tpu.concatenate %111, %114 in 0 : vector<16x64xf32>, vector<16x64xf32> -> vector<32x64xf32>
    %116 = tpu.iota {dimensions = array<i32: 0>} : vector<32x1xi32>
    %c3_i32_41 = arith.constant 3 : i32
    %117 = vector.broadcast %c3_i32_41 : i32 to vector<32x1xi32>
    %118 = arith.andi %116, %117 : vector<32x1xi32>
    %c2_i32_42 = arith.constant 2 : i32
    %119 = vector.broadcast %c2_i32_42 : i32 to vector<32x1xi32>
    %120 = arith.shrsi %116, %119 : vector<32x1xi32>
    %c3_i32_43 = arith.constant 3 : i32
    %121 = vector.broadcast %c3_i32_43 : i32 to vector<32x1xi32>
    %122 = arith.andi %120, %121 : vector<32x1xi32>
    %c1_i32_44 = arith.constant 1 : i32
    %123 = vector.broadcast %c1_i32_44 : i32 to vector<32x1xi32>
    %124 = arith.cmpi sge, %118, %123 : vector<32x1xi32>
    %c2_i32_45 = arith.constant 2 : i32
    %125 = vector.broadcast %c2_i32_45 : i32 to vector<32x1xi32>
    %126 = arith.cmpi sle, %118, %125 : vector<32x1xi32>
    %c1_i32_46 = arith.constant 1 : i32
    %127 = vector.broadcast %c1_i32_46 : i32 to vector<32x1xi32>
    %128 = arith.cmpi sge, %122, %127 : vector<32x1xi32>
    %c2_i32_47 = arith.constant 2 : i32
    %129 = vector.broadcast %c2_i32_47 : i32 to vector<32x1xi32>
    %130 = arith.cmpi sle, %122, %129 : vector<32x1xi32>
    %c5_i32 = arith.constant 5 : i32
    %131 = tpu.dynamic_rotate %115 by %c5_i32 dim 0 : vector<32x64xf32>, i32 -> vector<32x64xf32>
    %132 = arith.andi %128, %124 : vector<32x1xi1>
    %cst_48 = arith.constant 0.000000e+00 : f32
    %133 = vector.shape_cast %132 : vector<32x1xi1> to vector<32x1xi1>
    %134 = vector.broadcast %133 : vector<32x1xi1> to vector<32x64xi1>
    %135 = vector.broadcast %cst_48 : f32 to vector<32x64xf32>
    %136 = arith.select %134, %131, %135 : vector<32x64xi1>, vector<32x64xf32>
    %137 = arith.truncf %136 : vector<32x64xf32> to vector<32x64xbf16>
    %c4_i32 = arith.constant 4 : i32
    %138 = tpu.dynamic_rotate %115 by %c4_i32 dim 0 : vector<32x64xf32>, i32 -> vector<32x64xf32>
    %cst_49 = arith.constant 0.000000e+00 : f32
    %139 = vector.shape_cast %128 : vector<32x1xi1> to vector<32x1xi1>
    %140 = vector.broadcast %139 : vector<32x1xi1> to vector<32x64xi1>
    %141 = vector.broadcast %cst_49 : f32 to vector<32x64xf32>
    %142 = arith.select %140, %138, %141 : vector<32x64xi1>, vector<32x64xf32>
    %143 = arith.truncf %142 : vector<32x64xf32> to vector<32x64xbf16>
    %c3_i32_50 = arith.constant 3 : i32
    %144 = tpu.dynamic_rotate %115 by %c3_i32_50 dim 0 : vector<32x64xf32>, i32 -> vector<32x64xf32>
    %145 = arith.andi %128, %126 : vector<32x1xi1>
    %cst_51 = arith.constant 0.000000e+00 : f32
    %146 = vector.shape_cast %145 : vector<32x1xi1> to vector<32x1xi1>
    %147 = vector.broadcast %146 : vector<32x1xi1> to vector<32x64xi1>
    %148 = vector.broadcast %cst_51 : f32 to vector<32x64xf32>
    %149 = arith.select %147, %144, %148 : vector<32x64xi1>, vector<32x64xf32>
    %150 = arith.truncf %149 : vector<32x64xf32> to vector<32x64xbf16>
    %c1_i32_52 = arith.constant 1 : i32
    %151 = tpu.dynamic_rotate %115 by %c1_i32_52 dim 0 : vector<32x64xf32>, i32 -> vector<32x64xf32>
    %cst_53 = arith.constant 0.000000e+00 : f32
    %152 = vector.shape_cast %124 : vector<32x1xi1> to vector<32x1xi1>
    %153 = vector.broadcast %152 : vector<32x1xi1> to vector<32x64xi1>
    %154 = vector.broadcast %cst_53 : f32 to vector<32x64xf32>
    %155 = arith.select %153, %151, %154 : vector<32x64xi1>, vector<32x64xf32>
    %156 = arith.truncf %155 : vector<32x64xf32> to vector<32x64xbf16>
    %157 = arith.truncf %115 : vector<32x64xf32> to vector<32x64xbf16>
    %c31_i32 = arith.constant 31 : i32
    %158 = tpu.dynamic_rotate %115 by %c31_i32 dim 0 : vector<32x64xf32>, i32 -> vector<32x64xf32>
    %cst_54 = arith.constant 0.000000e+00 : f32
    %159 = vector.shape_cast %126 : vector<32x1xi1> to vector<32x1xi1>
    %160 = vector.broadcast %159 : vector<32x1xi1> to vector<32x64xi1>
    %161 = vector.broadcast %cst_54 : f32 to vector<32x64xf32>
    %162 = arith.select %160, %158, %161 : vector<32x64xi1>, vector<32x64xf32>
    %163 = arith.truncf %162 : vector<32x64xf32> to vector<32x64xbf16>
    %c29_i32 = arith.constant 29 : i32
    %164 = tpu.dynamic_rotate %115 by %c29_i32 dim 0 : vector<32x64xf32>, i32 -> vector<32x64xf32>
    %165 = arith.andi %130, %124 : vector<32x1xi1>
    %cst_55 = arith.constant 0.000000e+00 : f32
    %166 = vector.shape_cast %165 : vector<32x1xi1> to vector<32x1xi1>
    %167 = vector.broadcast %166 : vector<32x1xi1> to vector<32x64xi1>
    %168 = vector.broadcast %cst_55 : f32 to vector<32x64xf32>
    %169 = arith.select %167, %164, %168 : vector<32x64xi1>, vector<32x64xf32>
    %170 = arith.truncf %169 : vector<32x64xf32> to vector<32x64xbf16>
    %c28_i32 = arith.constant 28 : i32
    %171 = tpu.dynamic_rotate %115 by %c28_i32 dim 0 : vector<32x64xf32>, i32 -> vector<32x64xf32>
    %cst_56 = arith.constant 0.000000e+00 : f32
    %172 = vector.shape_cast %130 : vector<32x1xi1> to vector<32x1xi1>
    %173 = vector.broadcast %172 : vector<32x1xi1> to vector<32x64xi1>
    %174 = vector.broadcast %cst_56 : f32 to vector<32x64xf32>
    %175 = arith.select %173, %171, %174 : vector<32x64xi1>, vector<32x64xf32>
    %176 = arith.truncf %175 : vector<32x64xf32> to vector<32x64xbf16>
    %c27_i32 = arith.constant 27 : i32
    %177 = tpu.dynamic_rotate %115 by %c27_i32 dim 0 : vector<32x64xf32>, i32 -> vector<32x64xf32>
    %178 = arith.andi %130, %126 : vector<32x1xi1>
    %cst_57 = arith.constant 0.000000e+00 : f32
    %179 = vector.shape_cast %178 : vector<32x1xi1> to vector<32x1xi1>
    %180 = vector.broadcast %179 : vector<32x1xi1> to vector<32x64xi1>
    %181 = vector.broadcast %cst_57 : f32 to vector<32x64xf32>
    %182 = arith.select %180, %177, %181 : vector<32x64xi1>, vector<32x64xf32>
    %183 = arith.truncf %182 : vector<32x64xf32> to vector<32x64xbf16>
    %184 = tpu.concatenate %137, %143, %150, %156, %157, %163, %170, %176, %183 in 1 : vector<32x64xbf16>, vector<32x64xbf16>, vector<32x64xbf16>, vector<32x64xbf16>, vector<32x64xbf16>, vector<32x64xbf16>, vector<32x64xbf16>, vector<32x64xbf16>, vector<32x64xbf16> -> vector<32x576xbf16>
    %c0_58 = arith.constant 0 : index
    %c0_59 = arith.constant 0 : index
    %185 = vector.load %arg7[%c0_58, %c0_59] : memref<576x128xbf16, #tpu.memory_space<vmem>>, vector<576x128xbf16>
    %cst_60 = arith.constant dense<0.000000e+00> : vector<32x128xf32>
    %186 = tpu.matmul %184, %185, %cst_60 {dimension_numbers = #tpu.dot_dimension_numbers<[1], [0], [0], [1], [0, 0, 1, 1], [], []>} : vector<32x576xbf16>, vector<576x128xbf16>, vector<32x128xf32> -> vector<32x128xf32>
    %c0_61 = arith.constant 0 : index
    %c0_62 = arith.constant 0 : index
    %187 = vector.load %arg8[%c0_61, %c0_62] : memref<1x128xf32, #tpu.memory_space<vmem>>, vector<1x128xf32>
    %188 = vector.broadcast %187 : vector<1x128xf32> to vector<32x128xf32>
    %189 = arith.addf %186, %188 : vector<32x128xf32>
    %cst_63 = arith.constant 0.000000e+00 : f32
    %190 = vector.broadcast %cst_63 : f32 to vector<32x128xf32>
    %191 = arith.maximumf %189, %190 : vector<32x128xf32>
    %c31_i32_64 = arith.constant 31 : i32
    %192 = tpu.dynamic_rotate %191 by %c31_i32_64 dim 0 : vector<32x128xf32>, i32 -> vector<32x128xf32>
    %193 = arith.maximumf %191, %192 : vector<32x128xf32>
    %c28_i32_65 = arith.constant 28 : i32
    %194 = tpu.dynamic_rotate %193 by %c28_i32_65 dim 0 : vector<32x128xf32>, i32 -> vector<32x128xf32>
    %195 = arith.maximumf %193, %194 : vector<32x128xf32>
    %196 = arith.truncf %195 : vector<32x128xf32> to vector<32x128xbf16>
    %c0_66 = arith.constant 0 : index
    %c0_67 = arith.constant 0 : index
    %197 = vector.load %arg9[%c0_66, %c0_67] : memref<4x16xbf16, #tpu.memory_space<vmem>>, vector<4x16xbf16>
    %198 = vector.extract_strided_slice %196 {offsets = [0, 0], sizes = [16, 128], strides = [1, 1]} : vector<32x128xbf16> to vector<16x128xbf16>
    %cst_68 = arith.constant dense<0.000000e+00> : vector<4x128xf32>
    %199 = tpu.matmul %197, %198, %cst_68 {dimension_numbers = #tpu.dot_dimension_numbers<[1], [0], [0], [1], [0, 0, 1, 1], [], []>} : vector<4x16xbf16>, vector<16x128xbf16>, vector<4x128xf32> -> vector<4x128xf32>
    %c0_69 = arith.constant 0 : index
    %c0_70 = arith.constant 0 : index
    %200 = vector.load %arg9[%c0_69, %c0_70] : memref<4x16xbf16, #tpu.memory_space<vmem>>, vector<4x16xbf16>
    %201 = vector.extract_strided_slice %196 {offsets = [16, 0], sizes = [16, 128], strides = [1, 1]} : vector<32x128xbf16> to vector<16x128xbf16>
    %cst_71 = arith.constant dense<0.000000e+00> : vector<4x128xf32>
    %202 = tpu.matmul %200, %201, %cst_71 {dimension_numbers = #tpu.dot_dimension_numbers<[1], [0], [0], [1], [0, 0, 1, 1], [], []>} : vector<4x16xbf16>, vector<16x128xbf16>, vector<4x128xf32> -> vector<4x128xf32>
    %203 = tpu.concatenate %199, %202 in 0 : vector<4x128xf32>, vector<4x128xf32> -> vector<8x128xf32>
    %c0_i32_72 = arith.constant 0 : i32
    %204 = tpu.memref_slice %arg30[%c0_i32_72] : memref<4x!tpu.dma_semaphore, #tpu.memory_space<semaphore_mem>> -> memref<1x!tpu.dma_semaphore, #tpu.memory_space<semaphore_mem>>
    %205 = tpu.memref_squeeze %204 : memref<1x!tpu.dma_semaphore, #tpu.memory_space<semaphore_mem>> -> memref<!tpu.dma_semaphore, #tpu.memory_space<semaphore_mem>>
    tpu.wait_dma2 semaphore(%205 : memref<!tpu.dma_semaphore, #tpu.memory_space<semaphore_mem>>) src(%arg20 : memref<1152x256xbf16, #tpu.memory_space<any>>) dst(%arg26 : memref<1152x256xbf16, #tpu.memory_space<vmem>>)
    %206 = tpu.iota {dimensions = array<i32: 0>} : vector<8x1xi32>
    %c1_i32_73 = arith.constant 1 : i32
    %207 = vector.broadcast %c1_i32_73 : i32 to vector<8x1xi32>
    %208 = arith.andi %206, %207 : vector<8x1xi32>
    %c1_i32_74 = arith.constant 1 : i32
    %209 = vector.broadcast %c1_i32_74 : i32 to vector<8x1xi32>
    %210 = arith.shrsi %206, %209 : vector<8x1xi32>
    %c1_i32_75 = arith.constant 1 : i32
    %211 = vector.broadcast %c1_i32_75 : i32 to vector<8x1xi32>
    %212 = arith.andi %210, %211 : vector<8x1xi32>
    %c1_i32_76 = arith.constant 1 : i32
    %213 = vector.broadcast %c1_i32_76 : i32 to vector<8x1xi32>
    %214 = arith.cmpi sge, %208, %213 : vector<8x1xi32>
    %c0_i32_77 = arith.constant 0 : i32
    %215 = vector.broadcast %c0_i32_77 : i32 to vector<8x1xi32>
    %216 = arith.cmpi sle, %208, %215 : vector<8x1xi32>
    %c1_i32_78 = arith.constant 1 : i32
    %217 = vector.broadcast %c1_i32_78 : i32 to vector<8x1xi32>
    %218 = arith.cmpi sge, %212, %217 : vector<8x1xi32>
    %c0_i32_79 = arith.constant 0 : i32
    %219 = vector.broadcast %c0_i32_79 : i32 to vector<8x1xi32>
    %220 = arith.cmpi sle, %212, %219 : vector<8x1xi32>
    %c3_i32_80 = arith.constant 3 : i32
    %221 = tpu.dynamic_rotate %203 by %c3_i32_80 dim 0 : vector<8x128xf32>, i32 -> vector<8x128xf32>
    %222 = arith.andi %218, %214 : vector<8x1xi1>
    %cst_81 = arith.constant 0.000000e+00 : f32
    %223 = vector.shape_cast %222 : vector<8x1xi1> to vector<8x1xi1>
    %224 = vector.broadcast %223 : vector<8x1xi1> to vector<8x128xi1>
    %225 = vector.broadcast %cst_81 : f32 to vector<8x128xf32>
    %226 = arith.select %224, %221, %225 : vector<8x128xi1>, vector<8x128xf32>
    %227 = arith.truncf %226 : vector<8x128xf32> to vector<8x128xbf16>
    %c2_i32_82 = arith.constant 2 : i32
    %228 = tpu.dynamic_rotate %203 by %c2_i32_82 dim 0 : vector<8x128xf32>, i32 -> vector<8x128xf32>
    %cst_83 = arith.constant 0.000000e+00 : f32
    %229 = vector.shape_cast %218 : vector<8x1xi1> to vector<8x1xi1>
    %230 = vector.broadcast %229 : vector<8x1xi1> to vector<8x128xi1>
    %231 = vector.broadcast %cst_83 : f32 to vector<8x128xf32>
    %232 = arith.select %230, %228, %231 : vector<8x128xi1>, vector<8x128xf32>
    %233 = arith.truncf %232 : vector<8x128xf32> to vector<8x128xbf16>
    %c1_i32_84 = arith.constant 1 : i32
    %234 = tpu.dynamic_rotate %203 by %c1_i32_84 dim 0 : vector<8x128xf32>, i32 -> vector<8x128xf32>
    %235 = arith.andi %218, %216 : vector<8x1xi1>
    %cst_85 = arith.constant 0.000000e+00 : f32
    %236 = vector.shape_cast %235 : vector<8x1xi1> to vector<8x1xi1>
    %237 = vector.broadcast %236 : vector<8x1xi1> to vector<8x128xi1>
    %238 = vector.broadcast %cst_85 : f32 to vector<8x128xf32>
    %239 = arith.select %237, %234, %238 : vector<8x128xi1>, vector<8x128xf32>
    %240 = arith.truncf %239 : vector<8x128xf32> to vector<8x128xbf16>
    %c1_i32_86 = arith.constant 1 : i32
    %241 = tpu.dynamic_rotate %203 by %c1_i32_86 dim 0 : vector<8x128xf32>, i32 -> vector<8x128xf32>
    %cst_87 = arith.constant 0.000000e+00 : f32
    %242 = vector.shape_cast %214 : vector<8x1xi1> to vector<8x1xi1>
    %243 = vector.broadcast %242 : vector<8x1xi1> to vector<8x128xi1>
    %244 = vector.broadcast %cst_87 : f32 to vector<8x128xf32>
    %245 = arith.select %243, %241, %244 : vector<8x128xi1>, vector<8x128xf32>
    %246 = arith.truncf %245 : vector<8x128xf32> to vector<8x128xbf16>
    %247 = arith.truncf %203 : vector<8x128xf32> to vector<8x128xbf16>
    %c7_i32_88 = arith.constant 7 : i32
    %248 = tpu.dynamic_rotate %203 by %c7_i32_88 dim 0 : vector<8x128xf32>, i32 -> vector<8x128xf32>
    %cst_89 = arith.constant 0.000000e+00 : f32
    %249 = vector.shape_cast %216 : vector<8x1xi1> to vector<8x1xi1>
    %250 = vector.broadcast %249 : vector<8x1xi1> to vector<8x128xi1>
    %251 = vector.broadcast %cst_89 : f32 to vector<8x128xf32>
    %252 = arith.select %250, %248, %251 : vector<8x128xi1>, vector<8x128xf32>
    %253 = arith.truncf %252 : vector<8x128xf32> to vector<8x128xbf16>
    %c7_i32_90 = arith.constant 7 : i32
    %254 = tpu.dynamic_rotate %203 by %c7_i32_90 dim 0 : vector<8x128xf32>, i32 -> vector<8x128xf32>
    %255 = arith.andi %220, %214 : vector<8x1xi1>
    %cst_91 = arith.constant 0.000000e+00 : f32
    %256 = vector.shape_cast %255 : vector<8x1xi1> to vector<8x1xi1>
    %257 = vector.broadcast %256 : vector<8x1xi1> to vector<8x128xi1>
    %258 = vector.broadcast %cst_91 : f32 to vector<8x128xf32>
    %259 = arith.select %257, %254, %258 : vector<8x128xi1>, vector<8x128xf32>
    %260 = arith.truncf %259 : vector<8x128xf32> to vector<8x128xbf16>
    %c6_i32_92 = arith.constant 6 : i32
    %261 = tpu.dynamic_rotate %203 by %c6_i32_92 dim 0 : vector<8x128xf32>, i32 -> vector<8x128xf32>
    %cst_93 = arith.constant 0.000000e+00 : f32
    %262 = vector.shape_cast %220 : vector<8x1xi1> to vector<8x1xi1>
    %263 = vector.broadcast %262 : vector<8x1xi1> to vector<8x128xi1>
    %264 = vector.broadcast %cst_93 : f32 to vector<8x128xf32>
    %265 = arith.select %263, %261, %264 : vector<8x128xi1>, vector<8x128xf32>
    %266 = arith.truncf %265 : vector<8x128xf32> to vector<8x128xbf16>
    %c5_i32_94 = arith.constant 5 : i32
    %267 = tpu.dynamic_rotate %203 by %c5_i32_94 dim 0 : vector<8x128xf32>, i32 -> vector<8x128xf32>
    %268 = arith.andi %220, %216 : vector<8x1xi1>
    %cst_95 = arith.constant 0.000000e+00 : f32
    %269 = vector.shape_cast %268 : vector<8x1xi1> to vector<8x1xi1>
    %270 = vector.broadcast %269 : vector<8x1xi1> to vector<8x128xi1>
    %271 = vector.broadcast %cst_95 : f32 to vector<8x128xf32>
    %272 = arith.select %270, %267, %271 : vector<8x128xi1>, vector<8x128xf32>
    %273 = arith.truncf %272 : vector<8x128xf32> to vector<8x128xbf16>
    %274 = tpu.concatenate %227, %233, %240, %246, %247, %253, %260, %266, %273 in 1 : vector<8x128xbf16>, vector<8x128xbf16>, vector<8x128xbf16>, vector<8x128xbf16>, vector<8x128xbf16>, vector<8x128xbf16>, vector<8x128xbf16>, vector<8x128xbf16>, vector<8x128xbf16> -> vector<8x1152xbf16>
    %c0_96 = arith.constant 0 : index
    %c0_97 = arith.constant 0 : index
    %275 = vector.load %arg26[%c0_96, %c0_97] : memref<1152x256xbf16, #tpu.memory_space<vmem>>, vector<1152x256xbf16>
    %cst_98 = arith.constant dense<0.000000e+00> : vector<8x256xf32>
    %276 = tpu.matmul %274, %275, %cst_98 {dimension_numbers = #tpu.dot_dimension_numbers<[1], [0], [0], [1], [0, 0, 1, 1], [], []>} : vector<8x1152xbf16>, vector<1152x256xbf16>, vector<8x256xf32> -> vector<8x256xf32>
    %c0_99 = arith.constant 0 : index
    %c0_100 = arith.constant 0 : index
    %277 = vector.load %arg10[%c0_99, %c0_100] : memref<1x256xf32, #tpu.memory_space<vmem>>, vector<1x256xf32>
    %278 = vector.broadcast %277 : vector<1x256xf32> to vector<8x256xf32>
    %279 = arith.addf %276, %278 : vector<8x256xf32>
    %cst_101 = arith.constant 0.000000e+00 : f32
    %280 = vector.broadcast %cst_101 : f32 to vector<8x256xf32>
    %281 = arith.maximumf %279, %280 : vector<8x256xf32>
    %c7_i32_102 = arith.constant 7 : i32
    %282 = tpu.dynamic_rotate %281 by %c7_i32_102 dim 0 : vector<8x256xf32>, i32 -> vector<8x256xf32>
    %283 = arith.maximumf %281, %282 : vector<8x256xf32>
    %c6_i32_103 = arith.constant 6 : i32
    %284 = tpu.dynamic_rotate %283 by %c6_i32_103 dim 0 : vector<8x256xf32>, i32 -> vector<8x256xf32>
    %285 = arith.maximumf %283, %284 : vector<8x256xf32>
    %286 = arith.truncf %285 : vector<8x256xf32> to vector<8x256xbf16>
    %c0_104 = arith.constant 0 : index
    %c0_105 = arith.constant 0 : index
    %287 = vector.load %arg11[%c0_104, %c0_105] : memref<1x4xbf16, #tpu.memory_space<vmem>>, vector<1x4xbf16>
    %288 = vector.extract_strided_slice %286 {offsets = [0, 0], sizes = [4, 256], strides = [1, 1]} : vector<8x256xbf16> to vector<4x256xbf16>
    %cst_106 = arith.constant dense<0.000000e+00> : vector<1x256xf32>
    %289 = tpu.matmul %287, %288, %cst_106 {dimension_numbers = #tpu.dot_dimension_numbers<[1], [0], [0], [1], [0, 0, 1, 1], [], []>} : vector<1x4xbf16>, vector<4x256xbf16>, vector<1x256xf32> -> vector<1x256xf32>
    %c0_107 = arith.constant 0 : index
    %c0_108 = arith.constant 0 : index
    %290 = vector.load %arg11[%c0_107, %c0_108] : memref<1x4xbf16, #tpu.memory_space<vmem>>, vector<1x4xbf16>
    %291 = vector.extract_strided_slice %286 {offsets = [4, 0], sizes = [4, 256], strides = [1, 1]} : vector<8x256xbf16> to vector<4x256xbf16>
    %cst_109 = arith.constant dense<0.000000e+00> : vector<1x256xf32>
    %292 = tpu.matmul %290, %291, %cst_109 {dimension_numbers = #tpu.dot_dimension_numbers<[1], [0], [0], [1], [0, 0, 1, 1], [], []>} : vector<1x4xbf16>, vector<4x256xbf16>, vector<1x256xf32> -> vector<1x256xf32>
    %293 = tpu.concatenate %289, %292 in 0 : vector<1x256xf32>, vector<1x256xf32> -> vector<2x256xf32>
    %c1_i32_110 = arith.constant 1 : i32
    %294 = tpu.memref_slice %arg30[%c1_i32_110] : memref<4x!tpu.dma_semaphore, #tpu.memory_space<semaphore_mem>> -> memref<1x!tpu.dma_semaphore, #tpu.memory_space<semaphore_mem>>
    %295 = tpu.memref_squeeze %294 : memref<1x!tpu.dma_semaphore, #tpu.memory_space<semaphore_mem>> -> memref<!tpu.dma_semaphore, #tpu.memory_space<semaphore_mem>>
    tpu.wait_dma2 semaphore(%295 : memref<!tpu.dma_semaphore, #tpu.memory_space<semaphore_mem>>) src(%arg21 : memref<256x512xbf16, #tpu.memory_space<any>>) dst(%arg27 : memref<256x512xbf16, #tpu.memory_space<vmem>>)
    %296 = arith.truncf %293 : vector<2x256xf32> to vector<2x256xbf16>
    %c0_111 = arith.constant 0 : index
    %c0_112 = arith.constant 0 : index
    %297 = vector.load %arg27[%c0_111, %c0_112] : memref<256x512xbf16, #tpu.memory_space<vmem>>, vector<256x512xbf16>
    %cst_113 = arith.constant dense<0.000000e+00> : vector<2x512xf32>
    %298 = tpu.matmul %296, %297, %cst_113 {dimension_numbers = #tpu.dot_dimension_numbers<[1], [0], [0], [1], [0, 0, 1, 1], [], []>} : vector<2x256xbf16>, vector<256x512xbf16>, vector<2x512xf32> -> vector<2x512xf32>
    %c0_114 = arith.constant 0 : index
    %c0_115 = arith.constant 0 : index
    %299 = vector.load %arg12[%c0_114, %c0_115] : memref<1x512xf32, #tpu.memory_space<vmem>>, vector<1x512xf32>
    %300 = vector.broadcast %299 : vector<1x512xf32> to vector<2x512xf32>
    %301 = arith.addf %298, %300 : vector<2x512xf32>
    %cst_116 = arith.constant 0.000000e+00 : f32
    %302 = vector.broadcast %cst_116 : f32 to vector<2x512xf32>
    %303 = arith.maximumf %301, %302 : vector<2x512xf32>
    %304 = arith.truncf %303 : vector<2x512xf32> to vector<2x512xbf16>
    %c2_i32_117 = arith.constant 2 : i32
    %305 = tpu.memref_slice %arg30[%c2_i32_117] : memref<4x!tpu.dma_semaphore, #tpu.memory_space<semaphore_mem>> -> memref<1x!tpu.dma_semaphore, #tpu.memory_space<semaphore_mem>>
    %306 = tpu.memref_squeeze %305 : memref<1x!tpu.dma_semaphore, #tpu.memory_space<semaphore_mem>> -> memref<!tpu.dma_semaphore, #tpu.memory_space<semaphore_mem>>
    tpu.wait_dma2 semaphore(%306 : memref<!tpu.dma_semaphore, #tpu.memory_space<semaphore_mem>>) src(%arg22 : memref<512x1024xbf16, #tpu.memory_space<any>>) dst(%arg28 : memref<512x1024xbf16, #tpu.memory_space<vmem>>)
    %c0_118 = arith.constant 0 : index
    %c0_119 = arith.constant 0 : index
    %307 = vector.load %arg28[%c0_118, %c0_119] : memref<512x1024xbf16, #tpu.memory_space<vmem>>, vector<512x1024xbf16>
    %cst_120 = arith.constant dense<0.000000e+00> : vector<2x1024xf32>
    %308 = tpu.matmul %304, %307, %cst_120 {dimension_numbers = #tpu.dot_dimension_numbers<[1], [0], [0], [1], [0, 0, 1, 1], [], []>} : vector<2x512xbf16>, vector<512x1024xbf16>, vector<2x1024xf32> -> vector<2x1024xf32>
    %c0_121 = arith.constant 0 : index
    %c0_122 = arith.constant 0 : index
    %309 = vector.load %arg13[%c0_121, %c0_122] : memref<1x1024xf32, #tpu.memory_space<vmem>>, vector<1x1024xf32>
    %310 = vector.broadcast %309 : vector<1x1024xf32> to vector<2x1024xf32>
    %311 = arith.addf %308, %310 : vector<2x1024xf32>
    %cst_123 = arith.constant 0.000000e+00 : f32
    %312 = vector.broadcast %cst_123 : f32 to vector<2x1024xf32>
    %313 = arith.maximumf %311, %312 : vector<2x1024xf32>
    %314 = arith.truncf %313 : vector<2x1024xf32> to vector<2x1024xbf16>
    %c0_124 = arith.constant 0 : index
    %c0_125 = arith.constant 0 : index
    %315 = vector.load %arg14[%c0_124, %c0_125] : memref<1024x52xbf16, #tpu.memory_space<vmem>>, vector<1024x52xbf16>
    %cst_126 = arith.constant dense<0.000000e+00> : vector<2x52xf32>
    %316 = tpu.matmul %314, %315, %cst_126 {dimension_numbers = #tpu.dot_dimension_numbers<[1], [0], [0], [1], [0, 0, 1, 1], [], []>} : vector<2x1024xbf16>, vector<1024x52xbf16>, vector<2x52xf32> -> vector<2x52xf32>
    %c0_127 = arith.constant 0 : index
    %c0_128 = arith.constant 0 : index
    %317 = vector.load %arg15[%c0_127, %c0_128] : memref<1x52xf32, #tpu.memory_space<vmem>>, vector<1x52xf32>
    %318 = vector.broadcast %317 : vector<1x52xf32> to vector<2x52xf32>
    %319 = arith.addf %316, %318 : vector<2x52xf32>
    %320 = arith.truncf %319 : vector<2x52xf32> to vector<2x52xbf16>
    %c0_129 = arith.constant 0 : index
    %c0_130 = arith.constant 0 : index
    %321 = vector.load %arg16[%c0_129, %c0_130] : memref<52x3328xbf16, #tpu.memory_space<vmem>>, vector<52x3328xbf16>
    %cst_131 = arith.constant dense<0.000000e+00> : vector<2x3328xf32>
    %322 = tpu.matmul %320, %321, %cst_131 {dimension_numbers = #tpu.dot_dimension_numbers<[1], [0], [0], [1], [0, 0, 1, 1], [], []>} : vector<2x52xbf16>, vector<52x3328xbf16>, vector<2x3328xf32> -> vector<2x3328xf32>
    %c0_132 = arith.constant 0 : index
    %c0_133 = arith.constant 0 : index
    %323 = vector.load %arg24[%c0_132, %c0_133] : memref<2x3328xf32, #tpu.memory_space<vmem>>, vector<2x3328xf32>
    tpu.vector_store %arg24[%c0_132, %c0_133], %322 {strides = array<i32>} : memref<2x3328xf32, #tpu.memory_space<vmem>>, vector<2x3328xf32>,
    %c3_i32_134 = arith.constant 3 : i32
    %324 = tpu.memref_slice %arg30[%c3_i32_134] : memref<4x!tpu.dma_semaphore, #tpu.memory_space<semaphore_mem>> -> memref<1x!tpu.dma_semaphore, #tpu.memory_space<semaphore_mem>>
    %325 = tpu.memref_squeeze %324 : memref<1x!tpu.dma_semaphore, #tpu.memory_space<semaphore_mem>> -> memref<!tpu.dma_semaphore, #tpu.memory_space<semaphore_mem>>
    tpu.wait_dma2 semaphore(%325 : memref<!tpu.dma_semaphore, #tpu.memory_space<semaphore_mem>>) src(%arg23 : memref<512x512xbf16, #tpu.memory_space<any>>) dst(%arg29 : memref<512x512xbf16, #tpu.memory_space<vmem>>)
    %c0_135 = arith.constant 0 : index
    %c0_136 = arith.constant 0 : index
    %326 = vector.load %arg29[%c0_135, %c0_136] : memref<512x512xbf16, #tpu.memory_space<vmem>>, vector<512x512xbf16>
    %cst_137 = arith.constant dense<0.000000e+00> : vector<2x512xf32>
    %327 = tpu.matmul %304, %326, %cst_137 {dimension_numbers = #tpu.dot_dimension_numbers<[1], [0], [0], [1], [0, 0, 1, 1], [], []>} : vector<2x512xbf16>, vector<512x512xbf16>, vector<2x512xf32> -> vector<2x512xf32>
    %c0_138 = arith.constant 0 : index
    %c0_139 = arith.constant 0 : index
    %328 = vector.load %arg17[%c0_138, %c0_139] : memref<1x512xf32, #tpu.memory_space<vmem>>, vector<1x512xf32>
    %329 = vector.broadcast %328 : vector<1x512xf32> to vector<2x512xf32>
    %330 = arith.addf %327, %329 : vector<2x512xf32>
    %cst_140 = arith.constant 0.000000e+00 : f32
    %331 = vector.broadcast %cst_140 : f32 to vector<2x512xf32>
    %332 = arith.maximumf %330, %331 : vector<2x512xf32>
    %333 = arith.truncf %332 : vector<2x512xf32> to vector<2x512xbf16>
    %c0_141 = arith.constant 0 : index
    %c0_142 = arith.constant 0 : index
    %334 = vector.load %arg18[%c0_141, %c0_142] : memref<512x5xbf16, #tpu.memory_space<vmem>>, vector<512x5xbf16>
    %cst_143 = arith.constant dense<0.000000e+00> : vector<2x5xf32>
    %335 = tpu.matmul %333, %334, %cst_143 {dimension_numbers = #tpu.dot_dimension_numbers<[1], [0], [0], [1], [0, 0, 1, 1], [], []>} : vector<2x512xbf16>, vector<512x5xbf16>, vector<2x5xf32> -> vector<2x5xf32>
    %c0_144 = arith.constant 0 : index
    %c0_145 = arith.constant 0 : index
    %336 = vector.load %arg19[%c0_144, %c0_145] : memref<1x5xf32, #tpu.memory_space<vmem>>, vector<1x5xf32>
    %337 = vector.broadcast %336 : vector<1x5xf32> to vector<2x5xf32>
    %338 = arith.addf %335, %337 : vector<2x5xf32>
    %c0_146 = arith.constant 0 : index
    %c0_147 = arith.constant 0 : index
    %339 = vector.load %arg25[%c0_146, %c0_147] : memref<2x5xf32, #tpu.memory_space<vmem>>, vector<2x5xf32>
    tpu.vector_store %arg25[%c0_146, %c0_147], %338 {strides = array<i32>} : memref<2x5xf32, #tpu.memory_space<vmem>>, vector<2x5xf32>,
    return
  }
}

</mosaic_0001>

<bundles_post_ra>
// kernel: multitask_cnn_forward.1
= control target key start
LH: loop header
LB: loop body
LE: loop exit
PB: predicated region body
PF: predicated region fallthrough
CT: control target
= control target key end

     0   :  { %s15636_s30 = smov [#allocation2]   ;;  %s15637_s29 = smov [#allocation3]   ;;  %s20396_s0 = inlined_call_operand.vmem [shape: bf16[512,16], index: 0, kind: input, shape index: {}]   ;;  %s20397_s1 = inlined_call_operand.vmem [shape: bf16[16,32], index: 1, kind: input, shape index: {}]   ;;  %s20398_s2 = inlined_call_operand.vmem [shape: f32[1,32], index: 2, kind: input, shape index: {}]   ;;  %s20399_s3 = inlined_call_operand.vmem [shape: bf16[64,256], index: 3, kind: input, shape index: {}]   ;;  %s20400_s4 = inlined_call_operand.vmem [shape: bf16[288,64], index: 4, kind: input, shape index: {}]   ;;  %s20401_s5 = inlined_call_operand.vmem [shape: f32[1,64], index: 5, kind: input, shape index: {}]   ;;  %s20402_s6 = inlined_call_operand.vmem [shape: bf16[16,64], index: 6, kind: input, shape index: {}]   ;;  %s20403_s7 = inlined_call_operand.vmem [shape: bf16[576,128], index: 7, kind: input, shape index: {}]   ;;  %s20404_s8 = inlined_call_operand.vmem [shape: f32[1,128], index: 8, kind: input, shape index: {}]   ;;  %s20405_s9 = inlined_call_operand.vmem [shape: bf16[4,16], index: 9, kind: input, shape index: {}]   ;;  %s20406_s10 = inlined_call_operand.vmem [shape: f32[1,256], index: 10, kind: input, shape index: {}]   ;;  %s20407_s11 = inlined_call_operand.vmem [shape: bf16[1,4], index: 11, kind: input, shape index: {}]   ;;  %s20408_s12 = inlined_call_operand.vmem [shape: f32[1,512], index: 12, kind: input, shape index: {}]   ;;  %s20409_s13 = inlined_call_operand.vmem [shape: f32[1,1024], index: 13, kind: input, shape index: {}]   ;;  %s20410_s14 = inlined_call_operand.vmem [shape: bf16[1024,52], index: 14, kind: input, shape index: {}]   ;;  %s20411_s15 = inlined_call_operand.vmem [shape: f32[1,52], index: 15, kind: input, shape index: {}]   ;;  %s20412_s16 = inlined_call_operand.vmem [shape: bf16[52,3328], index: 16, kind: input, shape index: {}]   ;;  %s20413_s17 = inlined_call_operand.vmem [shape: f32[1,512], index: 17, kind: input, shape index: {}]   ;;  %s20414_s18 = inlined_call_operand.vmem [shape: bf16[512,5], index: 18, kind: input, shape index: {}]   ;;  %s20415_s19 = inlined_call_operand.vmem [shape: f32[1,5], index: 19, kind: input, shape index: {}]   ;;  %s20416_s20 = inlined_call_operand.hbm [shape: bf16[1152,256], index: 20, kind: input, shape index: {}]   ;;  %s20417_s24 = inlined_call_operand.vmem [shape: f32[2,3328], index: 24, kind: output, shape index: {0}]   ;;  %s20418_s25 = inlined_call_operand.vmem [shape: f32[2,5], index: 25, kind: output, shape index: {1}]   ;;  %s20419_s23 = inlined_call_operand.vmem [shape: bf16[512,512], index: 23, kind: input, shape index: {}]   ;;  %s20420_s21 = inlined_call_operand.hbm [shape: bf16[256,512], index: 21, kind: input, shape index: {}]   ;;  %s20421_s22 = inlined_call_operand.hbm [shape: bf16[512,1024], index: 22, kind: input, shape index: {}]  }
   0x1   :  { %20551 = sst [smem:[#allocation88_spill]] %s20396_s0  ;;  %v124_v0 = vld [vmem:[%s20419_s23] sm:$0xff]  ;;  %v126_v1 = vld [vmem:[%s20419_s23 + $0x8] sm:$0xff]  ;;  %v128_v2 = vld [vmem:[%s20419_s23 + $0x10] sm:$0xff]  ;;  %s93_s0 = sshll.u32 %s20420_s21, 4  ;;  %s94_s0 = int_to_ptr.hbm [resolvable:$true] %s93_s0 }
   0x2   :  { %20552 = sst [smem:[#allocation89_spill]] %s20397_s1  ;;  %125 = vst [vmem:[#allocation5] sm:$0xff] %v124_v0  ;;  %v130_v3 = vld [vmem:[%s20419_s23 + $0x18] sm:$0xff]  ;;  %v132_v4 = vld [vmem:[%s20419_s23 + $0x20] sm:$0xff]  ;;  %v134_v5 = vld [vmem:[%s20419_s23 + $0x28] sm:$0xff]  ;;  %s107_s27 = sshll.u32 %s20421_s22, 4  ;;  %s108_s27 = int_to_ptr.hbm [resolvable:$true] %s107_s27 }
   0x3   :  { %20553 = sst [smem:[#allocation90_spill]] %s20398_s2  ;;  %127 = vst [vmem:[#allocation5 + $0x8] sm:$0xff] %v126_v1  ;;  %s95_s2 = sshll.u32 %s15637_s29, 4  ;;  %v136_v6 = vld [vmem:[%s20419_s23 + $0x30] sm:$0xff]  ;;  %v138_v7 = vld [vmem:[%s20419_s23 + $0x38] sm:$0xff]  ;;  %v140_v8 = vld [vmem:[%s20419_s23 + $0x40] sm:$0xff]  ;;  %s96_s2 = int_to_ptr.vmem [resolvable:$true] %s95_s2 }
   0x4   :  { %20554 = sst [smem:[#allocation91_spill]] %s20399_s3  ;;  %129 = vst [vmem:[#allocation5 + $0x10] sm:$0xff] %v128_v2  ;;  %v142_v9 = vld [vmem:[%s20419_s23 + $0x48] sm:$0xff]  ;;  %v144_v10 = vld [vmem:[%s20419_s23 + $0x50] sm:$0xff]  ;;  %v146_v11 = vld [vmem:[%s20419_s23 + $0x58] sm:$0xff] }
   0x5   :  { %20555 = sst [smem:[#allocation92_spill]] %s20400_s4  ;;  %131 = vst [vmem:[#allocation5 + $0x18] sm:$0xff] %v130_v3  ;;  %v148_v12 = vld [vmem:[%s20419_s23 + $0x60] sm:$0xff]  ;;  %v150_v13 = vld [vmem:[%s20419_s23 + $0x68] sm:$0xff]  ;;  %v152_v14 = vld [vmem:[%s20419_s23 + $0x70] sm:$0xff] }
   0x6   :  { %20556 = sst [smem:[#allocation93_spill]] %s20401_s5  ;;  %133 = vst [vmem:[#allocation5 + $0x20] sm:$0xff] %v132_v4  ;;  %v154_v15 = vld [vmem:[%s20419_s23 + $0x78] sm:$0xff]  ;;  %v156_v16 = vld [vmem:[%s20419_s23 + $0x80] sm:$0xff]  ;;  %v158_v17 = vld [vmem:[%s20419_s23 + $0x88] sm:$0xff] }
   0x7   :  { %20557 = sst [smem:[#allocation94_spill]] %s20402_s6  ;;  %s79_s6 = sshll.u32 %s20416_s20, 4  ;;  %135 = vst [vmem:[#allocation5 + $0x28] sm:$0xff] %v134_v5  ;;  %v160_v18 = vld [vmem:[%s20419_s23 + $0x90] sm:$0xff]  ;;  %v162_v19 = vld [vmem:[%s20419_s23 + $0x98] sm:$0xff]  ;;  %v164_v20 = vld [vmem:[%s20419_s23 + $0xa0] sm:$0xff]  ;;  %s80_s6 = int_to_ptr.hbm [resolvable:$true] %s79_s6 }
   0x8   :  { %20558 = sst [smem:[#allocation95_spill]] %s20403_s7  ;;  %s81_s7 = sshll.u32 %s15636_s30, 4  ;;  %137 = vst [vmem:[#allocation5 + $0x30] sm:$0xff] %v136_v6  ;;  %v166_v21 = vld [vmem:[%s20419_s23 + $0xa8] sm:$0xff]  ;;  %v168_v22 = vld [vmem:[%s20419_s23 + $0xb0] sm:$0xff]  ;;  %v170_v23 = vld [vmem:[%s20419_s23 + $0xb8] sm:$0xff]  ;;  %s82_s7 = int_to_ptr.vmem [resolvable:$true] %s81_s7 }
   0x9   :  { %20559 = sst [smem:[#allocation96_spill]] %s20404_s8  ;;  %s15638_s20 = smov [#allocation4]   ;;  %139 = vst [vmem:[#allocation5 + $0x38] sm:$0xff] %v138_v7  ;;  %v172_v24 = vld [vmem:[%s20419_s23 + $0xc0] sm:$0xff]  ;;  %v174_v25 = vld [vmem:[%s20419_s23 + $0xc8] sm:$0xff]  ;;  %v176_v26 = vld [vmem:[%s20419_s23 + $0xd0] sm:$0xff] }
   0xa   :  { %20560 = sst [smem:[#allocation97_spill]] %s20405_s9  ;;  %141 = vst [vmem:[#allocation5 + $0x40] sm:$0xff] %v140_v8  ;;  %v178_v27 = vld [vmem:[%s20419_s23 + $0xd8] sm:$0xff]  ;;  %v180_v28 = vld [vmem:[%s20419_s23 + $0xe0] sm:$0xff]  ;;  %v182_v29 = vld [vmem:[%s20419_s23 + $0xe8] sm:$0xff] }
   0xb   :  { %20561 = sst [smem:[#allocation98_spill]] %s20415_s19  ;;  %s109_s19 = sshll.u32 %s15638_s20, 4  ;;  %143 = vst [vmem:[#allocation5 + $0x48] sm:$0xff] %v142_v9  ;;  %v184_v30 = vld [vmem:[%s20419_s23 + $0xf0] sm:$0xff]  ;;  %v186_v31 = vld [vmem:[%s20419_s23 + $0xf8] sm:$0xff]  ;;  %v188_v32 = vld [vmem:[%s20419_s23 + $0x100] sm:$0xff]  ;;  %s110_s19 = int_to_ptr.vmem [resolvable:$true] %s109_s19 }
   0xc   :  { %84 = dma.hbm_to_vmem [thread:$0]  %s80_s6, 18432, %s82_s7, [#allocation6]  ;;  %145 = vst [vmem:[#allocation5 + $0x50] sm:$0xff] %v144_v10  ;;  %v190_v33 = vld [vmem:[%s20419_s23 + $0x108] sm:$0xff]  ;;  %v192_v34 = vld [vmem:[%s20419_s23 + $0x110] sm:$0xff]  ;;  %v194_v35 = vld [vmem:[%s20419_s23 + $0x118] sm:$0xff] }
   0xd   :  { %98 = dma.hbm_to_vmem [thread:$0]  %s94_s0, 8192, %s96_s2, [#allocation6 + $0x1]  ;;  %147 = vst [vmem:[#allocation5 + $0x58] sm:$0xff] %v146_v11  ;;  %v196_v36 = vld [vmem:[%s20419_s23 + $0x120] sm:$0xff]  ;;  %v198_v37 = vld [vmem:[%s20419_s23 + $0x128] sm:$0xff]  ;;  %v200_v38 = vld [vmem:[%s20419_s23 + $0x130] sm:$0xff] }
   0xe   :  { %112 = dma.hbm_to_vmem [thread:$0]  %s108_s27, 32768, %s110_s19, [#allocation6 + $0x2]  ;;  %149 = vst [vmem:[#allocation5 + $0x60] sm:$0xff] %v148_v12  ;;  %v202_v39 = vld [vmem:[%s20419_s23 + $0x138] sm:$0xff]  ;;  %v204_v40 = vld [vmem:[%s20419_s23 + $0x140] sm:$0xff]  ;;  %v206_v41 = vld [vmem:[%s20419_s23 + $0x148] sm:$0xff] }
   0xf   :  { %151 = vst [vmem:[#allocation5 + $0x68] sm:$0xff] %v150_v13  ;;  %v208_v42 = vld [vmem:[%s20419_s23 + $0x150] sm:$0xff]  ;;  %v210_v43 = vld [vmem:[%s20419_s23 + $0x158] sm:$0xff]  ;;  %v212_v44 = vld [vmem:[%s20419_s23 + $0x160] sm:$0xff] }
  0x10   :  { %153 = vst [vmem:[#allocation5 + $0x70] sm:$0xff] %v152_v14  ;;  %v214_v45 = vld [vmem:[%s20419_s23 + $0x168] sm:$0xff]  ;;  %v216_v46 = vld [vmem:[%s20419_s23 + $0x170] sm:$0xff]  ;;  %v218_v47 = vld [vmem:[%s20419_s23 + $0x178] sm:$0xff] }
  0x11   :  { %155 = vst [vmem:[#allocation5 + $0x78] sm:$0xff] %v154_v15  ;;  %v220_v48 = vld [vmem:[%s20419_s23 + $0x180] sm:$0xff]  ;;  %v222_v49 = vld [vmem:[%s20419_s23 + $0x188] sm:$0xff]  ;;  %v224_v50 = vld [vmem:[%s20419_s23 + $0x190] sm:$0xff] }
  0x12   :  { %157 = vst [vmem:[#allocation5 + $0x80] sm:$0xff] %v156_v16  ;;  %v226_v51 = vld [vmem:[%s20419_s23 + $0x198] sm:$0xff]  ;;  %v228_v52 = vld [vmem:[%s20419_s23 + $0x1a0] sm:$0xff]  ;;  %v230_v53 = vld [vmem:[%s20419_s23 + $0x1a8] sm:$0xff] }
  0x13   :  { %159 = vst [vmem:[#allocation5 + $0x88] sm:$0xff] %v158_v17  ;;  %v232_v54 = vld [vmem:[%s20419_s23 + $0x1b0] sm:$0xff]  ;;  %v234_v55 = vld [vmem:[%s20419_s23 + $0x1b8] sm:$0xff]  ;;  %v236_v56 = vld [vmem:[%s20419_s23 + $0x1c0] sm:$0xff] }
  0x14   :  { %161 = vst [vmem:[#allocation5 + $0x90] sm:$0xff] %v160_v18  ;;  %v238_v57 = vld [vmem:[%s20419_s23 + $0x1c8] sm:$0xff]  ;;  %v240_v58 = vld [vmem:[%s20419_s23 + $0x1d0] sm:$0xff]  ;;  %v242_v59 = vld [vmem:[%s20419_s23 + $0x1d8] sm:$0xff] }
  0x15   :  { %163 = vst [vmem:[#allocation5 + $0x98] sm:$0xff] %v162_v19  ;;  %v244_v60 = vld [vmem:[%s20419_s23 + $0x1e0] sm:$0xff]  ;;  %v246_v61 = vld [vmem:[%s20419_s23 + $0x1e8] sm:$0xff]  ;;  %v248_v62 = vld [vmem:[%s20419_s23 + $0x1f0] sm:$0xff] }
  0x16   :  { %165 = vst [vmem:[#allocation5 + $0xa0] sm:$0xff] %v164_v20  ;;  %v250_v63 = vld [vmem:[%s20419_s23 + $0x1f8] sm:$0xff]  ;;  %v252_v0 = vld [vmem:[%s20419_s23 + $0x200] sm:$0xff]  ;;  %v254_v1 = vld [vmem:[%s20419_s23 + $0x208] sm:$0xff] }
  0x17   :  { %167 = vst [vmem:[#allocation5 + $0xa8] sm:$0xff] %v166_v21  ;;  %v256_v2 = vld [vmem:[%s20419_s23 + $0x210] sm:$0xff]  ;;  %v258_v3 = vld [vmem:[%s20419_s23 + $0x218] sm:$0xff]  ;;  %v260_v4 = vld [vmem:[%s20419_s23 + $0x220] sm:$0xff] }
  0x18   :  { %169 = vst [vmem:[#allocation5 + $0xb0] sm:$0xff] %v168_v22  ;;  %v262_v5 = vld [vmem:[%s20419_s23 + $0x228] sm:$0xff]  ;;  %v264_v6 = vld [vmem:[%s20419_s23 + $0x230] sm:$0xff]  ;;  %v266_v7 = vld [vmem:[%s20419_s23 + $0x238] sm:$0xff] }
  0x19   :  { %171 = vst [vmem:[#allocation5 + $0xb8] sm:$0xff] %v170_v23  ;;  %v268_v8 = vld [vmem:[%s20419_s23 + $0x240] sm:$0xff]  ;;  %v270_v9 = vld [vmem:[%s20419_s23 + $0x248] sm:$0xff]  ;;  %v272_v10 = vld [vmem:[%s20419_s23 + $0x250] sm:$0xff] }
  0x1a   :  { %173 = vst [vmem:[#allocation5 + $0xc0] sm:$0xff] %v172_v24  ;;  %v274_v11 = vld [vmem:[%s20419_s23 + $0x258] sm:$0xff]  ;;  %v276_v12 = vld [vmem:[%s20419_s23 + $0x260] sm:$0xff]  ;;  %v278_v13 = vld [vmem:[%s20419_s23 + $0x268] sm:$0xff] }
  0x1b   :  { %175 = vst [vmem:[#allocation5 + $0xc8] sm:$0xff] %v174_v25  ;;  %v280_v14 = vld [vmem:[%s20419_s23 + $0x270] sm:$0xff]  ;;  %v282_v15 = vld [vmem:[%s20419_s23 + $0x278] sm:$0xff]  ;;  %v284_v16 = vld [vmem:[%s20419_s23 + $0x280] sm:$0xff] }
  0x1c   :  { %177 = vst [vmem:[#allocation5 + $0xd0] sm:$0xff] %v176_v26  ;;  %v286_v17 = vld [vmem:[%s20419_s23 + $0x288] sm:$0xff]  ;;  %v288_v18 = vld [vmem:[%s20419_s23 + $0x290] sm:$0xff]  ;;  %v290_v19 = vld [vmem:[%s20419_s23 + $0x298] sm:$0xff] }
  0x1d   :  { %179 = vst [vmem:[#allocation5 + $0xd8] sm:$0xff] %v178_v27  ;;  %v292_v20 = vld [vmem:[%s20419_s23 + $0x2a0] sm:$0xff]  ;;  %v294_v21 = vld [vmem:[%s20419_s23 + $0x2a8] sm:$0xff]  ;;  %v296_v22 = vld [vmem:[%s20419_s23 + $0x2b0] sm:$0xff] }
  0x1e   :  { %181 = vst [vmem:[#allocation5 + $0xe0] sm:$0xff] %v180_v28  ;;  %v298_v23 = vld [vmem:[%s20419_s23 + $0x2b8] sm:$0xff]  ;;  %v300_v24 = vld [vmem:[%s20419_s23 + $0x2c0] sm:$0xff]  ;;  %v302_v25 = vld [vmem:[%s20419_s23 + $0x2c8] sm:$0xff] }
  0x1f   :  { %183 = vst [vmem:[#allocation5 + $0xe8] sm:$0xff] %v182_v29  ;;  %v304_v26 = vld [vmem:[%s20419_s23 + $0x2d0] sm:$0xff]  ;;  %v306_v27 = vld [vmem:[%s20419_s23 + $0x2d8] sm:$0xff]  ;;  %v308_v28 = vld [vmem:[%s20419_s23 + $0x2e0] sm:$0xff] }
  0x20   :  { %185 = vst [vmem:[#allocation5 + $0xf0] sm:$0xff] %v184_v30  ;;  %v310_v29 = vld [vmem:[%s20419_s23 + $0x2e8] sm:$0xff]  ;;  %v312_v30 = vld [vmem:[%s20419_s23 + $0x2f0] sm:$0xff] }
  0x21   :  { %187 = vst [vmem:[#allocation5 + $0xf8] sm:$0xff] %v186_v31  ;;  %v314_v31 = vld [vmem:[%s20419_s23 + $0x2f8] sm:$0xff] }
  0x22   :  { %189 = vst [vmem:[#allocation5 + $0x100] sm:$0xff] %v188_v32  ;;  %v316_v32 = vld [vmem:[%s20419_s23 + $0x300] sm:$0xff] }
  0x23   :  { %191 = vst [vmem:[#allocation5 + $0x108] sm:$0xff] %v190_v33  ;;  %v318_v33 = vld [vmem:[%s20419_s23 + $0x308] sm:$0xff] }
  0x24   :  { %193 = vst [vmem:[#allocation5 + $0x110] sm:$0xff] %v192_v34  ;;  %v320_v34 = vld [vmem:[%s20419_s23 + $0x310] sm:$0xff] }
  0x25   :  { %195 = vst [vmem:[#allocation5 + $0x118] sm:$0xff] %v194_v35  ;;  %v322_v35 = vld [vmem:[%s20419_s23 + $0x318] sm:$0xff] }
  0x26   :  { %197 = vst [vmem:[#allocation5 + $0x120] sm:$0xff] %v196_v36  ;;  %v324_v36 = vld [vmem:[%s20419_s23 + $0x320] sm:$0xff] }
  0x27   :  { %199 = vst [vmem:[#allocation5 + $0x128] sm:$0xff] %v198_v37  ;;  %v326_v37 = vld [vmem:[%s20419_s23 + $0x328] sm:$0xff] }
  0x28   :  { %201 = vst [vmem:[#allocation5 + $0x130] sm:$0xff] %v200_v38  ;;  %v328_v38 = vld [vmem:[%s20419_s23 + $0x330] sm:$0xff] }
  0x29   :  { %203 = vst [vmem:[#allocation5 + $0x138] sm:$0xff] %v202_v39  ;;  %v330_v39 = vld [vmem:[%s20419_s23 + $0x338] sm:$0xff] }
  0x2a   :  { %205 = vst [vmem:[#allocation5 + $0x140] sm:$0xff] %v204_v40  ;;  %v332_v40 = vld [vmem:[%s20419_s23 + $0x340] sm:$0xff] }
  0x2b   :  { %207 = vst [vmem:[#allocation5 + $0x148] sm:$0xff] %v206_v41  ;;  %v334_v41 = vld [vmem:[%s20419_s23 + $0x348] sm:$0xff] }
  0x2c   :  { %209 = vst [vmem:[#allocation5 + $0x150] sm:$0xff] %v208_v42  ;;  %v336_v42 = vld [vmem:[%s20419_s23 + $0x350] sm:$0xff] }
  0x2d   :  { %211 = vst [vmem:[#allocation5 + $0x158] sm:$0xff] %v210_v43  ;;  %v338_v43 = vld [vmem:[%s20419_s23 + $0x358] sm:$0xff] }
  0x2e   :  { %213 = vst [vmem:[#allocation5 + $0x160] sm:$0xff] %v212_v44  ;;  %v340_v44 = vld [vmem:[%s20419_s23 + $0x360] sm:$0xff] }
  0x2f   :  { %215 = vst [vmem:[#allocation5 + $0x168] sm:$0xff] %v214_v45  ;;  %v342_v45 = vld [vmem:[%s20419_s23 + $0x368] sm:$0xff] }
  0x30   :  { %217 = vst [vmem:[#allocation5 + $0x170] sm:$0xff] %v216_v46  ;;  %v344_v46 = vld [vmem:[%s20419_s23 + $0x370] sm:$0xff] }
  0x31   :  { %219 = vst [vmem:[#allocation5 + $0x178] sm:$0xff] %v218_v47  ;;  %v346_v47 = vld [vmem:[%s20419_s23 + $0x378] sm:$0xff] }
  0x32   :  { %221 = vst [vmem:[#allocation5 + $0x180] sm:$0xff] %v220_v48  ;;  %v348_v48 = vld [vmem:[%s20419_s23 + $0x380] sm:$0xff] }
  0x33   :  { %223 = vst [vmem:[#allocation5 + $0x188] sm:$0xff] %v222_v49  ;;  %v350_v49 = vld [vmem:[%s20419_s23 + $0x388] sm:$0xff] }
  0x34   :  { %225 = vst [vmem:[#allocation5 + $0x190] sm:$0xff] %v224_v50  ;;  %v352_v50 = vld [vmem:[%s20419_s23 + $0x390] sm:$0xff] }
  0x35   :  { %227 = vst [vmem:[#allocation5 + $0x198] sm:$0xff] %v226_v51  ;;  %v354_v51 = vld [vmem:[%s20419_s23 + $0x398] sm:$0xff] }
  0x36   :  { %229 = vst [vmem:[#allocation5 + $0x1a0] sm:$0xff] %v228_v52  ;;  %v356_v52 = vld [vmem:[%s20419_s23 + $0x3a0] sm:$0xff] }
  0x37   :  { %231 = vst [vmem:[#allocation5 + $0x1a8] sm:$0xff] %v230_v53  ;;  %v358_v53 = vld [vmem:[%s20419_s23 + $0x3a8] sm:$0xff] }
  0x38   :  { %233 = vst [vmem:[#allocation5 + $0x1b0] sm:$0xff] %v232_v54  ;;  %v360_v54 = vld [vmem:[%s20419_s23 + $0x3b0] sm:$0xff] }
  0x39   :  { %235 = vst [vmem:[#allocation5 + $0x1b8] sm:$0xff] %v234_v55  ;;  %v362_v55 = vld [vmem:[%s20419_s23 + $0x3b8] sm:$0xff] }
  0x3a   :  { %237 = vst [vmem:[#allocation5 + $0x1c0] sm:$0xff] %v236_v56  ;;  %v364_v56 = vld [vmem:[%s20419_s23 + $0x3c0] sm:$0xff] }
  0x3b   :  { %239 = vst [vmem:[#allocation5 + $0x1c8] sm:$0xff] %v238_v57  ;;  %v366_v57 = vld [vmem:[%s20419_s23 + $0x3c8] sm:$0xff] }
  0x3c   :  { %241 = vst [vmem:[#allocation5 + $0x1d0] sm:$0xff] %v240_v58  ;;  %v368_v58 = vld [vmem:[%s20419_s23 + $0x3d0] sm:$0xff] }
  0x3d   :  { %243 = vst [vmem:[#allocation5 + $0x1d8] sm:$0xff] %v242_v59  ;;  %v370_v59 = vld [vmem:[%s20419_s23 + $0x3d8] sm:$0xff] }
  0x3e   :  { %245 = vst [vmem:[#allocation5 + $0x1e0] sm:$0xff] %v244_v60  ;;  %v372_v60 = vld [vmem:[%s20419_s23 + $0x3e0] sm:$0xff] }
  0x3f   :  { %247 = vst [vmem:[#allocation5 + $0x1e8] sm:$0xff] %v246_v61  ;;  %v374_v61 = vld [vmem:[%s20419_s23 + $0x3e8] sm:$0xff] }
  0x40   :  { %249 = vst [vmem:[#allocation5 + $0x1f0] sm:$0xff] %v248_v62  ;;  %v376_v62 = vld [vmem:[%s20419_s23 + $0x3f0] sm:$0xff] }
  0x41   :  { %251 = vst [vmem:[#allocation5 + $0x1f8] sm:$0xff] %v250_v63  ;;  %v378_v63 = vld [vmem:[%s20419_s23 + $0x3f8] sm:$0xff] }
  0x42   :  { %253 = vst [vmem:[#allocation5 + $0x200] sm:$0xff] %v252_v0 }
  0x43   :  { %255 = vst [vmem:[#allocation5 + $0x208] sm:$0xff] %v254_v1 }
  0x44   :  { %257 = vst [vmem:[#allocation5 + $0x210] sm:$0xff] %v256_v2 }
  0x45   :  { %259 = vst [vmem:[#allocation5 + $0x218] sm:$0xff] %v258_v3 }
  0x46   :  { %261 = vst [vmem:[#allocation5 + $0x220] sm:$0xff] %v260_v4 }
  0x47   :  { %263 = vst [vmem:[#allocation5 + $0x228] sm:$0xff] %v262_v5 }
  0x48   :  { %265 = vst [vmem:[#allocation5 + $0x230] sm:$0xff] %v264_v6 }
  0x49   :  { %267 = vst [vmem:[#allocation5 + $0x238] sm:$0xff] %v266_v7 }
  0x4a   :  { %269 = vst [vmem:[#allocation5 + $0x240] sm:$0xff] %v268_v8 }
  0x4b   :  { %271 = vst [vmem:[#allocation5 + $0x248] sm:$0xff] %v270_v9 }
  0x4c   :  { %273 = vst [vmem:[#allocation5 + $0x250] sm:$0xff] %v272_v10 }
  0x4d   :  { %275 = vst [vmem:[#allocation5 + $0x258] sm:$0xff] %v274_v11 }
  0x4e   :  { %277 = vst [vmem:[#allocation5 + $0x260] sm:$0xff] %v276_v12 }
  0x4f   :  { %279 = vst [vmem:[#allocation5 + $0x268] sm:$0xff] %v278_v13 }
  0x50   :  { %281 = vst [vmem:[#allocation5 + $0x270] sm:$0xff] %v280_v14 }
  0x51   :  { %283 = vst [vmem:[#allocation5 + $0x278] sm:$0xff] %v282_v15 }
  0x52   :  { %285 = vst [vmem:[#allocation5 + $0x280] sm:$0xff] %v284_v16 }
  0x53   :  { %287 = vst [vmem:[#allocation5 + $0x288] sm:$0xff] %v286_v17 }
  0x54   :  { %289 = vst [vmem:[#allocation5 + $0x290] sm:$0xff] %v288_v18 }
  0x55   :  { %291 = vst [vmem:[#allocation5 + $0x298] sm:$0xff] %v290_v19 }
  0x56   :  { %293 = vst [vmem:[#allocation5 + $0x2a0] sm:$0xff] %v292_v20 }
  0x57   :  { %295 = vst [vmem:[#allocation5 + $0x2a8] sm:$0xff] %v294_v21 }
  0x58   :  { %297 = vst [vmem:[#allocation5 + $0x2b0] sm:$0xff] %v296_v22 }
  0x59   :  { %299 = vst [vmem:[#allocation5 + $0x2b8] sm:$0xff] %v298_v23 }
  0x5a   :  { %301 = vst [vmem:[#allocation5 + $0x2c0] sm:$0xff] %v300_v24 }
  0x5b   :  { %303 = vst [vmem:[#allocation5 + $0x2c8] sm:$0xff] %v302_v25 }
  0x5c   :  { %305 = vst [vmem:[#allocation5 + $0x2d0] sm:$0xff] %v304_v26 }
  0x5d   :  { %307 = vst [vmem:[#allocation5 + $0x2d8] sm:$0xff] %v306_v27 }
  0x5e   :  { %309 = vst [vmem:[#allocation5 + $0x2e0] sm:$0xff] %v308_v28 }
  0x5f   :  { %311 = vst [vmem:[#allocation5 + $0x2e8] sm:$0xff] %v310_v29 }
  0x60   :  { %313 = vst [vmem:[#allocation5 + $0x2f0] sm:$0xff] %v312_v30 }
  0x61   :  { %315 = vst [vmem:[#allocation5 + $0x2f8] sm:$0xff] %v314_v31 }
  0x62   :  { %317 = vst [vmem:[#allocation5 + $0x300] sm:$0xff] %v316_v32 }
  0x63   :  { %319 = vst [vmem:[#allocation5 + $0x308] sm:$0xff] %v318_v33 }
  0x64   :  { %321 = vst [vmem:[#allocation5 + $0x310] sm:$0xff] %v320_v34 }
  0x65   :  { %323 = vst [vmem:[#allocation5 + $0x318] sm:$0xff] %v322_v35 }
  0x66   :  { %325 = vst [vmem:[#allocation5 + $0x320] sm:$0xff] %v324_v36 }
  0x67   :  { %327 = vst [vmem:[#allocation5 + $0x328] sm:$0xff] %v326_v37 }
  0x68   :  { %329 = vst [vmem:[#allocation5 + $0x330] sm:$0xff] %v328_v38 }
  0x69   :  { %331 = vst [vmem:[#allocation5 + $0x338] sm:$0xff] %v330_v39 }
  0x6a   :  { %333 = vst [vmem:[#allocation5 + $0x340] sm:$0xff] %v332_v40 }
  0x6b   :  { %335 = vst [vmem:[#allocation5 + $0x348] sm:$0xff] %v334_v41 }
  0x6c   :  { %337 = vst [vmem:[#allocation5 + $0x350] sm:$0xff] %v336_v42 }
  0x6d   :  { %339 = vst [vmem:[#allocation5 + $0x358] sm:$0xff] %v338_v43 }
  0x6e   :  { %341 = vst [vmem:[#allocation5 + $0x360] sm:$0xff] %v340_v44 }
  0x6f   :  { %343 = vst [vmem:[#allocation5 + $0x368] sm:$0xff] %v342_v45 }
  0x70   :  { %345 = vst [vmem:[#allocation5 + $0x370] sm:$0xff] %v344_v46 }
  0x71   :  { %347 = vst [vmem:[#allocation5 + $0x378] sm:$0xff] %v346_v47 }
  0x72   :  { %349 = vst [vmem:[#allocation5 + $0x380] sm:$0xff] %v348_v48 }
  0x73   :  { %351 = vst [vmem:[#allocation5 + $0x388] sm:$0xff] %v350_v49 }
  0x74   :  { %353 = vst [vmem:[#allocation5 + $0x390] sm:$0xff] %v352_v50 }
  0x75   :  { %355 = vst [vmem:[#allocation5 + $0x398] sm:$0xff] %v354_v51 }
  0x76   :  { %357 = vst [vmem:[#allocation5 + $0x3a0] sm:$0xff] %v356_v52 }
  0x77   :  { %359 = vst [vmem:[#allocation5 + $0x3a8] sm:$0xff] %v358_v53 }
  0x78   :  { %361 = vst [vmem:[#allocation5 + $0x3b0] sm:$0xff] %v360_v54 }
  0x79   :  { %363 = vst [vmem:[#allocation5 + $0x3b8] sm:$0xff] %v362_v55 }
  0x7a   :  { %365 = vst [vmem:[#allocation5 + $0x3c0] sm:$0xff] %v364_v56 }
  0x7b   :  { %367 = vst [vmem:[#allocation5 + $0x3c8] sm:$0xff] %v366_v57 }
  0x7c   :  { %369 = vst [vmem:[#allocation5 + $0x3d0] sm:$0xff] %v368_v58 }
  0x7d   :  { %371 = vst [vmem:[#allocation5 + $0x3d8] sm:$0xff] %v370_v59 }
  0x7e   :  { %373 = vst [vmem:[#allocation5 + $0x3e0] sm:$0xff] %v372_v60 }
  0x7f   :  { %375 = vst [vmem:[#allocation5 + $0x3e8] sm:$0xff] %v374_v61 }
  0x80   :  { %377 = vst [vmem:[#allocation5 + $0x3f0] sm:$0xff] %v376_v62 }
  0x81   :  { %379 = vst [vmem:[#allocation5 + $0x3f8] sm:$0xff] %v378_v63 }
  0x82   :  { %385 = vsyncadd [#allocation6 + $0x3], 16384  ;;  %s20562_s21 = sld [smem:[#allocation89_spill]]  ;;  %vm20427_vm0 = vcmask 130048   ;;  %v1016_v12 = vlaneseq  ;;  %s15640_s30 = smov 96  }
  0x83   :  { %s20563_s4 = sld [smem:[#allocation88_spill]] }
  0x84   :  { %s20564_s27 = sld [smem:[#allocation90_spill]]  ;;  %v16210_v15 = vshrl.u32 %v1016_v12, 7 }
  0x85   :  { %s20565_s6 = sld [smem:[#allocation91_spill]] }
  0x86   :  { %vm20441_vm1 = vcmp.lt.s32.totalorder %v16210_v15, 7  ;;  %s20571_s29 = sld [smem:[#allocation92_spill]]  ;;  %vm20428_vm9 = vcmp.lt.s32.totalorder %v16210_v15, 1 }
  0x87   :  { %s20979_s2 = sld [smem:[#allocation93_spill]] }
  0x88   :  { %v14713_v0 = vld [vmem:[%s20562_s21] sm:$0xff]  ;;  %s20989_s7 = sld [smem:[#allocation94_spill]] }
  0x89   :  { %v14681_v1 = vld [vmem:[%s20563_s4] sm:$0xff]  ;;  %726 = vmatpush.bf16.msra.mxu0 %v14713_v0  ;;  %v14682_v2 = vld [vmem:[%s20563_s4 + $0x8] sm:$0xff]  ;;  %v14683_v3 = vld [vmem:[%s20563_s4 + $0x10] sm:$0xff]  ;;  %s21011_s21 = sld [smem:[#allocation95_spill]] }
  0x8a   :  { %v14684_v4 = vld [vmem:[%s20563_s4 + $0x18] sm:$0xff]  ;;  %v14685_v5 = vld [vmem:[%s20563_s4 + $0x20] sm:$0xff]  ;;  %v14686_v6 = vld [vmem:[%s20563_s4 + $0x28] sm:$0xff]  ;;  %s21054_s3 = sld [smem:[#allocation96_spill]] }
  0x8b   :  { %v14687_v7 = vld [vmem:[%s20563_s4 + $0x30] sm:$0xff]  ;;  %v14688_v8 = vld [vmem:[%s20563_s4 + $0x38] sm:$0xff]  ;;  %v14689_v9 = vld [vmem:[%s20563_s4 + $0x40] sm:$0xff]  ;;  %s21063_s1 = sld [smem:[#allocation97_spill]] }
  0x8c   :  { %11237 = vmatmul.msk.bf16.vlgmr.msra.gmra.mxu0 %vm20427_vm0, %v14681_v1  ;;  %v16206_v11 = vld [vmem:[%s20564_s27] ss:$0 sm:$0xff]  ;;  %v14690_v21 = vld [vmem:[%s20563_s4 + $0x48] sm:$0xff]  ;;  %v14691_v34 = vld [vmem:[%s20563_s4 + $0x50] sm:$0xff] }
  0x8d   :  { %v14692_v53 = vld [vmem:[%s20563_s4 + $0x58] sm:$0xff] }
  0x9c   :  { %11238 = vmatmul.msk.bf16.gmra.mxu0 %vm20427_vm0, %v14682_v2 }
  0xac   :  { %11239 = vmatmul.msk.bf16.gmra.mxu0 %vm20427_vm0, %v14683_v3 }
  0xbc   :  { %11240 = vmatmul.msk.bf16.gmra.mxu0 %vm20427_vm0, %v14684_v4 }
  0xcc   :  { %11241 = vmatmul.msk.bf16.gmra.mxu0 %vm20427_vm0, %v14685_v5 }
  0xdc   :  { %11242 = vmatmul.msk.bf16.gmra.mxu0 %vm20427_vm0, %v14686_v6 }
  0xec   :  { %11243 = vmatmul.msk.bf16.gmra.mxu0 %vm20427_vm0, %v14687_v7 }
  0xfc   :  { %11244 = vmatmul.msk.bf16.gmra.mxu0 %vm20427_vm0, %v14688_v8 }
 0x109   :  { %v728_v10 = vpop.f32.mrf.mxu0 }
 0x10a   :  { %v729_v13 = vadd.f32 %v16206_v11, %v728_v10 }
 0x10c   :  { %11245 = vmatmul.msk.bf16.gmra.mxu0 %vm20427_vm0, %v14689_v9  ;;  %v888_v16 = vmax.f32 %v729_v13, 0.0  ;;  %v14693_v9 = vld [vmem:[%s20563_s4 + $0x60] sm:$0xff] }
 0x10e   :  { %v16214_v19 = vrot.slane %v888_v16, 1 }
 0x111   :  { %v730_v14 = vpop.f32.mrf.mxu0 }
 0x112   :  { %v731_v17 = vadd.f32 %v16206_v11, %v730_v14 }
 0x114   :  { %v889_v18 = vmax.f32 %v731_v17, 0.0 }
 0x116   :  { %v953_v20 = vrot.slane %v889_v18, 1 }
 0x118   :  { %v1081_v22 = vsel %vm20441_vm1, %v16214_v19, %v953_v20 }
 0x119   :  { %v733_v23 = vpop.f32.mrf.mxu0  ;;  %v16222_v24 = vmax.f32 %v888_v16, %v1081_v22 }
 0x11a   :  { %v734_v25 = vadd.f32 %v16206_v11, %v733_v23 }
 0x11c   :  { %v890_v26 = vmax.f32 %v734_v25, 0.0  ;;  %11246 = vmatmul.msk.bf16.gmra.mxu0 %vm20427_vm0, %v14690_v21 }
 0x11e   :  { %v954_v27 = vrot.slane %v890_v26, 1 }
 0x120   :  { %v1080_v28 = vsel %vm20441_vm1, %v953_v20, %v954_v27 }
 0x121   :  { %v735_v29 = vpop.f32.mrf.mxu0  ;;  %v16228_v30 = vmax.f32 %v889_v18, %v1080_v28 }
 0x122   :  { %v736_v31 = vadd.f32 %v16206_v11, %v735_v29 }
 0x124   :  { %v891_v32 = vmax.f32 %v736_v31, 0.0 }
 0x126   :  { %v955_v33 = vrot.slane %v891_v32, 1 }
 0x128   :  { %v1079_v35 = vsel %vm20441_vm1, %v954_v27, %v955_v33 }
 0x129   :  { %v738_v36 = vpop.f32.mrf.mxu0  ;;  %v1085_v37 = vmax.f32 %v890_v26, %v1079_v35 }
 0x12a   :  { %v739_v38 = vadd.f32 %v16206_v11, %v738_v36 }
 0x12b   :  { %v1147_v41 = vmax.f32 %v16222_v24, %v1085_v37 }
 0x12c   :  { %v892_v39 = vmax.f32 %v739_v38, 0.0  ;;  %11247 = vmatmul.msk.bf16.gmra.mxu0 %vm20427_vm0, %v14691_v34  ;;  %v14694_v34 = vld [vmem:[%s20563_s4 + $0x68] sm:$0xff] }
 0x12d   :  { %v1211_v47 = vpack.c.bf16 %v1147_v41, %v1147_v41 }
 0x12e   :  { %v956_v40 = vrot.slane %v892_v39, 1 }
 0x12f   :  { %v16243_v51 = vunpack.c.l.b16 %v1211_v47 }
 0x130   :  { %v1078_v42 = vsel %vm20441_vm1, %v955_v33, %v956_v40 }
 0x131   :  { %v740_v43 = vpop.f32.mrf.mxu0  ;;  %v1086_v44 = vmax.f32 %v891_v32, %v1078_v42 }
 0x132   :  { %v741_v45 = vadd.f32 %v16206_v11, %v740_v43 }
 0x133   :  { %v1148_v46 = vmax.f32 %v16228_v30, %v1086_v44 }
 0x134   :  { %v893_v48 = vmax.f32 %v741_v45, 0.0 }
 0x135   :  { %v1212_v49 = vpack.c.bf16 %v1148_v46, %v1148_v46 }
 0x136   :  { %v957_v50 = vrot.slane %v893_v48, 1 }
 0x137   :  { %v16245_v52 = vunpack.c.l.b16 %v1212_v49 }
 0x138   :  { %v1077_v54 = vsel %vm20441_vm1, %v956_v40, %v957_v50 }
 0x139   :  { %v743_v55 = vpop.f32.mrf.mxu0  ;;  %v1087_v56 = vmax.f32 %v892_v39, %v1077_v54  ;;  %v1387_v57 = vpack.c.b16 %v16245_v52, %v16243_v51 }
 0x13a   :  { %v744_v58 = vadd.f32 %v16206_v11, %v743_v55 }
 0x13b   :  { %v1149_v59 = vmax.f32 %v1085_v37, %v1087_v56 }
 0x13c   :  { %v894_v60 = vmax.f32 %v744_v58, 0.0  ;;  %11248 = vmatmul.msk.bf16.gmra.mxu0 %vm20427_vm0, %v14692_v53 }
 0x13d   :  { %v1213_v3 = vpack.c.bf16 %v1149_v59, %v1149_v59 }
 0x13e   :  { %v958_v61 = vrot.slane %v894_v60, 1 }
 0x13f   :  { %v16259_v7 = vunpack.c.l.b16 %v1213_v3 }
 0x140   :  { %v1076_v62 = vsel %vm20441_vm1, %v957_v50, %v958_v61 }
 0x141   :  { %v745_v63 = vpop.f32.mrf.mxu0  ;;  %v1088_v0 = vmax.f32 %v893_v48, %v1076_v62 }
 0x142   :  { %v746_v1 = vadd.f32 %v16206_v11, %v745_v63 }
 0x143   :  { %v1150_v2 = vmax.f32 %v1086_v44, %v1088_v0 }
 0x144   :  { %v895_v4 = vmax.f32 %v746_v1, 0.0 }
 0x145   :  { %v1214_v5 = vpack.c.bf16 %v1150_v2, %v1150_v2 }
 0x146   :  { %v959_v6 = vrot.slane %v895_v4, 1 }
 0x147   :  { %v16261_v8 = vunpack.c.l.b16 %v1214_v5 }
 0x148   :  { %v1075_v10 = vsel %vm20441_vm1, %v958_v61, %v959_v6 }
 0x149   :  { %v748_v12 = vpop.f32.mrf.mxu0  ;;  %v1089_v13 = vmax.f32 %v894_v60, %v1075_v10  ;;  %v1388_v14 = vpack.c.b16 %v16261_v8, %v16259_v7 }
 0x14a   :  { %v749_v16 = vadd.f32 %v16206_v11, %v748_v12 }
 0x14b   :  { %v1151_v17 = vmax.f32 %v1087_v56, %v1089_v13  ;;  %v14695_v56 = vld [vmem:[%s20563_s4 + $0x70] sm:$0xff] }
 0x14c   :  { %v896_v18 = vmax.f32 %v749_v16, 0.0  ;;  %11249 = vmatmul.msk.bf16.gmra.mxu0 %vm20427_vm0, %v14693_v9 }
 0x14d   :  { %v1215_v27 = vpack.c.bf16 %v1151_v17, %v1151_v17 }
 0x14e   :  { %v960_v20 = vrot.slane %v896_v18, 1 }
 0x14f   :  { %v16275_v32 = vunpack.c.l.b16 %v1215_v27 }
 0x150   :  { %v1074_v21 = vsel %vm20441_vm1, %v959_v6, %v960_v20 }
 0x151   :  { %v750_v22 = vpop.f32.mrf.mxu0  ;;  %v1090_v23 = vmax.f32 %v895_v4, %v1074_v21 }
 0x152   :  { %v751_v25 = vadd.f32 %v16206_v11, %v750_v22 }
 0x153   :  { %v1152_v26 = vmax.f32 %v1088_v0, %v1090_v23 }
 0x154   :  { %v897_v28 = vmax.f32 %v751_v25, 0.0 }
 0x155   :  { %v1216_v29 = vpack.c.bf16 %v1152_v26, %v1152_v26 }
 0x156   :  { %v961_v31 = vrot.slane %v897_v28, 1 }
 0x157   :  { %v16277_v33 = vunpack.c.l.b16 %v1216_v29 }
 0x158   :  { %v1073_v35 = vsel %vm20441_vm1, %v960_v20, %v961_v31 }
 0x159   :  { %v753_v36 = vpop.f32.mrf.mxu0  ;;  %v1091_v37 = vmax.f32 %v896_v18, %v1073_v35  ;;  %v1389_v38 = vpack.c.b16 %v16277_v33, %v16275_v32  ;;  %v14696_v18 = vld [vmem:[%s20563_s4 + $0x78] sm:$0xff] }
 0x15a   :  { %v754_v39 = vadd.f32 %v16206_v11, %v753_v36 }
 0x15b   :  { %v1153_v40 = vmax.f32 %v1089_v13, %v1091_v37 }
 0x15c   :  { %v898_v41 = vmax.f32 %v754_v39, 0.0  ;;  %11250 = vmatmul.msk.bf16.gmra.mxu0 %vm20427_vm0, %v14694_v34 }
 0x15d   :  { %v1217_v48 = vpack.c.bf16 %v1153_v40, %v1153_v40 }
 0x15e   :  { %v962_v42 = vrot.slane %v898_v41, 1 }
 0x15f   :  { %v16291_v54 = vunpack.c.l.b16 %v1217_v48 }
 0x160   :  { %v1072_v43 = vsel %vm20441_vm1, %v961_v31, %v962_v42 }
 0x161   :  { %v755_v44 = vpop.f32.mrf.mxu0  ;;  %v1092_v45 = vmax.f32 %v897_v28, %v1072_v43 }
 0x162   :  { %v756_v46 = vadd.f32 %v16206_v11, %v755_v44 }
 0x163   :  { %v1154_v47 = vmax.f32 %v1090_v23, %v1092_v45 }
 0x164   :  { %v899_v49 = vmax.f32 %v756_v46, 0.0 }
 0x165   :  { %v1218_v50 = vpack.c.bf16 %v1154_v47, %v1154_v47 }
 0x166   :  { %v963_v53 = vrot.slane %v899_v49, 1 }
 0x167   :  { %v16293_v55 = vunpack.c.l.b16 %v1218_v50 }
 0x168   :  { %v1071_v58 = vsel %vm20441_vm1, %v962_v42, %v963_v53 }
 0x169   :  { %v758_v59 = vpop.f32.mrf.mxu0  ;;  %v1093_v60 = vmax.f32 %v898_v41, %v1071_v58  ;;  %v1390_v61 = vpack.c.b16 %v16293_v55, %v16291_v54  ;;  %v14697_v41 = vld [vmem:[%s20563_s4 + $0x80] sm:$0xff] }
 0x16a   :  { %v759_v62 = vadd.f32 %v16206_v11, %v758_v59  ;;  %v14698_v59 = vld [vmem:[%s20563_s4 + $0x88] sm:$0xff] }
 0x16b   :  { %v1155_v63 = vmax.f32 %v1091_v37, %v1093_v60 }
 0x16c   :  { %v900_v0 = vmax.f32 %v759_v62, 0.0  ;;  %11251 = vmatmul.msk.bf16.gmra.mxu0 %vm20427_vm0, %v14695_v56 }
 0x16d   :  { %v1219_v9 = vpack.c.bf16 %v1155_v63, %v1155_v63 }
 0x16e   :  { %v964_v1 = vrot.slane %v900_v0, 1 }
 0x16f   :  { %v16307_v16 = vunpack.c.l.b16 %v1219_v9 }
 0x170   :  { %v1070_v2 = vsel %vm20441_vm1, %v963_v53, %v964_v1 }
 0x171   :  { %v760_v3 = vpop.f32.mrf.mxu0  ;;  %v1094_v4 = vmax.f32 %v899_v49, %v1070_v2 }
 0x172   :  { %v761_v5 = vadd.f32 %v16206_v11, %v760_v3 }
 0x173   :  { %v1156_v6 = vmax.f32 %v1092_v45, %v1094_v4 }
 0x174   :  { %v901_v10 = vmax.f32 %v761_v5, 0.0 }
 0x175   :  { %v1220_v12 = vpack.c.bf16 %v1156_v6, %v1156_v6 }
 0x176   :  { %v965_v13 = vrot.slane %v901_v10, 1 }
 0x177   :  { %v16309_v17 = vunpack.c.l.b16 %v1220_v12 }
 0x178   :  { %v1069_v20 = vsel %vm20441_vm1, %v964_v1, %v965_v13 }
 0x179   :  { %v763_v21 = vpop.f32.mrf.mxu0  ;;  %v1391_v22 = vpack.c.b16 %v16309_v17, %v16307_v16  ;;  %v1095_v25 = vmax.f32 %v900_v0, %v1069_v20 }
 0x17a   :  { %v764_v23 = vadd.f32 %v16206_v11, %v763_v21 }
 0x17b   :  { %v1157_v28 = vmax.f32 %v1093_v60, %v1095_v25 }
 0x17c   :  { %v902_v26 = vmax.f32 %v764_v23, 0.0  ;;  %11252 = vmatmul.msk.bf16.gmra.mxu0 %vm20427_vm0, %v14696_v18 }
 0x17d   :  { %v1221_v36 = vpack.c.bf16 %v1157_v28, %v1157_v28 }
 0x17e   :  { %v966_v27 = vrot.slane %v902_v26, 1 }
 0x17f   :  { %v16322_v39 = vunpack.c.l.b16 %v1221_v36 }
 0x180   :  { %v1068_v29 = vsel %vm20441_vm1, %v965_v13, %v966_v27 }
 0x181   :  { %v765_v31 = vpop.f32.mrf.mxu0  ;;  %v1096_v34 = vmax.f32 %v901_v10, %v1068_v29 }
 0x182   :  { %v766_v44 = vadd.f32 %v16206_v11, %v765_v31 }
 0x183   :  { %v1158_v35 = vmax.f32 %v1094_v4, %v1096_v34 }
 0x184   :  { %v903_v47 = vmax.f32 %v766_v44, 0.0 }
 0x185   :  { %v1222_v37 = vpack.c.bf16 %v1158_v35, %v1158_v35 }
 0x186   :  { %v967_v53 = vrot.slane %v903_v47, 1 }
 0x187   :  { %v1366_v40 = vunpack.c.l.b16 %v1222_v37 }
 0x188   :  { %v1067_v1 = vsel %vm20441_vm1, %v966_v27, %v967_v53 }
 0x189   :  { %v768_v42 = vpop.f32.mrf.mxu0  ;;  %v1392_v43 = vpack.c.b16 %v1366_v40, %v16322_v39  ;;  %v1097_v4 = vmax.f32 %v902_v26, %v1067_v1  ;;  %v14699_v39 = vld [vmem:[%s20563_s4 + $0x90] sm:$0xff] }
 0x18a   :  { %v769_v45 = vadd.f32 %v16206_v11, %v768_v42 }
 0x18b   :  { %v1159_v28 = vmax.f32 %v1095_v25, %v1097_v4 }
 0x18c   :  { %11253 = vmatmul.msk.bf16.gmra.mxu0 %vm20427_vm0, %v14697_v41  ;;  %v904_v48 = vmax.f32 %v769_v45, 0.0 }
 0x18d   :  { %v1223_v37 = vpack.c.bf16 %v1159_v28, %v1159_v28 }
 0x18e   :  { %v968_v56 = vrot.slane %v904_v48, 1 }
 0x18f   :  { %v1367_v45 = vunpack.c.l.b16 %v1223_v37 }
 0x190   :  { %v1066_v0 = vsel %vm20441_vm1, %v967_v53, %v968_v56 }
 0x191   :  { %v770_v46 = vpop.f32.mrf.mxu0  ;;  %v1098_v5 = vmax.f32 %v903_v47, %v1066_v0 }
 0x192   :  { %v771_v49 = vadd.f32 %v16206_v11, %v770_v46 }
 0x193   :  { %v1160_v18 = vmax.f32 %v1096_v34, %v1098_v5 }
 0x194   :  { %v905_v50 = vmax.f32 %v771_v49, 0.0 }
 0x195   :  { %v1224_v31 = vpack.c.bf16 %v1160_v18, %v1160_v18 }
 0x196   :  { %v969_v58 = vrot.slane %v905_v50, 1 }
 0x197   :  { %v1368_v42 = vunpack.c.l.b16 %v1224_v31 }
 0x198   :  { %v1065_v60 = vsel %vm20441_vm1, %v968_v56, %v969_v58 }
 0x199   :  { %v773_v62 = vpop.f32.mrf.mxu0  ;;  %v1099_v2 = vmax.f32 %v904_v48, %v1065_v60  ;;  %v1393_v48 = vpack.c.b16 %v1368_v42, %v1367_v45  ;;  %v14702_v42 = vld [vmem:[%s20563_s4 + $0xa8] sm:$0xff] }
 0x19a   :  { %v774_v63 = vadd.f32 %v16206_v11, %v773_v62 }
 0x19b   :  { %v1161_v9 = vmax.f32 %v1097_v4, %v1099_v2 }
 0x19c   :  { %v906_v3 = vmax.f32 %v774_v63, 0.0  ;;  %11254 = vmatmul.msk.bf16.gmra.mxu0 %vm20427_vm0, %v14698_v59 }
 0x19d   :  { %v1225_v23 = vpack.c.bf16 %v1161_v9, %v1161_v9 }
 0x19e   :  { %v970_v6 = vrot.slane %v906_v3, 1 }
 0x19f   :  { %v1369_v36 = vunpack.c.l.b16 %v1225_v23 }
 0x1a0   :  { %v1064_v10 = vsel %vm20441_vm1, %v969_v58, %v970_v6 }
 0x1a1   :  { %v775_v12 = vpop.f32.mrf.mxu0  ;;  %v1100_v13 = vmax.f32 %v905_v50, %v1064_v10 }
 0x1a2   :  { %v776_v20 = vadd.f32 %v16206_v11, %v775_v12 }
 0x1a3   :  { %v1162_v21 = vmax.f32 %v1098_v5, %v1100_v13 }
 0x1a4   :  { %v907_v27 = vmax.f32 %v776_v20, 0.0 }
 0x1a5   :  { %v1226_v29 = vpack.c.bf16 %v1162_v21, %v1162_v21 }
 0x1a6   :  { %v971_v35 = vrot.slane %v907_v27, 1 }
 0x1a7   :  { %v1370_v26 = vunpack.c.l.b16 %v1226_v29 }
 0x1a8   :  { %v1063_v40 = vsel %vm20441_vm1, %v970_v6, %v971_v35 }
 0x1a9   :  { %v778_v34 = vpop.f32.mrf.mxu0  ;;  %v1394_v41 = vpack.c.b16 %v1370_v26, %v1369_v36  ;;  %v1101_v44 = vmax.f32 %v906_v3, %v1063_v40  ;;  %v14700_v3 = vld [vmem:[%s20563_s4 + $0x98] sm:$0xff] }
 0x1aa   :  { %v779_v25 = vadd.f32 %v16206_v11, %v778_v34 }
 0x1ab   :  { %1419 = vmatpush.bf16.msra.mxu1 %v1394_v41  ;;  %v1163_v46 = vmax.f32 %v1099_v2, %v1101_v44 }
 0x1ac   :  { %v908_v47 = vmax.f32 %v779_v25, 0.0  ;;  %11255 = vmatmul.msk.bf16.gmra.mxu0 %vm20427_vm0, %v14699_v39 }
 0x1ad   :  { %v1227_v60 = vpack.c.bf16 %v1163_v46, %v1163_v46 }
 0x1ae   :  { %v972_v49 = vrot.slane %v908_v47, 1 }
 0x1af   :  { %1420 = vmatpush.bf16.msra.mxu1 %v1393_v48  ;;  %v16359_v1 = vunpack.c.l.b16 %v1227_v60 }
 0x1b0   :  { %v1062_v50 = vsel %vm20441_vm1, %v971_v35, %v972_v49 }
 0x1b1   :  { %v780_v53 = vpop.f32.mrf.mxu0  ;;  %v1102_v56 = vmax.f32 %v907_v27, %v1062_v50 }
 0x1b2   :  { %v781_v58 = vadd.f32 %v16206_v11, %v780_v53 }
 0x1b3   :  { %1421 = vmatpush.bf16.msra.mxu1 %v1392_v43  ;;  %v1164_v59 = vmax.f32 %v1100_v13, %v1102_v56 }
 0x1b4   :  { %v909_v62 = vmax.f32 %v781_v58, 0.0 }
 0x1b5   :  { %v1228_v63 = vpack.c.bf16 %v1164_v59, %v1164_v59 }
 0x1b6   :  { %v973_v0 = vrot.slane %v909_v62, 1 }
 0x1b7   :  { %1422 = vmatpush.bf16.msra.mxu1 %v1391_v22  ;;  %v16361_v2 = vunpack.c.l.b16 %v1228_v63 }
 0x1b8   :  { %v1061_v43 = vsel %vm20441_vm1, %v972_v49, %v973_v0 }
 0x1b9   :  { %v783_v4 = vpop.f32.mrf.mxu0  ;;  %v1103_v5 = vmax.f32 %v908_v47, %v1061_v43  ;;  %v1395_v6 = vpack.c.b16 %v16361_v2, %v16359_v1 }
 0x1ba   :  { %v784_v9 = vadd.f32 %v16206_v11, %v783_v4 }
 0x1bb   :  { %1423 = vmatpush.bf16.msra.mxu1 %v1390_v61  ;;  %v1165_v16 = vmax.f32 %v1101_v44, %v1103_v5 }
 0x1bc   :  { %v910_v17 = vmax.f32 %v784_v9, 0.0  ;;  %11256 = vmatmul.msk.bf16.gmra.mxu0 %vm20427_vm0, %v14700_v3 }
 0x1bd   :  { %v1229_v55 = vpack.c.bf16 %v1165_v16, %v1165_v16 }
 0x1be   :  { %v974_v22 = vrot.slane %v910_v17, 1 }
 0x1bf   :  { %1424 = vmatpush.bf16.msra.mxu1 %v1389_v38  ;;  %v16387_v32 = vunpack.c.l.b16 %v1229_v55  ;;  %v14701_v38 = vld [vmem:[%s20563_s4 + $0xa0] sm:$0xff] }
 0x1c0   :  { %v1060_v10 = vsel %vm20441_vm1, %v973_v0, %v974_v22 }
 0x1c1   :  { %v785_v12 = vpop.f32.mrf.mxu0  ;;  %v1104_v13 = vmax.f32 %v909_v62, %v1060_v10 }
 0x1c2   :  { %v786_v18 = vadd.f32 %v16206_v11, %v785_v12 }
 0x1c3   :  { %1425 = vmatpush.bf16.msra.mxu1 %v1388_v14  ;;  %v1166_v54 = vmax.f32 %v1102_v56, %v1104_v13 }
 0x1c4   :  { %v911_v61 = vmax.f32 %v786_v18, 0.0 }
 0x1c5   :  { %v1230_v20 = vpack.c.bf16 %v1166_v54, %v1166_v54 }
 0x1c6   :  { %v975_v21 = vrot.slane %v911_v61, 1 }
 0x1c7   :  { %1426 = vmatpush.bf16.msra.mxu1 %v1387_v57  ;;  %v16389_v33 = vunpack.c.l.b16 %v1230_v20 }
 0x1c8   :  { %v1059_v7 = vsel %vm20441_vm1, %v974_v22, %v975_v21 }
 0x1c9   :  { %v788_v8 = vpop.f32.mrf.mxu0  ;;  %v1105_v14 = vmax.f32 %v910_v17, %v1059_v7  ;;  %v1396_v23 = vpack.c.b16 %v16389_v33, %v16387_v32 }
 0x1ca   :  { %v789_v28 = vadd.f32 %v16206_v11, %v788_v8 }
 0x1cb   :  { %v1167_v51 = vmax.f32 %v1103_v5, %v1105_v14  ;;  %v14703_v5 = vld [vmem:[%s20563_s4 + $0xb0] sm:$0xff] }
 0x1cc   :  { %v912_v52 = vmax.f32 %v789_v28, 0.0  ;;  %11257 = vmatmul.msk.bf16.gmra.mxu0 %vm20427_vm0, %v14701_v38 }
 0x1cd   :  { %v1231_v26 = vpack.c.bf16 %v1167_v51, %v1167_v51 }
 0x1ce   :  { %v976_v57 = vrot.slane %v912_v52, 1 }
 0x1cf   :  { %v16403_v34 = vunpack.c.l.b16 %v1231_v26 }
 0x1d0   :  { %v1058_v27 = vsel %vm20441_vm1, %v975_v21, %v976_v57 }
 0x1d1   :  { %v790_v29 = vpop.f32.mrf.mxu0  ;;  %v1106_v31 = vmax.f32 %v911_v61, %v1058_v27 }
 0x1d2   :  { %v791_v35 = vadd.f32 %v16206_v11, %v790_v29 }
 0x1d3   :  { %v1168_v36 = vmax.f32 %v1104_v13, %v1106_v31 }
 0x1d4   :  { %v913_v37 = vmax.f32 %v791_v35, 0.0 }
 0x1d5   :  { %v1232_v39 = vpack.c.bf16 %v1168_v36, %v1168_v36 }
 0x1d6   :  { %v977_v40 = vrot.slane %v913_v37, 1 }
 0x1d7   :  { %v16405_v41 = vunpack.c.l.b16 %v1232_v39 }
 0x1d8   :  { %v1057_v44 = vsel %vm20441_vm1, %v976_v57, %v977_v40 }
 0x1d9   :  { %v793_v25 = vpop.f32.mrf.mxu0  ;;  %v1107_v45 = vmax.f32 %v912_v52, %v1057_v44  ;;  %v1397_v46 = vpack.c.b16 %v16405_v41, %v16403_v34  ;;  %v14704_v52 = vld [vmem:[%s20563_s4 + $0xb8] sm:$0xff] }
 0x1da   :  { %v794_v47 = vadd.f32 %v16206_v11, %v793_v25 }
 0x1db   :  { %v1169_v48 = vmax.f32 %v1105_v14, %v1107_v45 }
 0x1dc   :  { %v914_v49 = vmax.f32 %v794_v47, 0.0  ;;  %11258 = vmatmul.msk.bf16.gmra.mxu0 %vm20427_vm0, %v14702_v42 }
 0x1dd   :  { %v1233_v62 = vpack.c.bf16 %v1169_v48, %v1169_v48 }
 0x1de   :  { %v978_v50 = vrot.slane %v914_v49, 1 }
 0x1df   :  { %v16419_v43 = vunpack.c.l.b16 %v1233_v62 }
 0x1e0   :  { %v1056_v53 = vsel %vm20441_vm1, %v977_v40, %v978_v50 }
 0x1e1   :  { %v795_v56 = vpop.f32.mrf.mxu0  ;;  %v1108_v58 = vmax.f32 %v913_v37, %v1056_v53 }
 0x1e2   :  { %v796_v59 = vadd.f32 %v16206_v11, %v795_v56 }
 0x1e3   :  { %v1170_v60 = vmax.f32 %v1106_v31, %v1108_v58 }
 0x1e4   :  { %v915_v63 = vmax.f32 %v796_v59, 0.0 }
 0x1e5   :  { %v1234_v0 = vpack.c.bf16 %v1170_v60, %v1170_v60 }
 0x1e6   :  { %v979_v3 = vrot.slane %v915_v63, 1 }
 0x1e7   :  { %v16421_v4 = vunpack.c.l.b16 %v1234_v0 }
 0x1e8   :  { %v1055_v9 = vsel %vm20441_vm1, %v978_v50, %v979_v3 }
 0x1e9   :  { %v798_v16 = vpop.f32.mrf.mxu0  ;;  %v1109_v17 = vmax.f32 %v914_v49, %v1055_v9  ;;  %v1398_v22 = vpack.c.b16 %v16421_v4, %v16419_v43  ;;  %v14705_v49 = vld [vmem:[%s20563_s4 + $0xc0] sm:$0xff] }
 0x1ea   :  { %v799_v10 = vadd.f32 %v16206_v11, %v798_v16  ;;  %v14706_v16 = vld [vmem:[%s20563_s4 + $0xc8] sm:$0xff] }
 0x1eb   :  { %v1171_v12 = vmax.f32 %v1107_v45, %v1109_v17 }
 0x1ec   :  { %v916_v13 = vmax.f32 %v799_v10, 0.0  ;;  %11259 = vmatmul.msk.bf16.gmra.mxu0 %vm20427_vm0, %v14703_v5 }
 0x1ed   :  { %v1235_v38 = vpack.c.bf16 %v1171_v12, %v1171_v12 }
 0x1ee   :  { %v980_v18 = vrot.slane %v916_v13, 1 }
 0x1ef   :  { %v16435_v28 = vunpack.c.l.b16 %v1235_v38 }
 0x1f0   :  { %v1054_v54 = vsel %vm20441_vm1, %v979_v3, %v980_v18 }
 0x1f1   :  { %v800_v55 = vpop.f32.mrf.mxu0  ;;  %v1110_v61 = vmax.f32 %v915_v63, %v1054_v54 }
 0x1f2   :  { %v801_v20 = vadd.f32 %v16206_v11, %v800_v55 }
 0x1f3   :  { %v1172_v21 = vmax.f32 %v1108_v58, %v1110_v61 }
 0x1f4   :  { %v917_v7 = vmax.f32 %v801_v20, 0.0 }
 0x1f5   :  { %v1236_v8 = vpack.c.bf16 %v1172_v21, %v1172_v21 }
 0x1f6   :  { %v981_v14 = vrot.slane %v917_v7, 1 }
 0x1f7   :  { %v16437_v51 = vunpack.c.l.b16 %v1236_v8 }
 0x1f8   :  { %v1053_v57 = vsel %vm20441_vm1, %v980_v18, %v981_v14 }
 0x1f9   :  { %v803_v27 = vpop.f32.mrf.mxu0  ;;  %v1399_v29 = vpack.c.b16 %v16437_v51, %v16435_v28  ;;  %v1111_v35 = vmax.f32 %v916_v13, %v1053_v57 }
 0x1fa   :  { %v804_v31 = vadd.f32 %v16206_v11, %v803_v27 }
 0x1fb   :  { %v1173_v37 = vmax.f32 %v1109_v17, %v1111_v35 }
 0x1fc   :  { %v918_v36 = vmax.f32 %v804_v31, 0.0  ;;  %11260 = vmatmul.msk.bf16.gmra.mxu0 %vm20427_vm0, %v14704_v52 }
 0x1fd   :  { %v1237_v25 = vpack.c.bf16 %v1173_v37, %v1173_v37 }
 0x1fe   :  { %v982_v26 = vrot.slane %v918_v36, 1 }
 0x1ff   :  { %v16450_v47 = vunpack.c.l.b16 %v1237_v25 }
 0x200   :  { %v1052_v39 = vsel %vm20441_vm1, %v981_v14, %v982_v26 }
 0x201   :  { %v805_v40 = vpop.f32.mrf.mxu0  ;;  %v1112_v42 = vmax.f32 %v917_v7, %v1052_v39 }
 0x202   :  { %v806_v56 = vadd.f32 %v16206_v11, %v805_v40 }
 0x203   :  { %v1174_v44 = vmax.f32 %v1110_v61, %v1112_v42 }
 0x204   :  { %v919_v60 = vmax.f32 %v806_v56, 0.0 }
 0x205   :  { %v1238_v45 = vpack.c.bf16 %v1174_v44, %v1174_v44 }
 0x206   :  { %v983_v3 = vrot.slane %v919_v60, 1 }
 0x207   :  { %v1382_v48 = vunpack.c.l.b16 %v1238_v45 }
 0x208   :  { %v1051_v18 = vsel %vm20441_vm1, %v982_v26, %v983_v3 }
 0x209   :  { %v808_v50 = vpop.f32.mrf.mxu0  ;;  %v1400_v53 = vpack.c.b16 %v1382_v48, %v16450_v47  ;;  %v1113_v61 = vmax.f32 %v918_v36, %v1051_v18  ;;  %v14707_v47 = vld [vmem:[%s20563_s4 + $0xd0] sm:$0xff] }
 0x20a   :  { %v809_v58 = vadd.f32 %v16206_v11, %v808_v50 }
 0x20b   :  { %v1175_v37 = vmax.f32 %v1111_v35, %v1113_v61 }
 0x20c   :  { %11261 = vmatmul.msk.bf16.gmra.mxu0 %vm20427_vm0, %v14705_v49  ;;  %v920_v62 = vmax.f32 %v809_v58, 0.0 }
 0x20d   :  { %v1239_v45 = vpack.c.bf16 %v1175_v37, %v1175_v37 }
 0x20e   :  { %v984_v5 = vrot.slane %v920_v62, 1 }
 0x20f   :  { %v1383_v58 = vunpack.c.l.b16 %v1239_v45 }
 0x210   :  { %v1050_v13 = vsel %vm20441_vm1, %v983_v3, %v984_v5 }
 0x211   :  { %v810_v59 = vpop.f32.mrf.mxu0  ;;  %v1114_v20 = vmax.f32 %v919_v60, %v1050_v13 }
 0x212   :  { %v811_v63 = vadd.f32 %v16206_v11, %v810_v59 }
 0x213   :  { %v1176_v52 = vmax.f32 %v1112_v42, %v1114_v20 }
 0x214   :  { %v921_v0 = vmax.f32 %v811_v63, 0.0 }
 0x215   :  { %v1240_v40 = vpack.c.bf16 %v1176_v52, %v1176_v52 }
 0x216   :  { %v985_v9 = vrot.slane %v921_v0, 1 }
 0x217   :  { %v1384_v50 = vunpack.c.l.b16 %v1240_v40 }
 0x218   :  { %v1049_v17 = vsel %vm20441_vm1, %v984_v5, %v985_v9 }
 0x219   :  { %v813_v10 = vpop.f32.mrf.mxu0  ;;  %v1115_v54 = vmax.f32 %v920_v62, %v1049_v17  ;;  %v1401_v62 = vpack.c.b16 %v1384_v50, %v1383_v58  ;;  %v14710_v50 = vld [vmem:[%s20563_s4 + $0xe8] sm:$0xff] }
 0x21a   :  { %v814_v12 = vadd.f32 %v16206_v11, %v813_v10 }
 0x21b   :  { %v1177_v38 = vmax.f32 %v1113_v61, %v1115_v54 }
 0x21c   :  { %v922_v55 = vmax.f32 %v814_v12, 0.0  ;;  %11262 = vmatmul.msk.bf16.gmra.mxu0 %vm20427_vm0, %v14706_v16 }
 0x21d   :  { %v1241_v31 = vpack.c.bf16 %v1177_v38, %v1177_v38 }
 0x21e   :  { %v986_v21 = vrot.slane %v922_v55, 1 }
 0x21f   :  { %v1385_v25 = vunpack.c.l.b16 %v1241_v31 }
 0x220   :  { %v1048_v7 = vsel %vm20441_vm1, %v985_v9, %v986_v21 }
 0x221   :  { %v815_v8 = vpop.f32.mrf.mxu0  ;;  %v1116_v14 = vmax.f32 %v921_v0, %v1048_v7 }
 0x222   :  { %v816_v57 = vadd.f32 %v16206_v11, %v815_v8 }
 0x223   :  { %v1178_v27 = vmax.f32 %v1114_v20, %v1116_v14 }
 0x224   :  { %v923_v26 = vmax.f32 %v816_v57, 0.0 }
 0x225   :  { %v1242_v39 = vpack.c.bf16 %v1178_v27, %v1178_v27 }
 0x226   :  { %v987_v44 = vrot.slane %v923_v26, 1 }
 0x227   :  { %v1386_v36 = vunpack.c.l.b16 %v1242_v39 }
 0x228   :  { %v1047_v48 = vsel %vm20441_vm1, %v986_v21, %v987_v44 }
 0x229   :  { %v818_v42 = vpop.f32.mrf.mxu0  ;;  %v1402_v49 = vpack.c.b16 %v1386_v36, %v1385_v25  ;;  %v1117_v56 = vmax.f32 %v922_v55, %v1047_v48  ;;  %v14708_v55 = vld [vmem:[%s20563_s4 + $0xd8] sm:$0xff] }
 0x22a   :  { %v819_v35 = vadd.f32 %v16206_v11, %v818_v42 }
 0x22b   :  { %1448 = vmatpush.bf16.msra.mxu2 %v1402_v49  ;;  %v1179_v59 = vmax.f32 %v1115_v54, %v1117_v56 }
 0x22c   :  { %v924_v60 = vmax.f32 %v819_v35, 0.0  ;;  %11263 = vmatmul.msk.bf16.gmra.mxu0 %vm20427_vm0, %v14707_v47 }
 0x22d   :  { %v1243_v17 = vpack.c.bf16 %v1179_v59, %v1179_v59 }
 0x22e   :  { %v988_v63 = vrot.slane %v924_v60, 1 }
 0x22f   :  { %1449 = vmatpush.bf16.msra.mxu2 %v1401_v62  ;;  %v16487_v18 = vunpack.c.l.b16 %v1243_v17 }
 0x230   :  { %v1046_v0 = vsel %vm20441_vm1, %v987_v44, %v988_v63 }
 0x231   :  { %v820_v3 = vpop.f32.mrf.mxu0  ;;  %v1118_v5 = vmax.f32 %v923_v26, %v1046_v0 }
 0x232   :  { %v821_v9 = vadd.f32 %v16206_v11, %v820_v3 }
 0x233   :  { %1450 = vmatpush.bf16.msra.mxu2 %v1400_v53  ;;  %v1180_v16 = vmax.f32 %v1116_v14, %v1118_v5 }
 0x234   :  { %v925_v10 = vmax.f32 %v821_v9, 0.0 }
 0x235   :  { %v1244_v12 = vpack.c.bf16 %v1180_v16, %v1180_v16 }
 0x236   :  { %v989_v13 = vrot.slane %v925_v10, 1 }
 0x237   :  { %1451 = vmatpush.bf16.msra.mxu2 %v1399_v29  ;;  %v16489_v54 = vunpack.c.l.b16 %v1244_v12 }
 0x238   :  { %v1045_v53 = vsel %vm20441_vm1, %v988_v63, %v989_v13 }
 0x239   :  { %v823_v61 = vpop.f32.mrf.mxu0  ;;  %v1119_v20 = vmax.f32 %v924_v60, %v1045_v53  ;;  %v1541_v21 = vpack.c.b16 %v16489_v54, %v16487_v18 }
 0x23a   :  { %v824_v38 = vadd.f32 %v16206_v11, %v823_v61 }
 0x23b   :  { %1452 = vmatpush.bf16.msra.mxu2 %v1398_v22  ;;  %v1181_v28 = vmax.f32 %v1117_v56, %v1119_v20 }
 0x23c   :  { %v926_v51 = vmax.f32 %v824_v38, 0.0  ;;  %11264 = vmatmul.msk.bf16.gmra.mxu0 %vm20427_vm0, %v14708_v55 }
 0x23d   :  { %v1245_v4 = vpack.c.bf16 %v1181_v28, %v1181_v28 }
 0x23e   :  { %v990_v29 = vrot.slane %v926_v51, 1 }
 0x23f   :  { %1453 = vmatpush.bf16.msra.mxu2 %v1397_v46  ;;  %v16515_v34 = vunpack.c.l.b16 %v1245_v4  ;;  %v14709_v46 = vld [vmem:[%s20563_s4 + $0xe0] sm:$0xff] }
 0x240   :  { %v1044_v7 = vsel %vm20441_vm1, %v989_v13, %v990_v29 }
 0x241   :  { %v825_v8 = vpop.f32.mrf.mxu0  ;;  %v1120_v14 = vmax.f32 %v925_v10, %v1044_v7 }
 0x242   :  { %v826_v52 = vadd.f32 %v16206_v11, %v825_v8 }
 0x243   :  { %1454 = vmatpush.bf16.msra.mxu2 %v1396_v23  ;;  %v1182_v43 = vmax.f32 %v1118_v5, %v1120_v14 }
 0x244   :  { %v927_v22 = vmax.f32 %v826_v52, 0.0 }
 0x245   :  { %v1246_v57 = vpack.c.bf16 %v1182_v43, %v1182_v43 }
 0x246   :  { %v991_v27 = vrot.slane %v927_v22, 1 }
 0x247   :  { %1455 = vmatpush.bf16.msra.mxu2 %v1395_v6  ;;  %v16517_v41 = vunpack.c.l.b16 %v1246_v57 }
 0x248   :  { %v1043_v32 = vsel %vm20441_vm1, %v990_v29, %v991_v27 }
 0x249   :  { %v828_v33 = vpop.f32.mrf.mxu0  ;;  %v1121_v23 = vmax.f32 %v926_v51, %v1043_v32  ;;  %v1542_v31 = vpack.c.b16 %v16517_v41, %v16515_v34  ;;  %v14718_v34 = vld [vmem:[%s20565_s6 + $0x24] sm:$0xf]  ;;  %v11289_v41 = vld [vmem:[%s20565_s6 + $0x28] sm:$0xf0] }
 0x24a   :  { %v829_v37 = vadd.f32 %v16206_v11, %v828_v33 }
 0x24b   :  { %v1183_v1 = vmax.f32 %v1119_v20, %v1121_v23  ;;  %v14711_v20 = vld [vmem:[%s20563_s4 + $0xf0] sm:$0xff] }
 0x24c   :  { %v928_v2 = vmax.f32 %v829_v37, 0.0  ;;  %11265 = vmatmul.msk.bf16.gmra.mxu0 %vm20427_vm0, %v14709_v46 }
 0x24d   :  { %v1247_v36 = vpack.c.bf16 %v1183_v1, %v1183_v1 }
 0x24e   :  { %v992_v6 = vrot.slane %v928_v2, 1 }
 0x24f   :  { %v16531_v42 = vunpack.c.l.b16 %v1247_v36 }
 0x250   :  { %v1042_v26 = vsel %vm20441_vm1, %v991_v27, %v992_v6 }
 0x251   :  { %v830_v39 = vpop.f32.mrf.mxu0  ;;  %v1122_v40 = vmax.f32 %v927_v22, %v1042_v26 }
 0x252   :  { %v831_v44 = vadd.f32 %v16206_v11, %v830_v39 }
 0x253   :  { %v1184_v25 = vmax.f32 %v1120_v14, %v1122_v40 }
 0x254   :  { %v929_v45 = vmax.f32 %v831_v44, 0.0 }
 0x255   :  { %v1248_v47 = vpack.c.bf16 %v1184_v25, %v1184_v25 }
 0x256   :  { %v993_v48 = vrot.slane %v929_v45, 1 }
 0x257   :  { %v16533_v49 = vunpack.c.l.b16 %v1248_v47 }
 0x258   :  { %v1041_v56 = vsel %vm20441_vm1, %v992_v6, %v993_v48 }
 0x259   :  { %v833_v35 = vpop.f32.mrf.mxu0  ;;  %v1123_v58 = vmax.f32 %v928_v2, %v1041_v56  ;;  %v1543_v59 = vpack.c.b16 %v16533_v49, %v16531_v42  ;;  %v14712_v2 = vld [vmem:[%s20563_s4 + $0xf8] sm:$0xff]  ;;  %s15639_s4 = smov 64  }
 0x25a   :  { %v834_v60 = vadd.f32 %v16206_v11, %v833_v35 }
 0x25b   :  { %v1185_v62 = vmax.f32 %v1121_v23, %v1123_v58 }
 0x25c   :  { %v930_v63 = vmax.f32 %v834_v60, 0.0  ;;  %11266 = vmatmul.msk.bf16.gmra.mxu0 %vm20427_vm0, %v14710_v50 }
 0x25d   :  { %v1249_v10 = vpack.c.bf16 %v1185_v62, %v1185_v62 }
 0x25e   :  { %v994_v0 = vrot.slane %v930_v63, 1 }
 0x25f   :  { %v16547_v53 = vunpack.c.l.b16 %v1249_v10 }
 0x260   :  { %v1040_v3 = vsel %vm20441_vm1, %v993_v48, %v994_v0 }
 0x261   :  { %v835_v5 = vpop.f32.mrf.mxu0  ;;  %v1124_v9 = vmax.f32 %v929_v45, %v1040_v3 }
 0x262   :  { %v836_v16 = vadd.f32 %v16206_v11, %v835_v5 }
 0x263   :  { %v1186_v17 = vmax.f32 %v1122_v40, %v1124_v9 }
 0x264   :  { %v931_v12 = vmax.f32 %v836_v16, 0.0 }
 0x265   :  { %v1250_v13 = vpack.c.bf16 %v1186_v17, %v1186_v17 }
 0x266   :  { %v995_v55 = vrot.slane %v931_v12, 1 }
 0x267   :  { %v16549_v61 = vunpack.c.l.b16 %v1250_v13 }
 0x268   :  { %v1039_v38 = vsel %vm20441_vm1, %v994_v0, %v995_v55 }
 0x269   :  { %v838_v28 = vpop.f32.mrf.mxu0  ;;  %v1125_v51 = vmax.f32 %v930_v63, %v1039_v38  ;;  %v1544_v29 = vpack.c.b16 %v16549_v61, %v16547_v53 }
 0x26a   :  { %v839_v7 = vadd.f32 %v16206_v11, %v838_v28 }
 0x26b   :  { %v1187_v8 = vmax.f32 %v1123_v58, %v1125_v51 }
 0x26c   :  { %v932_v14 = vmax.f32 %v839_v7, 0.0  ;;  %11267 = vmatmul.msk.bf16.gmra.mxu0 %vm20427_vm0, %v14711_v20 }
 0x26d   :  { %v1251_v46 = vpack.c.bf16 %v1187_v8, %v1187_v8 }
 0x26e   :  { %v996_v52 = vrot.slane %v932_v14, 1 }
 0x26f   :  { %v16563_v37 = vunpack.c.l.b16 %v1251_v46 }
 0x270   :  { %v1038_v43 = vsel %vm20441_vm1, %v995_v55, %v996_v52 }
 0x271   :  { %v840_v4 = vpop.f32.mrf.mxu0  ;;  %v1126_v22 = vmax.f32 %v931_v12, %v1038_v43 }
 0x272   :  { %v841_v57 = vadd.f32 %v16206_v11, %v840_v4 }
 0x273   :  { %v1188_v27 = vmax.f32 %v1124_v9, %v1126_v22 }
 0x274   :  { %v933_v32 = vmax.f32 %v841_v57, 0.0 }
 0x275   :  { %v1252_v33 = vpack.c.bf16 %v1188_v27, %v1188_v27 }
 0x276   :  { %v997_v23 = vrot.slane %v933_v32, 1 }
 0x277   :  { %v16565_v1 = vunpack.c.l.b16 %v1252_v33 }
 0x278   :  { %v1037_v6 = vsel %vm20441_vm1, %v996_v52, %v997_v23 }
 0x279   :  { %v843_v26 = vpop.f32.mrf.mxu0  ;;  %v1545_v39 = vpack.c.b16 %v16565_v1, %v16563_v37  ;;  %v1127_v44 = vmax.f32 %v932_v14, %v1037_v6 }
 0x27a   :  { %v844_v40 = vadd.f32 %v16206_v11, %v843_v26 }
 0x27b   :  { %v1189_v45 = vmax.f32 %v1125_v51, %v1127_v44  ;;  %v16592_v51 = vld [vmem:[%s20564_s27] ss:$0 sm:$0xff]  ;;  %s15641_s27 = smov 32  }
 0x27c   :  { %v934_v25 = vmax.f32 %v844_v40, 0.0  ;;  %11268 = vmatmul.msk.bf16.gmra.mxu0 %vm20427_vm0, %v14712_v2 }
 0x27d   :  { %v1253_v35 = vpack.c.bf16 %v1189_v45, %v1189_v45 }
 0x27e   :  { %v998_v36 = vrot.slane %v934_v25, 1 }
 0x27f   :  { %v16578_v60 = vunpack.c.l.b16 %v1253_v35 }
 0x280   :  { %v1036_v47 = vsel %vm20441_vm1, %v997_v23, %v998_v36 }
 0x281   :  { %v845_v48 = vpop.f32.mrf.mxu0  ;;  %v1128_v50 = vmax.f32 %v933_v32, %v1036_v47 }
 0x282   :  { %v846_v3 = vadd.f32 %v16206_v11, %v845_v48 }
 0x283   :  { %v1190_v56 = vmax.f32 %v1126_v22, %v1128_v50 }
 0x284   :  { %v935_v16 = vmax.f32 %v846_v3, 0.0 }
 0x285   :  { %v1254_v58 = vpack.c.bf16 %v1190_v56, %v1190_v56 }
 0x286   :  { %v999_v13 = vrot.slane %v935_v16, 1 }
 0x287   :  { %v16580_v62 = vunpack.c.l.b16 %v1254_v58 }
 0x289   :  { %v848_v63 = vpop.f32.mrf.mxu0  ;;  %v1546_v0 = vpack.c.b16 %v16580_v62, %v16578_v60 }
 0x28a   :  { %v849_v5 = vadd.f32 %v16206_v11, %v848_v63 }
 0x28c   :  { %v936_v17 = vmax.f32 %v849_v5, 0.0 }
 0x28e   :  { %v1000_v55 = vrot.slane %v936_v17, 1 }
 0x290   :  { %v1034_v8 = vsel %vm20441_vm1, %v999_v13, %v1000_v55 }
 0x291   :  { %v850_v9 = vpop.f32.mrf.mxu0  ;;  %v1130_v4 = vmax.f32 %v935_v16, %v1034_v8 }
 0x292   :  { %v851_v10 = vadd.f32 %v16206_v11, %v850_v9  ;;  %v1035_v11 = vsel %vm20441_vm1, %v998_v36, %v999_v13  ;;  %v11271_v13 = vld [vmem:[%s20565_s6] sm:$0xf] }
 0x293   :  { %v1129_v43 = vmax.f32 %v934_v25, %v1035_v11  ;;  %v1192_v33 = vmax.f32 %v1128_v50, %v1130_v4  ;;  %v14714_v50 = vld [vmem:[%s20565_s6 + $0x4] sm:$0xf] }
 0x294   :  { %v937_v12 = vmax.f32 %v851_v10, 0.0 }
 0x295   :  { %v1191_v26 = vmax.f32 %v1127_v44, %v1129_v43  ;;  %v1256_v36 = vpack.c.bf16 %v1192_v33, %v1192_v33  ;;  %v11273_v44 = vld [vmem:[%s20565_s6 + $0x8] sm:$0xf0] }
 0x296   :  { %v1001_v20 = vrot.slane %v937_v12, 1  ;;  %v16611_v5 = vor.u32 %v14714_v50, %v11273_v44  ;;  %v11287_v44 = vld [vmem:[%s20565_s6 + $0x20] sm:$0xf] }
 0x297   :  { %v1255_v56 = vpack.c.bf16 %v1191_v26, %v1191_v26  ;;  %v1522_v62 = vunpack.c.l.b16 %v1256_v36  ;;  %v11279_v26 = vld [vmem:[%s20565_s6 + $0x10] sm:$0xf] }
 0x298   :  { %v1033_v38 = vsel %vm20441_vm1, %v1000_v55, %v1001_v20  ;;  %1456 = vmatmul.bf16.vlgmr.msra.gmra.mxu2 %v16611_v5  ;;  %v14715_v55 = vld [vmem:[%s20565_s6 + $0x4] sm:$0xf0] }
 0x299   :  { %v853_v28 = vpop.f32.mrf.mxu0  ;;  %v1131_v14 = vmax.f32 %v936_v17, %v1033_v38  ;;  %v1521_v9 = vunpack.c.l.b16 %v1255_v56 }
 0x29a   :  { %v854_v7 = vadd.f32 %v16592_v51, %v853_v28 }
 0x29b   :  { %v1193_v57 = vmax.f32 %v1129_v43, %v1131_v14  ;;  %v1547_v10 = vpack.c.b16 %v1522_v62, %v1521_v9 }
 0x29c   :  { %v938_v52 = vmax.f32 %v854_v7, 0.0 }
 0x29d   :  { %v1257_v6 = vpack.c.bf16 %v1193_v57, %v1193_v57 }
 0x29e   :  { %v1002_v22 = vrot.slane %v938_v52, 1 }
 0x29f   :  { %v1523_v48 = vunpack.c.l.b16 %v1257_v6 }
 0x2a0   :  { %v1032_v27 = vsel %vm20441_vm1, %v1001_v20, %v1002_v22  ;;  %v11272_v20 = vor.u32 %v14715_v55, %v11271_v13 }
 0x2a1   :  { %v855_v46 = vpop.f32.mrf.mxu0  ;;  %v1132_v32 = vmax.f32 %v937_v12, %v1032_v27 }
 0x2a2   :  { %v856_v23 = vadd.f32 %v16592_v51, %v855_v46  ;;  %1427 = vmatmul.bf16.vlgmr.msra.gmra.mxu1 %v11272_v20 }
 0x2a3   :  { %v1194_v2 = vmax.f32 %v1130_v4, %v1132_v32 }
 0x2a4   :  { %v939_v40 = vmax.f32 %v856_v23, 0.0 }
 0x2a5   :  { %v1258_v45 = vpack.c.bf16 %v1194_v2, %v1194_v2 }
 0x2a6   :  { %v1003_v47 = vrot.slane %v939_v40, 1 }
 0x2a7   :  { %v1524_v25 = vunpack.c.l.b16 %v1258_v45 }
 0x2a8   :  { %v1031_v35 = vsel %vm20441_vm1, %v1002_v22, %v1003_v47 }
 0x2a9   :  { %v858_v58 = vpop.f32.mrf.mxu0  ;;  %v1548_v60 = vpack.c.b16 %v1524_v25, %v1523_v48  ;;  %v1133_v63 = vmax.f32 %v938_v52, %v1031_v35 }
 0x2aa   :  { %v859_v3 = vadd.f32 %v16592_v51, %v858_v58 }
 0x2ab   :  { %1573 = vmatpush.bf16.msra.mxu3 %v1548_v60  ;;  %v1195_v16 = vmax.f32 %v1131_v14, %v1133_v63 }
 0x2ac   :  { %v940_v17 = vmax.f32 %v859_v3, 0.0 }
 0x2ad   :  { %v1259_v14 = vpack.c.bf16 %v1195_v16, %v1195_v16 }
 0x2ae   :  { %v1004_v12 = vrot.slane %v940_v17, 1 }
 0x2af   :  { %1574 = vmatpush.bf16.msra.mxu3 %v1547_v10  ;;  %v16626_v22 = vunpack.c.l.b16 %v1259_v14  ;;  %v14720_v14 = vld [vmem:[%s20565_s6 + $0x34] sm:$0xf] }
 0x2b0   :  { %v1030_v38 = vsel %vm20441_vm1, %v1003_v47, %v1004_v12 }
 0x2b1   :  { %v860_v28 = vpop.f32.mrf.mxu0  ;;  %v1134_v7 = vmax.f32 %v939_v40, %v1030_v38  ;;  %v14717_v40 = vld [vmem:[%s20565_s6 + $0x14] sm:$0xf0] }
 0x2b2   :  { %v861_v8 = vadd.f32 %v16592_v51, %v860_v28  ;;  %v11280_v45 = vor.u32 %v14717_v40, %v11279_v26 }
 0x2b3   :  { %1575 = vmatpush.bf16.msra.mxu3 %v1546_v0  ;;  %v1196_v11 = vmax.f32 %v1132_v32, %v1134_v7  ;;  %v14716_v0 = vld [vmem:[%s20565_s6 + $0x14] sm:$0xf]  ;;  %v11281_v32 = vld [vmem:[%s20565_s6 + $0x18] sm:$0xf0] }
 0x2b4   :  { %v941_v52 = vmax.f32 %v861_v8, 0.0  ;;  %1432 = vmatmul.bf16.gmra.mxu1 %v11280_v45 }
 0x2b5   :  { %v1260_v43 = vpack.c.bf16 %v1196_v11, %v1196_v11 }
 0x2b6   :  { %v1005_v4 = vrot.slane %v941_v52, 1 }
 0x2b7   :  { %1576 = vmatpush.bf16.msra.mxu3 %v1545_v39  ;;  %v16628_v57 = vunpack.c.l.b16 %v1260_v43  ;;  %v16641_v39 = vor.u32 %v14716_v0, %v11281_v32 }
 0x2b8   :  { %v1029_v27 = vsel %vm20441_vm1, %v1004_v12, %v1005_v4 }
 0x2b9   :  { %v863_v46 = vpop.f32.mrf.mxu0  ;;  %v1135_v33 = vmax.f32 %v940_v17, %v1029_v27  ;;  %v1549_v37 = vpack.c.b16 %v16628_v57, %v16626_v22  ;;  %1461 = vmatmul.bf16.gmra.mxu2 %v16641_v39  ;;  %v1646_v57 = vand.u32 7, %v16210_v15 }
 0x2ba   :  { %v864_v1 = vadd.f32 %v16592_v51, %v863_v46 }
 0x2bb   :  { %1577 = vmatpush.bf16.msra.mxu3 %v1544_v29  ;;  %v1197_v23 = vmax.f32 %v1133_v63, %v1135_v33  ;;  %v14719_v63 = vld [vmem:[%s20565_s6 + $0x24] sm:$0xf0]  ;;  %vm16788_vm2 = vcmp.ge.s32.totalorder %v1646_v57, 1  ;;  %vm16876_vm15 = vcmp.le.s32.totalorder %v1646_v57, 6 }
 0x2bc   :  { %v942_v2 = vmax.f32 %v864_v1, 0.0  ;;  %v11288_v3 = vor.u32 %v14719_v63, %v11287_v44  ;;  %v11295_v1 = vld [vmem:[%s20565_s6 + $0x30] sm:$0xf] }
 0x2bd   :  { %v1261_v49 = vpack.c.bf16 %v1197_v23, %v1197_v23  ;;  %v14721_v23 = vld [vmem:[%s20565_s6 + $0x34] sm:$0xf0] }
 0x2be   :  { %v1006_v6 = vrot.slane %v942_v2, 1 }
 0x2bf   :  { %1578 = vmatpush.bf16.msra.mxu3 %v1543_v59  ;;  %v16665_v25 = vunpack.c.l.b16 %v1261_v49 }
 0x2c0   :  { %v1028_v53 = vsel %vm20441_vm1, %v1005_v4, %v1006_v6 }
 0x2c1   :  { %v865_v61 = vpop.f32.mrf.mxu0  ;;  %v1136_v29 = vmax.f32 %v941_v52, %v1028_v53  ;;  %v11297_v52 = vld [vmem:[%s20565_s6 + $0x38] sm:$0xf0] }
 0x2c2   :  { %v866_v36 = vadd.f32 %v16592_v51, %v865_v61  ;;  %v16709_v46 = vor.u32 %v14720_v14, %v11297_v52 }
 0x2c3   :  { %1579 = vmatpush.bf16.msra.mxu3 %v1542_v31  ;;  %v1198_v42 = vmax.f32 %v1134_v7, %v1136_v29 }
 0x2c4   :  { %v943_v59 = vmax.f32 %v866_v36, 0.0  ;;  %1437 = vmatmul.bf16.gmra.mxu1 %v11288_v3 }
 0x2c5   :  { %v1262_v47 = vpack.c.bf16 %v1198_v42, %v1198_v42 }
 0x2c6   :  { %v1007_v48 = vrot.slane %v943_v59, 1 }
 0x2c7   :  { %1580 = vmatpush.bf16.msra.mxu3 %v1541_v21  ;;  %v16667_v56 = vunpack.c.l.b16 %v1262_v47  ;;  %v16680_v21 = vor.u32 %v14718_v34, %v11289_v41 }
 0x2c8   :  { %v1027_v35 = vsel %vm20441_vm1, %v1006_v6, %v1007_v48 }
 0x2c9   :  { %v868_v58 = vpop.f32.mrf.mxu0  ;;  %v1137_v31 = vmax.f32 %v942_v2, %v1027_v35  ;;  %v1550_v18 = vpack.c.b16 %v16667_v56, %v16665_v25  ;;  %1466 = vmatmul.bf16.gmra.mxu2 %v16680_v21  ;;  %v11296_v2 = vor.u32 %v14721_v23, %v11295_v1  ;;  %v1662_v25 = vshra.s32 %v16210_v15, 3 }
 0x2ca   :  { %v869_v54 = vadd.f32 %v16592_v51, %v868_v58  ;;  %1581 = vmatmul.bf16.vlgmr.msra.gmra.mxu3 %v11272_v20 }
 0x2cb   :  { %v1199_v60 = vmax.f32 %v1135_v33, %v1137_v31 }
 0x2cc   :  { %v944_v62 = vmax.f32 %v869_v54, 0.0 }
 0x2cd   :  { %v1263_v13 = vpack.c.bf16 %v1199_v60, %v1199_v60 }
 0x2ce   :  { %v1008_v50 = vrot.slane %v944_v62, 1 }
 0x2cf   :  { %v16692_v28 = vunpack.c.l.b16 %v1263_v13 }
 0x2d0   :  { %v1026_v9 = vsel %vm20441_vm1, %v1007_v48, %v1008_v50 }
 0x2d1   :  { %v870_v16 = vpop.f32.mrf.mxu0  ;;  %v1138_v17 = vmax.f32 %v943_v59, %v1026_v9 }
 0x2d2   :  { %v871_v10 = vadd.f32 %v16592_v51, %v870_v16 }
 0x2d3   :  { %v1200_v12 = vmax.f32 %v1136_v29, %v1138_v17 }
 0x2d4   :  { %v945_v55 = vmax.f32 %v871_v10, 0.0  ;;  %1442 = vmatmul.bf16.gmra.mxu1 %v11296_v2 }
 0x2d5   :  { %v1264_v20 = vpack.c.bf16 %v1200_v12, %v1200_v12 }
 0x2d6   :  { %v1009_v38 = vrot.slane %v945_v55, 1 }
 0x2d7   :  { %v16694_v7 = vunpack.c.l.b16 %v1264_v20 }
 0x2d8   :  { %v1025_v8 = vsel %vm20441_vm1, %v1008_v50, %v1009_v38 }
 0x2d9   :  { %v873_v11 = vpop.f32.mrf.mxu0  ;;  %v16704_v43 = vmax.f32 %v944_v62, %v1025_v8  ;;  %v1551_v4 = vpack.c.b16 %v16694_v7, %v16692_v28  ;;  %1471 = vmatmul.bf16.gmra.mxu2 %v16709_v46 }
 0x2da   :  { %v874_v27 = vadd.f32 %v16592_v51, %v873_v11  ;;  %1586 = vmatmul.bf16.gmra.mxu3 %v11280_v45 }
 0x2db   :  { %v1201_v0 = vmax.f32 %v1137_v31, %v16704_v43 }
 0x2dc   :  { %v946_v32 = vmax.f32 %v874_v27, 0.0 }
 0x2dd   :  { %v1265_v53 = vpack.c.bf16 %v1201_v0, %v1201_v0 }
 0x2de   :  { %v1010_v33 = vrot.slane %v946_v32, 1 }
 0x2df   :  { %v16721_v29 = vunpack.c.l.b16 %v1265_v53 }
 0x2e0   :  { %v1024_v6 = vsel %vm20441_vm1, %v1009_v38, %v1010_v33 }
 0x2e1   :  { %v875_v26 = vpop.f32.mrf.mxu0  ;;  %v1140_v40 = vmax.f32 %v945_v55, %v1024_v6 }
 0x2e2   :  { %v876_v34 = vadd.f32 %v16592_v51, %v875_v26 }
 0x2e3   :  { %v1202_v45 = vmax.f32 %v1138_v17, %v1140_v40 }
 0x2e4   :  { %v947_v60 = vmax.f32 %v876_v34, 0.0 }
 0x2e5   :  { %v1266_v61 = vpack.c.bf16 %v1202_v45, %v1202_v45 }
 0x2e6   :  { %v1011_v16 = vrot.slane %v947_v60, 1 }
 0x2e7   :  { %v16723_v36 = vunpack.c.l.b16 %v1266_v61 }
 0x2e8   :  { %v1023_v14 = vsel %vm20441_vm1, %v1010_v33, %v1011_v16 }
 0x2e9   :  { %v878_v42 = vpop.f32.mrf.mxu0  ;;  %v1552_v49 = vpack.c.b16 %v16723_v36, %v16721_v29  ;;  %v16762_v29 = vadd.s32 8, %v16210_v15 }
 0x2ea   :  { %1591 = vmatmul.bf16.gmra.mxu3 %v11288_v3  ;;  %v879_v58 = vadd.f32 %v16592_v51, %v878_v42 }
 0x2eb   :  { %20566 = vst [vmem:[#allocation20_spill] sm:$0xff] %v16762_v29  ;;  %v1663_v56 = vshra.s32 %v16762_v29, 3 }
 0x2ec   :  { %v948_v54 = vmax.f32 %v879_v58, 0.0 }
 0x2ee   :  { %v1012_v3 = vrot.slane %v948_v54, 1 }
 0x2f0   :  { %v1022_v13 = vsel %vm20441_vm1, %v1011_v16, %v1012_v3  ;;  %v14739_v16 = vld [vmem:[%s20571_s29 + $0x88] sm:$0xff] }
 0x2f1   :  { %v880_v59 = vpop.f32.mrf.mxu0  ;;  %v1142_v52 = vmax.f32 %v947_v60, %v1022_v13 }
 0x2f2   :  { %v881_v48 = vadd.f32 %v16592_v51, %v880_v59 }
 0x2f4   :  { %v949_v31 = vmax.f32 %v881_v48, 0.0 }
 0x2f6   :  { %v1013_v44 = vrot.slane %v949_v31, 1 }
 0x2f8   :  { %v1021_v12 = vsel %vm20441_vm1, %v1012_v3, %v1013_v44 }
 0x2f9   :  { %v883_v47 = vpop.f32.mrf.mxu0  ;;  %v1143_v11 = vmax.f32 %v948_v54, %v1021_v12 }
 0x2fa   :  { %v884_v35 = vadd.f32 %v16592_v51, %v883_v47  ;;  %1596 = vmatmul.bf16.gmra.mxu3 %v11296_v2  ;;  %v1141_v2 = vmax.f32 %v946_v32, %v1023_v14  ;;  %v1204_v47 = vmax.f32 %v1140_v40, %v1142_v52 }
 0x2fc   :  { %v950_v41 = vmax.f32 %v884_v35, 0.0  ;;  %v1205_v59 = vmax.f32 %v1141_v2, %v1143_v11  ;;  %v1268_v32 = vpack.c.bf16 %v1204_v47, %v1204_v47 }
 0x2fe   :  { %v1014_v62 = vrot.slane %v950_v41, 1 }
 0x300   :  { %v1020_v17 = vsel %vm20441_vm1, %v1013_v44, %v1014_v62 }
 0x301   :  { %v885_v50 = vpop.f32.mrf.mxu0  ;;  %v1144_v20 = vmax.f32 %v949_v31, %v1020_v17  ;;  %v20572_v17 = vmov 0 }
 0x302   :  { %v886_v63 = vadd.f32 %v16592_v51, %v885_v50  ;;  %v20573_v17 = vsel %vm16788_vm2, 4294967295, %v20572_v17 }
 0x303   :  { %v1206_v6 = vmax.f32 %v1142_v52, %v1144_v20 }
 0x304   :  { %v951_v9 = vmax.f32 %v886_v63, 0.0 }
 0x305   :  { %v1270_v58 = vpack.c.bf16 %v1206_v6, %v1206_v6 }
 0x306   :  { %v1015_v10 = vrot.slane %v951_v9, 1 }
 0x308   :  { %v1082_v55 = vsel %vm20441_vm1, %v1015_v10, %v16214_v19  ;;  %v1019_v51 = vsel %vm20441_vm1, %v1014_v62, %v1015_v10  ;;  %v1534_v62 = vunpack.c.l.b16 %v1268_v32  ;;  %v20574_v10 = vmov 0 }
 0x309   :  { %v1146_v38 = vmax.f32 %v951_v9, %v1082_v55  ;;  %v1145_v8 = vmax.f32 %v950_v41, %v1019_v51  ;;  %v1536_v41 = vunpack.c.l.b16 %v1270_v58  ;;  %v16783_v9 = vadd.s32 24, %v16210_v15 }
 0x30b   :  { %v1209_v27 = vmax.f32 %v1145_v8, %v16222_v24  ;;  %v1210_v0 = vmax.f32 %v1146_v38, %v16228_v30  ;;  %v1207_v1 = vmax.f32 %v1143_v11, %v1145_v8  ;;  %v1208_v23 = vmax.f32 %v1144_v20, %v1146_v38  ;;  %20570 = vst [vmem:[#allocation24_spill] sm:$0xff] %v16783_v9  ;;  %v14738_v20 = vld [vmem:[%s20571_s29 + $0x80] sm:$0xff] }
 0x30c   :  { %v1269_v24 = vpack.c.bf16 %v1205_v59, %v1205_v59  ;;  %v1203_v30 = vmax.f32 %v16704_v43, %v1141_v2  ;;  %v1649_v13 = vand.u32 7, %v16783_v9  ;;  %v1665_v51 = vshra.s32 %v16783_v9, 3 }
 0x30d   :  { %v1273_v19 = vpack.c.bf16 %v1209_v27, %v1209_v27  ;;  %v1274_v26 = vpack.c.bf16 %v1210_v0, %v1210_v0  ;;  %v1271_v45 = vpack.c.bf16 %v1207_v1, %v1207_v1  ;;  %v1272_v53 = vpack.c.bf16 %v1208_v23, %v1208_v23 }
 0x30e   :  { %v1535_v31 = vunpack.c.l.b16 %v1269_v24  ;;  %v1267_v54 = vpack.c.bf16 %v1203_v30, %v1203_v30  ;;  %v16810_v14 = vand.u32 7, %v1665_v51  ;;  %vm16828_vm8 = vcmp.ge.s32.totalorder %v1649_v13, 1 }
 0x30f   :  { %v1539_v61 = vunpack.c.l.b16 %v1273_v19  ;;  %v1540_v42 = vunpack.c.l.b16 %v1274_v26  ;;  %v1537_v35 = vunpack.c.l.b16 %v1271_v45  ;;  %v1538_v33 = vunpack.c.l.b16 %v1272_v53 }
 0x310   :  { %v1554_v60 = vpack.c.b16 %v1536_v41, %v1535_v31  ;;  %v1533_v50 = vunpack.c.l.b16 %v1267_v54  ;;  %vm1729_vm12 = vcmp.ge.s32.totalorder %v16810_v14, 1 }
 0x311   :  { %v1556_v48 = vpack.c.b16 %v1540_v42, %v1539_v61  ;;  %v1555_v34 = vpack.c.b16 %v1538_v33, %v1537_v35  ;;  %vm1794_vm14 = vmand %vm1729_vm12, %vm16828_vm8 }
 0x312   :  { %v1553_v44 = vpack.c.b16 %v1534_v62, %v1533_v50  ;;  %v20583_v50 = vmov 0 }
 0x313   :  { %1602 = vmatpush.bf16.msrb.mxu1 %v1556_v48  ;;  %v20584_v50 = vsel %vm16876_vm15, 4294967295, %v20583_v50 }
 0x317   :  { %1603 = vmatpush.bf16.msrb.mxu1 %v1555_v34 }
 0x31b   :  { %1604 = vmatpush.bf16.msrb.mxu1 %v1554_v60  ;;  %v1457_v40 = vpop.f32.mrf.mxu2 }
 0x31f   :  { %1605 = vmatpush.bf16.msrb.mxu1 %v1553_v44  ;;  %v1428_v43 = vpop.f32.mrf.mxu1 }
 0x320   :  { %v16764_v36 = vadd.f32 %v1457_v40, %v1428_v43 }
 0x322   :  { %v20435_v54 = vrot.slane %v16764_v36, 1 }
 0x323   :  { %1606 = vmatpush.bf16.msrb.mxu1 %v1552_v49  ;;  %v1459_v3 = vpop.f32.mrf.mxu2  ;;  %v16780_v49 = vadd.s32 16, %v16210_v15 }
 0x325   :  { %20569 = vst [vmem:[#allocation23_spill] sm:$0xff] %v16780_v49  ;;  %v1648_v12 = vand.u32 7, %v16780_v49  ;;  %v1664_v55 = vshra.s32 %v16780_v49, 3 }
 0x327   :  { %1607 = vmatpush.bf16.msrb.mxu1 %v1551_v4  ;;  %v1430_v63 = vpop.f32.mrf.mxu1  ;;  %v16776_v4 = vand.u32 7, %v1663_v56  ;;  %v16808_v11 = vand.u32 7, %v1664_v55  ;;  %vm16814_vm6 = vcmp.ge.s32.totalorder %v1648_v12, 1  ;;  %vm16917_vm0 = vcmp.le.s32.totalorder %v1648_v12, 6 }
 0x329   :  { %vm1743_vm5 = vcmp.le.s32.totalorder %v16776_v4, 6  ;;  %vm20432_vm11 = vcmp.ge.s32.totalorder %v16808_v11, 1 }
 0x32a   :  { %vm1793_vm13 = vmand %vm20432_vm11, %vm16814_vm6 }
 0x32b   :  { %1608 = vmatpush.bf16.msrb.mxu1 %v1550_v18  ;;  %v16768_v18 = vadd.f32 %v1459_v3, %v1430_v63 }
 0x32d   :  { %20567 = vst [vmem:[#allocation21_spill] sm:$0xff] %v16768_v18  ;;  %v1759_v38 = vrot.slane %v16768_v18, 7  ;;  %v1936_v60 = vrot.slane %v16768_v18, 1 }
 0x32f   :  { %1609 = vmatpush.bf16.msrb.mxu1 %v1549_v37  ;;  %v16774_v37 = vand.u32 7, %v1662_v25 }
 0x331   :  { %v1433_v28 = vpop.f32.mrf.mxu1  ;;  %vm1742_vm4 = vcmp.le.s32.totalorder %v16774_v37, 6 }
 0x332   :  { %1610 = vmatmul.bf16.vlgmr.msrb.gmra.mxu1 %v16611_v5  ;;  %v1647_v5 = vand.u32 7, %v16762_v29  ;;  %vm16822_vm7 = vmand %vm1742_vm4, %vm16788_vm2  ;;  %v2303_v6 = vsel %vm1742_vm4, %v16768_v18, 0.0 }
 0x333   :  { %3278 = vmatpush.bf16.msra.mxu1 %v14739_v16  ;;  %v2319_v35 = vpack.c.bf16 %v2303_v6, %v2303_v6 }
 0x334   :  { %vm16792_vm3 = vcmp.ge.s32.totalorder %v1647_v5, 1 }
 0x335   :  { %v20575_v10 = vsel %vm16792_vm3, 4294967295, %v20574_v10  ;;  %vm2192_vm10 = vmand %vm1743_vm5, %vm16792_vm3  ;;  %v2791_v32 = vunpack.c.l.b16 %v2319_v35 }
 0x337   :  { %3279 = vmatpush.bf16.msra.mxu1 %v14738_v20 }
 0x339   :  { %v1435_v0 = vpop.f32.mrf.mxu1 }
 0x33c   :  { %v1462_v7 = vpop.f32.mrf.mxu2 }
 0x33d   :  { %v16770_v22 = vadd.f32 %v1462_v7, %v1433_v28 }
 0x33f   :  { %20568 = vst [vmem:[#allocation22_spill] sm:$0xff] %v16770_v22  ;;  %v1760_v8 = vrot.slane %v16770_v22, 7  ;;  %v2304_v45 = vsel %vm1743_vm5, %v16770_v22, 0.0  ;;  %v1937_v62 = vrot.slane %v16770_v22, 1 }
 0x340   :  { %v2320_v33 = vpack.c.bf16 %v2304_v45, %v2304_v45 }
 0x341   :  { %v1788_v2 = vsel %vm20428_vm9, %v1759_v38, %v1760_v8  ;;  %v1438_v30 = vpop.f32.mrf.mxu1 }
 0x342   :  { %1615 = vmatmul.bf16.gmra.mxu1 %v16641_v39  ;;  %v20436_v39 = vrot.slane %v16764_v36, 7  ;;  %v2240_v26 = vsel %vm2192_vm10, %v1788_v2, 0.0  ;;  %v16867_v47 = vsel %vm1794_vm14, %v1788_v2, 0.0  ;;  %v2792_v31 = vunpack.c.l.b16 %v2320_v33  ;;  %vm16905_vm14 = vmand %vm1742_vm4, %vm16876_vm15 }
 0x343   :  { %v2256_v42 = vpack.c.bf16 %v2240_v26, %v2240_v26  ;;  %v2081_v63 = vsel %vm16814_vm6, %v1788_v2, 0.0  ;;  %vm20430_vm10 = vcmp.le.s32.totalorder %v16808_v11, 6 }
 0x344   :  { %v1464_v1 = vpop.f32.mrf.mxu2  ;;  %v16848_v19 = vsel %vm20428_vm9, %v20436_v39, %v1759_v38  ;;  %v2807_v3 = vpack.c.b16 %v2792_v31, %v2791_v32  ;;  %v2097_v57 = vpack.c.bf16 %v2081_v63, %v2081_v63 }
 0x345   :  { %v16862_v53 = vsel %vm1793_vm13, %v16848_v19, 0.0  ;;  %v2239_v61 = vsel %vm16822_vm7, %v16848_v19, 0.0  ;;  %v2736_v48 = vunpack.c.l.b16 %v2256_v42  ;;  %v16869_v41 = vadd.f32 %v1464_v1, %v1435_v0 }
 0x346   :  { %v2255_v59 = vpack.c.bf16 %v2239_v61, %v2239_v61  ;;  %vm16883_vm7 = vcmp.le.s32.totalorder %v1647_v5, 6  ;;  %vm20429_vm13 = vcmp.le.s32.totalorder %v16810_v14, 6  ;;  %v16947_v1 = vsel %vm20441_vm1, %v1936_v60, %v1937_v62 }
 0x347   :  { %20582 = vst [vmem:[#allocation25_spill] sm:$0xff] %v16869_v41  ;;  %v1761_v43 = vrot.slane %v16869_v41, 7  ;;  %v2305_v7 = vsel %vm20430_vm10, %v16869_v41, 0.0  ;;  %vm16925_vm4 = vmand %vm1743_vm5, %vm16883_vm7  ;;  %v2585_v26 = vunpack.c.l.b16 %v2097_v57  ;;  %v16964_v61 = vsel %vm20441_vm1, %v20435_v54, %v1936_v60 }
 0x348   :  { %v2735_v58 = vunpack.c.l.b16 %v2255_v59  ;;  %v2321_v27 = vpack.c.bf16 %v2305_v7, %v2305_v7  ;;  %vm16955_vm10 = vmand %vm20432_vm11, %vm16917_vm0  ;;  %20599 = vst [vmem:[#allocation26_spill] sm:$0xff] %v16964_v61  ;;  %vm20602_vm11 = vcmp.le.s32.totalorder %v16808_v11, 6  ;;  %v2383_v33 = vsel %vm16905_vm14, %v16947_v1, 0.0 }
 0x349   :  { %v16896_v28 = vsel %vm20428_vm9, %v1760_v8, %v1761_v43  ;;  %vm16932_vm9 = vcmp.le.s32.totalorder %v1649_v13, 6  ;;  %v1440_v12 = vpop.f32.mrf.mxu1  ;;  %vm2337_vm2 = vmand %vm20602_vm11, %vm16917_vm0  ;;  %v2159_v31 = vsel %vm16876_vm15, %v16964_v61, 0.0  ;;  %v2160_v60 = vsel %vm16883_vm7, %v16947_v1, 0.0 }
 0x34a   :  { %v2751_v24 = vpack.c.b16 %v2736_v48, %v2735_v58  ;;  %v2082_v56 = vsel %vm16828_vm8, %v16896_v28, 0.0  ;;  %v2793_v58 = vunpack.c.l.b16 %v2321_v27  ;;  %vm20603_vm11 = vcmp.le.s32.totalorder %v16810_v14, 6 }
 0x34b   :  { %v2098_v20 = vpack.c.bf16 %v2082_v56, %v2082_v56  ;;  %v2175_v25 = vpack.c.bf16 %v2159_v31, %v2159_v31  ;;  %v2176_v56 = vpack.c.bf16 %v2160_v60, %v2160_v60 }
 0x34c   :  { %v1467_v34 = vpop.f32.mrf.mxu2  ;;  %2759 = vrot.lane.b32.xlu2 %v2751_v24, %s15639_s4  ;;  %v16991_v24 = vadd.s32 32, %v16210_v15 }
 0x34d   :  { %v16880_v44 = vadd.f32 %v1467_v34, %v1438_v30  ;;  %v2586_v45 = vunpack.c.l.b16 %v2098_v20  ;;  %v16994_v30 = vadd.s32 40, %v16210_v15  ;;  %v2399_v20 = vpack.c.bf16 %v2383_v33, %v2383_v33 }
 0x34e   :  { %v1650_v0 = vand.u32 7, %v16991_v24  ;;  %v17034_v33 = vunpack.c.l.b16 %v2175_v25 }
 0x34f   :  { %v2306_v5 = vsel %vm20429_vm13, %v16880_v44, 0.0  ;;  %v1939_v51 = vrot.slane %v16880_v44, 1  ;;  %vm20431_vm13 = vcmp.ge.s32.totalorder %v16776_v4, 1  ;;  %v2600_v63 = vpack.c.b16 %v2586_v45, %v2585_v26 }
 0x350   :  { %vm16941_vm5 = vmand %vm20431_vm13, %vm16883_vm7  ;;  %v2322_v2 = vpack.c.bf16 %v2306_v5, %v2306_v5  ;;  %v1667_v40 = vshra.s32 %v16994_v30, 3  ;;  %v1762_v57 = vrot.slane %v16880_v44, 7  ;;  %20604 = vst [vmem:[#allocation27_spill] sm:$0xff] %v17034_v33 }
 0x351   :  { %vm16970_vm13 = vmand %vm1729_vm12, %vm16932_vm9  ;;  %v16999_v32 = vsel %vm16941_vm5, %v16964_v61, 0.0  ;;  %v1443_v5 = vpop.f32.mrf.mxu1 }
 0x352   :  { %1620 = vmatmul.bf16.gmra.mxu1 %v16680_v21  ;;  %v1938_v21 = vrot.slane %v16869_v41, 1  ;;  %v2794_v34 = vunpack.c.l.b16 %v2322_v2  ;;  %vm2338_vm7 = vmand %vm20603_vm11, %vm16932_vm9  ;;  %v1651_v2 = vand.u32 7, %v16994_v30  ;;  %v17032_v31 = vand.u32 7, %v1667_v40 }
 0x353   :  { %v2847_v40 = vunpack.c.l.b16 %v2399_v20 }
 0x354   :  { %v1469_v8 = vpop.f32.mrf.mxu2  ;;  %2815 = vrot.lane.b32.xlu2 %v2807_v3, %s15640_s30  ;;  %v16976_v59 = vsel %vm20441_vm1, %v1937_v62, %v1938_v21  ;;  %v16981_v35 = vsel %vm20441_vm1, %v1938_v21, %v1939_v51  ;;  %v1666_v3 = vshra.s32 %v16991_v24, 3  ;;  %vm17042_vm14 = vcmp.ge.s32.totalorder %v1651_v2, 1 }
 0x355   :  { %v16949_v13 = vadd.f32 %v1469_v8, %v1440_v12  ;;  %v2384_v62 = vsel %vm16925_vm4, %v16976_v59, 0.0  ;;  %v2385_v21 = vsel %vm2337_vm2, %v16981_v35, 0.0  ;;  %v2808_v8 = vpack.c.b16 %v2794_v34, %v2793_v58 }
 0x356   :  { %v2400_v12 = vpack.c.bf16 %v2384_v62, %v2384_v62  ;;  %v2401_v27 = vpack.c.bf16 %v2385_v21, %v2385_v21  ;;  %v17028_v26 = vand.u32 7, %v1666_v3  ;;  %v17036_v58 = vunpack.c.l.b16 %v2176_v56 }
 0x357   :  { %v20438_v48 = vrot.slane %v16949_v13, 1  ;;  %v20437_v45 = vrot.slane %v16949_v13, 7  ;;  %vm17038_vm2 = vcmp.ge.s32.totalorder %v1650_v0, 1  ;;  %vm20610_vm4 = vcmp.lt.s32.totalorder %v16210_v15, 1 }
 0x358   :  { %20605 = vst [vmem:[#allocation28_spill] sm:$0xff] %v17036_v58  ;;  %vm20440_vm5 = vcmp.le.s32.totalorder %v17028_v26, 6  ;;  %vm20611_vm11 = vmmov %vm20610_vm4  ;;  %v2848_v25 = vunpack.c.l.b16 %v2400_v12  ;;  %v17648_v58 = vadd.s32 112, %v16210_v15 }
 0x359   :  { %v17016_v7 = vsel %vm20441_vm1, %v1939_v51, %v20438_v48  ;;  %v17057_v60 = vsel %vm20611_vm11, %v1762_v57, %v20437_v45  ;;  %v2307_v3 = vsel %vm20440_vm5, %v16949_v13, 0.0  ;;  %v1906_v45 = vsel %vm1729_vm12, %v16770_v22, 0.0 }
 0x35a   :  { %v2386_v51 = vsel %vm2338_vm7, %v17016_v7, 0.0  ;;  %vm20439_vm7 = vcmp.le.s32.totalorder %v17032_v31, 6  ;;  %v2323_v20 = vpack.c.bf16 %v2307_v3, %v2307_v3  ;;  %vm20613_vm11 = vcmp.le.s32.totalorder %v16808_v11, 6 }
 0x35b   :  { %v2402_v30 = vpack.c.bf16 %v2386_v51, %v2386_v51  ;;  %v1445_v51 = vpop.f32.mrf.mxu1  ;;  %vm20616_vm5 = vcmp.le.s32.totalorder %v16810_v14, 6  ;;  %v17108_v3 = vadd.s32 56, %v16210_v15  ;;  %v2017_v14 = vsel %vm16955_vm10, %v16947_v1, 0.0 }
 0x35c   :  { %v1472_v55 = vpop.f32.mrf.mxu2  ;;  %2609 = vrot.lane.b32.xlu2 %v2600_v63, %s15640_s30  ;;  %vm17101_vm1 = vmand %vm20616_vm5, %vm16828_vm8  ;;  %vm17131_vm8 = vcmp.le.s32.totalorder %v1651_v2, 6  ;;  %vm20626_vm12 = vcmp.lt.s32.totalorder %v16210_v15, 7 }
 0x35d   :  { %v17063_v63 = vadd.f32 %v1472_v55, %v1443_v5  ;;  %v17081_v39 = vunpack.c.l.b16 %v2402_v30  ;;  %v1669_v6 = vshra.s32 %v17108_v3, 3  ;;  %v20448_v2 = vand.u32 7, %v17108_v3  ;;  %vm20629_vm10 = vmmov %vm20626_vm12 }
 0x35f   :  { %v2308_v5 = vsel %vm20439_vm7, %v17063_v63, 0.0  ;;  %vm20452_vm7 = vcmask 261120   ;;  %v1764_v52 = vrot.slane %v17063_v63, 7 }
 0x362   :  { %1625 = vmatmul.bf16.gmra.mxu1 %v16709_v46  ;;  %v17050_v46 = vsel %vm20610_vm4, %v1761_v43, %v1762_v57  ;;  %v2084_v43 = vsel %vm17042_vm14, %v17057_v60, 0.0  ;;  %vm20612_vm4 = vcmp.ge.s32.totalorder %v16808_v11, 1  ;;  %v1636_v11 = vadd.s32 48, %v16210_v15 }
 0x363   :  { %v2083_v62 = vsel %vm17038_vm2, %v17050_v46, 0.0  ;;  %v2100_v56 = vpack.c.bf16 %v2084_v43, %v2084_v43  ;;  %v1905_v57 = vsel %vm20612_vm4, %v16768_v18, 0.0  ;;  %vm17091_vm4 = vmand %vm20613_vm11, %vm16814_vm6  ;;  %vm17118_vm6 = vcmp.le.s32.totalorder %v1650_v0, 6 }
 0x364   :  { %v2099_v21 = vpack.c.bf16 %v2083_v62, %v2083_v62  ;;  %v1474_v54 = vpop.f32.mrf.mxu2  ;;  %v17079_v62 = vunpack.c.l.b16 %v2401_v27  ;;  %2817 = vrot.lane.b32.xlu2 %v2808_v8, %s15640_s30  ;;  %v1921_v48 = vpack.c.bf16 %v1905_v57, %v1905_v57  ;;  %v2863_v27 = vpack.c.b16 %v2848_v25, %v2847_v40 }
 0x365   :  { %v2588_v43 = vunpack.c.l.b16 %v2100_v56  ;;  %v17095_v30 = vadd.f32 %v1474_v54, %v1445_v51  ;;  %v2324_v8 = vpack.c.bf16 %v2308_v5, %v2308_v5  ;;  %v1922_v40 = vpack.c.bf16 %v1906_v45, %v1906_v45 }
 0x366   :  { %v2587_v12 = vunpack.c.l.b16 %v2099_v21  ;;  %v1941_v54 = vrot.slane %v17063_v63, 1  ;;  %v17113_v23 = vunpack.c.l.b16 %v1921_v48  ;;  %v2795_v57 = vunpack.c.l.b16 %v2323_v20 }
 0x367   :  { %v17122_v5 = vunpack.c.l.b16 %v1922_v40  ;;  %v2796_v45 = vunpack.c.l.b16 %v2324_v8  ;;  %v20446_v9 = vrot.slane %v17095_v30, 1  ;;  %v2018_v48 = vsel %vm16970_vm13, %v16976_v59, 0.0 }
 0x368   :  { %20619 = vst [vmem:[#allocation29_spill] sm:$0xff] %v17113_v23  ;;  %v2601_v56 = vpack.c.b16 %v2588_v43, %v2587_v12  ;;  %v2033_v25 = vpack.c.bf16 %v2017_v14, %v2017_v14  ;;  %v1668_v49 = vshra.s32 %v1636_v11, 3  ;;  %v2034_v0 = vpack.c.bf16 %v2018_v48, %v2018_v48 }
 0x369   :  { %20622 = vst [vmem:[#allocation30_spill] sm:$0xff] %v17122_v5  ;;  %v20625_v12 = vrot.slane %v16949_v13, 1  ;;  %v2161_v8 = vsel %vm16917_vm0, %v16976_v59, 0.0  ;;  %v1652_v40 = vand.u32 7, %v1636_v11  ;;  %v2162_v48 = vsel %vm16932_vm9, %v16981_v35, 0.0 }
 0x36a   :  { %v17141_v42 = vunpack.c.l.b16 %v2033_v25  ;;  %v17148_v14 = vunpack.c.l.b16 %v2034_v0  ;;  %v17158_v16 = vsel %vm20629_vm10, %v1941_v54, %v20446_v9  ;;  %v20447_v59 = vrot.slane %v17095_v30, 7 }
 0x36b   :  { %v17139_v43 = vsel %vm20626_vm12, %v20625_v12, %v1941_v54  ;;  %v2809_v12 = vpack.c.b16 %v2796_v45, %v2795_v57  ;;  %v20630_v11 = vrot.slane %v16949_v13, 7  ;;  %vm20631_vm0 = vcmp.lt.s32.totalorder %v16210_v15, 1 }
 0x36c   :  { %20627 = vst [vmem:[#allocation31_spill] sm:$0xff] %v17141_v42  ;;  %2611 = vrot.lane.b32.xlu2 %v2601_v56, %s15640_s30  ;;  %vm17167_vm13 = vcmp.ge.s32.totalorder %v1652_v40, 1  ;;  %vm17173_vm9 = vcmp.ge.s32.totalorder %v20448_v2, 1  ;;  %v17177_v54 = vand.u32 7, %v1668_v49  ;;  %v17179_v56 = vand.u32 7, %v1669_v6  ;;  %vm20636_vm5 = vmmov %vm20631_vm0 }
 0x36d   :  { %20628 = vst [vmem:[#allocation32_spill] sm:$0xff] %v17148_v14  ;;  %v17165_v25 = vsel %vm20631_vm0, %v20630_v11, %v1764_v52  ;;  %v17185_v57 = vsel %vm20636_vm5, %v1764_v52, %v20447_v59  ;;  %v2177_v11 = vpack.c.bf16 %v2161_v8, %v2161_v8  ;;  %v2178_v1 = vpack.c.bf16 %v2162_v48, %v2162_v48 }
 0x36e   :  { %v2085_v45 = vsel %vm17167_vm13, %v17165_v25, 0.0  ;;  %v2086_v49 = vsel %vm17173_vm9, %v17185_v57, 0.0  ;;  %v2241_v9 = vsel %vm17091_vm4, %v16896_v28, 0.0  ;;  %vm17198_vm11 = vcmp.le.s32.totalorder %v1652_v40, 6 }
 0x36f   :  { %v2101_v6 = vpack.c.bf16 %v2085_v45, %v2085_v45  ;;  %v2102_v52 = vpack.c.bf16 %v2086_v49, %v2086_v49  ;;  %v17202_v2 = vunpack.c.l.b16 %v2177_v11  ;;  %v2242_v8 = vsel %vm17101_vm1, %v17050_v46, 0.0 }
 0x370   :  { %v2257_v0 = vpack.c.bf16 %v2241_v9, %v2241_v9  ;;  %v17207_v22 = vunpack.c.l.b16 %v2178_v1  ;;  %v2258_v48 = vpack.c.bf16 %v2242_v8, %v2242_v8  ;;  %vm1730_vm12 = vcmp.ge.s32.totalorder %v17028_v26, 1 }
 0x371   :  { %20639 = vst [vmem:[#allocation33_spill] sm:$0xff] %v17202_v2  ;;  %v2589_v29 = vunpack.c.l.b16 %v2101_v6  ;;  %vm20641_vm4 = vcmp.le.s32.totalorder %v17028_v26, 6  ;;  %v2590_v40 = vunpack.c.l.b16 %v2102_v52  ;;  %vm1731_vm1 = vcmp.ge.s32.totalorder %v17032_v31, 1  ;;  %vm1971_vm0 = vmand %vm1730_vm12, %vm17118_vm6 }
 0x372   :  { %11373 = vmatmul.msk.bf16.vlgmr.msra.gmra.mxu1 %vm20452_vm7, %v2863_v27  ;;  %20640 = vst [vmem:[#allocation34_spill] sm:$0xff] %v17207_v22  ;;  %vm17214_vm10 = vmand %vm20641_vm4, %vm17038_vm2  ;;  %v17218_v45 = vunpack.c.l.b16 %v2257_v0  ;;  %v1907_v9 = vsel %vm1730_vm12, %v16869_v41, 0.0  ;;  %v17231_v1 = vunpack.c.l.b16 %v2258_v48  ;;  %v1908_v0 = vsel %vm1731_vm1, %v16880_v44, 0.0 }
 0x373   :  { %v1923_v11 = vpack.c.bf16 %v1907_v9, %v1907_v9  ;;  %vm1972_vm5 = vmand %vm1731_vm1, %vm17131_vm8  ;;  %v2602_v49 = vpack.c.b16 %v2590_v40, %v2589_v29  ;;  %v1924_v6 = vpack.c.bf16 %v1908_v0, %v1908_v0  ;;  %v2019_v52 = vsel %vm1971_vm0, %v16981_v35, 0.0 }
 0x374   :  { %20644 = vst [vmem:[#allocation35_spill] sm:$0xff] %v17218_v45  ;;  %2819 = vrot.lane.b32.xlu2 %v2809_v12, %s15640_s30  ;;  %v2020_v12 = vsel %vm1972_vm5, %v17016_v7, 0.0  ;;  %vm20646_vm4 = vcmp.le.s32.totalorder %v17032_v31, 6  ;;  %v17251_v48 = vadd.s32 64, %v16210_v15  ;;  %v2035_v40 = vpack.c.bf16 %v2019_v52, %v2019_v52  ;;  %vm17261_vm0 = vmand %vm1730_vm12, %vm17038_vm2 }
 0x375   :  { %20645 = vst [vmem:[#allocation36_spill] sm:$0xff] %v17231_v1  ;;  %vm17246_vm7 = vmand %vm20646_vm4, %vm17042_vm14  ;;  %v17255_v29 = vunpack.c.l.b16 %v1923_v11  ;;  %v17265_v0 = vunpack.c.l.b16 %v1924_v6  ;;  %v2036_v21 = vpack.c.bf16 %v2020_v12, %v2020_v12  ;;  %v2163_v41 = vsel %vm17118_vm6, %v17016_v7, 0.0 }
 0x376   :  { %v2164_v11 = vsel %vm17131_vm8, %v17139_v43, 0.0  ;;  %vm17277_vm5 = vmand %vm1731_vm1, %vm17042_vm14  ;;  %v1670_v6 = vshra.s32 %v17251_v48, 3  ;;  %v17282_v52 = vunpack.c.l.b16 %v2035_v40  ;;  %v2179_v12 = vpack.c.bf16 %v2163_v41, %v2163_v41 }
 0x377   :  { %20649 = vst [vmem:[#allocation37_spill] sm:$0xff] %v17255_v29  ;;  %v2180_v9 = vpack.c.bf16 %v2164_v11, %v2164_v11  ;;  %vm20656_vm2 = vcmp.le.s32.totalorder %v17028_v26, 6  ;;  %v17290_v24 = vunpack.c.l.b16 %v2036_v21  ;;  %v2243_v18 = vsel %vm17214_vm10, %v17057_v60, 0.0 }
 0x378   :  { %20652 = vst [vmem:[#allocation38_spill] sm:$0xff] %v17265_v0  ;;  %vm2339_vm12 = vmand %vm20656_vm2, %vm17118_vm6  ;;  %v2244_v40 = vsel %vm17246_vm7, %v17165_v25, 0.0  ;;  %v20658_v41 = vand.u32 7, %v17108_v3  ;;  %v17304_v26 = vunpack.c.l.b16 %v2179_v12  ;;  %v2259_v21 = vpack.c.bf16 %v2243_v18, %v2243_v18 }
 0x379   :  { %20655 = vst [vmem:[#allocation39_spill] sm:$0xff] %v17282_v52  ;;  %v17306_v11 = vunpack.c.l.b16 %v2180_v9  ;;  %vm20663_vm6 = vmmov %vm20646_vm4  ;;  %v2260_v8 = vpack.c.bf16 %v2244_v40, %v2244_v40  ;;  %vm1732_vm7 = vcmp.ge.s32.totalorder %v17177_v54, 1  ;;  %vm1733_vm1 = vcmp.ge.s32.totalorder %v17179_v56, 1 }
 0x37a   :  { %20657 = vst [vmem:[#allocation40_spill] sm:$0xff] %v17290_v24  ;;  %vm17300_vm14 = vcmp.le.s32.totalorder %v20658_v41, 6  ;;  %vm17312_vm10 = vmand %vm20663_vm6, %vm17131_vm8  ;;  %v2387_v9 = vsel %vm2339_vm12, %v17139_v43, 0.0  ;;  %v17324_v31 = vunpack.c.l.b16 %v2259_v21  ;;  %v20667_v20 = vpack.c.b16 %v17081_v39, %v17079_v62 }
 0x37b   :  { %20661 = vst [vmem:[#allocation41_spill] sm:$0xff] %v17304_v26  ;;  %vm1973_vm8 = vmand %vm1732_vm7, %vm17198_vm11  ;;  %vm20668_vm4 = vcmask 261120   ;;  %v17334_v12 = vand.u32 7, %v1670_v6  ;;  %v17336_v40 = vunpack.c.l.b16 %v2260_v8  ;;  %v1910_v41 = vsel %vm1733_vm1, %v17063_v63, 0.0 }
 0x37c   :  { %20662 = vst [vmem:[#allocation42_spill] sm:$0xff] %v17306_v11  ;;  %2613 = vrot.lane.b32.xlu2 %v2602_v49, %s15640_s30  ;;  %v1909_v49 = vsel %vm1732_vm7, %v16949_v13, 0.0  ;;  %vm1974_vm2 = vmand %vm1733_vm1, %vm17300_vm14  ;;  %v2388_v39 = vsel %vm17312_vm10, %v17158_v16, 0.0  ;;  %v1926_v6 = vpack.c.bf16 %v1910_v41, %v1910_v41  ;;  %v2021_v8 = vsel %vm1973_vm8, %v17139_v43, 0.0 }
 0x37d   :  { %20666 = vst [vmem:[#allocation43_spill] sm:$0xff] %v17324_v31  ;;  %v1925_v62 = vpack.c.bf16 %v1909_v49, %v1909_v49  ;;  %v2403_v18 = vpack.c.bf16 %v2387_v9, %v2387_v9  ;;  %v2037_v26 = vpack.c.bf16 %v2021_v8, %v2021_v8  ;;  %v2404_v11 = vpack.c.bf16 %v2388_v39, %v2388_v39  ;;  %vm17392_vm8 = vmand %vm1732_vm7, %vm17167_vm13 }
 0x37e   :  { %20669 = vst [vmem:[#allocation44_spill] sm:$0xff] %v17336_v40  ;;  %v17357_v7 = vunpack.c.l.b16 %v1926_v6  ;;  %vm20478_vm12 = vcmp.le.s32.totalorder %v17177_v54, 6  ;;  %vm1734_vm6 = vcmp.ge.s32.totalorder %v17334_v12, 1  ;;  %v1857_v9 = vpack.c.bf16 %v16862_v53, %v16862_v53 }
 0x37f   :  { %v17355_v3 = vunpack.c.l.b16 %v1925_v62  ;;  %v17363_v41 = vunpack.c.l.b16 %v2037_v26  ;;  %vm2197_vm10 = vmand %vm20478_vm12, %vm17167_vm13  ;;  %v17372_v43 = vsel %vm1734_vm6, %v17095_v30, 0.0  ;;  %v17381_v26 = vsel %vm17198_vm11, %v17158_v16, 0.0 }
 0x380   :  { %20671 = vst [vmem:[#allocation46_spill] sm:$0xff] %v17357_v7  ;;  %v17384_v62 = vsel %vm2197_vm10, %v17185_v57, 0.0  ;;  %v1858_v6 = vpack.c.bf16 %v16867_v47, %v16867_v47  ;;  %v2851_v53 = vunpack.c.l.b16 %v2403_v18  ;;  %v1843_v38 = vsel %vm17261_vm0, %v16896_v28, 0.0 }
 0x381   :  { %20670 = vst [vmem:[#allocation45_spill] sm:$0xff] %v17355_v3  ;;  %v1859_v18 = vpack.c.bf16 %v1843_v38, %v1843_v38  ;;  %v1845_v28 = vsel %vm17392_vm8, %v17057_v60, 0.0  ;;  %vm20682_vm13 = vcmask 261120   ;;  %vm20458_vm0 = vcmp.le.s32.totalorder %v17179_v56, 6 }
 0x382   :  { %11374 = vmatmul.msk.bf16.gmra.mxu1 %vm20668_vm4, %v20667_v20  ;;  %v2022_v20 = vsel %vm1974_vm2, %v17158_v16, 0.0  ;;  %20672 = vst [vmem:[#allocation47_spill] sm:$0xff] %v17363_v41  ;;  %vm1798_vm4 = vmand %vm1733_vm1, %vm17173_vm9  ;;  %v17404_v47 = vunpack.c.l.b16 %v1858_v6  ;;  %v2116_v6 = vpack.c.bf16 %v16949_v13, %v16949_v13  ;;  %v1582_v13 = vpop.f32.mrf.mxu3  ;;  %v1927_v7 = vpack.c.bf16 %v17372_v43, %v17372_v43 }
 0x383   :  { %v2038_v55 = vpack.c.bf16 %v2022_v20, %v2022_v20  ;;  %v2852_v20 = vunpack.c.l.b16 %v2404_v11  ;;  %v1844_v11 = vsel %vm17277_vm5, %v17050_v46, 0.0  ;;  %v17418_v41 = vunpack.c.l.b16 %v1859_v18  ;;  %vm17456_vm1 = vmand %vm20458_vm0, %vm17173_vm9 }
 0x384   :  { %20677 = vst [vmem:[#allocation50_spill] sm:$0xff] %v17404_v47  ;;  %v1860_v21 = vpack.c.bf16 %v1844_v11, %v1844_v11  ;;  %v17427_v34 = vunpack.c.l.b16 %v2116_v6  ;;  %v1654_v11 = vand.u32 7, %v17251_v48  ;;  %v2118_v6 = vpack.c.bf16 %v17095_v30, %v17095_v30 }
 0x385   :  { %v17376_v39 = vunpack.c.l.b16 %v2038_v55  ;;  %v17398_v55 = vunpack.c.l.b16 %v1857_v9  ;;  %v2115_v9 = vpack.c.bf16 %v16880_v44, %v16880_v44  ;;  %v2865_v16 = vpack.c.b16 %v2852_v20, %v2851_v53  ;;  %20678 = vst [vmem:[#allocation51_spill] sm:$0xff] %v17418_v41 }
 0x386   :  { %v17425_v46 = vunpack.c.l.b16 %v1860_v21  ;;  %20681 = vst [vmem:[#allocation54_spill] sm:$0xff] %v17427_v34  ;;  %v1846_v44 = vsel %vm1798_vm4, %v17165_v25, 0.0  ;;  %v1861_v53 = vpack.c.bf16 %v1845_v28, %v1845_v28  ;;  %v1639_v21 = vadd.s32 72, %v16210_v15 }
 0x387   :  { %20673 = vst [vmem:[#allocation48_spill] sm:$0xff] %v17376_v39  ;;  %v17420_v35 = vunpack.c.l.b16 %v2115_v9  ;;  %v1862_v20 = vpack.c.bf16 %v1846_v44, %v1846_v44  ;;  %vm17444_vm5 = vcmp.le.s32.totalorder %v1654_v11, 6  ;;  %vm17448_vm7 = vcmp.ge.s32.totalorder %v1654_v11, 1 }
 0x388   :  { %20676 = vst [vmem:[#allocation49_spill] sm:$0xff] %v17398_v55  ;;  %v17436_v8 = vunpack.c.l.b16 %v1861_v53  ;;  %v2117_v9 = vpack.c.bf16 %v17063_v63, %v17063_v63  ;;  %v1671_v28 = vshra.s32 %v1639_v21, 3  ;;  %vm17468_vm2 = vmand %vm1734_vm6, %vm17444_vm5  ;;  %v17474_v53 = vunpack.c.l.b16 %v2118_v6 }
 0x389   :  { %20679 = vst [vmem:[#allocation52_spill] sm:$0xff] %v17420_v35  ;;  %v17438_v60 = vunpack.c.l.b16 %v1862_v20  ;;  %v17477_v20 = vadd.s32 120, %v16210_v15  ;;  %vm1799_vm9 = vmand %vm1734_vm6, %vm17448_vm7  ;;  %v1655_v25 = vand.u32 7, %v1639_v21  ;;  %v1640_v21 = vadd.s32 80, %v16210_v15 }
 0x38a   :  { %20680 = vst [vmem:[#allocation53_spill] sm:$0xff] %v17425_v46  ;;  %v17472_v27 = vunpack.c.l.b16 %v2117_v9  ;;  %v17486_v11 = vsel %vm1799_vm9, %v17185_v57, 0.0  ;;  %v17488_v38 = vand.u32 7, %v1671_v28  ;;  %vm20464_vm4 = vcmp.le.s32.totalorder %v17334_v12, 6  ;;  %v1584_v34 = vpop.f32.mrf.mxu3 }
 0x38b   :  { %20683 = vst [vmem:[#allocation55_spill] sm:$0xff] %v17436_v8  ;;  %vm17490_vm10 = vcmp.le.s32.totalorder %v1655_v25, 6  ;;  %v1677_v6 = vshra.s32 %v17477_v20, 3  ;;  %vm17517_vm0 = vmand %vm20464_vm4, %vm17448_vm7  ;;  %v1641_v8 = vadd.s32 88, %v16210_v15  ;;  %v20705_v35 = vmov 0 }
 0x38c   :  { %20684 = vst [vmem:[#allocation56_spill] sm:$0xff] %v17438_v60  ;;  %vm20459_vm8 = vcmp.ge.s32.totalorder %v17488_v38, 1  ;;  %vm20704_vm4 = vcmp.ge.s32.totalorder %v17488_v38, 1  ;;  %v2032_v39 = vpack.c.bf16 %v16999_v32, %v16999_v32  ;;  %v20707_v31 = vmov 0 }
 0x38d   :  { %20693 = vst [vmem:[#allocation57_spill] sm:$0xff] %v17472_v27  ;;  %vm17500_vm6 = vmand %vm20459_vm8, %vm17490_vm10  ;;  %v17504_v57 = vand.u32 7, %v1677_v6  ;;  %v1672_v6 = vshra.s32 %v1640_v21, 3  ;;  %vm20703_vm8 = vcmp.ge.s32.totalorder %v16776_v4, 1  ;;  %v1673_v40 = vshra.s32 %v1641_v8, 3 }
 0x38e   :  { %20694 = vst [vmem:[#allocation58_spill] sm:$0xff] %v17474_v53  ;;  %v1904_v27 = vsel %vm20703_vm8, %v16764_v36, 0.0  ;;  %v2309_v53 = vsel %vm20478_vm12, %v17095_v30, 0.0  ;;  %vm20480_vm8 = vcmp.le.s32.totalorder %v17488_v38, 6  ;;  %v20722_v0 = vrot.slane %v17095_v30, 1 }
 0x38f   :  { %vm20477_vm9 = vcmp.le.s32.totalorder %v17504_v57, 6  ;;  %v17542_v41 = vand.u32 7, %v1672_v6  ;;  %v1920_v46 = vpack.c.bf16 %v1904_v27, %v1904_v27  ;;  %v2325_v47 = vpack.c.bf16 %v2309_v53, %v2309_v53 }
 0x390   :  { %v2318_v60 = vsel %vm20477_vm9, %v16764_v36, 0.0  ;;  %v2261_v6 = vpack.c.bf16 %v17384_v62, %v17384_v62  ;;  %v17576_v27 = vunpack.c.l.b16 %v2032_v39  ;;  %v20724_v59 = vrot.slane %v17095_v30, 7 }
 0x391   :  { %v2334_v3 = vpack.c.bf16 %v2318_v60, %v2318_v60  ;;  %v17564_v60 = vunpack.c.l.b16 %v1920_v46  ;;  %vm20483_vm12 = vcmp.ge.s32.totalorder %v17542_v41, 1  ;;  %v2797_v62 = vunpack.c.l.b16 %v2325_v47 }
 0x392   :  { %11375 = vmatmul.msk.bf16.gmra.mxu1 %vm20682_vm13, %v2865_v16  ;;  %vm17508_vm13 = vcmp.ge.s32.totalorder %v1655_v25, 1  ;;  %v2080_v25 = vsel %vm16792_vm3, %v16848_v19, 0.0  ;;  %v1656_v19 = vand.u32 7, %v1640_v21  ;;  %v2181_v21 = vpack.c.bf16 %v17381_v26, %v17381_v26 }
 0x393   :  { %vm17538_vm15 = vmand %vm20704_vm4, %vm17508_vm13  ;;  %v2096_v55 = vpack.c.bf16 %v2080_v25, %v2080_v25  ;;  %v17574_v25 = vadd.s32 96, %v16210_v15  ;;  %v17578_v52 = vunpack.c.l.b16 %v2334_v3  ;;  %v17588_v46 = vand.u32 7, %v1673_v40 }
 0x394   :  { %v20706_v35 = vsel %vm17538_vm15, 4294967295, %v20705_v35  ;;  %vm17549_vm4 = vcmp.le.s32.totalorder %v1656_v19, 6  ;;  %vm17560_vm9 = vmand %vm20480_vm8, %vm17508_vm13  ;;  %vm20717_vm3 = vcmp.le.s32.totalorder %v17179_v56, 6  ;;  %v17604_v40 = vadd.s32 104, %v16210_v15 }
 0x395   :  { %v20708_v31 = vsel %vm17549_vm4, 4294967295, %v20707_v31  ;;  %v17566_v53 = vunpack.c.l.b16 %v2096_v55  ;;  %20712 = vst [vmem:[#allocation60_spill] sm:$0xff] %v17578_v52  ;;  %vm17584_vm8 = vmand %vm20483_vm12, %vm17549_vm4  ;;  %vm20718_vm12 = vcmp.le.s32.totalorder %v17177_v54, 6  ;;  %vm17606_vm4 = vcmp.ge.s32.totalorder %v1656_v19, 1  ;;  %v1587_v19 = vpop.f32.mrf.mxu3 }
 0x396   :  { %vm2341_vm15 = vmand %vm20718_vm12, %vm17198_vm11  ;;  %v17610_v29 = vunpack.c.l.b16 %v2261_v6  ;;  %vm20725_vm11 = vcmp.lt.s32.totalorder %v16210_v15, 1  ;;  %vm20726_vm12 = vcmp.ge.s32.totalorder %v17488_v38, 1  ;;  %v1675_v30 = vshra.s32 %v17604_v40, 3 }
 0x397   :  { %v20729_v22 = vmov 0 }
 0x398   :  { %20721 = vst [vmem:[#allocation63_spill] sm:$0xff] %v17610_v29  ;;  %v17683_v44 = vand.u32 7, %v1675_v30 }
 0x3af   :  { %v1611_v43 = vpop.f32.mrf.mxu1 }
 0x3b0   :  { %v17571_v26 = vadd.f32 %v1611_v43, %v1582_v13  ;;  %v17590_v13 = vunpack.c.l.b16 %v2181_v21  ;;  %v17592_v43 = vunpack.c.l.b16 %v1927_v7  ;;  %v1657_v21 = vand.u32 7, %v1641_v8 }
 0x3b2   :  { %20711 = vst [vmem:[#allocation59_spill] sm:$0xff] %v17571_v26  ;;  %v1766_v39 = vrot.slane %v17571_v26, 7  ;;  %v1943_v3 = vrot.slane %v17571_v26, 1  ;;  %v2310_v24 = vsel %vm20717_vm3, %v17571_v26, 0.0  ;;  %vm20723_vm3 = vcmp.lt.s32.totalorder %v16210_v15, 7 }
 0x3b3   :  { %20715 = vst [vmem:[#allocation61_spill] sm:$0xff] %v17590_v13  ;;  %v2326_v47 = vpack.c.bf16 %v2310_v24, %v2310_v24  ;;  %v1674_v24 = vshra.s32 %v17574_v25, 3  ;;  %v1912_v8 = vsel %vm20726_vm12, %v17571_v26, 0.0  ;;  %vm20499_vm12 = vcmp.ge.s32.totalorder %v17588_v46, 1  ;;  %v1589_v13 = vpop.f32.mrf.mxu3 }
 0x3b4   :  { %20716 = vst [vmem:[#allocation62_spill] sm:$0xff] %v17592_v43  ;;  %v1958_v45 = vsel %vm20723_vm3, %v20722_v0, %v1943_v3  ;;  %v17620_v54 = vsel %vm20725_vm11, %v20724_v59, %v1766_v39  ;;  %vm17629_vm3 = vcmp.le.s32.totalorder %v1657_v21, 6  ;;  %v20727_v0 = vmov 0 }
 0x3b5   :  { %v2798_v6 = vunpack.c.l.b16 %v2326_v47  ;;  %v2389_v1 = vsel %vm2341_vm15, %v1958_v45, 0.0  ;;  %v2087_v2 = vsel %vm17448_vm7, %v17620_v54, 0.0  ;;  %v20728_v0 = vsel %vm17629_vm3, 4294967295, %v20727_v0  ;;  %vm17654_vm7 = vmand %vm20499_vm12, %vm17629_vm3 }
 0x3b6   :  { %vm20502_vm11 = vcmp.le.s32.totalorder %v17542_v41, 6  ;;  %v2166_v59 = vsel %vm17300_vm14, %v1958_v45, 0.0  ;;  %vm17638_vm15 = vcmp.ge.s32.totalorder %v1657_v21, 1  ;;  %v2246_v42 = vsel %vm17456_vm1, %v17620_v54, 0.0 }
 0x3b7   :  { %v1613_v26 = vpop.f32.mrf.mxu1  ;;  %v2810_v47 = vpack.c.b16 %v2798_v6, %v2797_v62  ;;  %v20730_v22 = vsel %vm17638_vm15, 4294967295, %v20729_v22  ;;  %v2182_v18 = vpack.c.bf16 %v2166_v59, %v2166_v59  ;;  %v1928_v14 = vpack.c.bf16 %v1912_v8, %v1912_v8  ;;  %vm17669_vm1 = vmand %vm20502_vm11, %vm17606_vm4 }
 0x3b8   :  { %v17645_v23 = vadd.f32 %v1613_v26, %v1584_v34  ;;  %v2405_v5 = vpack.c.bf16 %v2389_v1, %v2389_v1  ;;  %v2103_v33 = vpack.c.bf16 %v2087_v2, %v2087_v2  ;;  %v2262_v21 = vpack.c.bf16 %v2246_v42, %v2246_v42 }
 0x3b9   :  { %2821 = vrot.lane.b32.xlu2 %v2810_v47, %s15640_s30  ;;  %v17659_v48 = vunpack.c.l.b16 %v2182_v18  ;;  %v17661_v34 = vunpack.c.l.b16 %v1928_v14  ;;  %v2023_v2 = vsel %vm17468_vm2, %v1958_v45, 0.0  ;;  %vm20738_vm12 = vcmp.le.s32.totalorder %v17179_v56, 6 }
 0x3ba   :  { %20731 = vst [vmem:[#allocation64_spill] sm:$0xff] %v17645_v23  ;;  %v1944_v26 = vrot.slane %v17645_v23, 1  ;;  %vm2342_vm3 = vmand %vm20738_vm12, %vm17300_vm14  ;;  %v1767_v42 = vrot.slane %v17645_v23, 7  ;;  %v1658_v14 = vand.u32 7, %v17574_v25  ;;  %v17680_v45 = vand.u32 7, %v1674_v24 }
 0x3bb   :  { %20734 = vst [vmem:[#allocation65_spill] sm:$0xff] %v17659_v48  ;;  %vm20507_vm2 = vcmp.le.s32.totalorder %v17588_v46, 6  ;;  %v17687_v6 = vunpack.c.l.b16 %v2262_v21  ;;  %vm20740_vm11 = vcmp.lt.s32.totalorder %v16210_v15, 7  ;;  %vm20741_vm14 = vcmp.lt.s32.totalorder %v16210_v15, 1 }
 0x3bc   :  { %20735 = vst [vmem:[#allocation66_spill] sm:$0xff] %v17661_v34  ;;  %v1957_v51 = vsel %vm20740_vm11, %v1943_v3, %v1944_v26  ;;  %v17693_v56 = vsel %vm20741_vm14, %v1766_v39, %v1767_v42  ;;  %v1676_v25 = vshra.s32 %v17648_v58, 3  ;;  %v2853_v30 = vunpack.c.l.b16 %v2405_v5 }
 0x3bd   :  { %20739 = vst [vmem:[#allocation67_spill] sm:$0xff] %v17687_v6  ;;  %v2390_v59 = vsel %vm2342_vm3, %v1957_v51, 0.0  ;;  %v2088_v47 = vsel %vm17508_vm13, %v17693_v56, 0.0  ;;  %v2591_v18 = vunpack.c.l.b16 %v2103_v33  ;;  %v2024_v39 = vsel %vm17500_vm6, %v1957_v51, 0.0  ;;  %vm17719_vm6 = vmand %vm20507_vm2, %vm17638_vm15 }
 0x3be   :  { %v2406_v21 = vpack.c.bf16 %v2390_v59, %v2390_v59  ;;  %v2104_v8 = vpack.c.bf16 %v2088_v47, %v2088_v47  ;;  %v2039_v52 = vpack.c.bf16 %v2023_v2, %v2023_v2  ;;  %v2040_v61 = vpack.c.bf16 %v2024_v39, %v2024_v39 }
 0x3bf   :  { %v1616_v48 = vpop.f32.mrf.mxu1  ;;  %v2167_v5 = vsel %vm17444_vm5, %v1957_v51, 0.0  ;;  %v2247_v28 = vsel %vm17517_vm0, %v17693_v56, 0.0  ;;  %vm20742_vm13 = vcmp.le.s32.totalorder %v17334_v12, 6  ;;  %v1659_v51 = vand.u32 7, %v17604_v40 }
 0x3c0   :  { %v17710_v33 = vadd.f32 %v1616_v48, %v1587_v19  ;;  %v2854_v59 = vunpack.c.l.b16 %v2406_v21  ;;  %v2592_v47 = vunpack.c.l.b16 %v2104_v8  ;;  %v2311_v63 = vsel %vm20742_vm13, %v17645_v23, 0.0  ;;  %vm20750_vm11 = vmmov %vm20742_vm13 }
 0x3c1   :  { %vm17724_vm3 = vcmp.ge.s32.totalorder %v1658_v14, 1  ;;  %v17728_v19 = vunpack.c.l.b16 %v2039_v52  ;;  %v17730_v48 = vunpack.c.l.b16 %v2040_v61  ;;  %vm20749_vm0 = vcmp.ge.s32.totalorder %v17542_v41, 1  ;;  %vm2343_vm12 = vmand %vm20750_vm11, %vm17444_vm5 }
 0x3c2   :  { %v1913_v8 = vsel %vm20749_vm0, %v17645_v23, 0.0  ;;  %v1768_v21 = vrot.slane %v17710_v33, 7  ;;  %v1945_v39 = vrot.slane %v17710_v33, 1  ;;  %v2866_v24 = vpack.c.b16 %v2854_v59, %v2853_v30 }
 0x3c3   :  { %20747 = vst [vmem:[#allocation68_spill] sm:$0xff] %v17728_v19  ;;  %v2603_v3 = vpack.c.b16 %v2592_v47, %v2591_v18  ;;  %vm20751_vm14 = vcmp.le.s32.totalorder %v17488_v38, 6  ;;  %v2327_v52 = vpack.c.bf16 %v2311_v63, %v2311_v63  ;;  %v2183_v23 = vpack.c.bf16 %v2167_v5, %v2167_v5 }
 0x3c4   :  { %20748 = vst [vmem:[#allocation69_spill] sm:$0xff] %v17730_v48  ;;  %v2312_v61 = vsel %vm20751_vm14, %v17710_v33, 0.0  ;;  %vm20752_vm13 = vcmask 261120   ;;  %vm20753_vm0 = vcmp.lt.s32.totalorder %v16210_v15, 7  ;;  %vm20754_vm2 = vcmp.lt.s32.totalorder %v16210_v15, 1 }
 0x3c5   :  { %11376 = vmatmul.msk.bf16.gmra.mxu1 %vm20752_vm13, %v2866_v24  ;;  %2615 = vrot.lane.b32.xlu2 %v2603_v3, %s15640_s30  ;;  %v2328_v30 = vpack.c.bf16 %v2312_v61, %v2312_v61  ;;  %v1956_v16 = vsel %vm20753_vm0, %v1944_v26, %v1945_v39  ;;  %v17752_v12 = vsel %vm20754_vm2, %v1767_v42, %v1768_v21  ;;  %v17754_v18 = vand.u32 7, %v1676_v25 }
 0x3c6   :  { %v2391_v59 = vsel %vm2343_vm12, %v1956_v16, 0.0  ;;  %v2089_v47 = vsel %vm17606_vm4, %v17752_v12, 0.0  ;;  %v2168_v24 = vsel %vm17490_vm10, %v1956_v16, 0.0  ;;  %v2263_v5 = vpack.c.bf16 %v2247_v28, %v2247_v28  ;;  %vm20759_vm12 = vmmov %vm20751_vm14 }
 0x3c7   :  { %v2800_v3 = vunpack.c.l.b16 %v2328_v30  ;;  %vm20516_vm5 = vcmp.le.s32.totalorder %v17680_v45, 6  ;;  %v2184_v63 = vpack.c.bf16 %v2168_v24, %v2168_v24  ;;  %v1618_v61 = vpop.f32.mrf.mxu1  ;;  %v2407_v42 = vpack.c.bf16 %v2391_v59, %v2391_v59  ;;  %v1592_v59 = vpop.f32.mrf.mxu3  ;;  %vm17781_vm14 = vmand %vm20759_vm12, %vm17490_vm10 }
 0x3c8   :  { %vm17763_vm2 = vcmp.le.s32.totalorder %v1658_v14, 6  ;;  %v2248_v40 = vsel %vm17560_vm9, %v17752_v12, 0.0  ;;  %vm20757_vm11 = vcmp.ge.s32.totalorder %v17588_v46, 1  ;;  %v1929_v30 = vpack.c.bf16 %v1913_v8, %v1913_v8 }
 0x3c9   :  { %v1914_v28 = vsel %vm20757_vm11, %v17710_v33, 0.0  ;;  %v17773_v19 = vadd.f32 %v1618_v61, %v1589_v13  ;;  %v2799_v48 = vunpack.c.l.b16 %v2327_v52  ;;  %v2105_v26 = vpack.c.bf16 %v2089_v47, %v2089_v47  ;;  %vm17807_vm11 = vmand %vm20516_vm5, %vm17724_vm3 }
 0x3ca   :  { %v17775_v24 = vunpack.c.l.b16 %v2183_v23  ;;  %v17785_v32 = vunpack.c.l.b16 %v2184_v63  ;;  %v2264_v43 = vpack.c.bf16 %v2248_v40, %v2248_v40  ;;  %v17787_v34 = vunpack.c.l.b16 %v2263_v5 }
 0x3cb   :  { %v1930_v13 = vpack.c.bf16 %v1914_v28, %v1914_v28  ;;  %v1946_v8 = vrot.slane %v17773_v19, 1  ;;  %v2811_v52 = vpack.c.b16 %v2800_v3, %v2799_v48  ;;  %v1769_v23 = vrot.slane %v17773_v19, 7 }
 0x3cc   :  { %20758 = vst [vmem:[#allocation70_spill] sm:$0xff] %v17775_v24  ;;  %vm20764_vm9 = vcmp.le.s32.totalorder %v17542_v41, 6  ;;  %vm17794_vm13 = vcmp.ge.s32.totalorder %v1659_v51, 1  ;;  %vm17798_vm10 = vcmp.le.s32.totalorder %v1659_v51, 6  ;;  %vm20524_vm0 = vcmp.le.s32.totalorder %v17683_v44, 6 }
 0x3cd   :  { %20762 = vst [vmem:[#allocation71_spill] sm:$0xff] %v17785_v32  ;;  %v2313_v9 = vsel %vm20764_vm9, %v17773_v19, 0.0  ;;  %v2855_v40 = vunpack.c.l.b16 %v2407_v42  ;;  %v17813_v3 = vunpack.c.l.b16 %v2264_v43  ;;  %v17815_v51 = vunpack.c.l.b16 %v1929_v30  ;;  %2823 = vrot.lane.b32.xlu2 %v2811_v52, %s15640_s30 }
 0x3ce   :  { %20763 = vst [vmem:[#allocation72_spill] sm:$0xff] %v17787_v34  ;;  %vm20773_vm12 = vcmp.lt.s32.totalorder %v16210_v15, 7  ;;  %vm20774_vm9 = vcmp.lt.s32.totalorder %v16210_v15, 1  ;;  %v17824_v28 = vunpack.c.l.b16 %v1930_v13  ;;  %v2025_v42 = vsel %vm17584_vm8, %v1956_v16, 0.0 }
 0x3cf   :  { %20771 = vst [vmem:[#allocation73_spill] sm:$0xff] %v17813_v3  ;;  %v1955_v63 = vsel %vm20773_vm12, %v1945_v39, %v1946_v8  ;;  %v17822_v61 = vsel %vm20774_vm9, %v1768_v21, %v1769_v23  ;;  %v2329_v52 = vpack.c.bf16 %v2313_v9, %v2313_v9  ;;  %v1621_v16 = vpop.f32.mrf.mxu1  ;;  %v2041_v13 = vpack.c.bf16 %v2025_v42, %v2025_v42 }
 0x3d0   :  { %20772 = vst [vmem:[#allocation74_spill] sm:$0xff] %v17815_v51  ;;  %v2392_v43 = vsel %vm17781_vm14, %v1955_v63, 0.0  ;;  %v2090_v30 = vsel %vm17638_vm15, %v17822_v61, 0.0  ;;  %v2026_v55 = vsel %vm17654_vm7, %v1955_v63, 0.0  ;;  %vm20776_vm8 = vnez %v20708_v31 }
 0x3d1   :  { %20775 = vst [vmem:[#allocation75_spill] sm:$0xff] %v17824_v28  ;;  %v2408_v5 = vpack.c.bf16 %v2392_v43, %v2392_v43  ;;  %v2106_v24 = vpack.c.bf16 %v2090_v30, %v2090_v30  ;;  %v2042_v14 = vpack.c.bf16 %v2026_v55, %v2026_v55  ;;  %v2169_v32 = vsel %vm20776_vm8, %v1955_v63, 0.0  ;;  %v1594_v55 = vpop.f32.mrf.mxu3 }
 0x3d2   :  { %v2249_v9 = vsel %vm17669_vm1, %v17822_v61, 0.0  ;;  %v17844_v29 = vadd.f32 %v1621_v16, %v1592_v59  ;;  %v2593_v30 = vunpack.c.l.b16 %v2105_v26  ;;  %v2801_v34 = vunpack.c.l.b16 %v2329_v52  ;;  %vm17885_vm1 = vmand %vm20524_vm0, %vm17794_vm13 }
 0x3d3   :  { %v2856_v43 = vunpack.c.l.b16 %v2408_v5  ;;  %v2594_v39 = vunpack.c.l.b16 %v2106_v24  ;;  %vm20777_vm7 = vcmp.le.s32.totalorder %v17542_v41, 6  ;;  %v20780_v63 = vand.u32 7, %v17648_v58 }
 0x3d4   :  { %vm17850_vm14 = vmand %vm20777_vm7, %vm20776_vm8  ;;  %v20781_v42 = vmov 0  ;;  %v17861_v1 = vunpack.c.l.b16 %v2041_v13  ;;  %v17863_v26 = vunpack.c.l.b16 %v2042_v14  ;;  %vm20517_vm9 = vcmp.ge.s32.totalorder %v17680_v45, 1 }
 0x3d5   :  { %vm17856_vm12 = vcmp.ge.s32.totalorder %v20780_v63, 1  ;;  %v1770_v31 = vrot.slane %v17844_v29, 7  ;;  %v1947_v24 = vrot.slane %v17844_v29, 1  ;;  %v2867_v59 = vpack.c.b16 %v2856_v43, %v2855_v40  ;;  %vm17872_vm8 = vmand %vm20517_vm9, %vm17763_vm2 }
 0x3d6   :  { %v20782_v42 = vsel %vm17856_vm12, 4294967295, %v20781_v42  ;;  %20783 = vst [vmem:[#allocation76_spill] sm:$0xff] %v17861_v1  ;;  %v2604_v5 = vpack.c.b16 %v2594_v39, %v2593_v30  ;;  %vm20787_vm7 = vcmp.le.s32.totalorder %v17588_v46, 6  ;;  %v2185_v14 = vpack.c.bf16 %v2169_v32, %v2169_v32 }
 0x3d7   :  { %20784 = vst [vmem:[#allocation77_spill] sm:$0xff] %v17863_v26  ;;  %v2314_v16 = vsel %vm20787_vm7, %v17844_v29, 0.0  ;;  %v2265_v63 = vpack.c.bf16 %v2249_v9, %v2249_v9  ;;  %vm20790_vm5 = vcmask 261120   ;;  %vm20791_vm7 = vcmp.lt.s32.totalorder %v16210_v15, 7  ;;  %v1623_v21 = vpop.f32.mrf.mxu1 }
 0x3d8   :  { %11377 = vmatmul.msk.bf16.gmra.mxu1 %vm20790_vm5, %v2867_v59  ;;  %2617 = vrot.lane.b32.xlu2 %v2604_v5, %s15640_s30  ;;  %v2330_v39 = vpack.c.bf16 %v2314_v16, %v2314_v16  ;;  %v1954_v43 = vsel %vm20791_vm7, %v1946_v8, %v1947_v24  ;;  %vm20792_vm9 = vcmp.lt.s32.totalorder %v16210_v15, 1  ;;  %vm20529_vm15 = vcmp.ge.s32.totalorder %v17683_v44, 1 }
 0x3d9   :  { %v17895_v32 = vsel %vm20792_vm9, %v1769_v23, %v1770_v31  ;;  %v2393_v9 = vsel %vm17850_vm14, %v1954_v43, 0.0  ;;  %v20793_v59 = vand.u32 7, %v17648_v58  ;;  %vm20796_vm7 = vnez %v20728_v0  ;;  %vm17918_vm14 = vmand %vm20529_vm15, %vm17798_vm10 }
 0x3da   :  { %v2091_v30 = vsel %vm17724_vm3, %v17895_v32, 0.0  ;;  %v2170_v8 = vsel %vm20796_vm7, %v1954_v43, 0.0  ;;  %v2250_v23 = vsel %vm17719_vm6, %v17895_v32, 0.0  ;;  %v2802_v58 = vunpack.c.l.b16 %v2330_v39 }
 0x3db   :  { %vm17905_vm5 = vcmp.le.s32.totalorder %v20793_v59, 6  ;;  %v2409_v16 = vpack.c.bf16 %v2393_v9, %v2393_v9  ;;  %v2107_v59 = vpack.c.bf16 %v2091_v30, %v2091_v30  ;;  %v2186_v13 = vpack.c.bf16 %v2170_v8, %v2170_v8 }
 0x3dc   :  { %v2266_v1 = vpack.c.bf16 %v2250_v23, %v2250_v23  ;;  %vm20799_vm9 = vcmp.ge.s32.totalorder %v17680_v45, 1  ;;  %v1916_v2 = vsel %vm20529_vm15, %v17844_v29, 0.0  ;;  %v2027_v51 = vsel %vm17872_vm8, %v1954_v43, 0.0 }
 0x3dd   :  { %v1915_v26 = vsel %vm20799_vm9, %v17773_v19, 0.0  ;;  %v17930_v28 = vadd.f32 %v1623_v21, %v1594_v55  ;;  %v2812_v3 = vpack.c.b16 %v2802_v58, %v2801_v34  ;;  %v17932_v39 = vunpack.c.l.b16 %v2185_v14 }
 0x3de   :  { %v17934_v9 = vunpack.c.l.b16 %v2265_v63  ;;  %vm20802_vm6 = vcmp.le.s32.totalorder %v17588_v46, 6  ;;  %v17944_v8 = vunpack.c.l.b16 %v2186_v13  ;;  %v17946_v23 = vunpack.c.l.b16 %v2266_v1 }
 0x3df   :  { %20800 = vst [vmem:[#allocation78_spill] sm:$0xff] %v17932_v39  ;;  %vm17940_vm0 = vmand %vm20802_vm6, %vm20796_vm7  ;;  %v1931_v52 = vpack.c.bf16 %v1915_v26, %v1915_v26  ;;  %v1932_v21 = vpack.c.bf16 %v1916_v2, %v1916_v2  ;;  %v1948_v34 = vrot.slane %v17930_v28, 1  ;;  %v2857_v55 = vunpack.c.l.b16 %v2409_v16 }
 0x3e0   :  { %20801 = vst [vmem:[#allocation79_spill] sm:$0xff] %v17934_v9  ;;  %v1771_v14 = vrot.slane %v17930_v28, 7  ;;  %vm20807_vm8 = vcmp.le.s32.totalorder %v17680_v45, 6  ;;  %vm20808_vm7 = vcmp.le.s32.totalorder %v17754_v18, 6  ;;  %v2595_v1 = vunpack.c.l.b16 %v2107_v59  ;;  %2825 = vrot.lane.b32.xlu2 %v2812_v3, %s15640_s30  ;;  %v1597_v59 = vpop.f32.mrf.mxu3 }
 0x3e1   :  { %20805 = vst [vmem:[#allocation80_spill] sm:$0xff] %v17944_v8  ;;  %v2315_v0 = vsel %vm20807_vm8, %v17930_v28, 0.0  ;;  %vm17957_vm9 = vmand %vm20808_vm7, %vm17856_vm12  ;;  %v2043_v43 = vpack.c.bf16 %v2027_v51, %v2027_v51  ;;  %vm20811_vm6 = vcmp.lt.s32.totalorder %v16210_v15, 7  ;;  %vm20812_vm8 = vcmp.lt.s32.totalorder %v16210_v15, 1 }
 0x3e2   :  { %20806 = vst [vmem:[#allocation81_spill] sm:$0xff] %v17946_v23  ;;  %v1953_v58 = vsel %vm20811_vm6, %v1947_v24, %v1948_v34  ;;  %v17970_v16 = vsel %vm20812_vm8, %v1770_v31, %v1771_v14  ;;  %v17972_v2 = vunpack.c.l.b16 %v1931_v52  ;;  %v17974_v6 = vunpack.c.l.b16 %v1932_v21  ;;  %v1626_v21 = vpop.f32.mrf.mxu1 }
 0x3e3   :  { %20813 = vst [vmem:[#allocation82_spill] sm:$0xff] %v17970_v16  ;;  %v2394_v26 = vsel %vm17940_vm0, %v1953_v58, 0.0  ;;  %v2092_v51 = vsel %vm17794_vm13, %v17970_v16, 0.0  ;;  %v2331_v3 = vpack.c.bf16 %v2315_v0, %v2315_v0  ;;  %v2028_v24 = vsel %vm17918_vm14, %v1953_v58, 0.0 }
 0x3e4   :  { %20814 = vst [vmem:[#allocation83_spill] sm:$0xff] %v17972_v2  ;;  %v2410_v63 = vpack.c.bf16 %v2394_v26, %v2394_v26  ;;  %v2108_v9 = vpack.c.bf16 %v2092_v51, %v2092_v51  ;;  %v2044_v52 = vpack.c.bf16 %v2028_v24, %v2028_v24  ;;  %v17985_v23 = vunpack.c.l.b16 %v2043_v43 }
 0x3e5   :  { %20815 = vst [vmem:[#allocation84_spill] sm:$0xff] %v17974_v6  ;;  %v2171_v30 = vsel %vm17763_vm2, %v1953_v58, 0.0  ;;  %v2251_v39 = vsel %vm17807_vm11, %v17970_v16, 0.0  ;;  %vm20530_vm0 = vcmp.ge.s32.totalorder %v17754_v18, 1  ;;  %v17993_v62 = vadd.f32 %v1626_v21, %v1597_v59 }
 0x3e6   :  { %20816 = vst [vmem:[#allocation85_spill] sm:$0xff] %v17985_v23  ;;  %v2858_v0 = vunpack.c.l.b16 %v2410_v63  ;;  %v2596_v26 = vunpack.c.l.b16 %v2108_v9  ;;  %v17995_v51 = vunpack.c.l.b16 %v2044_v52  ;;  %vm18001_vm14 = vmand %vm20530_vm0, %vm17905_vm5  ;;  %v2187_v58 = vpack.c.bf16 %v2171_v30, %v2171_v30 }
 0x3e7   :  { %20817 = vst [vmem:[#allocation86_spill] sm:$0xff] %v17993_v62  ;;  %v1917_v48 = vsel %vm20530_vm0, %v17930_v28, 0.0  ;;  %vm20821_vm11 = vnez %v20706_v35  ;;  %v1772_v63 = vrot.slane %v17993_v62, 7  ;;  %v1949_v59 = vrot.slane %v17993_v62, 1 }
 0x3e8   :  { %20818 = vst [vmem:[#allocation87_spill] sm:$0xff] %v17995_v51  ;;  %v18012_v9 = vsel %vm20821_vm11, %v17620_v54, 0.0  ;;  %v2868_v24 = vpack.c.b16 %v2858_v0, %v2857_v55  ;;  %v2605_v52 = vpack.c.b16 %v2596_v26, %v2595_v1  ;;  %vm20822_vm6 = vcmp.le.s32.totalorder %v17680_v45, 6 }
 0x3e9   :  { %vm2347_vm8 = vmand %vm20822_vm6, %vm17763_vm2  ;;  %vm20823_vm15 = vcmp.le.s32.totalorder %v17683_v44, 6  ;;  %vm20538_vm0 = vcmp.ge.s32.totalorder %v16774_v37, 1  ;;  %v2267_v54 = vpack.c.bf16 %v2251_v39, %v2251_v39  ;;  %vm20824_vm11 = vcmask 261120  }
 0x3ea   :  { %v2316_v21 = vsel %vm20823_vm15, %v17993_v62, 0.0  ;;  %11378 = vmatmul.msk.bf16.gmra.mxu1 %vm20824_vm11, %v2868_v24  ;;  %2619 = vrot.lane.b32.xlu2 %v2605_v52, %s15640_s30  ;;  %vm20825_vm7 = vcmp.lt.s32.totalorder %v16210_v15, 7  ;;  %vm20826_vm2 = vcmp.lt.s32.totalorder %v16210_v15, 1  ;;  %vm20827_vm15 = vcmp.ge.s32.totalorder %v17504_v57, 1  ;;  %v1628_v23 = vpop.f32.mrf.mxu1 }
 0x3eb   :  { %v2332_v55 = vpack.c.bf16 %v2316_v21, %v2316_v21  ;;  %v1952_v25 = vsel %vm20825_vm7, %v1948_v34, %v1949_v59  ;;  %v18032_v1 = vsel %vm20826_vm2, %v1771_v14, %v1772_v63  ;;  %v1918_v30 = vsel %vm20827_vm15, %v17993_v62, 0.0 }
 0x3ec   :  { %v2395_v0 = vsel %vm2347_vm8, %v1952_v25, 0.0  ;;  %v20828_v26 = vand.u32 7, %v17477_v20  ;;  %v2093_v24 = vsel %vm17856_vm12, %v18032_v1, 0.0  ;;  %v2172_v34 = vsel %vm17798_vm10, %v1952_v25, 0.0 }
 0x3ed   :  { %v2252_v14 = vsel %vm17885_vm1, %v18032_v1, 0.0  ;;  %v2803_v52 = vunpack.c.l.b16 %v2331_v3  ;;  %v2804_v21 = vunpack.c.l.b16 %v2332_v55  ;;  %v2188_v35 = vpack.c.bf16 %v2172_v34, %v2172_v34 }
 0x3ee   :  { %vm18039_vm6 = vcmp.ge.s32.totalorder %v20828_v26, 1  ;;  %v18051_v31 = vunpack.c.l.b16 %v2187_v58  ;;  %v1599_v26 = vpop.f32.mrf.mxu3  ;;  %v2268_v51 = vpack.c.bf16 %v2252_v14, %v2252_v14  ;;  %v1933_v2 = vpack.c.bf16 %v1917_v48, %v1917_v48 }
 0x3ef   :  { %v1934_v6 = vpack.c.bf16 %v1918_v30, %v1918_v30  ;;  %v18055_v8 = vsel %vm18001_vm14, %v1952_v25, 0.0  ;;  %v18057_v62 = vadd.f32 %v1628_v23, %v1599_v26  ;;  %v2411_v16 = vpack.c.bf16 %v2395_v0, %v2395_v0 }
 0x3f0   :  { %v20831_v40 = vand.u32 7, %v17477_v20  ;;  %v2109_v58 = vpack.c.bf16 %v2093_v24, %v2093_v24  ;;  %v18065_v55 = vunpack.c.l.b16 %v2267_v54  ;;  %v2813_v34 = vpack.c.b16 %v2804_v21, %v2803_v52 }
 0x3f1   :  { %v18067_v14 = vunpack.c.l.b16 %v2188_v35  ;;  %v18069_v48 = vunpack.c.l.b16 %v2268_v51  ;;  %v18071_v43 = vunpack.c.l.b16 %v1933_v2  ;;  %v1950_v23 = vrot.slane %v18057_v62, 1 }
 0x3f2   :  { %vm18061_vm1 = vcmp.le.s32.totalorder %v20831_v40, 6  ;;  %v1903_v20 = vsel %vm20538_vm0, %v18057_v62, 0.0  ;;  %v1773_v25 = vrot.slane %v18057_v62, 7  ;;  %vm20834_vm14 = vcmp.le.s32.totalorder %v17683_v44, 6  ;;  %2827 = vrot.lane.b32.xlu2 %v2813_v34, %s15640_s30 }
 0x3f3   :  { %vm2348_vm7 = vmand %vm20834_vm14, %vm17798_vm10  ;;  %vm20835_vm8 = vcmp.le.s32.totalorder %v17754_v18, 6  ;;  %v1919_v35 = vpack.c.bf16 %v1903_v20, %v1903_v20  ;;  %vm20836_vm11 = vnez %v20584_v50  ;;  %v2701_v54 = vpack.c.b16 %v18067_v14, %v18051_v31  ;;  %v20944_v14 = vld [vmem:[#allocation21_spill] sm:$0xff] }
 0x3f4   :  { %v2317_v51 = vsel %vm20835_vm8, %v18057_v62, 0.0  ;;  %vm18089_vm2 = vmand %vm20538_vm0, %vm20836_vm11  ;;  %v2757_v47 = vpack.c.b16 %v18069_v48, %v18065_v55  ;;  %v18097_v30 = vunpack.c.l.b16 %v1934_v6  ;;  %vm20839_vm10 = vnez %v20575_v10 }
 0x3f5   :  { %vm20840_vm15 = vcmp.ge.s32.totalorder %v16776_v4, 1  ;;  %v20843_v0 = vrot.slane %v16764_v36, 7  ;;  %vm20844_vm8 = vcmp.lt.s32.totalorder %v16210_v15, 1  ;;  %vm20845_vm11 = vcmp.lt.s32.totalorder %v16210_v15, 7 }
 0x3f6   :  { %vm18104_vm14 = vmand %vm20840_vm15, %vm20839_vm10  ;;  %v1951_v52 = vsel %vm20845_vm11, %v1949_v59, %v1950_v23  ;;  %v20847_v21 = vrot.slane %v16764_v36, 1  ;;  %v2471_v10 = vunpack.c.l.b16 %v1919_v35  ;;  %vm20849_vm10 = vnez %v20573_v17 }
 0x3f7   :  { %v1790_v24 = vsel %vm20844_vm8, %v1773_v25, %v20843_v0  ;;  %vm20846_vm0 = vmmov %vm20844_vm8  ;;  %v2396_v40 = vsel %vm2348_vm7, %v1951_v52, 0.0  ;;  %v2333_v34 = vpack.c.bf16 %v2317_v51, %v2317_v51  ;;  %vm20850_vm15 = vcmp.ge.s32.totalorder %v17542_v41, 1 }
 0x3f8   :  { %v1775_v6 = vsel %vm20846_vm0, %v1772_v63, %v1773_v25  ;;  %vm20848_vm12 = vmmov %vm20845_vm11  ;;  %v2079_v26 = vsel %vm20849_vm10, %v1790_v24, 0.0  ;;  %v2412_v20 = vpack.c.bf16 %v2396_v40, %v2396_v40  ;;  %v2487_v41 = vpack.c.b16 %v17564_v60, %v2471_v10 }
 0x3f9   :  { %v1966_v4 = vsel %vm20848_vm12, %v1950_v23, %v20847_v21  ;;  %vm18126_vm8 = vmand %vm20850_vm15, %vm17606_vm4  ;;  %v2095_v63 = vpack.c.bf16 %v2079_v26, %v2079_v26  ;;  %v2094_v25 = vsel %vm18039_vm6, %v1775_v6, 0.0  ;;  %vm20853_vm12 = vcmp.ge.s32.totalorder %v16774_v37, 1 }
 0x3fa   :  { %v2015_v23 = vsel %vm18089_vm2, %v1966_v4, 0.0  ;;  %vm18138_vm0 = vmand %vm20853_vm12, %vm20849_vm10  ;;  %v1840_v51 = vsel %vm18104_vm14, %v1790_v24, 0.0  ;;  %v2110_v35 = vpack.c.bf16 %v2094_v25, %v2094_v25  ;;  %v2859_v26 = vunpack.c.l.b16 %v2411_v16  ;;  %2495 = vrot.lane.b32.xlu0 %v2487_v41, %s15641_s27 }
 0x3fb   :  { %v2031_v0 = vpack.c.bf16 %v2015_v23, %v2015_v23  ;;  %v2583_v21 = vunpack.c.l.b16 %v2095_v63  ;;  %v2860_v40 = vunpack.c.l.b16 %v2412_v20  ;;  %vm20856_vm4 = vcmp.le.s32.totalorder %v17754_v18, 6 }
 0x3fc   :  { %vm2349_vm7 = vmand %vm20856_vm4, %vm17905_vm5  ;;  %v2494_v37 = vpack.c.b16 %v18097_v30, %v18071_v43  ;;  %v2597_v17 = vunpack.c.l.b16 %v2109_v58  ;;  %v2598_v60 = vunpack.c.l.b16 %v2110_v35  ;;  %vm20857_vm2 = vcmp.ge.s32.totalorder %v17504_v57, 1 }
 0x3fd   :  { %v2527_v2 = vunpack.c.l.b16 %v2031_v0  ;;  %vm1982_vm14 = vmand %vm20857_vm2, %vm18061_vm1  ;;  %v1863_v16 = vpack.c.bf16 %v17486_v11, %v17486_v11  ;;  %v2599_v50 = vpack.c.b16 %v17566_v53, %v2583_v21  ;;  %v2869_v10 = vpack.c.b16 %v2860_v40, %v2859_v26 }
 0x3fe   :  { %v1839_v63 = vsel %vm18138_vm0, %v1775_v6, 0.0  ;;  %v1856_v20 = vpack.c.bf16 %v1840_v51, %v1840_v51  ;;  %v2606_v25 = vpack.c.b16 %v2598_v60, %v2597_v17  ;;  %v2805_v23 = vunpack.c.l.b16 %v2333_v34 }
 0x3ff   :  { %v2397_v58 = vsel %vm2349_vm7, %v1966_v4, 0.0  ;;  %v1855_v41 = vpack.c.bf16 %v1839_v63, %v1839_v63  ;;  %2607 = vrot.lane.b32.xlu1 %v2599_v50, %s15640_s30  ;;  %vm20858_vm11 = vcmask 261120   ;;  %v2030_v0 = vsel %vm1982_vm14, %v1951_v52, 0.0  ;;  %v20865_v50 = vld [vmem:[#allocation26_spill] sm:$0xff] }
 0x400   :  { %11379 = vmatmul.msk.bf16.gmra.mxu1 %vm20858_vm11, %v2869_v10  ;;  %v18163_v35 = vunpack.c.l.b16 %v1856_v20  ;;  %v2045_v11 = vpack.c.bf16 %v18055_v8, %v18055_v8  ;;  %v2173_v53 = vsel %vm17905_vm5, %v1951_v52, 0.0  ;;  %vm20859_vm10 = vcmp.le.s32.totalorder %v17504_v57, 6  ;;  %2621 = vrot.lane.b32.xlu2 %v2606_v25, %s15640_s30 }
 0x401   :  { %vm2206_vm15 = vmand %vm20859_vm10, %vm18039_vm6  ;;  %v2543_v34 = vpack.c.b16 %v17576_v27, %v2527_v2  ;;  %v18175_v7 = vunpack.c.l.b16 %v1855_v41  ;;  %v2046_v51 = vpack.c.bf16 %v2030_v0, %v2030_v0  ;;  %v2174_v21 = vsel %vm18061_vm1, %v1966_v4, 0.0 }
 0x402   :  { %vm20860_vm12 = vnez %v20730_v22  ;;  %vm20861_vm0 = vcmp.ge.s32.totalorder %v17588_v46, 1  ;;  %vm20864_vm4 = vmmov %vm20859_vm10  ;;  %v18191_v27 = vunpack.c.l.b16 %v2045_v11  ;;  %v2189_v8 = vpack.c.bf16 %v2173_v53, %v2173_v53 }
 0x403   :  { %vm18183_vm5 = vmand %vm20861_vm0, %vm20860_vm12  ;;  %v2190_v52 = vpack.c.bf16 %v2174_v21, %v2174_v21  ;;  %v2253_v4 = vsel %vm17957_vm9, %v1775_v6, 0.0  ;;  %v2447_v22 = vpack.c.b16 %v18163_v35, %v18175_v7  ;;  %v18197_v46 = vunpack.c.l.b16 %v2046_v51  ;;  %2551 = vrot.lane.b32.xlu0 %v2543_v34, %s15639_s4  ;;  %v20867_v34 = vld [vmem:[#allocation28_spill] sm:$0xff]  ;;  %v20868_v51 = vld [vmem:[#allocation27_spill] sm:$0xff] }
 0x404   :  { %vm2350_vm7 = vmand %vm20864_vm4, %vm18061_vm1  ;;  %v2254_v26 = vsel %vm2206_vm15, %v1790_v24, 0.0  ;;  %v2269_v40 = vpack.c.bf16 %v2253_v4, %v2253_v4  ;;  %v18199_v17 = vunpack.c.l.b16 %v2189_v8  ;;  %v1864_v2 = vpack.c.bf16 %v18012_v9, %v18012_v9  ;;  %v20866_v9 = vld [vmem:[#allocation60_spill] sm:$0xff] }
 0x405   :  { %v18201_v3 = vunpack.c.l.b16 %v2190_v52  ;;  %v2270_v60 = vpack.c.bf16 %v2254_v26, %v2254_v26  ;;  %v2398_v13 = vsel %vm2350_vm7, %v20865_v50, 0.0  ;;  %v2413_v6 = vpack.c.bf16 %v2397_v58, %v2397_v58 }
 0x406   :  { %v2550_v10 = vpack.c.b16 %v18197_v46, %v18191_v27  ;;  %v18209_v63 = vunpack.c.l.b16 %v2269_v40  ;;  %v18215_v25 = vunpack.c.l.b16 %v1863_v16  ;;  %v18217_v41 = vunpack.c.l.b16 %v1864_v2  ;;  %v20871_v2 = vld [vmem:[#allocation30_spill] sm:$0xff] }
 0x407   :  { %v2702_v24 = vpack.c.b16 %v18201_v3, %v18199_v17  ;;  %v18213_v20 = vunpack.c.l.b16 %v2270_v60  ;;  %v2814_v0 = vpack.c.b16 %v20866_v9, %v2805_v23  ;;  %v1849_v58 = vsel %vm18126_vm8, %v17693_v56, 0.0 }
 0x408   :  { %v1850_v11 = vsel %vm18183_vm5, %v17752_v12, 0.0  ;;  %v2121_v53 = vpack.c.bf16 %v17710_v33, %v17710_v33  ;;  %v20869_v16 = vpack.c.b16 %v20867_v34, %v20868_v51  ;;  %v2414_v21 = vpack.c.bf16 %v2398_v13, %v2398_v13  ;;  %v20874_v13 = vld [vmem:[#allocation32_spill] sm:$0xff]  ;;  %v20880_v34 = vld [vmem:[#allocation33_spill] sm:$0xff] }
 0x409   :  { %v2758_v23 = vpack.c.b16 %v18213_v20, %v18209_v63  ;;  %v2451_v59 = vpack.c.b16 %v18217_v41, %v18215_v25  ;;  %v1865_v56 = vpack.c.bf16 %v1849_v58, %v1849_v58  ;;  %2829 = vrot.lane.b32.xlu2 %v2814_v0, %s15640_s30  ;;  %v1866_v5 = vpack.c.bf16 %v1850_v11, %v1850_v11 }
 0x40a   :  { %2703 = vrot.lane.b32.xlu1 %v20869_v16, %s15641_s27  ;;  %v2122_v12 = vpack.c.bf16 %v17773_v19, %v17773_v19  ;;  %vm20870_vm9 = vcmp.ge.s32.totalorder %v17680_v45, 1  ;;  %v2861_v33 = vunpack.c.l.b16 %v2413_v6  ;;  %v18248_v26 = vunpack.c.l.b16 %v2121_v53  ;;  %v20872_v19 = vld [vmem:[#allocation29_spill] sm:$0xff]  ;;  %v20875_v6 = vld [vmem:[#allocation31_spill] sm:$0xff]  ;;  %v20879_v53 = vld [vmem:[#allocation34_spill] sm:$0xff] }
 0x40b   :  { %vm1803_vm1 = vmand %vm20870_vm9, %vm17724_vm3  ;;  %v18244_v52 = vunpack.c.l.b16 %v1865_v56  ;;  %v18246_v4 = vunpack.c.l.b16 %v1866_v5  ;;  %v2862_v60 = vunpack.c.l.b16 %v2414_v21  ;;  %v20873_v50 = vpack.c.b16 %v20871_v2, %v20872_v19  ;;  %v20883_v5 = vld [vmem:[#allocation35_spill] sm:$0xff]  ;;  %v20889_v19 = vld [vmem:[#allocation37_spill] sm:$0xff] }
 0x40c   :  { %v1851_v8 = vsel %vm1803_vm1, %v17822_v61, 0.0  ;;  %v18250_v40 = vunpack.c.l.b16 %v2122_v12  ;;  %v20876_v9 = vpack.c.b16 %v20874_v13, %v20875_v6  ;;  %vm20877_vm3 = vmmov %vm20858_vm11  ;;  %vm20878_vm8 = vcmp.ge.s32.totalorder %v17683_v44, 1  ;;  %v20892_v13 = vld [vmem:[#allocation39_spill] sm:$0xff] }
 0x40d   :  { %2497 = vrot.lane.b32.xlu0 %v20873_v50, %s15641_s27  ;;  %v2452_v45 = vpack.c.b16 %v18246_v4, %v18244_v52  ;;  %v2870_v61 = vpack.c.b16 %v2862_v60, %v2861_v33  ;;  %vm1804_vm2 = vmand %vm20878_vm8, %vm17794_vm13  ;;  %v1867_v0 = vpack.c.bf16 %v1851_v8, %v1851_v8  ;;  %v20881_v51 = vpack.c.b16 %v20879_v53, %v20880_v34 }
 0x40e   :  { %v2660_v49 = vpack.c.b16 %v18250_v40, %v18248_v26  ;;  %v1852_v58 = vsel %vm1804_vm2, %v17895_v32, 0.0  ;;  %v2123_v56 = vpack.c.bf16 %v17844_v29, %v17844_v29  ;;  %v2124_v38 = vpack.c.bf16 %v17930_v28, %v17930_v28  ;;  %v20882_v32 = vld [vmem:[#allocation36_spill] sm:$0xff]  ;;  %v20887_v29 = vld [vmem:[#allocation82_spill] sm:$0xff]  ;;  %vm20945_vm0 = vmmov %vm20877_vm3 }
 0x40f   :  { %v1868_v11 = vpack.c.bf16 %v1852_v58, %v1852_v58  ;;  %v18274_v16 = vunpack.c.l.b16 %v1867_v0  ;;  %v20884_v12 = vpack.c.b16 %v20882_v32, %v20883_v5  ;;  %vm20885_vm13 = vnez %v20782_v42  ;;  %v20888_v28 = vld [vmem:[#allocation38_spill] sm:$0xff]  ;;  %v20896_v58 = vld [vmem:[#allocation41_spill] sm:$0xff]  ;;  %vm20946_vm5 = vmmov %vm20945_vm0 }
 0x410   :  { %11380 = vmatmul.msk.bf16.gmra.mxu1 %vm20877_vm3, %v2870_v61  ;;  %v18288_v33 = vunpack.c.l.b16 %v2123_v56  ;;  %v18290_v8 = vunpack.c.l.b16 %v2124_v38  ;;  %vm20886_vm14 = vcmp.ge.s32.totalorder %v17754_v18, 1  ;;  %v20890_v50 = vpack.c.b16 %v20888_v28, %v20889_v19  ;;  %v20891_v61 = vld [vmem:[#allocation40_spill] sm:$0xff]  ;;  %v20895_v0 = vld [vmem:[#allocation42_spill] sm:$0xff]  ;;  %v20900_v38 = vld [vmem:[#allocation43_spill] sm:$0xff] }
 0x411   :  { %v18276_v21 = vunpack.c.l.b16 %v1868_v11  ;;  %vm1805_vm11 = vmand %vm20886_vm14, %vm20885_vm13  ;;  %v20893_v6 = vpack.c.b16 %v20891_v61, %v20892_v13  ;;  %vm20894_vm10 = vcmp.ge.s32.totalorder %v17504_v57, 1  ;;  %v20897_v11 = vpack.c.b16 %v20895_v0, %v20896_v58  ;;  %v20903_v28 = vld [vmem:[#allocation45_spill] sm:$0xff]  ;;  %v14729_v58 = vld [vmem:[%s20571_s29 + $0x38] sm:$0xff] }
 0x412   :  { %2553 = vrot.lane.b32.xlu1 %v20876_v9, %s15639_s4  ;;  %v1853_v60 = vsel %vm1805_vm11, %v20887_v29, 0.0  ;;  %v2661_v2 = vpack.c.b16 %v18290_v8, %v18288_v33  ;;  %vm1806_vm15 = vmand %vm20894_vm10, %vm18039_vm6  ;;  %v2126_v39 = vpack.c.bf16 %v18057_v62, %v18057_v62  ;;  %v20906_v62 = vld [vmem:[#allocation47_spill] sm:$0xff]  ;;  %v20908_v13 = vld [vmem:[#allocation65_spill] sm:$0xff]  ;;  %3174 = vmatpush.bf16.msrb.mxu2 %v14729_v58  ;;  %v2111_v31 = vpack.c.bf16 %v16764_v36, %v16764_v36  ;;  %v3281_v33 = vpop.f32.mrf.mxu1 }
 0x413   :  { %v2453_v44 = vpack.c.b16 %v18276_v21, %v18274_v16  ;;  %v1869_v18 = vpack.c.bf16 %v1853_v60, %v1853_v60  ;;  %v1854_v42 = vsel %vm1806_vm15, %v18032_v1, 0.0  ;;  %v20899_v1 = vld [vmem:[#allocation44_spill] sm:$0xff]  ;;  %v20902_v60 = vld [vmem:[#allocation46_spill] sm:$0xff]  ;;  %vm20540_vm6 = vcmask 523264   ;;  %vm20952_vm4 = vmmov %vm20945_vm0 }
 0x414   :  { %v1870_v9 = vpack.c.bf16 %v1854_v42, %v1854_v42  ;;  %v20901_v32 = vpack.c.b16 %v20899_v1, %v20900_v38  ;;  %v20904_v19 = vpack.c.b16 %v20902_v60, %v20903_v28  ;;  %v20911_v42 = vld [vmem:[#allocation67_spill] sm:$0xff]  ;;  %v20917_v38 = vld [vmem:[#allocation69_spill] sm:$0xff]  ;;  %v14734_v58 = vld [vmem:[%s20571_s29 + $0x60] sm:$0xff]  ;;  %v2639_v48 = vunpack.c.l.b16 %v2111_v31 }
 0x415   :  { %2705 = vrot.lane.b32.xlu0 %v20881_v51, %s15641_s27  ;;  %v18316_v53 = vunpack.c.l.b16 %v1869_v18  ;;  %v20898_v51 = vld [vmem:[#allocation86_spill] sm:$0xff]  ;;  %v14737_v1 = vld [vmem:[%s20571_s29 + $0x78] sm:$0xff]  ;;  %v14727_v28 = vld [vmem:[%s20571_s29 + $0x28] sm:$0xff]  ;;  %vm2913_vm12 = vcmask 785408  }
 0x416   :  { %v18318_v34 = vunpack.c.l.b16 %v1870_v9  ;;  %v2125_v56 = vpack.c.bf16 %v20898_v51, %v20898_v51  ;;  %v20912_v9 = vld [vmem:[#allocation63_spill] sm:$0xff]  ;;  %v20915_v51 = vld [vmem:[#allocation62_spill] sm:$0xff]  ;;  %3223 = vmatpush.bf16.msrb.mxu3 %v14737_v1  ;;  %vm20953_vm7 = vmmov %vm20945_vm0 }
 0x417   :  { %v20913_v0 = vpack.c.b16 %v20911_v42, %v20912_v9  ;;  %v20924_v42 = vld [vmem:[#allocation72_spill] sm:$0xff]  ;;  %v14733_v1 = vld [vmem:[%s20571_s29 + $0x58] sm:$0xff]  ;;  %v20954_v31 = vld [vmem:[#allocation53_spill] sm:$0xff] }
 0x418   :  { %v2454_v57 = vpack.c.b16 %v18318_v34, %v18316_v53  ;;  %v18330_v5 = vunpack.c.l.b16 %v2125_v56  ;;  %vm20957_vm9 = vmmov %vm20945_vm0 }
 0x419   :  { %vm20961_vm1 = vmmov %vm20945_vm0 }
 0x41a   :  { %2761 = vrot.lane.b32.xlu1 %v20884_v12, %s15639_s4  ;;  %v18332_v12 = vunpack.c.l.b16 %v2126_v39  ;;  %v14728_v39 = vld [vmem:[%s20571_s29 + $0x30] sm:$0xff]  ;;  %vm20965_vm3 = vmmov %vm20945_vm0  ;;  %v3283_v34 = vpop.f32.mrf.mxu1 }
 0x41b   :  { %3175 = vmatpush.bf16.msrb.mxu2 %v14728_v39  ;;  %v14724_v39 = vld [vmem:[%s20571_s29 + $0x10] sm:$0xff]  ;;  %vm20969_vm8 = vmmov %vm20945_vm0 }
 0x41c   :  { %v2662_v29 = vpack.c.b16 %v18332_v12, %v18330_v5  ;;  %vm20972_vm2 = vmmov %vm20945_vm0 }
 0x41d   :  { %2499 = vrot.lane.b32.xlu0 %v20890_v50, %s15641_s27  ;;  %v20905_v50 = vld [vmem:[#allocation48_spill] sm:$0xff]  ;;  %vm20973_vm13 = vmmov %vm20945_vm0 }
 0x41e   :  { %v20907_v61 = vpack.c.b16 %v20905_v50, %v20906_v62  ;;  %v20920_v50 = vld [vmem:[#allocation71_spill] sm:$0xff]  ;;  %v20921_v62 = vld [vmem:[#allocation70_spill] sm:$0xff]  ;;  %vm20974_vm14 = vmmov %vm20945_vm0 }
 0x41f   :  { %3176 = vmatpush.bf16.msrb.mxu2 %v14727_v28  ;;  %v14723_v28 = vld [vmem:[%s20571_s29 + $0x8] sm:$0xff]  ;;  %vm20975_vm11 = vmmov %vm20945_vm0 }
 0x420   :  { %vm20976_vm10 = vmmov %vm20945_vm0 }
 0x421   :  { %vm20977_vm15 = vmmov %vm20945_vm0 }
 0x422   :  { %2555 = vrot.lane.b32.xlu1 %v20893_v6, %s15639_s4  ;;  %v20909_v6 = vld [vmem:[#allocation61_spill] sm:$0xff] }
 0x423   :  { %v20910_v18 = vpack.c.b16 %v20908_v13, %v20909_v6  ;;  %v14726_v13 = vld [vmem:[%s20571_s29 + $0x20] sm:$0xff]  ;;  %v14735_v6 = vld [vmem:[%s20571_s29 + $0x68] sm:$0xff] }
 0x424   :  { %3177 = vmatpush.bf16.msrb.mxu2 %v14726_v13  ;;  %v14722_v13 = vld [vmem:[%s20571_s29] sm:$0xff] }
 0x425   :  { %2707 = vrot.lane.b32.xlu0 %v20897_v11, %s15641_s27  ;;  %v20914_v11 = vld [vmem:[#allocation66_spill] sm:$0xff] }
 0x426   :  { %v20916_v56 = vpack.c.b16 %v20914_v11, %v20915_v51  ;;  %v20926_v11 = vld [vmem:[#allocation75_spill] sm:$0xff]  ;;  %v20927_v51 = vld [vmem:[#allocation74_spill] sm:$0xff] }
 0x42a   :  { %2763 = vrot.lane.b32.xlu1 %v20901_v32, %s15639_s4  ;;  %v20918_v32 = vld [vmem:[#allocation68_spill] sm:$0xff] }
 0x42b   :  { %v20919_v60 = vpack.c.b16 %v20917_v38, %v20918_v32  ;;  %v20929_v38 = vld [vmem:[#allocation77_spill] sm:$0xff]  ;;  %v20930_v32 = vld [vmem:[#allocation76_spill] sm:$0xff] }
 0x42d   :  { %2501 = vrot.lane.b32.xlu0 %v20904_v19, %s15641_s27  ;;  %v14736_v19 = vld [vmem:[%s20571_s29 + $0x70] sm:$0xff] }
 0x42e   :  { %3224 = vmatpush.bf16.msrb.mxu3 %v14736_v19  ;;  %v14732_v19 = vld [vmem:[%s20571_s29 + $0x50] sm:$0xff] }
 0x432   :  { %2557 = vrot.lane.b32.xlu1 %v20907_v61, %s15639_s4  ;;  %v20922_v61 = vpack.c.b16 %v20920_v50, %v20921_v62  ;;  %3225 = vmatpush.bf16.msrb.mxu3 %v14735_v6  ;;  %v20932_v50 = vld [vmem:[#allocation80_spill] sm:$0xff]  ;;  %v20933_v62 = vld [vmem:[#allocation78_spill] sm:$0xff]  ;;  %v14731_v6 = vld [vmem:[%s20571_s29 + $0x48] sm:$0xff] }
 0x435   :  { %2709 = vrot.lane.b32.xlu0 %v20910_v18, %s15641_s27  ;;  %v20923_v18 = vld [vmem:[#allocation73_spill] sm:$0xff] }
 0x436   :  { %v20925_v9 = vpack.c.b16 %v20923_v18, %v20924_v42  ;;  %3226 = vmatpush.bf16.msrb.mxu3 %v14734_v58  ;;  %v20935_v18 = vld [vmem:[#allocation81_spill] sm:$0xff]  ;;  %v20936_v42 = vld [vmem:[#allocation79_spill] sm:$0xff]  ;;  %v14730_v58 = vld [vmem:[%s20571_s29 + $0x40] sm:$0xff] }
 0x43a   :  { %2765 = vrot.lane.b32.xlu1 %v20913_v0, %s15639_s4  ;;  %v14725_v0 = vld [vmem:[%s20571_s29 + $0x18] sm:$0xff]  ;;  %3227 = vmatpush.bf16.msrb.mxu3 %v14733_v1  ;;  %v20942_v1 = vld [vmem:[#allocation85_spill] sm:$0xff] }
 0x43b   :  { %3178 = vmatpush.bf16.msrb.mxu2 %v14725_v0  ;;  %v2760_v0 = vpop.permute.xlu2 %2759 }
 0x43d   :  { %2503 = vrot.lane.b32.xlu0 %v20916_v56, %s15641_s27  ;;  %v20928_v56 = vpack.c.b16 %v20926_v11, %v20927_v51  ;;  %v20938_v11 = vld [vmem:[#allocation84_spill] sm:$0xff]  ;;  %v20939_v51 = vld [vmem:[#allocation83_spill] sm:$0xff] }
 0x43e   :  { %3228 = vmatpush.bf16.msrb.mxu3 %v14732_v19  ;;  %v20948_v19 = vld [vmem:[#allocation25_spill] sm:$0xff] }
 0x43f   :  { %3179 = vmatpush.bf16.msrb.mxu2 %v14724_v39  ;;  %v20941_v39 = vld [vmem:[#allocation87_spill] sm:$0xff]  ;;  %v2114_v63 = vpack.c.bf16 %v20948_v19, %v20948_v19 }
 0x442   :  { %2559 = vrot.lane.b32.xlu1 %v20919_v60, %s15639_s4  ;;  %v20931_v60 = vpack.c.b16 %v20929_v38, %v20930_v32  ;;  %3229 = vmatpush.bf16.msrb.mxu3 %v14731_v6  ;;  %v20943_v38 = vpack.c.b16 %v20941_v39, %v20942_v1 }
 0x443   :  { %3180 = vmatpush.bf16.msrb.mxu2 %v14723_v28  ;;  %v2816_v32 = vpop.permute.xlu2 %2815 }
 0x445   :  { %2711 = vrot.lane.b32.xlu0 %v20922_v61, %s15641_s27  ;;  %v20934_v61 = vpack.c.b16 %v20932_v50, %v20933_v62  ;;  %v2642_v62 = vunpack.c.l.b16 %v2114_v63 }
 0x446   :  { %3230 = vmatpush.bf16.msrb.mxu3 %v14730_v58 }
 0x447   :  { %3181 = vmatpush.bf16.msrb.mxu2 %v14722_v13  ;;  %v20950_v13 = vld [vmem:[#allocation49_spill] sm:$0xff] }
 0x44a   :  { %2767 = vrot.lane.b32.xlu1 %v20925_v9, %s15639_s4  ;;  %v20937_v9 = vpack.c.b16 %v20935_v18, %v20936_v42 }
 0x44d   :  { %2505 = vrot.lane.b32.xlu0 %v20928_v56, %s15641_s27  ;;  %v20940_v56 = vpack.c.b16 %v20938_v11, %v20939_v51 }
 0x452   :  { %2561 = vrot.lane.b32.xlu1 %v20931_v60, %s15639_s4  ;;  %v2610_v60 = vpop.permute.xlu2 %2609 }
 0x455   :  { %2713 = vrot.lane.b32.xlu0 %v20934_v61, %s15641_s27  ;;  %v20949_v61 = vld [vmem:[#allocation50_spill] sm:$0xff] }
 0x456   :  { %v20951_v6 = vpack.c.b16 %v20949_v61, %v20950_v13  ;;  %v20967_v61 = vld [vmem:[#allocation57_spill] sm:$0xff] }
 0x45a   :  { %2769 = vrot.lane.b32.xlu1 %v20937_v9, %s15639_s4 }
 0x45d   :  { %2507 = vrot.lane.b32.xlu0 %v20940_v56, %s15641_s27 }
 0x462   :  { %2563 = vrot.lane.b32.xlu1 %v20943_v38, %s15639_s4 }
 0x465   :  { %2715 = vrot.lane.b32.xlu0 %v2701_v54, %s15641_s27  ;;  %v2112_v54 = vpack.c.bf16 %v20944_v14, %v20944_v14  ;;  %v20955_v14 = vld [vmem:[#allocation51_spill] sm:$0xff] }
 0x467   :  { %v2640_v43 = vunpack.c.l.b16 %v2112_v54  ;;  %v20956_v54 = vpack.c.b16 %v20954_v31, %v20955_v14 }
 0x469   :  { %v2655_v27 = vpack.c.b16 %v2640_v43, %v2639_v48 }
 0x46a   :  { %2771 = vrot.lane.b32.xlu1 %v2757_v47, %s15639_s4  ;;  %v2818_v47 = vpop.permute.xlu2 %2817 }
 0x46c   :  { %v2496_v28 = vpop.permute.xlu0 %2495 }
 0x46d   :  { %2509 = vrot.lane.b32.xlu0 %v2494_v37, %s15641_s27  ;;  %v2874_v30 = vsel %vm20945_vm0, %v2447_v22, %v2496_v28  ;;  %v20947_v22 = vld [vmem:[#allocation22_spill] sm:$0xff] }
 0x471   :  { %v2608_v55 = vpop.permute.xlu1 %2607 }
 0x472   :  { %2565 = vrot.lane.b32.xlu1 %v2550_v10, %s15639_s4  ;;  %v2612_v20 = vpop.permute.xlu2 %2611 }
 0x475   :  { %2717 = vrot.lane.b32.xlu0 %v2702_v24, %s15641_s27  ;;  %v2552_v36 = vpop.permute.xlu0 %2551  ;;  %v2113_v24 = vpack.c.bf16 %v20947_v22, %v20947_v22  ;;  %v20962_v22 = vld [vmem:[#allocation56_spill] sm:$0xff] }
 0x476   :  { %v2898_v37 = vsel %vm20540_vm6, %v2874_v30, %v2552_v36  ;;  %v20958_v30 = vld [vmem:[#allocation54_spill] sm:$0xff]  ;;  %v20959_v36 = vld [vmem:[#allocation52_spill] sm:$0xff] }
 0x477   :  { %v2915_v46 = vsel %vm2913_vm12, %v2898_v37, %v2608_v55  ;;  %v2641_v50 = vunpack.c.l.b16 %v2113_v24  ;;  %v20960_v37 = vpack.c.b16 %v20958_v30, %v20959_v36  ;;  %v20963_v24 = vld [vmem:[#allocation55_spill] sm:$0xff] }
 0x478   :  { %3182 = vmatmul.bf16.vlgmr.msrb.gmra.mxu2 %v2915_v46  ;;  %v20964_v19 = vpack.c.b16 %v20962_v22, %v20963_v24 }
 0x47a   :  { %2773 = vrot.lane.b32.xlu1 %v2758_v23, %s15639_s4  ;;  %v2820_v56 = vpop.permute.xlu2 %2819 }
 0x47c   :  { %v2704_v17 = vpop.permute.xlu1 %2703 }
 0x47d   :  { %v2940_v3 = vsel %vm20946_vm5, %v2655_v27, %v2704_v17  ;;  %vm20978_vm5 = vmmov %vm20945_vm0 }
 0x47e   :  { %v2963_v10 = vsel %vm20540_vm6, %v2940_v3, %v2760_v0  ;;  %v2656_v0 = vpack.c.b16 %v2642_v62, %v2641_v50  ;;  %v20966_v62 = vld [vmem:[#allocation58_spill] sm:$0xff] }
 0x47f   :  { %v2979_v35 = vsel %vm2913_vm12, %v2963_v10, %v2816_v32  ;;  %v2498_v7 = vpop.permute.xlu0 %2497  ;;  %v20968_v13 = vpack.c.b16 %v20966_v62, %v20967_v61 }
 0x480   :  { %3231 = vmatmul.bf16.vlgmr.msrb.gmra.mxu3 %v2979_v35  ;;  %v2877_v18 = vsel %vm20952_vm4, %v20951_v6, %v2498_v7 }
 0x482   :  { %v2614_v28 = vpop.permute.xlu2 %2613 }
 0x484   :  { %v2554_v23 = vpop.permute.xlu1 %2553 }
 0x485   :  { %v2900_v42 = vsel %vm20540_vm6, %v2877_v18, %v2554_v23 }
 0x486   :  { %v2918_v58 = vsel %vm2913_vm12, %v2900_v42, %v2610_v60 }
 0x487   :  { %v2706_v9 = vpop.permute.xlu0 %2705 }
 0x488   :  { %v2943_v11 = vsel %vm20953_vm7, %v2656_v0, %v2706_v9  ;;  %3187 = vmatmul.bf16.gmra.mxu2 %v2918_v58 }
 0x48a   :  { %v2822_v3 = vpop.permute.xlu2 %2821 }
 0x48c   :  { %v2762_v51 = vpop.permute.xlu1 %2761 }
 0x48d   :  { %v2965_v39 = vsel %vm20540_vm6, %v2943_v11, %v2762_v51  ;;  %v20970_v11 = vld [vmem:[#allocation64_spill] sm:$0xff] }
 0x48e   :  { %v2982_v1 = vsel %vm2913_vm12, %v2965_v39, %v2818_v47  ;;  %v2120_v51 = vpack.c.bf16 %v20970_v11, %v20970_v11  ;;  %v20971_v39 = vld [vmem:[#allocation59_spill] sm:$0xff] }
 0x48f   :  { %v2500_v38 = vpop.permute.xlu0 %2499 }
 0x490   :  { %3236 = vmatmul.bf16.gmra.mxu3 %v2982_v1  ;;  %v2880_v55 = vsel %vm20957_vm9, %v20956_v54, %v2500_v38  ;;  %v2119_v1 = vpack.c.bf16 %v20971_v39, %v20971_v39  ;;  %v2648_v38 = vunpack.c.l.b16 %v2120_v51 }
 0x492   :  { %v2616_v7 = vpop.permute.xlu2 %2615  ;;  %v2647_v31 = vunpack.c.l.b16 %v2119_v1 }
 0x494   :  { %v2556_v32 = vpop.permute.xlu1 %2555  ;;  %v2659_v54 = vpack.c.b16 %v2648_v38, %v2647_v31 }
 0x495   :  { %v2902_v60 = vsel %vm20540_vm6, %v2880_v55, %v2556_v32 }
 0x496   :  { %v2921_v43 = vsel %vm2913_vm12, %v2902_v60, %v2612_v20 }
 0x497   :  { %v2708_v48 = vpop.permute.xlu0 %2707 }
 0x498   :  { %v2946_v27 = vsel %vm20961_vm1, %v20960_v37, %v2708_v48  ;;  %3192 = vmatmul.bf16.gmra.mxu2 %v2921_v43 }
 0x49a   :  { %v2824_v0 = vpop.permute.xlu2 %2823 }
 0x49c   :  { %v2764_v47 = vpop.permute.xlu1 %2763 }
 0x49d   :  { %v2967_v46 = vsel %vm20540_vm6, %v2946_v27, %v2764_v47 }
 0x49e   :  { %v2985_v17 = vsel %vm2913_vm12, %v2967_v46, %v2820_v56 }
 0x49f   :  { %v2502_v10 = vpop.permute.xlu0 %2501 }
 0x4a0   :  { %3241 = vmatmul.bf16.gmra.mxu3 %v2985_v17  ;;  %v2883_v63 = vsel %vm20965_vm3, %v20964_v19, %v2502_v10 }
 0x4a2   :  { %v2618_v55 = vpop.permute.xlu2 %2617 }
 0x4a4   :  { %v2558_v35 = vpop.permute.xlu1 %2557 }
 0x4a5   :  { %v2904_v20 = vsel %vm20540_vm6, %v2883_v63, %v2558_v35 }
 0x4a6   :  { %v2924_v50 = vsel %vm2913_vm12, %v2904_v20, %v2614_v28 }
 0x4a7   :  { %v2710_v23 = vpop.permute.xlu0 %2709 }
 0x4a8   :  { %v2949_v6 = vsel %vm20969_vm8, %v20968_v13, %v2710_v23  ;;  %3197 = vmatmul.bf16.gmra.mxu2 %v2924_v50 }
 0x4ac   :  { %v2766_v18 = vpop.permute.xlu1 %2765 }
 0x4ad   :  { %v2969_v42 = vsel %vm20540_vm6, %v2949_v6, %v2766_v18  ;;  %v18566_v18 = vld [vmem:[%s20979_s2] ss:$0 sm:$0xff] }
 0x4ae   :  { %v2988_v9 = vsel %vm2913_vm12, %v2969_v42, %v2822_v3 }
 0x4af   :  { %v2504_v58 = vpop.permute.xlu0 %2503 }
 0x4b0   :  { %3246 = vmatmul.bf16.gmra.mxu3 %v2988_v9  ;;  %v2886_v32 = vsel %vm20972_vm2, %v2451_v59, %v2504_v58  ;;  %v2826_v59 = vpop.permute.xlu2 %2825 }
 0x4b4   :  { %v2560_v56 = vpop.permute.xlu1 %2559 }
 0x4b5   :  { %v2906_v28 = vsel %vm20540_vm6, %v2886_v32, %v2560_v56 }
 0x4b6   :  { %v2927_v60 = vsel %vm2913_vm12, %v2906_v28, %v2616_v7 }
 0x4b7   :  { %v2712_v14 = vpop.permute.xlu0 %2711 }
 0x4b8   :  { %v2952_v48 = vsel %vm20973_vm13, %v2659_v54, %v2712_v14  ;;  %3202 = vmatmul.bf16.gmra.mxu2 %v2927_v60  ;;  %v2620_v7 = vpop.permute.xlu2 %2619 }
 0x4bc   :  { %v2768_v43 = vpop.permute.xlu1 %2767 }
 0x4bd   :  { %v2971_v30 = vsel %vm20540_vm6, %v2952_v48, %v2768_v43 }
 0x4be   :  { %v2991_v36 = vsel %vm2913_vm12, %v2971_v30, %v2824_v0 }
 0x4bf   :  { %v2506_v25 = vpop.permute.xlu0 %2505 }
 0x4c0   :  { %3251 = vmatmul.bf16.gmra.mxu3 %v2991_v36  ;;  %v2889_v37 = vsel %vm20974_vm14, %v2452_v45, %v2506_v25  ;;  %v2828_v26 = vpop.permute.xlu2 %2827 }
 0x4c4   :  { %v2562_v41 = vpop.permute.xlu1 %2561 }
 0x4c5   :  { %v2908_v27 = vsel %vm20540_vm6, %v2889_v37, %v2562_v41 }
 0x4c6   :  { %v2930_v46 = vsel %vm2913_vm12, %v2908_v27, %v2618_v55 }
 0x4c7   :  { %v2714_v47 = vpop.permute.xlu0 %2713 }
 0x4c8   :  { %v2955_v17 = vsel %vm20975_vm11, %v2660_v49, %v2714_v47  ;;  %3207 = vmatmul.bf16.gmra.mxu2 %v2930_v46  ;;  %v2622_v21 = vpop.permute.xlu2 %2621 }
 0x4cc   :  { %v2770_v3 = vpop.permute.xlu1 %2769 }
 0x4cd   :  { %v2973_v10 = vsel %vm20540_vm6, %v2955_v17, %v2770_v3 }
 0x4ce   :  { %v2994_v35 = vsel %vm2913_vm12, %v2973_v10, %v2826_v59 }
 0x4cf   :  { %v2508_v52 = vpop.permute.xlu0 %2507 }
 0x4d0   :  { %3256 = vmatmul.bf16.gmra.mxu3 %v2994_v35  ;;  %v2892_v45 = vsel %vm20976_vm10, %v2453_v44, %v2508_v52  ;;  %v2830_v13 = vpop.permute.xlu2 %2829 }
 0x4d4   :  { %v2564_v4 = vpop.permute.xlu1 %2563 }
 0x4d5   :  { %v2910_v22 = vsel %vm20540_vm6, %v2892_v45, %v2564_v4 }
 0x4d6   :  { %v2933_v49 = vsel %vm2913_vm12, %v2910_v22, %v2620_v7 }
 0x4d7   :  { %v2716_v40 = vpop.permute.xlu0 %2715 }
 0x4d8   :  { %v2958_v24 = vsel %vm20977_vm15, %v2661_v2, %v2716_v40  ;;  %3212 = vmatmul.bf16.gmra.mxu2 %v2933_v49 }
 0x4dc   :  { %v2772_v19 = vpop.permute.xlu1 %2771 }
 0x4dd   :  { %v2975_v63 = vsel %vm20540_vm6, %v2958_v24, %v2772_v19 }
 0x4de   :  { %v2997_v20 = vsel %vm2913_vm12, %v2975_v63, %v2828_v26 }
 0x4df   :  { %v2510_v16 = vpop.permute.xlu0 %2509 }
 0x4e0   :  { %3261 = vmatmul.bf16.gmra.mxu3 %v2997_v20  ;;  %v2895_v23 = vsel %vm20945_vm0, %v2454_v57, %v2510_v16  ;;  %v3286_v57 = vpop.f32.mrf.mxu1 }
 0x4e4   :  { %v2566_v44 = vpop.permute.xlu1 %2565 }
 0x4e5   :  { %v2912_v50 = vsel %vm20540_vm6, %v2895_v23, %v2566_v44 }
 0x4e6   :  { %v2936_v2 = vsel %vm2913_vm12, %v2912_v50, %v2622_v21 }
 0x4e7   :  { %v2718_v8 = vpop.permute.xlu0 %2717 }
 0x4e8   :  { %v2961_v62 = vsel %vm20978_vm5, %v2662_v29, %v2718_v8  ;;  %3217 = vmatmul.bf16.gmra.mxu2 %v2936_v2  ;;  %v3288_v9 = vpop.f32.mrf.mxu1 }
 0x4ec   :  { %v2774_v61 = vpop.permute.xlu1 %2773 }
 0x4ed   :  { %v2977_v6 = vsel %vm20540_vm6, %v2961_v62, %v2774_v61 }
 0x4ee   :  { %v3000_v53 = vsel %vm2913_vm12, %v2977_v6, %v2830_v13  ;;  %vm20980_vm12 = vcmp.lt.s32.totalorder %v16210_v15, 7 }
 0x4ef   :  { %vm20981_vm4 = vmmov %vm20980_vm12 }
 0x4f0   :  { %3266 = vmatmul.bf16.gmra.mxu3 %v3000_v53  ;;  %v3291_v51 = vpop.f32.mrf.mxu1  ;;  %vm20982_vm7 = vmmov %vm20981_vm4 }
 0x4f1   :  { %vm20983_vm9 = vmmov %vm20981_vm4 }
 0x4f2   :  { %vm20984_vm1 = vmmov %vm20981_vm4 }
 0x4f3   :  { %vm20985_vm3 = vmmov %vm20984_vm1 }
 0x4f4   :  { %vm20986_vm8 = vmmov %vm20984_vm1 }
 0x4f5   :  { %vm20987_vm2 = vmmov %vm20984_vm1 }
 0x4f6   :  { %vm20988_vm13 = vmmov %vm20984_vm1 }
 0x4f7   :  { %vm20990_vm14 = vmmov %vm20984_vm1 }
 0x4f8   :  { %v3293_v28 = vpop.f32.mrf.mxu1  ;;  %vm20991_vm11 = vmmov %vm20984_vm1 }
 0x4f9   :  { %vm20992_vm10 = vmmov %vm20984_vm1 }
 0x4fa   :  { %vm20993_vm15 = vmmov %vm20984_vm1 }
 0x4fb   :  { %v3183_v42 = vpop.f32.mrf.mxu2  ;;  %vm20994_vm0 = vmmov %vm20984_vm1 }
 0x4fc   :  { %v3184_v5 = vadd.f32 %v18566_v18, %v3183_v42  ;;  %vm20995_vm5 = vmmov %vm20994_vm0 }
 0x500   :  { %v3296_v54 = vpop.f32.mrf.mxu1 }
 0x503   :  { %v3232_v12 = vpop.f32.mrf.mxu3  ;;  %v3185_v0 = vpop.f32.mrf.mxu2 }
 0x504   :  { %v3233_v29 = vadd.f32 %v3232_v12, %v3184_v5  ;;  %v3186_v59 = vadd.f32 %v18566_v18, %v3185_v0 }
 0x506   :  { %v3282_v22 = vadd.f32 %v3281_v33, %v3233_v29 }
 0x508   :  { %v3298_v43 = vpop.f32.mrf.mxu1  ;;  %v3321_v50 = vmax.f32 %v3282_v22, 0.0 }
 0x50a   :  { %v18583_v42 = vrot.slane %v3321_v50, 1 }
 0x50b   :  { %v3234_v58 = vpop.f32.mrf.mxu3  ;;  %v3188_v11 = vpop.f32.mrf.mxu2 }
 0x50c   :  { %v3189_v56 = vadd.f32 %v18566_v18, %v3188_v11  ;;  %v3235_v47 = vadd.f32 %v3234_v58, %v3186_v59 }
 0x50e   :  { %v3284_v7 = vadd.f32 %v3283_v34, %v3235_v47 }
 0x510   :  { %v3301_v25 = vpop.f32.mrf.mxu1  ;;  %v3322_v21 = vmax.f32 %v3284_v7, 0.0 }
 0x512   :  { %v3338_v53 = vrot.slane %v3322_v21, 1 }
 0x513   :  { %v3237_v39 = vpop.f32.mrf.mxu3  ;;  %v3190_v32 = vpop.f32.mrf.mxu2 }
 0x514   :  { %v3238_v1 = vadd.f32 %v3237_v39, %v3189_v56  ;;  %v3191_v37 = vadd.f32 %v18566_v18, %v3190_v32  ;;  %v3367_v32 = vsel %vm20982_vm7, %v18583_v42, %v3338_v53 }
 0x516   :  { %v18570_v38 = vadd.f32 %v3286_v57, %v3238_v1 }
 0x518   :  { %v3303_v45 = vpop.f32.mrf.mxu1  ;;  %v3323_v63 = vmax.f32 %v18570_v38, 0.0 }
 0x51a   :  { %v3339_v61 = vrot.slane %v3323_v63, 1 }
 0x51b   :  { %v3239_v31 = vpop.f32.mrf.mxu3  ;;  %v3193_v14 = vpop.f32.mrf.mxu2 }
 0x51c   :  { %v3240_v17 = vadd.f32 %v3239_v31, %v3191_v37  ;;  %v3194_v40 = vadd.f32 %v18566_v18, %v3193_v14  ;;  %v3366_v11 = vsel %vm20980_vm12, %v3338_v53, %v3339_v61  ;;  %vm20996_vm12 = vmmov %vm20994_vm0 }
 0x51e   :  { %v18577_v26 = vadd.f32 %v3288_v9, %v3240_v17 }
 0x520   :  { %v3324_v8 = vmax.f32 %v18577_v26, 0.0  ;;  %v18586_v58 = vpop.f32.mrf.mxu1 }
 0x522   :  { %v3340_v5 = vrot.slane %v3324_v8, 1 }
 0x523   :  { %v3242_v55 = vpop.f32.mrf.mxu3  ;;  %v3195_v60 = vpop.f32.mrf.mxu2 }
 0x524   :  { %v3196_v52 = vadd.f32 %v18566_v18, %v3195_v60  ;;  %v3243_v20 = vadd.f32 %v3242_v55, %v3194_v40  ;;  %v3370_v55 = vmax.f32 %v3322_v21, %v3366_v11 }
 0x526   :  { %v3292_v13 = vadd.f32 %v3291_v51, %v3243_v20 }
 0x528   :  { %v3325_v56 = vmax.f32 %v3292_v13, 0.0 }
 0x52b   :  { %v3244_v48 = vpop.f32.mrf.mxu3  ;;  %v3198_v30 = vpop.f32.mrf.mxu2 }
 0x52c   :  { %v3199_v3 = vadd.f32 %v18566_v18, %v3198_v30  ;;  %v3245_v49 = vadd.f32 %v3244_v48, %v3196_v52  ;;  %v3341_v30 = vrot.slane %v3325_v56, 1 }
 0x52e   :  { %v3294_v2 = vadd.f32 %v3293_v28, %v3245_v49  ;;  %v3365_v28 = vsel %vm20983_vm9, %v3339_v61, %v3340_v5 }
 0x530   :  { %v3326_v12 = vmax.f32 %v3294_v2, 0.0 }
 0x532   :  { %v3342_v31 = vrot.slane %v3326_v12, 1 }
 0x533   :  { %v3247_v36 = vpop.f32.mrf.mxu3  ;;  %v3200_v41 = vpop.f32.mrf.mxu2 }
 0x534   :  { %v3201_v46 = vadd.f32 %v18566_v18, %v3200_v41  ;;  %v3248_v4 = vadd.f32 %v3247_v36, %v3199_v3  ;;  %v3371_v41 = vmax.f32 %v3323_v63, %v3365_v28 }
 0x536   :  { %v3297_v44 = vadd.f32 %v3296_v54, %v3248_v4  ;;  %v3386_v7 = vmax.f32 %v3370_v55, %v3371_v41  ;;  %v3308_v4 = vpop.f32.mrf.mxu1 }
 0x538   :  { %v3327_v34 = vmax.f32 %v3297_v44, 0.0  ;;  %v3402_v40 = vpack.c.bf16 %v3386_v7, %v3386_v7 }
 0x53a   :  { %v3343_v51 = vrot.slane %v3327_v34, 1  ;;  %v3433_v21 = vunpack.c.l.b16 %v3402_v40 }
 0x53b   :  { %v3249_v27 = vpop.f32.mrf.mxu3  ;;  %v3203_v35 = vpop.f32.mrf.mxu2 }
 0x53c   :  { %v3250_v10 = vadd.f32 %v3249_v27, %v3201_v46  ;;  %v3204_v19 = vadd.f32 %v18566_v18, %v3203_v35  ;;  %v3362_v36 = vsel %vm20985_vm3, %v3342_v31, %v3343_v51  ;;  %v3363_v27 = vsel %vm20986_vm8, %v3341_v30, %v3342_v31 }
 0x53d   :  { %v3374_v3 = vmax.f32 %v3326_v12, %v3362_v36  ;;  %v3373_v22 = vmax.f32 %v3325_v56, %v3363_v27 }
 0x53e   :  { %v3299_v24 = vadd.f32 %v3298_v43, %v3250_v10  ;;  %v18603_v43 = vmax.f32 %v3321_v50, %v3367_v32  ;;  %v3364_v10 = vsel %vm20987_vm2, %v3340_v5, %v3341_v30  ;;  %v3311_v5 = vpop.f32.mrf.mxu1  ;;  %vm21007_vm2 = vcmp.lt.s32.totalorder %v16210_v15, 1 }
 0x53f   :  { %v3389_v63 = vmax.f32 %v3373_v22, %v3374_v3  ;;  %v3372_v20 = vmax.f32 %v3324_v8, %v3364_v10 }
 0x540   :  { %v3328_v33 = vmax.f32 %v3299_v24, 0.0  ;;  %v3385_v37 = vmax.f32 %v18603_v43, %v3370_v55 }
 0x541   :  { %v3388_v50 = vmax.f32 %v3372_v20, %v3373_v22  ;;  %v3405_v13 = vpack.c.bf16 %v3389_v63, %v3389_v63  ;;  %v14740_v63 = vld [vmem:[%s20989_s7] sm:$0xff] }
 0x542   :  { %v3344_v29 = vrot.slane %v3328_v33, 1  ;;  %v3401_v52 = vpack.c.bf16 %v3385_v37, %v3385_v37 }
 0x543   :  { %v3252_v16 = vpop.f32.mrf.mxu3  ;;  %v3205_v6 = vpop.f32.mrf.mxu2 }
 0x544   :  { %v3253_v23 = vadd.f32 %v3252_v16, %v3204_v19  ;;  %v3206_v0 = vadd.f32 %v18566_v18, %v3205_v6  ;;  %v3361_v14 = vsel %vm20984_vm1, %v3343_v51, %v3344_v29  ;;  %v3432_v16 = vunpack.c.l.b16 %v3401_v52 }
 0x545   :  { %v3375_v59 = vmax.f32 %v3327_v34, %v3361_v14  ;;  %v3387_v6 = vmax.f32 %v3371_v41, %v3372_v20 }
 0x546   :  { %v3302_v62 = vadd.f32 %v3301_v25, %v3253_v23  ;;  %v3440_v2 = vpack.c.b16 %v3433_v21, %v3432_v16 }
 0x547   :  { %v3390_v26 = vmax.f32 %v3374_v3, %v3375_v59 }
 0x548   :  { %v3329_v57 = vmax.f32 %v3302_v62, 0.0 }
 0x549   :  { %v3406_v23 = vpack.c.bf16 %v3390_v26, %v3390_v26 }
 0x54a   :  { %v3345_v9 = vrot.slane %v3329_v57, 1 }
 0x54b   :  { %v3254_v39 = vpop.f32.mrf.mxu3  ;;  %v18601_v48 = vpop.f32.mrf.mxu2  ;;  %v3437_v34 = vunpack.c.l.b16 %v3406_v23 }
 0x54c   :  { %v3360_v1 = vsel %vm20981_vm4, %v3344_v29, %v3345_v9  ;;  %v3255_v38 = vadd.f32 %v3254_v39, %v3206_v0  ;;  %v3436_v29 = vunpack.c.l.b16 %v3405_v13  ;;  %v3209_v37 = vadd.f32 %v18566_v18, %v18601_v48 }
 0x54d   :  { %v3376_v60 = vmax.f32 %v3328_v33, %v3360_v1  ;;  %v3313_v1 = vpop.f32.mrf.mxu1 }
 0x54e   :  { %v18599_v54 = vadd.f32 %v3303_v45, %v3255_v38  ;;  %v3442_v8 = vpack.c.b16 %v3437_v34, %v3436_v29 }
 0x54f   :  { %v3391_v17 = vmax.f32 %v3375_v59, %v3376_v60 }
 0x550   :  { %v3330_v25 = vmax.f32 %v18599_v54, 0.0 }
 0x551   :  { %v3407_v19 = vpack.c.bf16 %v3391_v17, %v3391_v17 }
 0x552   :  { %v18613_v47 = vrot.slane %v3330_v25, 1 }
 0x553   :  { %v3257_v46 = vpop.f32.mrf.mxu3  ;;  %v3210_v49 = vpop.f32.mrf.mxu2  ;;  %v3438_v62 = vunpack.c.l.b16 %v3407_v19 }
 0x554   :  { %v3359_v35 = vsel %vm20988_vm13, %v3345_v9, %v18613_v47  ;;  %v3403_v9 = vpack.c.bf16 %v3387_v6, %v3387_v6  ;;  %v3211_v30 = vadd.f32 %v18566_v18, %v3210_v49  ;;  %v3258_v10 = vadd.f32 %v3257_v46, %v3209_v37 }
 0x555   :  { %v18620_v45 = vmax.f32 %v3329_v57, %v3359_v35  ;;  %v3404_v57 = vpack.c.bf16 %v3388_v50, %v3388_v50 }
 0x556   :  { %v3434_v56 = vunpack.c.l.b16 %v3403_v9 }
 0x557   :  { %v3392_v24 = vmax.f32 %v3376_v60, %v18620_v45  ;;  %v3435_v0 = vunpack.c.l.b16 %v3404_v57  ;;  %v3316_v60 = vpop.f32.mrf.mxu1 }
 0x559   :  { %v3408_v44 = vpack.c.bf16 %v3392_v24, %v3392_v24  ;;  %v3441_v39 = vpack.c.b16 %v3435_v0, %v3434_v56  ;;  %v3307_v24 = vadd.f32 %v18586_v58, %v3258_v10 }
 0x55b   :  { %v3259_v33 = vpop.f32.mrf.mxu3  ;;  %v3439_v61 = vunpack.c.l.b16 %v3408_v44  ;;  %v3213_v12 = vpop.f32.mrf.mxu2 }
 0x55c   :  { %v3214_v31 = vadd.f32 %v18566_v18, %v3213_v12  ;;  %v3260_v27 = vadd.f32 %v3259_v33, %v3211_v30 }
 0x55d   :  { %v3443_v53 = vpack.c.b16 %v3439_v61, %v3438_v62 }
 0x55e   :  { %v3309_v22 = vadd.f32 %v3308_v4, %v3260_v27  ;;  %v3331_v4 = vmax.f32 %v3307_v24, 0.0  ;;  %v3503_v24 = vand.u32 3, %v16210_v15 }
 0x55f   :  { %3455 = vmatpush.bf16.msra.mxu2 %v3443_v53  ;;  %v3318_v16 = vpop.f32.mrf.mxu1 }
 0x560   :  { %v3332_v21 = vmax.f32 %v3309_v22, 0.0  ;;  %v3347_v62 = vrot.slane %v3331_v4, 1  ;;  %v3507_v22 = vshra.s32 %v16210_v15, 2  ;;  %vm18672_vm9 = vcmp.le.s32.totalorder %v3503_v24, 2 }
 0x562   :  { %v3348_v50 = vrot.slane %v3332_v21, 1  ;;  %v3358_v56 = vsel %vm20996_vm12, %v18613_v47, %v3347_v62 }
 0x563   :  { %v3262_v11 = vpop.f32.mrf.mxu3  ;;  %3456 = vmatpush.bf16.msra.mxu2 %v3442_v8  ;;  %v3215_v51 = vpop.f32.mrf.mxu2 }
 0x564   :  { %v3216_v28 = vadd.f32 %v18566_v18, %v3215_v51  ;;  %v3263_v36 = vadd.f32 %v3262_v11, %v3214_v31  ;;  %v3357_v34 = vsel %vm20995_vm5, %v3347_v62, %v3348_v50 }
 0x566   :  { %v3312_v35 = vadd.f32 %v3311_v5, %v3263_v36 }
 0x567   :  { %3457 = vmatpush.bf16.msra.mxu2 %v3441_v39  ;;  %v3379_v39 = vmax.f32 %v3331_v4, %v3357_v34 }
 0x568   :  { %v3333_v49 = vmax.f32 %v3312_v35, 0.0 }
 0x56a   :  { %v3349_v23 = vrot.slane %v3333_v49, 1 }
 0x56b   :  { %v3264_v38 = vpop.f32.mrf.mxu3  ;;  %3458 = vmatpush.bf16.msra.mxu2 %v3440_v2  ;;  %v3218_v32 = vpop.f32.mrf.mxu2 }
 0x56c   :  { %v3265_v14 = vadd.f32 %v3264_v38, %v3216_v28  ;;  %v3219_v55 = vadd.f32 %v18566_v18, %v3218_v32  ;;  %v3356_v61 = vsel %vm20992_vm10, %v3348_v50, %v3349_v23 }
 0x56d   :  { %v3380_v29 = vmax.f32 %v3332_v21, %v3356_v61  ;;  %v21000_v21 = vld [vmem:[#allocation23_spill] sm:$0xff] }
 0x56e   :  { %v3314_v17 = vadd.f32 %v3313_v1, %v3265_v14  ;;  %11385 = vmatmul.msk.bf16.vlgmr.msra.gmra.mxu2 %vm20540_vm6, %v14740_v63 }
 0x56f   :  { %v3395_v32 = vmax.f32 %v3379_v39, %v3380_v29 }
 0x570   :  { %v3334_v26 = vmax.f32 %v3314_v17, 0.0 }
 0x572   :  { %v3350_v46 = vrot.slane %v3334_v26, 1 }
 0x573   :  { %v3267_v41 = vpop.f32.mrf.mxu3  ;;  %v3220_v7 = vpop.f32.mrf.mxu2 }
 0x574   :  { %v3268_v59 = vadd.f32 %v3267_v41, %v3219_v55  ;;  %v3221_v40 = vadd.f32 %v18566_v18, %v3220_v7  ;;  %v3355_v2 = vsel %vm20991_vm11, %v3349_v23, %v3350_v46  ;;  %v3378_v55 = vmax.f32 %v3330_v25, %v3358_v56  ;;  %v14756_v56 = vld [vmem:[%s21011_s21 + $0x78] sm:$0xff] }
 0x575   :  { %v3381_v12 = vmax.f32 %v3333_v49, %v3355_v2  ;;  %v18663_v49 = vand.u32 3, %v3507_v22 }
 0x576   :  { %v3317_v3 = vadd.f32 %v3316_v60, %v3268_v59  ;;  %v3394_v36 = vmax.f32 %v3378_v55, %v3379_v39  ;;  %v3411_v59 = vpack.c.bf16 %v3395_v32, %v3395_v32  ;;  %v3393_v47 = vmax.f32 %v18620_v45, %v3378_v55  ;;  %v14755_v32 = vld [vmem:[%s21011_s21 + $0x70] sm:$0xff] }
 0x577   :  { %v3396_v38 = vmax.f32 %v3380_v29, %v3381_v12  ;;  %vm20542_vm4 = vcmp.le.s32.totalorder %v18663_v49, 2  ;;  %v14764_v29 = vld [vmem:[%s21011_s21 + $0xb8] sm:$0xff]  ;;  %vm20545_vm5 = vcmp.ge.s32.totalorder %v18663_v49, 1 }
 0x578   :  { %v3335_v52 = vmax.f32 %v3317_v3, 0.0  ;;  %v3410_v17 = vpack.c.bf16 %v3394_v36, %v3394_v36  ;;  %v3475_v3 = vunpack.c.l.b16 %v3411_v59  ;;  %v3409_v10 = vpack.c.bf16 %v3393_v47, %v3393_v47  ;;  %vm18685_vm3 = vmand %vm20542_vm4, %vm18672_vm9  ;;  %4196 = vmatpush.bf16.msrb.mxu1 %v14764_v29 }
 0x579   :  { %v3412_v30 = vpack.c.bf16 %v3396_v38, %v3396_v38  ;;  %v14747_v38 = vld [vmem:[%s21011_s21 + $0x30] sm:$0xff] }
 0x57a   :  { %v3351_v48 = vrot.slane %v3335_v52, 1  ;;  %v3474_v7 = vunpack.c.l.b16 %v3410_v17  ;;  %v3473_v54 = vunpack.c.l.b16 %v3409_v10 }
 0x57b   :  { %v3269_v19 = vpop.f32.mrf.mxu3  ;;  %v3476_v27 = vunpack.c.l.b16 %v3412_v30 }
 0x57c   :  { %v3270_v20 = vadd.f32 %v3269_v19, %v3221_v40  ;;  %v3354_v18 = vsel %vm20990_vm14, %v3350_v46, %v3351_v48  ;;  %v3481_v25 = vpack.c.b16 %v3474_v7, %v3473_v54  ;;  %v3509_v46 = vshra.s32 %v21000_v21, 2 }
 0x57d   :  { %v3382_v13 = vmax.f32 %v3334_v26, %v3354_v18  ;;  %v3482_v35 = vpack.c.b16 %v3476_v27, %v3475_v3  ;;  %v20997_v26 = vld [vmem:[#allocation20_spill] sm:$0xff]  ;;  %vm20543_vm14 = vcmp.lt.s32.totalorder %v16210_v15, 4 }
 0x57e   :  { %v3319_v44 = vadd.f32 %v3318_v16, %v3270_v20  ;;  %v3508_v45 = vshra.s32 %v20997_v26, 2  ;;  %v18712_v61 = vand.u32 3, %v3509_v46 }
 0x57f   :  { %v3397_v0 = vmax.f32 %v3381_v12, %v3382_v13 }
 0x580   :  { %v3336_v58 = vmax.f32 %v3319_v44, 0.0  ;;  %v18665_v19 = vand.u32 3, %v3508_v45  ;;  %vm20541_vm10 = vcmp.ge.s32.totalorder %v18712_v61, 1 }
 0x581   :  { %v3413_v14 = vpack.c.bf16 %v3397_v0, %v3397_v0 }
 0x582   :  { %v3352_v33 = vrot.slane %v3336_v58, 1  ;;  %vm20548_vm7 = vcmp.le.s32.totalorder %v18665_v19, 2  ;;  %vm3524_vm11 = vcmp.ge.s32.totalorder %v18665_v19, 1 }
 0x583   :  { %v3477_v41 = vunpack.c.l.b16 %v3413_v14 }
 0x584   :  { %v3353_v6 = vsel %vm20993_vm15, %v3351_v48, %v3352_v33  ;;  %v3368_v53 = vsel %vm20994_vm0, %v3352_v33, %v18583_v42  ;;  %v3504_v48 = vand.u32 3, %v20997_v26  ;;  %vm18749_vm15 = vcmp.ge.s32.totalorder %v3503_v24, 1 }
 0x585   :  { %v3383_v57 = vmax.f32 %v3335_v52, %v3353_v6  ;;  %v3384_v5 = vmax.f32 %v3336_v58, %v3368_v53  ;;  %v21010_v6 = vld [vmem:[#allocation24_spill] sm:$0xff] }
 0x586   :  { %vm18677_vm1 = vcmp.le.s32.totalorder %v3504_v48, 2  ;;  %vm18689_vm8 = vcmp.ge.s32.totalorder %v3504_v48, 1  ;;  %v3510_v53 = vshra.s32 %v21010_v6, 2  ;;  %v3506_v0 = vand.u32 3, %v21010_v6 }
 0x587   :  { %v3399_v9 = vmax.f32 %v3383_v57, %v3384_v5  ;;  %v3400_v8 = vmax.f32 %v3384_v5, %v18603_v43  ;;  %v3398_v11 = vmax.f32 %v3382_v13, %v3383_v57  ;;  %vm18701_vm13 = vmand %vm20548_vm7, %vm18677_vm1 }
 0x588   :  { %v18735_v39 = vand.u32 3, %v3510_v53 }
 0x589   :  { %v3415_v51 = vpack.c.bf16 %v3399_v9, %v3399_v9  ;;  %v3416_v1 = vpack.c.bf16 %v3400_v8, %v3400_v8  ;;  %v3414_v42 = vpack.c.bf16 %v3398_v11, %v3398_v11  ;;  %v3505_v8 = vand.u32 3, %v21000_v21  ;;  %v14748_v11 = vld [vmem:[%s21011_s21 + $0x38] sm:$0xff] }
 0x58a   :  { %4158 = vmatpush.bf16.msrb.mxu2 %v14748_v11 }
 0x58b   :  { %v3479_v28 = vunpack.c.l.b16 %v3415_v51  ;;  %v3480_v31 = vunpack.c.l.b16 %v3416_v1  ;;  %v3478_v43 = vunpack.c.l.b16 %v3414_v42  ;;  %v14763_v51 = vld [vmem:[%s21011_s21 + $0xb0] sm:$0xff]  ;;  %vm18765_vm12 = vcmp.ge.s32.totalorder %v3505_v8, 1 }
 0x58c   :  { %4197 = vmatpush.bf16.msrb.mxu1 %v14763_v51 }
 0x58d   :  { %v3484_v60 = vpack.c.b16 %v3480_v31, %v3479_v28  ;;  %v3483_v37 = vpack.c.b16 %v3478_v43, %v3477_v41 }
 0x58e   :  { %4159 = vmatpush.bf16.msrb.mxu2 %v14747_v38 }
 0x58f   :  { %3493 = vmatpush.bf16.msra.mxu3 %v3484_v60 }
 0x593   :  { %3494 = vmatpush.bf16.msra.mxu3 %v3483_v37  ;;  %v14762_v37 = vld [vmem:[%s21011_s21 + $0xa8] sm:$0xff] }
 0x594   :  { %4198 = vmatpush.bf16.msrb.mxu1 %v14762_v37 }
 0x597   :  { %3495 = vmatpush.bf16.msra.mxu3 %v3482_v35 }
 0x59b   :  { %3496 = vmatpush.bf16.msra.mxu3 %v3481_v25 }
 0x59e   :  { %11386 = vmatmul.msk.bf16.vlgmr.msra.gmra.mxu3 %vm20540_vm6, %v14740_v63  ;;  %vm21018_vm6 = vcmp.lt.s32.totalorder %v16210_v15, 7 }
 0x59f   :  { %4177 = vmatpush.bf16.msrb.mxu3 %v14756_v56 }
 0x5a3   :  { %4178 = vmatpush.bf16.msrb.mxu3 %v14755_v32 }
 0x5f1   :  { %v18656_v52 = vpop.f32.mrf.mxu2 }
 0x5f2   :  { %v3614_v20 = vrot.slane %v18656_v52, 7  ;;  %v3560_v50 = vrot.slane %v18656_v52, 4  ;;  %v3642_v34 = vrot.slane %v18656_v52, 1 }
 0x5f9   :  { %v18660_v40 = vpop.f32.mrf.mxu2 }
 0x5fa   :  { %v3615_v63 = vrot.slane %v18660_v40, 7  ;;  %v3561_v2 = vrot.slane %v18660_v40, 4  ;;  %v3643_v57 = vrot.slane %v18660_v40, 1 }
 0x5fc   :  { %v3620_v18 = vsel %vm21007_vm2, %v3614_v20, %v3615_v63  ;;  %v3567_v12 = vsel %vm20543_vm14, %v3560_v50, %v3561_v2  ;;  %v3648_v55 = vsel %vm20994_vm0, %v3642_v34, %v3643_v57  ;;  %vm18771_vm2 = vcmp.ge.s32.totalorder %v3506_v0, 1 }
 0x5fd   :  { %v3631_v62 = vsel %vm18689_vm8, %v3620_v18, 0.0  ;;  %v3578_v42 = vsel %vm3524_vm11, %v3567_v12, 0.0  ;;  %vm20544_vm0 = vcmp.ge.s32.totalorder %v18735_v39, 1  ;;  %v3694_v17 = vsel %vm20542_vm4, %v3567_v12, 0.0 }
 0x5fe   :  { %v3635_v5 = vpack.c.bf16 %v3631_v62, %v3631_v62  ;;  %v3582_v47 = vpack.c.bf16 %v3578_v42, %v3578_v42  ;;  %v3658_v10 = vsel %vm18672_vm9, %v3648_v55, 0.0 }
 0x5ff   :  { %v3662_v56 = vpack.c.bf16 %v3658_v10, %v3658_v10 }
 0x600   :  { %v3761_v31 = vunpack.c.l.b16 %v3635_v5 }
 0x601   :  { %v3784_v6 = vunpack.c.l.b16 %v3662_v56 }
 0x621   :  { %v18707_v33 = vpop.f32.mrf.mxu3 }
 0x622   :  { %v3562_v13 = vrot.slane %v18707_v33, 4  ;;  %v3644_v1 = vrot.slane %v18707_v33, 1  ;;  %v3616_v60 = vrot.slane %v18707_v33, 7 }
 0x624   :  { %v3566_v9 = vsel %vm20543_vm14, %v3561_v2, %v3562_v13  ;;  %v3647_v3 = vsel %vm21018_vm6, %v3643_v57, %v3644_v1  ;;  %v3737_v2 = vunpack.c.l.b16 %v3582_v47 }
 0x625   :  { %v3579_v14 = vsel %vm20541_vm10, %v3566_v9, 0.0  ;;  %vm21019_vm10 = vcmp.lt.s32.totalorder %v16210_v15, 1  ;;  %v3695_v18 = vsel %vm20548_vm7, %v3566_v9, 0.0  ;;  %v3659_v53 = vsel %vm18677_vm1, %v3647_v3, 0.0 }
 0x626   :  { %v3583_v27 = vpack.c.bf16 %v3579_v14, %v3579_v14  ;;  %vm21020_vm4 = vmmov %vm21019_vm10  ;;  %v3698_v9 = vpack.c.bf16 %v3694_v17, %v3694_v17  ;;  %v3699_v11 = vpack.c.bf16 %v3695_v18, %v3695_v18  ;;  %v14760_v14 = vld [vmem:[%s21011_s21 + $0x98] sm:$0xff]  ;;  %v3663_v55 = vpack.c.bf16 %v3659_v53, %v3659_v53 }
 0x627   :  { %vm21021_vm6 = vmmov %vm21020_vm4  ;;  %v3586_v53 = vrot.slane %v18660_v40, 5 }
 0x628   :  { %v3619_v24 = vsel %vm21021_vm6, %v3615_v63, %v3616_v60  ;;  %v3738_v62 = vunpack.c.l.b16 %v3583_v27  ;;  %vm18828_vm6 = vcmp.le.s32.totalorder %v3506_v0, 2  ;;  %v3808_v47 = vunpack.c.l.b16 %v3698_v9 }
 0x629   :  { %v18760_v43 = vpop.f32.mrf.mxu3  ;;  %v3632_v29 = vsel %vm18765_vm12, %v3619_v24, 0.0  ;;  %v3809_v37 = vunpack.c.l.b16 %v3699_v11 }
 0x62a   :  { %v3563_v41 = vrot.slane %v18760_v43, 4  ;;  %v3617_v59 = vrot.slane %v18760_v43, 7  ;;  %v3645_v63 = vrot.slane %v18760_v43, 1  ;;  %v3534_v4 = vrot.slane %v18760_v43, 3 }
 0x62b   :  { %v3588_v56 = vrot.slane %v18760_v43, 5 }
 0x62c   :  { %v3621_v35 = vsel %vm21019_vm10, %v3617_v59, %v3614_v20  ;;  %v3568_v7 = vsel %vm20543_vm14, %v3563_v41, %v3560_v50  ;;  %v3565_v54 = vsel %vm20543_vm14, %v3562_v13, %v3563_v41  ;;  %v3618_v25 = vsel %vm21020_vm4, %v3616_v60, %v3617_v59  ;;  %v14761_v50 = vld [vmem:[%s21011_s21 + $0xa0] sm:$0xff] }
 0x62d   :  { %v3630_v22 = vsel %vm18749_vm15, %v3621_v35, 0.0  ;;  %v3577_v26 = vsel %vm20545_vm5, %v3568_v7, 0.0  ;;  %v3580_v45 = vsel %vm20544_vm0, %v3565_v54, 0.0  ;;  %v3633_v13 = vsel %vm18771_vm2, %v3618_v25, 0.0  ;;  %4199 = vmatpush.bf16.msrb.mxu1 %v14761_v50 }
 0x62e   :  { %v3634_v48 = vpack.c.bf16 %v3630_v22, %v3630_v22  ;;  %v3581_v20 = vpack.c.bf16 %v3577_v26, %v3577_v26  ;;  %v3584_v46 = vpack.c.bf16 %v3580_v45, %v3580_v45  ;;  %v3637_v32 = vpack.c.bf16 %v3633_v13, %v3633_v13 }
 0x62f   :  { %vm20547_vm4 = vcmp.le.s32.totalorder %v18712_v61, 2  ;;  %vm20546_vm10 = vcmp.le.s32.totalorder %v18735_v39, 2  ;;  %v3636_v60 = vpack.c.bf16 %v3632_v29, %v3632_v29  ;;  %vm21024_vm14 = vcmp.lt.s32.totalorder %v16210_v15, 7 }
 0x630   :  { %v3760_v57 = vunpack.c.l.b16 %v3634_v48  ;;  %v3736_v5 = vunpack.c.l.b16 %v3581_v20  ;;  %v3739_v12 = vunpack.c.l.b16 %v3584_v46  ;;  %v3646_v41 = vsel %vm21024_vm14, %v3644_v1, %v3645_v63  ;;  %vm21025_vm0 = vmmov %vm21024_vm14 }
 0x631   :  { %v3649_v59 = vsel %vm21025_vm0, %v3645_v63, %v3642_v34  ;;  %v3763_v27 = vunpack.c.l.b16 %v3637_v32  ;;  %v3696_v0 = vsel %vm20547_vm4, %v3565_v54, 0.0  ;;  %vm18845_vm5 = vcmp.le.s32.totalorder %v3505_v8, 2  ;;  %4200 = vmatpush.bf16.msrb.mxu1 %v14760_v14  ;;  %v14759_v34 = vld [vmem:[%s21011_s21 + $0x90] sm:$0xff]  ;;  %vm3541_vm4 = vmand %vm3524_vm11, %vm18689_vm8 }
 0x632   :  { %v3764_v51 = vpack.c.b16 %v3761_v31, %v3760_v57  ;;  %v3740_v42 = vpack.c.b16 %v3737_v2, %v3736_v5  ;;  %v3741_v38 = vpack.c.b16 %v3739_v12, %v3738_v62  ;;  %v3785_v1 = vunpack.c.l.b16 %v3663_v55 }
 0x633   :  { %v3697_v3 = vsel %vm20546_vm10, %v3568_v7, 0.0  ;;  %v3660_v10 = vsel %vm18845_vm5, %v3646_v41, 0.0  ;;  %v3661_v35 = vsel %vm18828_vm6, %v3649_v59, 0.0  ;;  %v3762_v21 = vunpack.c.l.b16 %v3636_v60  ;;  %vm3595_vm10 = vmand %vm3524_vm11, %vm18677_vm1 }
 0x634   :  { %3766 = vrot.lane.b32.xlu1 %v3764_v51, %s15639_s4  ;;  %3742 = vrot.lane.b32.xlu0 %v3740_v42, %s15639_s4  ;;  %v3812_v8 = vpack.c.b16 %v3809_v37, %v3808_v47  ;;  %v3700_v54 = vpack.c.bf16 %v3696_v0, %v3696_v0  ;;  %v3701_v22 = vpack.c.bf16 %v3697_v3, %v3697_v3  ;;  %v3531_v2 = vrot.slane %v18656_v52, 3 }
 0x635   :  { %3744 = vrot.lane.b32.xlu2 %v3741_v38, %s15639_s4  ;;  %v3765_v25 = vpack.c.b16 %v3763_v27, %v3762_v21  ;;  %v3664_v26 = vpack.c.bf16 %v3660_v10, %v3660_v10  ;;  %v3665_v45 = vpack.c.bf16 %v3661_v35, %v3661_v35  ;;  %4201 = vmatpush.bf16.msrb.mxu1 %v14759_v34  ;;  %v3585_v62 = vrot.slane %v18656_v52, 5 }
 0x636   :  { %v3788_v24 = vpack.c.b16 %v3785_v1, %v3784_v6  ;;  %v3810_v7 = vunpack.c.l.b16 %v3700_v54  ;;  %v3811_v48 = vunpack.c.l.b16 %v3701_v22  ;;  %v3532_v13 = vrot.slane %v18660_v40, 3 }
 0x637   :  { %v3786_v20 = vunpack.c.l.b16 %v3664_v26  ;;  %v3787_v46 = vunpack.c.l.b16 %v3665_v45  ;;  %v3533_v63 = vrot.slane %v18707_v33, 3  ;;  %v3587_v57 = vrot.slane %v18707_v33, 5 }
 0x638   :  { %v3813_v18 = vpack.c.b16 %v3811_v48, %v3810_v7  ;;  %vm20550_vm14 = vcmp.lt.s32.totalorder %v16210_v15, 3  ;;  %vm20549_vm0 = vcmp.lt.s32.totalorder %v16210_v15, 5  ;;  %vm21028_vm1 = vcmp.le.s32.totalorder %v18663_v49, 2 }
 0x639   :  { %v3789_v50 = vpack.c.b16 %v3787_v46, %v3786_v20  ;;  %v3592_v5 = vsel %vm20550_vm14, %v3585_v62, %v3586_v53  ;;  %v3538_v12 = vsel %vm20549_vm0, %v3531_v2, %v3532_v13  ;;  %v3537_v44 = vsel %vm20549_vm0, %v3532_v13, %v3533_v63  ;;  %vm3666_vm7 = vmand %vm21028_vm1, %vm18749_vm15 }
 0x63a   :  { %v3714_v29 = vsel %vm18685_vm3, %v3592_v5, 0.0  ;;  %v3591_v9 = vsel %vm20550_vm14, %v3586_v53, %v3587_v57  ;;  %vm21029_vm3 = vcmp.le.s32.totalorder %v18665_v19, 2  ;;  %v3678_v51 = vsel %vm3666_vm7, %v3538_v12, 0.0 }
 0x63b   :  { %v3718_v11 = vpack.c.bf16 %v3714_v29, %v3714_v29  ;;  %vm3667_vm11 = vmand %vm21029_vm3, %vm18689_vm8  ;;  %v3715_v42 = vsel %vm18701_vm13, %v3591_v9, 0.0  ;;  %v3607_v38 = vsel %vm3595_vm10, %v3592_v5, 0.0  ;;  %v3553_v32 = vsel %vm3541_vm4, %v3538_v12, 0.0 }
 0x63c   :  { %3768 = vrot.lane.b32.xlu0 %v3765_v25, %s15639_s4  ;;  %3814 = vrot.lane.b32.xlu1 %v3812_v8, %s15639_s4  ;;  %v3679_v14 = vsel %vm3667_vm11, %v3537_v44, 0.0  ;;  %v3682_v55 = vpack.c.bf16 %v3678_v51, %v3678_v51  ;;  %vm21030_vm1 = vcmp.ge.s32.totalorder %v18712_v61, 1  ;;  %v3719_v19 = vpack.c.bf16 %v3715_v42, %v3715_v42  ;;  %v14754_v51 = vld [vmem:[%s21011_s21 + $0x68] sm:$0xff] }
 0x63d   :  { %3790 = vrot.lane.b32.xlu2 %v3788_v24, %s15639_s4  ;;  %vm3542_vm0 = vmand %vm21030_vm1, %vm18765_vm12  ;;  %v3683_v60 = vpack.c.bf16 %v3679_v14, %v3679_v14  ;;  %v18909_v23 = vunpack.c.l.b16 %v3718_v11  ;;  %v3611_v47 = vpack.c.bf16 %v3607_v38, %v3607_v38  ;;  %v3557_v37 = vpack.c.bf16 %v3553_v32, %v3553_v32  ;;  %v14758_v42 = vld [vmem:[%s21011_s21 + $0x88] sm:$0xff]  ;;  %4179 = vmatpush.bf16.msrb.mxu3 %v14754_v51  ;;  %v14745_v38 = vld [vmem:[%s21011_s21 + $0x20] sm:$0xff] }
 0x63e   :  { %v3554_v41 = vsel %vm3542_vm0, %v3537_v44, 0.0  ;;  %vm21031_vm14 = vmmov %vm21030_vm1  ;;  %v18911_v58 = vunpack.c.l.b16 %v3682_v55  ;;  %v18915_v6 = vunpack.c.l.b16 %v3719_v19  ;;  %vm21032_vm7 = vcmp.lt.s32.totalorder %v16210_v15, 3  ;;  %v14753_v32 = vld [vmem:[%s21011_s21 + $0x60] sm:$0xff]  ;;  %4202 = vmatpush.bf16.msrb.mxu1 %v14758_v42  ;;  %v14744_v55 = vld [vmem:[%s21011_s21 + $0x18] sm:$0xff] }
 0x63f   :  { %vm3596_vm8 = vmand %vm21031_vm14, %vm18845_vm5  ;;  %v18913_v27 = vunpack.c.l.b16 %v3683_v60  ;;  %v3593_v0 = vsel %vm21032_vm7, %v3588_v56, %v3585_v62  ;;  %vm21033_vm13 = vcmp.ge.s32.totalorder %v18663_v49, 1  ;;  %vm21034_vm10 = vcmp.lt.s32.totalorder %v16210_v15, 5  ;;  %v14757_v14 = vld [vmem:[%s21011_s21 + $0x80] sm:$0xff]  ;;  %v14752_v60 = vld [vmem:[%s21011_s21 + $0x58] sm:$0xff] }
 0x640   :  { %v3608_v59 = vsel %vm3596_vm8, %v3591_v9, 0.0  ;;  %vm3594_vm4 = vmand %vm21033_vm13, %vm18672_vm9  ;;  %v3539_v34 = vsel %vm21034_vm10, %v3534_v4, %v3531_v2  ;;  %v3558_v3 = vpack.c.bf16 %v3554_v41, %v3554_v41  ;;  %vm21038_vm9 = vcmp.ge.s32.totalorder %v18735_v39, 1  ;;  %v14743_v41 = vld [vmem:[%s21011_s21 + $0x10] sm:$0xff] }
 0x641   :  { %vm21035_vm14 = vmmov %vm21034_vm10  ;;  %v3606_v10 = vsel %vm3594_vm4, %v3593_v0, 0.0  ;;  %v3802_v35 = vpack.c.b16 %v18913_v27, %v18911_v58  ;;  %v3612_v21 = vpack.c.bf16 %v3608_v59, %v3608_v59  ;;  %v3826_v28 = vpack.c.b16 %v18915_v6, %v18909_v23  ;;  %4180 = vmatpush.bf16.msrb.mxu3 %v14753_v32  ;;  %v14751_v19 = vld [vmem:[%s21011_s21 + $0x50] sm:$0xff]  ;;  %v14742_v59 = vld [vmem:[%s21011_s21 + $0x8] sm:$0xff] }
 0x642   :  { %v3536_v1 = vsel %vm21035_vm14, %v3533_v63, %v3534_v4  ;;  %vm21036_vm0 = vmmov %vm21033_vm13  ;;  %v3610_v8 = vpack.c.bf16 %v3606_v10, %v3606_v10  ;;  %v18941_v25 = vunpack.c.l.b16 %v3611_v47  ;;  %v18943_v22 = vunpack.c.l.b16 %v3557_v37  ;;  %4203 = vmatpush.bf16.msrb.mxu1 %v14757_v14  ;;  %v14750_v47 = vld [vmem:[%s21011_s21 + $0x48] sm:$0xff]  ;;  %v14741_v37 = vld [vmem:[%s21011_s21] sm:$0xff] }
 0x643   :  { %vm3540_vm3 = vmand %vm21036_vm0, %vm18749_vm15  ;;  %v18951_v7 = vunpack.c.l.b16 %v3558_v3  ;;  %vm21041_vm4 = vcmp.le.s32.totalorder %v18735_v39, 2  ;;  %v3638_v3 = vpack.c.bf16 %v18656_v52, %v18656_v52  ;;  %v3639_v10 = vpack.c.bf16 %v18660_v40, %v18660_v40  ;;  %v14768_v40 = vld [vmem:[%s21011_s21 + $0xd8] sm:$0xff] }
 0x644   :  { %3816 = vrot.lane.b32.xlu0 %v3813_v18, %s15639_s4  ;;  %3792 = vrot.lane.b32.xlu1 %v3789_v50, %s15639_s4  ;;  %vm21037_vm11 = vmmov %vm21032_vm7  ;;  %v3552_v54 = vsel %vm3540_vm3, %v3539_v34, 0.0  ;;  %v18949_v45 = vunpack.c.l.b16 %v3610_v8  ;;  %vm21040_vm7 = vcmp.le.s32.totalorder %v18712_v61, 2  ;;  %v18959_v18 = vunpack.c.l.b16 %v3612_v21  ;;  %v14770_v21 = vld [vmem:[%s21011_s21 + $0xe8] sm:$0xff] }
 0x645   :  { %v3590_v16 = vsel %vm21037_vm11, %v3587_v57, %v3588_v56  ;;  %vm3543_vm1 = vmand %vm21038_vm9, %vm18771_vm2  ;;  %v3556_v49 = vpack.c.bf16 %v3552_v54, %v3552_v54  ;;  %v14746_v56 = vld [vmem:[%s21011_s21 + $0x28] sm:$0xff]  ;;  %4181 = vmatpush.bf16.msrb.mxu3 %v14752_v60  ;;  %v3774_v8 = vunpack.c.l.b16 %v3638_v3  ;;  %v3775_v54 = vunpack.c.l.b16 %v3639_v10 }
 0x646   :  { %v3555_v26 = vsel %vm3543_vm1, %v3536_v1, 0.0  ;;  %vm21039_vm15 = vmmov %vm21038_vm9  ;;  %v3754_v2 = vpack.c.b16 %v18941_v25, %v18949_v45  ;;  %4160 = vmatpush.bf16.msrb.mxu2 %v14746_v56  ;;  %v3641_v51 = vpack.c.bf16 %v18760_v43, %v18760_v43 }
 0x647   :  { %vm3597_vm8 = vmand %vm21039_vm15, %vm18828_vm6  ;;  %v3559_v24 = vpack.c.bf16 %v3555_v26, %v3555_v26  ;;  %v18957_v20 = vunpack.c.l.b16 %v3556_v49  ;;  %v14769_v49 = vld [vmem:[%s21011_s21 + $0xe0] sm:$0xff]  ;;  %v3778_v26 = vpack.c.b16 %v3775_v54, %v3774_v8 }
 0x648   :  { %v3609_v48 = vsel %vm3597_vm8, %v3590_v16, 0.0  ;;  %vm3668_vm13 = vmand %vm21040_vm7, %vm18765_vm12  ;;  %v3777_v32 = vunpack.c.l.b16 %v3641_v51 }
 0x649   :  { %v3613_v46 = vpack.c.bf16 %v3609_v48, %v3609_v48  ;;  %vm3669_vm10 = vmand %vm21041_vm4, %vm18771_vm2  ;;  %v3680_v50 = vsel %vm3668_vm13, %v3536_v1, 0.0  ;;  %v18967_v62 = vunpack.c.l.b16 %v3559_v24  ;;  %v3730_v53 = vpack.c.b16 %v18943_v22, %v18957_v20  ;;  %4182 = vmatpush.bf16.msrb.mxu3 %v14751_v19  ;;  %v14771_v1 = vld [vmem:[%s21011_s21 + $0xf0] sm:$0xff]  ;;  %v14776_v48 = vld [vmem:[%s21011_s21 + $0x118] sm:$0xff] }
 0x64a   :  { %v3681_v30 = vsel %vm3669_vm10, %v3539_v34, 0.0  ;;  %v3684_v13 = vpack.c.bf16 %v3680_v50, %v3680_v50  ;;  %vm21042_vm12 = vmmov %vm21040_vm7  ;;  %4161 = vmatpush.bf16.msrb.mxu2 %v14745_v38  ;;  %v14772_v34 = vld [vmem:[%s21011_s21 + $0xf8] sm:$0xff]  ;;  %v14775_v50 = vld [vmem:[%s21011_s21 + $0x110] sm:$0xff]  ;;  %v3640_v38 = vpack.c.bf16 %v18707_v33, %v18707_v33 }
 0x64b   :  { %vm3704_vm14 = vmand %vm21042_vm12, %vm18845_vm5  ;;  %v18975_v36 = vunpack.c.l.b16 %v3613_v46  ;;  %v3685_v63 = vpack.c.bf16 %v3681_v30, %v3681_v30  ;;  %v3731_v5 = vpack.c.b16 %v18967_v62, %v18951_v7  ;;  %vm21044_vm5 = vcmask 523264   ;;  %v14767_v46 = vld [vmem:[%s21011_s21 + $0xd0] sm:$0xff]  ;;  %v14766_v30 = vld [vmem:[%s21011_s21 + $0xc8] sm:$0xff] }
 0x64c   :  { %vm21043_vm2 = vmmov %vm21041_vm4  ;;  %v3716_v57 = vsel %vm3704_vm14, %v3590_v16, 0.0  ;;  %v18983_v12 = vunpack.c.l.b16 %v3684_v13  ;;  %v14774_v13 = vld [vmem:[%s21011_s21 + $0x108] sm:$0xff]  ;;  %v3776_v25 = vunpack.c.l.b16 %v3640_v38  ;;  %vm21055_vm4 = vcmp.lt.s32.totalorder %v16210_v15, 7 }
 0x64d   :  { %vm3705_vm0 = vmand %vm21043_vm2, %vm18828_vm6  ;;  %v3720_v61 = vpack.c.bf16 %v3716_v57, %v3716_v57  ;;  %v3755_v29 = vpack.c.b16 %v18975_v36, %v18959_v18  ;;  %v18987_v44 = vunpack.c.l.b16 %v3685_v63  ;;  %4183 = vmatpush.bf16.msrb.mxu3 %v14750_v47  ;;  %v14765_v63 = vld [vmem:[%s21011_s21 + $0xc0] sm:$0xff]  ;;  %vm21057_vm12 = vcmp.lt.s32.totalorder %v16210_v15, 4 }
 0x64e   :  { %v3717_v17 = vsel %vm3705_vm0, %v3593_v0, 0.0  ;;  %4162 = vmatpush.bf16.msrb.mxu2 %v14744_v55  ;;  %v14749_v0 = vld [vmem:[%s21011_s21 + $0x40] sm:$0xff]  ;;  %vm21045_vm6 = vmmov %vm21044_vm5 }
 0x64f   :  { %v3721_v9 = vpack.c.bf16 %v3717_v17, %v3717_v17  ;;  %v18989_v11 = vunpack.c.l.b16 %v3720_v61  ;;  %v3803_v39 = vpack.c.b16 %v18987_v44, %v18983_v12  ;;  %v14773_v57 = vld [vmem:[%s21011_s21 + $0x100] sm:$0xff]  ;;  %vm21046_vm3 = vmmov %vm21044_vm5 }
 0x650   :  { %vm21047_vm11 = vmmov %vm21046_vm3 }
 0x651   :  { %v18993_v31 = vunpack.c.l.b16 %v3721_v9  ;;  %4184 = vmatpush.bf16.msrb.mxu3 %v14749_v0  ;;  %vm21048_vm9 = vmmov %vm21046_vm3 }
 0x652   :  { %4163 = vmatpush.bf16.msrb.mxu2 %v14743_v41  ;;  %vm21049_vm1 = vmmov %vm21046_vm3 }
 0x653   :  { %v3827_v4 = vpack.c.b16 %v18993_v31, %v18989_v11  ;;  %vm21050_vm15 = vmmov %vm21049_vm1 }
 0x654   :  { %vm21051_vm8 = vmmov %vm21049_vm1 }
 0x655   :  { %4238 = vmatpush.bf16.msra.mxu3 %v14776_v48  ;;  %vm21052_vm7 = vmmov %vm21049_vm1 }
 0x656   :  { %4164 = vmatpush.bf16.msrb.mxu2 %v14742_v59  ;;  %vm21053_vm13 = vmmov %vm21049_vm1 }
 0x657   :  { %vm21056_vm10 = vmmov %vm21055_vm4 }
 0x658   :  { %vm21058_vm14 = vmmov %vm21055_vm4 }
 0x659   :  { %4239 = vmatpush.bf16.msra.mxu3 %v14775_v50  ;;  %vm21059_vm2 = vmmov %vm21055_vm4 }
 0x65a   :  { %4165 = vmatpush.bf16.msrb.mxu2 %v14741_v37  ;;  %vm21060_vm0 = vmmov %vm21057_vm12 }
 0x65d   :  { %4240 = vmatpush.bf16.msra.mxu3 %v14774_v13 }
 0x65e   :  { %4215 = vmatpush.bf16.msra.mxu2 %v14772_v34 }
 0x661   :  { %4241 = vmatpush.bf16.msra.mxu3 %v14773_v57 }
 0x662   :  { %4216 = vmatpush.bf16.msra.mxu2 %v14771_v1 }
 0x666   :  { %4217 = vmatpush.bf16.msra.mxu2 %v14770_v21 }
 0x66a   :  { %4218 = vmatpush.bf16.msra.mxu2 %v14769_v49 }
 0x66e   :  { %4219 = vmatpush.bf16.msra.mxu2 %v14768_v40 }
 0x672   :  { %4220 = vmatpush.bf16.msra.mxu2 %v14767_v46 }
 0x676   :  { %4221 = vmatpush.bf16.msra.mxu2 %v14766_v30 }
 0x67a   :  { %4222 = vmatpush.bf16.msra.mxu2 %v14765_v63 }
 0x68f   :  { %v3745_v16 = vpop.permute.xlu2 %3744 }
 0x690   :  { %v3834_v22 = vsel %vm21047_vm11, %v3731_v5, %v3745_v16  ;;  %v15551_v5 = vld [vmem:[%s21054_s3] ss:$0 sm:$0xff] }
 0x697   :  { %v3791_v24 = vpop.permute.xlu2 %3790 }
 0x698   :  { %v3846_v52 = vsel %vm21044_vm5, %v3778_v26, %v3791_v24  ;;  %vm21061_vm5 = vmmov %vm21060_vm0 }
 0x699   :  { %4204 = vmatmul.bf16.vlgmr.msrb.gmra.mxu1 %v3846_v52 }
 0x6a6   :  { %v3767_v17 = vpop.permute.xlu1 %3766  ;;  %v3743_v61 = vpop.permute.xlu0 %3742 }
 0x6a7   :  { %v3838_v9 = vsel %vm21045_vm6, %v3754_v2, %v3767_v17  ;;  %v3830_v56 = vsel %vm21046_vm3, %v3730_v53, %v3743_v61  ;;  %v3779_v2 = vpack.c.b16 %v3777_v32, %v3776_v25  ;;  %vm21062_vm6 = vmmov %vm21060_vm0  ;;  %vm21064_vm3 = vcmask 130048  }
 0x6a8   :  { %4166 = vmatmul.bf16.vlgmr.msrb.gmra.mxu2 %v3830_v56  ;;  %4185 = vmatmul.bf16.vlgmr.msrb.gmra.mxu3 %v3838_v9  ;;  %vm21065_vm11 = vmmov %vm21064_vm3 }
 0x6ae   :  { %v3815_v42 = vpop.permute.xlu1 %3814  ;;  %v3769_v45 = vpop.permute.xlu0 %3768 }
 0x6af   :  { %v3842_v20 = vsel %vm21048_vm9, %v3755_v29, %v3769_v45  ;;  %v3854_v33 = vsel %vm21050_vm15, %v3802_v35, %v3815_v42  ;;  %vm4330_vm9 = vcmask 1043456  }
 0x6b6   :  { %v3793_v14 = vpop.permute.xlu1 %3792  ;;  %v3817_v7 = vpop.permute.xlu0 %3816 }
 0x6b7   :  { %v3850_v43 = vsel %vm21049_vm1, %v3779_v2, %v3793_v14  ;;  %v3858_v18 = vsel %vm21052_vm7, %v3803_v39, %v3817_v7 }
 0x6b8   :  { %4171 = vmatmul.bf16.gmra.mxu2 %v3834_v22  ;;  %4190 = vmatmul.bf16.gmra.mxu3 %v3842_v20 }
 0x6b9   :  { %4209 = vmatmul.bf16.gmra.mxu1 %v3850_v43 }
 0x6c8   :  { %4223 = vmatmul.bf16.vlgmr.msra.gmra.mxu2 %v3854_v33  ;;  %11531 = vmatmul.msk.bf16.vlgmr.msra.gmra.mxu3 %vm21051_vm8, %v3826_v28 }
 0x6d8   :  { %4228 = vmatmul.bf16.gmra.mxu2 %v3858_v18  ;;  %11532 = vmatmul.msk.bf16.gmra.mxu3 %vm21053_vm13, %v3827_v4 }
 0x716   :  { %v4205_v36 = vpop.f32.mrf.mxu1 }
 0x71e   :  { %v4207_v4 = vpop.f32.mrf.mxu1 }
 0x72b   :  { %v4167_v58 = vpop.f32.mrf.mxu2  ;;  %v4186_v27 = vpop.f32.mrf.mxu3 }
 0x72c   :  { %v4168_v12 = vadd.f32 %v15551_v5, %v4167_v58 }
 0x72e   :  { %v4187_v11 = vadd.f32 %v4186_v27, %v4168_v12 }
 0x730   :  { %v4206_v60 = vadd.f32 %v4205_v36, %v4187_v11 }
 0x733   :  { %v4169_v35 = vpop.f32.mrf.mxu2  ;;  %v4188_v62 = vpop.f32.mrf.mxu3 }
 0x734   :  { %v4170_v29 = vadd.f32 %v15551_v5, %v4169_v35 }
 0x736   :  { %v4189_v31 = vadd.f32 %v4188_v62, %v4170_v29  ;;  %v4210_v1 = vpop.f32.mrf.mxu1 }
 0x738   :  { %v4208_v41 = vadd.f32 %v4207_v4, %v4189_v31  ;;  %v4285_v4 = vld [vmem:[%s21063_s1] sm:$0x3] }
 0x73b   :  { %v4172_v53 = vpop.f32.mrf.mxu2  ;;  %v4191_v23 = vpop.f32.mrf.mxu3 }
 0x73c   :  { %v4173_v55 = vadd.f32 %v15551_v5, %v4172_v53 }
 0x73e   :  { %v4192_v0 = vadd.f32 %v4191_v23, %v4173_v55  ;;  %v4212_v50 = vpop.f32.mrf.mxu1 }
 0x740   :  { %v4211_v21 = vadd.f32 %v4210_v1, %v4192_v0 }
 0x743   :  { %v4174_v6 = vpop.f32.mrf.mxu2  ;;  %v4193_v28 = vpop.f32.mrf.mxu3 }
 0x744   :  { %v4175_v10 = vadd.f32 %v15551_v5, %v4174_v6 }
 0x746   :  { %v4194_v24 = vadd.f32 %v4193_v28, %v4175_v10 }
 0x748   :  { %v4213_v63 = vadd.f32 %v4212_v50, %v4194_v24 }
 0x74b   :  { %v4224_v44 = vpop.f32.mrf.mxu2  ;;  %v4243_v39 = vpop.f32.mrf.mxu3 }
 0x74c   :  { %v4225_v47 = vadd.f32 %v4224_v44, %v4206_v60 }
 0x74e   :  { %v4244_v3 = vadd.f32 %v4243_v39, %v4225_v47 }
 0x750   :  { %v4253_v49 = vmax.f32 %v4244_v3, 0.0 }
 0x752   :  { %v4257_v48 = vrot.slane %v4253_v49, 1 }
 0x753   :  { %v4226_v19 = vpop.f32.mrf.mxu2  ;;  %v4245_v59 = vpop.f32.mrf.mxu3 }
 0x754   :  { %v4227_v37 = vadd.f32 %v4226_v19, %v4208_v41 }
 0x756   :  { %v4246_v34 = vadd.f32 %v4245_v59, %v4227_v37 }
 0x758   :  { %v4254_v16 = vmax.f32 %v4246_v34, 0.0 }
 0x75a   :  { %v4258_v52 = vrot.slane %v4254_v16, 1 }
 0x75b   :  { %v4229_v8 = vpop.f32.mrf.mxu2  ;;  %v4248_v54 = vpop.f32.mrf.mxu3 }
 0x75c   :  { %v4230_v26 = vadd.f32 %v4229_v8, %v4211_v21  ;;  %v4263_v30 = vsel %vm21055_vm4, %v4257_v48, %v4258_v52 }
 0x75d   :  { %v4265_v9 = vmax.f32 %v4253_v49, %v4263_v30 }
 0x75e   :  { %v4249_v40 = vadd.f32 %v4248_v54, %v4230_v26 }
 0x75f   :  { %v4269_v25 = vrot.slane %v4265_v9, 4 }
 0x760   :  { %v4255_v46 = vmax.f32 %v4249_v40, 0.0 }
 0x762   :  { %v4259_v13 = vrot.slane %v4255_v46, 1 }
 0x763   :  { %v4231_v57 = vpop.f32.mrf.mxu2  ;;  %v4250_v51 = vpop.f32.mrf.mxu3 }
 0x764   :  { %v4262_v17 = vsel %vm21056_vm10, %v4258_v52, %v4259_v13  ;;  %v4232_v61 = vadd.f32 %v4231_v57, %v4213_v63 }
 0x765   :  { %v4266_v56 = vmax.f32 %v4254_v16, %v4262_v17 }
 0x766   :  { %v4251_v42 = vadd.f32 %v4250_v51, %v4232_v61 }
 0x767   :  { %v4270_v38 = vrot.slane %v4266_v56, 4 }
 0x768   :  { %v4256_v32 = vmax.f32 %v4251_v42, 0.0 }
 0x769   :  { %v4275_v2 = vsel %vm21057_vm12, %v4269_v25, %v4270_v38 }
 0x76a   :  { %v4260_v45 = vrot.slane %v4256_v32, 1  ;;  %v4277_v33 = vmax.f32 %v4265_v9, %v4275_v2 }
 0x76c   :  { %v4261_v14 = vsel %vm21058_vm14, %v4259_v13, %v4260_v45  ;;  %v4264_v22 = vsel %vm21059_vm2, %v4260_v45, %v4257_v48  ;;  %v4281_v23 = vpack.c.bf16 %v4277_v33, %v4277_v33 }
 0x76d   :  { %v4267_v20 = vmax.f32 %v4255_v46, %v4261_v14  ;;  %v4268_v43 = vmax.f32 %v4256_v32, %v4264_v22 }
 0x76e   :  { %v4288_v29 = vunpack.c.l.b16 %v4281_v23 }
 0x76f   :  { %v4271_v7 = vrot.slane %v4267_v20, 4  ;;  %v4272_v18 = vrot.slane %v4268_v43, 4 }
 0x771   :  { %v4273_v58 = vsel %vm21060_vm0, %v4271_v7, %v4272_v18  ;;  %v4276_v27 = vsel %vm21061_vm5, %v4272_v18, %v4269_v25  ;;  %v4274_v35 = vsel %vm21062_vm6, %v4270_v38, %v4271_v7 }
 0x772   :  { %v4280_v62 = vmax.f32 %v4268_v43, %v4276_v27  ;;  %v4278_v53 = vmax.f32 %v4266_v56, %v4274_v35  ;;  %v4279_v6 = vmax.f32 %v4267_v20, %v4273_v58 }
 0x774   :  { %v4284_v28 = vpack.c.bf16 %v4280_v62, %v4280_v62  ;;  %v4282_v36 = vpack.c.bf16 %v4278_v53, %v4278_v53  ;;  %v4283_v5 = vpack.c.bf16 %v4279_v6, %v4279_v6 }
 0x776   :  { %v4311_v12 = vunpack.c.l.b16 %v4284_v28  ;;  %v4289_v44 = vunpack.c.l.b16 %v4282_v36  ;;  %v4310_v39 = vunpack.c.l.b16 %v4283_v5 }
 0x778   :  { %v4290_v11 = vpack.c.b16 %v4289_v44, %v4288_v29  ;;  %v4312_v31 = vpack.c.b16 %v4311_v12, %v4310_v39 }
 0x77a   :  { %4302 = vmatpush.bf16.msra.mxu1 %v4290_v11  ;;  %4321 = vmatpush.bf16.msrb.mxu2 %v4312_v31 }
 0x77d   :  { %11534 = vmatmul.msk.bf16.vlgmr.msrb.gmra.mxu2 %vm21064_vm3, %v4285_v4  ;;  %11533 = vmatmul.msk.bf16.vlgmr.msra.gmra.mxu1 %vm21065_vm11, %v4285_v4 }
 0x7fa   :  { %v4304_v55 = vpop.f32.mrf.mxu1 }
 0x800   :  { %v4323_v60 = vpop.f32.mrf.mxu2 }
 0x801   :  { %v4328_v41 = vrot.slane %v4323_v60, 4 }
 0x802   :  { %v4306_v19 = vpop.f32.mrf.mxu1 }
 0x803   :  { %v19142_v59 = vsel %vm4330_vm9, %v4304_v55, %v4328_v41 }
 0x808   :  { %v4325_v47 = vpop.f32.mrf.mxu2 }
 0x809   :  { %15628 = dma.done.wait [#allocation6], 18432 }
 0x80a   :  { %15629 = vsyncadd [#allocation6], 4294948864  ;;  %v11593_v37 = vld [vmem:[#allocation2 + $0x70] sm:$0xf]  ;;  %v14792_v0 = vld [vmem:[#allocation2 + $0x74] sm:$0xf0] }
 0x80b   :  { %v11657_v34 = vld [vmem:[#allocation2 + $0xf0] sm:$0xf]  ;;  %v11594_v1 = vor.u32 %v14792_v0, %v11593_v37  ;;  %v14808_v3 = vld [vmem:[#allocation2 + $0xf4] sm:$0xf0]  ;;  %v11585_v54 = vld [vmem:[#allocation2 + $0x60] sm:$0xf] }
 0x80c   :  { %v11721_v10 = vld [vmem:[#allocation2 + $0x170] sm:$0xf]  ;;  %v14824_v16 = vld [vmem:[#allocation2 + $0x174] sm:$0xf0]  ;;  %v11658_v21 = vor.u32 %v14808_v3, %v11657_v34  ;;  %v14790_v49 = vld [vmem:[#allocation2 + $0x64] sm:$0xf0] }
 0x80d   :  { %v11722_v8 = vor.u32 %v14824_v16, %v11721_v10  ;;  %v11649_v26 = vld [vmem:[#allocation2 + $0xe0] sm:$0xf]  ;;  %5256 = vmatpush.bf16.msrb.mxu3 %v11594_v1  ;;  %v11586_v24 = vor.u32 %v14790_v49, %v11585_v54  ;;  %v14806_v52 = vld [vmem:[#allocation2 + $0xe4] sm:$0xf0]  ;;  %v11577_v30 = vld [vmem:[#allocation2 + $0x50] sm:$0xf] }
 0x80e   :  { %v11713_v40 = vld [vmem:[#allocation2 + $0x160] sm:$0xf]  ;;  %v14822_v48 = vld [vmem:[#allocation2 + $0x164] sm:$0xf0]  ;;  %5269 = vmatpush.bf16.msrb.mxu1 %v11658_v21  ;;  %v11650_v46 = vor.u32 %v14806_v52, %v11649_v26  ;;  %v14788_v13 = vld [vmem:[#allocation2 + $0x54] sm:$0xf0] }
 0x80f   :  { %5282 = vmatpush.bf16.msra.mxu2 %v11722_v8  ;;  %v11714_v50 = vor.u32 %v14822_v48, %v11713_v40  ;;  %v11641_v63 = vld [vmem:[#allocation2 + $0xd0] sm:$0xf]  ;;  %v14804_v57 = vld [vmem:[#allocation2 + $0xd4] sm:$0xf0]  ;;  %v11578_v9 = vor.u32 %v14788_v13, %v11577_v30  ;;  %v11569_v42 = vld [vmem:[#allocation2 + $0x40] sm:$0xf] }
 0x810   :  { %v11705_v17 = vld [vmem:[#allocation2 + $0x150] sm:$0xf]  ;;  %v14820_v61 = vld [vmem:[#allocation2 + $0x154] sm:$0xf0]  ;;  %v11642_v56 = vor.u32 %v14804_v57, %v11641_v63  ;;  %v14786_v38 = vld [vmem:[#allocation2 + $0x44] sm:$0xf0] }
 0x811   :  { %5257 = vmatpush.bf16.msrb.mxu3 %v11586_v24  ;;  %v11706_v51 = vor.u32 %v14820_v61, %v11705_v17  ;;  %v11633_v32 = vld [vmem:[#allocation2 + $0xc0] sm:$0xf]  ;;  %v14802_v25 = vld [vmem:[#allocation2 + $0xc4] sm:$0xf0]  ;;  %v11570_v14 = vor.u32 %v14786_v38, %v11569_v42  ;;  %v11561_v43 = vld [vmem:[#allocation2 + $0x30] sm:$0xf] }
 0x812   :  { %5270 = vmatpush.bf16.msrb.mxu1 %v11650_v46  ;;  %v11697_v45 = vld [vmem:[#allocation2 + $0x140] sm:$0xf]  ;;  %v14818_v2 = vld [vmem:[#allocation2 + $0x144] sm:$0xf0]  ;;  %v11634_v22 = vor.u32 %v14802_v25, %v11633_v32  ;;  %v14784_v33 = vld [vmem:[#allocation2 + $0x34] sm:$0xf0] }
 0x813   :  { %5283 = vmatpush.bf16.msra.mxu2 %v11714_v50  ;;  %v11698_v20 = vor.u32 %v14818_v2, %v11697_v45  ;;  %v11625_v7 = vld [vmem:[#allocation2 + $0xb0] sm:$0xf]  ;;  %v14800_v18 = vld [vmem:[#allocation2 + $0xb4] sm:$0xf0]  ;;  %v11562_v35 = vor.u32 %v14784_v33, %v11561_v43  ;;  %v11553_v23 = vld [vmem:[#allocation2 + $0x20] sm:$0xf] }
 0x814   :  { %v11689_v58 = vld [vmem:[#allocation2 + $0x130] sm:$0xf]  ;;  %v14816_v27 = vld [vmem:[#allocation2 + $0x134] sm:$0xf0]  ;;  %v11626_v62 = vor.u32 %v14800_v18, %v11625_v7  ;;  %v14782_v6 = vld [vmem:[#allocation2 + $0x24] sm:$0xf0] }
 0x815   :  { %5258 = vmatpush.bf16.msrb.mxu3 %v11578_v9  ;;  %v11690_v53 = vor.u32 %v14816_v27, %v11689_v58  ;;  %v11617_v28 = vld [vmem:[#allocation2 + $0xa0] sm:$0xf]  ;;  %v14798_v36 = vld [vmem:[#allocation2 + $0xa4] sm:$0xf0]  ;;  %v11554_v29 = vor.u32 %v14782_v6, %v11553_v23  ;;  %v11545_v11 = vld [vmem:[#allocation2 + $0x10] sm:$0xf] }
 0x816   :  { %5271 = vmatpush.bf16.msrb.mxu1 %v11642_v56  ;;  %v11681_v5 = vld [vmem:[#allocation2 + $0x120] sm:$0xf]  ;;  %v14814_v12 = vld [vmem:[#allocation2 + $0x124] sm:$0xf0]  ;;  %v11618_v44 = vor.u32 %v14798_v36, %v11617_v28  ;;  %v14780_v31 = vld [vmem:[#allocation2 + $0x14] sm:$0xf0] }
 0x817   :  { %5284 = vmatpush.bf16.msra.mxu2 %v11706_v51  ;;  %v11682_v39 = vor.u32 %v14814_v12, %v11681_v5  ;;  %v11609_v4 = vld [vmem:[#allocation2 + $0x90] sm:$0xf]  ;;  %v14796_v55 = vld [vmem:[#allocation2 + $0x94] sm:$0xf0]  ;;  %v11537_v19 = vld [vmem:[#allocation2] sm:$0xf]  ;;  %v11546_v47 = vor.u32 %v14780_v31, %v11545_v11 }
 0x818   :  { %v11673_v60 = vld [vmem:[#allocation2 + $0x110] sm:$0xf]  ;;  %v14812_v41 = vld [vmem:[#allocation2 + $0x114] sm:$0xf0]  ;;  %v14778_v37 = vld [vmem:[#allocation2 + $0x4] sm:$0xf0]  ;;  %v11610_v1 = vor.u32 %v14796_v55, %v11609_v4 }
 0x819   :  { %5259 = vmatpush.bf16.msrb.mxu3 %v11570_v14  ;;  %v11601_v0 = vld [vmem:[#allocation2 + $0x80] sm:$0xf]  ;;  %v14794_v34 = vld [vmem:[#allocation2 + $0x84] sm:$0xf0]  ;;  %v11674_v3 = vor.u32 %v14812_v41, %v11673_v60  ;;  %v11785_v21 = vld [vmem:[#allocation2 + $0x1f0] sm:$0xf]  ;;  %v11538_v48 = vor.u32 %v14778_v37, %v11537_v19 }
 0x81a   :  { %5272 = vmatpush.bf16.msrb.mxu1 %v11634_v22  ;;  %v11665_v10 = vld [vmem:[#allocation2 + $0x100] sm:$0xf]  ;;  %v14810_v16 = vld [vmem:[#allocation2 + $0x104] sm:$0xf0]  ;;  %v14840_v8 = vld [vmem:[#allocation2 + $0x1f4] sm:$0xf0]  ;;  %v11602_v30 = vor.u32 %v14794_v34, %v11601_v0 }
 0x81b   :  { %5285 = vmatpush.bf16.msra.mxu2 %v11698_v20  ;;  %v11849_v54 = vld [vmem:[#allocation2 + $0x270] sm:$0xf]  ;;  %v14856_v49 = vld [vmem:[#allocation2 + $0x274] sm:$0xf0]  ;;  %v4336_v52 = vand.u32 1, %v16210_v15  ;;  %v4337_v40 = vshra.s32 %v16210_v15, 1  ;;  %v11666_v13 = vor.u32 %v14810_v16, %v11665_v10  ;;  %v11786_v17 = vor.u32 %v14840_v8, %v11785_v21 }
 0x81c   :  { %v11913_v26 = vld [vmem:[#allocation2 + $0x2f0] sm:$0xf]  ;;  %v14872_v24 = vld [vmem:[#allocation2 + $0x2f4] sm:$0xf0]  ;;  %v4343_v46 = vrot.slane %v19142_v59, 5  ;;  %v4354_v50 = vrot.slane %v19142_v59, 7  ;;  %v11850_v61 = vor.u32 %v14856_v49, %v11849_v54 }
 0x81d   :  { %5260 = vmatpush.bf16.msrb.mxu3 %v11562_v35  ;;  %v19148_v63 = vand.u32 1, %v4337_v40  ;;  %vm19150_vm1 = vcmp.ge.s32.totalorder %v4336_v52, 1  ;;  %v11914_v9 = vor.u32 %v14872_v24, %v11913_v26  ;;  %v11777_v15 = vld [vmem:[#allocation2 + $0x1e0] sm:$0xf]  ;;  %v14838_v56 = vld [vmem:[#allocation2 + $0x1e4] sm:$0xf0] }
 0x81e   :  { %5273 = vmatpush.bf16.msrb.mxu1 %v11626_v62  ;;  %v11841_v51 = vld [vmem:[#allocation2 + $0x260] sm:$0xf]  ;;  %v14854_v42 = vld [vmem:[#allocation2 + $0x264] sm:$0xf0]  ;;  %v19155_v38 = vpack.c.bf16 %v4343_v46, %v4343_v46  ;;  %vm19157_vm8 = vcmp.le.s32.totalorder %v4336_v52, 0  ;;  %v4349_v25 = vrot.slane %v19142_v59, 6  ;;  %v19170_v22 = vpack.c.bf16 %v4354_v50, %v4354_v50  ;;  %vm12120_vm14 = vmpackc.low %vm19150_vm1, %vm19150_vm1 }
 0x81f   :  { %5286 = vmatpush.bf16.msra.mxu2 %v11690_v53  ;;  %vm4341_vm15 = vcmp.ge.s32.totalorder %v19148_v63, 1  ;;  %v11905_v45 = vld [vmem:[#allocation2 + $0x2e0] sm:$0xf]  ;;  %v14870_v2 = vld [vmem:[#allocation2 + $0x2e4] sm:$0xf0]  ;;  %v11778_v43 = vor.u32 %v14838_v56, %v11777_v15  ;;  %v11842_v33 = vor.u32 %v14854_v42, %v11841_v51  ;;  %vm12123_vm2 = vmpackc.low %vm19157_vm8, %vm19157_vm8  ;;  %vm4342_vm0 = vcmp.le.s32.totalorder %v19148_v63, 0 }
 0x820   :  { %vm19166_vm7 = vmand %vm4341_vm15, %vm19150_vm1  ;;  %v19175_v20 = vpack.c.bf16 %v4349_v25, %v4349_v25  ;;  %v11769_v7 = vld [vmem:[#allocation2 + $0x1d0] sm:$0xf]  ;;  %v14836_v18 = vld [vmem:[#allocation2 + $0x1d4] sm:$0xf0]  ;;  %v11906_v27 = vor.u32 %v14870_v2, %v11905_v45 }
 0x821   :  { %5261 = vmatpush.bf16.msrb.mxu3 %v11554_v29  ;;  %vm12111_vm13 = vmpackc.low %vm19166_vm7, %vm19166_vm7  ;;  %v11833_v35 = vld [vmem:[#allocation2 + $0x250] sm:$0xf]  ;;  %v14852_v62 = vld [vmem:[#allocation2 + $0x254] sm:$0xf0]  ;;  %v11770_v28 = vor.u32 %v14836_v18, %v11769_v7  ;;  %vm5584_vm7 = vcmask 1040384  }
 0x822   :  { %5274 = vmatpush.bf16.msrb.mxu1 %v11618_v44  ;;  %vm19181_vm4 = vmand %vm4341_vm15, %vm19157_vm8  ;;  %v11897_v53 = vld [vmem:[#allocation2 + $0x2d0] sm:$0xf]  ;;  %v14868_v23 = vld [vmem:[#allocation2 + $0x2d4] sm:$0xf0]  ;;  %v11834_v36 = vor.u32 %v14852_v62, %v11833_v35 }
 0x823   :  { %5287 = vmatpush.bf16.msra.mxu2 %v11682_v39  ;;  %vm12117_vm10 = vmpackc.low %vm19181_vm4, %vm19181_vm4  ;;  %v11761_v5 = vld [vmem:[#allocation2 + $0x1c0] sm:$0xf]  ;;  %v11898_v12 = vor.u32 %v14868_v23, %v11897_v53  ;;  %v14834_v29 = vld [vmem:[#allocation2 + $0x1c4] sm:$0xf0]  ;;  %v4365_v23 = vrot.slane %v19142_v59, 1 }
 0x824   :  { %vm19203_vm12 = vmpackc.low %vm4341_vm15, %vm4341_vm15  ;;  %v11825_v44 = vld [vmem:[#allocation2 + $0x240] sm:$0xf]  ;;  %v14850_v39 = vld [vmem:[#allocation2 + $0x244] sm:$0xf0]  ;;  %v11762_v4 = vor.u32 %v14834_v29, %v11761_v5 }
 0x825   :  { %5262 = vmatpush.bf16.msrb.mxu3 %v11546_v47  ;;  %v11889_v11 = vld [vmem:[#allocation2 + $0x2c0] sm:$0xf]  ;;  %v14866_v31 = vld [vmem:[#allocation2 + $0x2c4] sm:$0xf0]  ;;  %v11826_v55 = vor.u32 %v14850_v39, %v11825_v44  ;;  %v11753_v60 = vld [vmem:[#allocation2 + $0x1b0] sm:$0xf] }
 0x826   :  { %5275 = vmatpush.bf16.msrb.mxu1 %v11610_v1  ;;  %v11890_v41 = vor.u32 %v14866_v31, %v11889_v11  ;;  %v14832_v19 = vld [vmem:[#allocation2 + $0x1b4] sm:$0xf0]  ;;  %v11817_v47 = vld [vmem:[#allocation2 + $0x230] sm:$0xf]  ;;  %v11745_v10 = vld [vmem:[#allocation2 + $0x1a0] sm:$0xf] }
 0x827   :  { %5288 = vmatpush.bf16.msra.mxu2 %v11674_v3  ;;  %v14848_v37 = vld [vmem:[#allocation2 + $0x234] sm:$0xf0]  ;;  %v11881_v0 = vld [vmem:[#allocation2 + $0x2b0] sm:$0xf]  ;;  %v11754_v1 = vor.u32 %v14832_v19, %v11753_v60  ;;  %v14830_v21 = vld [vmem:[#allocation2 + $0x1a4] sm:$0xf0]  ;;  %v19218_v60 = vpack.c.bf16 %v4365_v23, %v4365_v23 }
 0x828   :  { %v14864_v34 = vld [vmem:[#allocation2 + $0x2b4] sm:$0xf0]  ;;  %v11818_v3 = vor.u32 %v14848_v37, %v11817_v47  ;;  %v11809_v8 = vld [vmem:[#allocation2 + $0x220] sm:$0xf]  ;;  %v14846_v54 = vld [vmem:[#allocation2 + $0x224] sm:$0xf0]  ;;  %v11746_v24 = vor.u32 %v14830_v21, %v11745_v10 }
 0x829   :  { %5263 = vmatpush.bf16.msrb.mxu3 %v11538_v48  ;;  %v11882_v16 = vor.u32 %v14864_v34, %v11881_v0  ;;  %v11873_v49 = vld [vmem:[#allocation2 + $0x2a0] sm:$0xf]  ;;  %v14862_v26 = vld [vmem:[#allocation2 + $0x2a4] sm:$0xf0]  ;;  %v11810_v52 = vor.u32 %v14846_v54, %v11809_v8  ;;  %v11737_v40 = vld [vmem:[#allocation2 + $0x190] sm:$0xf] }
 0x82a   :  { %5276 = vmatpush.bf16.msrb.mxu1 %v11602_v30  ;;  %v11874_v48 = vor.u32 %v14862_v26, %v11873_v49  ;;  %v14828_v46 = vld [vmem:[#allocation2 + $0x194] sm:$0xf0]  ;;  %v11801_v50 = vld [vmem:[#allocation2 + $0x210] sm:$0xf]  ;;  %v11729_v15 = vld [vmem:[#allocation2 + $0x180] sm:$0xf] }
 0x82b   :  { %5289 = vmatpush.bf16.msra.mxu2 %v11666_v13  ;;  %v14844_v30 = vld [vmem:[#allocation2 + $0x214] sm:$0xf0]  ;;  %v11865_v13 = vld [vmem:[#allocation2 + $0x290] sm:$0xf]  ;;  %v14826_v56 = vld [vmem:[#allocation2 + $0x184] sm:$0xf0] }
 0x82c   :  { %12113 = vmatmul.msk.bf16.vlgmr.msrb.gmra.mxu3 %vm12111_vm13, %v19155_v38  ;;  %v11793_v51 = vld [vmem:[#allocation2 + $0x200] sm:$0xf]  ;;  %v14842_v25 = vld [vmem:[#allocation2 + $0x204] sm:$0xf0]  ;;  %v12041_v7 = vld [vmem:[#allocation2 + $0x3f0] sm:$0xf]  ;;  %v11730_v62 = vor.u32 %v14826_v56, %v11729_v15 }
 0x82d   :  { %5295 = vmatpush.bf16.msra.mxu3 %v11786_v17  ;;  %12116 = vmatmul.msk.bf16.vlgmr.msrb.gmra.mxu1 %vm19203_vm12, %v19175_v20  ;;  %v14860_v17 = vld [vmem:[#allocation2 + $0x294] sm:$0xf0]  ;;  %v11857_v45 = vld [vmem:[#allocation2 + $0x280] sm:$0xf]  ;;  %v14858_v2 = vld [vmem:[#allocation2 + $0x284] sm:$0xf0]  ;;  %v11794_v53 = vor.u32 %v14842_v25, %v11793_v51 }
 0x82e   :  { %5308 = vmatpush.bf16.msra.mxu1 %v11850_v61  ;;  %12119 = vmatmul.msk.bf16.vlgmr.msra.gmra.mxu2 %vm12117_vm10, %v19170_v22  ;;  %v11738_v61 = vor.u32 %v14828_v46, %v11737_v40  ;;  %v11866_v42 = vor.u32 %v14860_v17, %v11865_v13  ;;  %v14904_v18 = vld [vmem:[#allocation2 + $0x3f4] sm:$0xf0]  ;;  %v11969_v29 = vld [vmem:[#allocation2 + $0x360] sm:$0xf]  ;;  %v14886_v44 = vld [vmem:[#allocation2 + $0x364] sm:$0xf0] }
 0x82f   :  { %5321 = vmatpush.bf16.msrb.mxu2 %v11914_v9  ;;  %v11802_v9 = vor.u32 %v14844_v30, %v11801_v50  ;;  %v14920_v35 = vld [vmem:[#allocation2 + $0x474] sm:$0xf0]  ;;  %v12042_v5 = vor.u32 %v14904_v18, %v12041_v7  ;;  %v12033_v39 = vld [vmem:[#allocation2 + $0x3e0] sm:$0xf]  ;;  %v14902_v11 = vld [vmem:[#allocation2 + $0x3e4] sm:$0xf0] }
 0x830   :  { %v12097_v31 = vld [vmem:[#allocation2 + $0x460] sm:$0xf]  ;;  %v12034_v19 = vor.u32 %v14902_v11, %v12033_v39  ;;  %v11961_v37 = vld [vmem:[#allocation2 + $0x350] sm:$0xf]  ;;  %v14884_v0 = vld [vmem:[#allocation2 + $0x354] sm:$0xf0] }
 0x831   :  { %5296 = vmatpush.bf16.msra.mxu3 %v11778_v43  ;;  %v11977_v43 = vld [vmem:[#allocation2 + $0x370] sm:$0xf]  ;;  %v14916_v10 = vld [vmem:[#allocation2 + $0x454] sm:$0xf0]  ;;  %v11953_v54 = vld [vmem:[#allocation2 + $0x340] sm:$0xf] }
 0x832   :  { %5309 = vmatpush.bf16.msra.mxu1 %v11842_v33  ;;  %v14888_v33 = vld [vmem:[#allocation2 + $0x374] sm:$0xf0]  ;;  %v12025_v34 = vld [vmem:[#allocation2 + $0x3d0] sm:$0xf]  ;;  %v14882_v49 = vld [vmem:[#allocation2 + $0x344] sm:$0xf0] }
 0x833   :  { %5322 = vmatpush.bf16.msrb.mxu2 %v11906_v27  ;;  %v12105_v27 = vld [vmem:[#allocation2 + $0x470] sm:$0xf]  ;;  %v12017_v26 = vld [vmem:[#allocation2 + $0x3c0] sm:$0xf]  ;;  %v14914_v40 = vld [vmem:[#allocation2 + $0x444] sm:$0xf0] }
 0x834   :  { %v11945_v30 = vld [vmem:[#allocation2 + $0x330] sm:$0xf]  ;;  %v14880_v13 = vld [vmem:[#allocation2 + $0x334] sm:$0xf0]  ;;  %v11937_v25 = vld [vmem:[#allocation2 + $0x320] sm:$0xf] }
 0x835   :  { %5297 = vmatpush.bf16.msra.mxu3 %v11770_v28  ;;  %v11858_v28 = vor.u32 %v14858_v2, %v11857_v45  ;;  %v12009_v17 = vld [vmem:[#allocation2 + $0x3b0] sm:$0xf]  ;;  %v14912_v15 = vld [vmem:[#allocation2 + $0x434] sm:$0xf0]  ;;  %v11946_v56 = vor.u32 %v14880_v13, %v11945_v30  ;;  %v14878_v45 = vld [vmem:[#allocation2 + $0x324] sm:$0xf0] }
 0x836   :  { %5310 = vmatpush.bf16.msra.mxu1 %v11834_v36  ;;  %v11978_v36 = vor.u32 %v14888_v33, %v11977_v43  ;;  %v12001_v2 = vld [vmem:[#allocation2 + $0x3a0] sm:$0xf]  ;;  %v14894_v43 = vld [vmem:[#allocation2 + $0x3a4] sm:$0xf0]  ;;  %v11938_v18 = vor.u32 %v14878_v45, %v11937_v25  ;;  %v11993_v23 = vld [vmem:[#allocation2 + $0x390] sm:$0xf] }
 0x837   :  { %5323 = vmatpush.bf16.msrb.mxu2 %v11898_v12  ;;  %v12106_v12 = vor.u32 %v14920_v35, %v12105_v27  ;;  %v12065_v33 = vld [vmem:[#allocation2 + $0x420] sm:$0xf]  ;;  %v14910_v7 = vld [vmem:[#allocation2 + $0x424] sm:$0xf0]  ;;  %v12002_v27 = vor.u32 %v14894_v43, %v12001_v2  ;;  %vm19241_vm5 = vmand %vm4342_vm0, %vm19150_vm1  ;;  %vm5511_vm1 = vcmask 1041408  }
 0x838   :  { %v12066_v35 = vor.u32 %v14910_v7, %v12065_v33  ;;  %vm19251_vm6 = vmand %vm4342_vm0, %vm19157_vm8  ;;  %v14821_v30 = vld [vmem:[#allocation2 + $0x164] sm:$0xf]  ;;  %v11715_v13 = vld [vmem:[#allocation2 + $0x168] sm:$0xf0]  ;;  %vm5507_vm8 = vcmask 31744  }
 0x839   :  { %5298 = vmatpush.bf16.msra.mxu3 %v11762_v4  ;;  %v14918_v4 = vld [vmem:[#allocation2 + $0x464] sm:$0xf0]  ;;  %vm12126_vm3 = vmpackc.low %vm19241_vm5, %vm19241_vm5  ;;  %v11579_v63 = vld [vmem:[#allocation2 + $0x58] sm:$0xf0] }
 0x83a   :  { %5311 = vmatpush.bf16.msra.mxu1 %v11826_v55  ;;  %v19213_v55 = vpack.c.bf16 %v19142_v59, %v19142_v59  ;;  %v12098_v47 = vor.u32 %v14918_v4, %v12097_v31  ;;  %v11985_v31 = vld [vmem:[#allocation2 + $0x380] sm:$0xf]  ;;  %v14890_v4 = vld [vmem:[#allocation2 + $0x384] sm:$0xf0]  ;;  %vm12132_vm11 = vmpackc.low %vm19251_vm6, %vm19251_vm6 }
 0x83b   :  { %5324 = vmatpush.bf16.msrb.mxu2 %v11890_v41  ;;  %v11970_v41 = vor.u32 %v14886_v44, %v11969_v29  ;;  %v11921_v29 = vld [vmem:[#allocation2 + $0x300] sm:$0xf]  ;;  %v14874_v44 = vld [vmem:[#allocation2 + $0x304] sm:$0xf0]  ;;  %vm19268_vm15 = vmpackc.low %vm4342_vm0, %vm4342_vm0 }
 0x83c   :  { %v14803_v25 = vld [vmem:[#allocation2 + $0xd4] sm:$0xf]  ;;  %v11643_v45 = vld [vmem:[#allocation2 + $0xd8] sm:$0xf0]  ;;  %v14833_v14 = vld [vmem:[#allocation2 + $0x1c4] sm:$0xf] }
 0x83d   :  { %5299 = vmatpush.bf16.msra.mxu3 %v11754_v1  ;;  %v14900_v1 = vld [vmem:[#allocation2 + $0x3d4] sm:$0xf0]  ;;  %v14819_v2 = vld [vmem:[#allocation2 + $0x154] sm:$0xf]  ;;  %v11707_v43 = vld [vmem:[#allocation2 + $0x158] sm:$0xf0]  ;;  %v11646_v7 = vor.u32 %v14803_v25, %v11643_v45 }
 0x83e   :  { %5312 = vmatpush.bf16.msra.mxu1 %v11818_v3  ;;  %v12089_v3 = vld [vmem:[#allocation2 + $0x450] sm:$0xf]  ;;  %v12026_v21 = vor.u32 %v14900_v1, %v12025_v34  ;;  %v11659_v34 = vld [vmem:[#allocation2 + $0xf8] sm:$0xf0]  ;;  %v11922_v1 = vor.u32 %v14874_v44, %v11921_v29  ;;  %v14839_v25 = vld [vmem:[#allocation2 + $0x1f4] sm:$0xf] }
 0x83f   :  { %5325 = vmatpush.bf16.msrb.mxu2 %v11882_v16  ;;  %v11962_v16 = vor.u32 %v14884_v0, %v11961_v37  ;;  %v12090_v8 = vor.u32 %v14916_v10, %v12089_v3  ;;  %v11595_v37 = vld [vmem:[#allocation2 + $0x78] sm:$0xf0]  ;;  %v14807_v0 = vld [vmem:[#allocation2 + $0xf4] sm:$0xf]  ;;  %v11891_v6 = vld [vmem:[#allocation2 + $0x2c8] sm:$0xf0] }
 0x840   :  { %v14823_v3 = vld [vmem:[#allocation2 + $0x174] sm:$0xf]  ;;  %v11723_v10 = vld [vmem:[#allocation2 + $0x178] sm:$0xf0] }
 0x841   :  { %5300 = vmatpush.bf16.msra.mxu3 %v11746_v24  ;;  %v14898_v24 = vld [vmem:[#allocation2 + $0x3c4] sm:$0xf0]  ;;  %v11563_v44 = vld [vmem:[#allocation2 + $0x38] sm:$0xf0] }
 0x842   :  { %5313 = vmatpush.bf16.msra.mxu1 %v11810_v52  ;;  %v12081_v52 = vld [vmem:[#allocation2 + $0x440] sm:$0xf]  ;;  %v12018_v46 = vor.u32 %v14898_v24, %v12017_v26  ;;  %v11787_v45 = vld [vmem:[#allocation2 + $0x1f8] sm:$0xf0] }
 0x843   :  { %5326 = vmatpush.bf16.msrb.mxu2 %v11874_v48  ;;  %v11954_v48 = vor.u32 %v14882_v49, %v11953_v54  ;;  %v12082_v50 = vor.u32 %v14914_v40, %v12081_v52  ;;  %v11986_v54 = vor.u32 %v14890_v4, %v11985_v31  ;;  %v11662_v52 = vor.u32 %v14807_v0, %v11659_v34  ;;  %v14789_v40 = vld [vmem:[#allocation2 + $0x64] sm:$0xf]  ;;  %v14815_v31 = vld [vmem:[#allocation2 + $0x134] sm:$0xf]  ;;  %v11691_v4 = vld [vmem:[#allocation2 + $0x138] sm:$0xf0] }
 0x844   :  { %v11555_v0 = vld [vmem:[#allocation2 + $0x28] sm:$0xf0]  ;;  %v14797_v34 = vld [vmem:[#allocation2 + $0xa4] sm:$0xf] }
 0x845   :  { %5301 = vmatpush.bf16.msra.mxu3 %v11738_v61  ;;  %v14896_v61 = vld [vmem:[#allocation2 + $0x3b4] sm:$0xf0] }
 0x846   :  { %5314 = vmatpush.bf16.msra.mxu1 %v11802_v9  ;;  %v12073_v9 = vld [vmem:[#allocation2 + $0x430] sm:$0xf]  ;;  %v12010_v51 = vor.u32 %v14896_v61, %v12009_v17 }
 0x847   :  { %5327 = vmatpush.bf16.msrb.mxu2 %v11866_v42  ;;  %v12074_v42 = vor.u32 %v14912_v15, %v12073_v9 }
 0x849   :  { %5302 = vmatpush.bf16.msra.mxu3 %v11730_v62  ;;  %v11929_v62 = vld [vmem:[#allocation2 + $0x310] sm:$0xf] }
 0x84a   :  { %5315 = vmatpush.bf16.msra.mxu1 %v11794_v53  ;;  %v14876_v53 = vld [vmem:[#allocation2 + $0x314] sm:$0xf0] }
 0x84b   :  { %5328 = vmatpush.bf16.msrb.mxu2 %v11858_v28  ;;  %v14892_v28 = vld [vmem:[#allocation2 + $0x394] sm:$0xf0] }
 0x84c   :  { %12122 = vmatmul.msk.bf16.vlgmr.msra.gmra.mxu3 %vm12120_vm14, %v19170_v22  ;;  %v11994_v39 = vor.u32 %v14892_v28, %v11993_v23  ;;  %v14817_v23 = vld [vmem:[#allocation2 + $0x144] sm:$0xf]  ;;  %v11699_v28 = vld [vmem:[#allocation2 + $0x148] sm:$0xf0] }
 0x84d   :  { %5334 = vmatpush.bf16.msrb.mxu3 %v11978_v36  ;;  %5316 = vmatmul.bf16.vlgmr.msra.gmra.mxu1 %v19213_v55  ;;  %v12057_v36 = vld [vmem:[#allocation2 + $0x410] sm:$0xf]  ;;  %v11702_v29 = vor.u32 %v14817_v23, %v11699_v28  ;;  %v14837_v28 = vld [vmem:[#allocation2 + $0x1e4] sm:$0xf] }
 0x84e   :  { %5347 = vmatpush.bf16.msrb.mxu1 %v12042_v5  ;;  %12125 = vmatmul.msk.bf16.vlgmr.msrb.gmra.mxu2 %vm12123_vm2, %v19218_v60  ;;  %v14908_v5 = vld [vmem:[#allocation2 + $0x414] sm:$0xf0] }
 0x84f   :  { %5360 = vmatpush.bf16.msra.mxu2 %v12106_v12  ;;  %v11930_v12 = vor.u32 %v14876_v53, %v11929_v62  ;;  %v12058_v11 = vor.u32 %v14908_v5, %v12057_v36  ;;  %v14801_v62 = vld [vmem:[#allocation2 + $0xc4] sm:$0xf]  ;;  %v11635_v53 = vld [vmem:[#allocation2 + $0xc8] sm:$0xf0] }
 0x850   :  { %v11638_v5 = vor.u32 %v14801_v62, %v11635_v53  ;;  %v11790_v62 = vor.u32 %v14839_v25, %v11787_v45 }
 0x851   :  { %5335 = vmatpush.bf16.msrb.mxu3 %v11970_v41  ;;  %v12049_v41 = vld [vmem:[#allocation2 + $0x400] sm:$0xf] }
 0x852   :  { %5348 = vmatpush.bf16.msrb.mxu1 %v12034_v19  ;;  %v14906_v19 = vld [vmem:[#allocation2 + $0x404] sm:$0xf0] }
 0x853   :  { %5361 = vmatpush.bf16.msra.mxu2 %v12098_v47  ;;  %v14791_v47 = vld [vmem:[#allocation2 + $0x74] sm:$0xf]  ;;  %v12050_v49 = vor.u32 %v14906_v19, %v12049_v41 }
 0x854   :  { %v11598_v24 = vor.u32 %v14791_v47, %v11595_v37  ;;  %v14781_v47 = vld [vmem:[#allocation2 + $0x24] sm:$0xf]  ;;  %v11694_v37 = vor.u32 %v14815_v31, %v11691_v4  ;;  %v14835_v4 = vld [vmem:[#allocation2 + $0x1d4] sm:$0xf] }
 0x855   :  { %5336 = vmatpush.bf16.msrb.mxu3 %v11962_v16 }
 0x856   :  { %5349 = vmatpush.bf16.msrb.mxu1 %v12026_v21  ;;  %v4380_v21 = vrot.slane %v19142_v59, 3 }
 0x857   :  { %5362 = vmatpush.bf16.msra.mxu2 %v12090_v8  ;;  %v4375_v8 = vrot.slane %v19142_v59, 2  ;;  %v14805_v59 = vld [vmem:[#allocation2 + $0xe4] sm:$0xf] }
 0x858   :  { %v19261_v17 = vpack.c.bf16 %v4380_v21, %v4380_v21  ;;  %v11558_v21 = vor.u32 %v14781_v47, %v11555_v0  ;;  %v11835_v47 = vld [vmem:[#allocation2 + $0x258] sm:$0xf0] }
 0x859   :  { %5337 = vmatpush.bf16.msrb.mxu3 %v11954_v48  ;;  %v11587_v48 = vld [vmem:[#allocation2 + $0x68] sm:$0xf0]  ;;  %v19263_v61 = vpack.c.bf16 %v4375_v8, %v4375_v8  ;;  %v11899_v0 = vld [vmem:[#allocation2 + $0x2d8] sm:$0xf0] }
 0x85a   :  { %5350 = vmatpush.bf16.msrb.mxu1 %v12018_v46  ;;  %v11726_v46 = vor.u32 %v14823_v3, %v11723_v10  ;;  %v11590_v15 = vor.u32 %v14789_v40, %v11587_v48  ;;  %v14813_v3 = vld [vmem:[#allocation2 + $0x124] sm:$0xf]  ;;  %v11683_v10 = vld [vmem:[#allocation2 + $0x128] sm:$0xf0]  ;;  %v11611_v40 = vld [vmem:[#allocation2 + $0x98] sm:$0xf0] }
 0x85b   :  { %5363 = vmatpush.bf16.msra.mxu2 %v12082_v50  ;;  %v11651_v50 = vld [vmem:[#allocation2 + $0xe8] sm:$0xf0]  ;;  %v14811_v48 = vld [vmem:[#allocation2 + $0x114] sm:$0xf] }
 0x85d   :  { %5338 = vmatpush.bf16.msrb.mxu3 %v11946_v56  ;;  %v11654_v56 = vor.u32 %v14805_v59, %v11651_v50 }
 0x85e   :  { %5351 = vmatpush.bf16.msrb.mxu1 %v12010_v51  ;;  %v14787_v51 = vld [vmem:[#allocation2 + $0x54] sm:$0xf] }
 0x85f   :  { %5364 = vmatpush.bf16.msra.mxu2 %v12074_v42  ;;  %v11718_v42 = vor.u32 %v14821_v30, %v11715_v13  ;;  %v11582_v33 = vor.u32 %v14787_v51, %v11579_v63  ;;  %v14777_v30 = vld [vmem:[#allocation2 + $0x4] sm:$0xf]  ;;  %v11539_v13 = vld [vmem:[#allocation2 + $0x8] sm:$0xf0] }
 0x860   :  { %v11603_v51 = vld [vmem:[#allocation2 + $0x88] sm:$0xf0] }
 0x861   :  { %5339 = vmatpush.bf16.msrb.mxu3 %v11938_v18  ;;  %v14785_v18 = vld [vmem:[#allocation2 + $0x44] sm:$0xf]  ;;  %v11667_v63 = vld [vmem:[#allocation2 + $0x108] sm:$0xf0] }
 0x862   :  { %5352 = vmatpush.bf16.msrb.mxu1 %v12002_v27  ;;  %v11710_v27 = vor.u32 %v14819_v2, %v11707_v43  ;;  %v14855_v2 = vld [vmem:[#allocation2 + $0x274] sm:$0xf]  ;;  %v11851_v43 = vld [vmem:[#allocation2 + $0x278] sm:$0xf0] }
 0x863   :  { %5365 = vmatpush.bf16.msra.mxu2 %v12066_v35  ;;  %v11571_v35 = vld [vmem:[#allocation2 + $0x48] sm:$0xf0]  ;;  %v11854_v53 = vor.u32 %v14855_v2, %v11851_v43  ;;  %v14827_v43 = vld [vmem:[#allocation2 + $0x194] sm:$0xf] }
 0x864   :  { %v11574_v36 = vor.u32 %v14785_v18, %v11571_v35  ;;  %v11542_v18 = vor.u32 %v14777_v30, %v11539_v13  ;;  %v14829_v13 = vld [vmem:[#allocation2 + $0x1a4] sm:$0xf] }
 0x865   :  { %5340 = vmatpush.bf16.msrb.mxu3 %v11930_v12  ;;  %v14783_v12 = vld [vmem:[#allocation2 + $0x34] sm:$0xf] }
 0x866   :  { %5353 = vmatpush.bf16.msrb.mxu1 %v11994_v39  ;;  %v14799_v39 = vld [vmem:[#allocation2 + $0xb4] sm:$0xf]  ;;  %v11566_v41 = vor.u32 %v14783_v12, %v11563_v44  ;;  %v11843_v12 = vld [vmem:[#allocation2 + $0x268] sm:$0xf0] }
 0x867   :  { %5366 = vmatpush.bf16.msra.mxu2 %v12058_v11  ;;  %v11627_v11 = vld [vmem:[#allocation2 + $0xb8] sm:$0xf0]  ;;  %v11907_v44 = vld [vmem:[#allocation2 + $0x2e8] sm:$0xf0] }
 0x868   :  { %v11630_v19 = vor.u32 %v14799_v39, %v11627_v11 }
 0x869   :  { %5341 = vmatpush.bf16.msrb.mxu3 %v11922_v1  ;;  %v11619_v1 = vld [vmem:[#allocation2 + $0xa8] sm:$0xf0] }
 0x86a   :  { %5354 = vmatpush.bf16.msrb.mxu1 %v11986_v54  ;;  %v11622_v8 = vor.u32 %v14797_v34, %v11619_v1  ;;  %v14779_v54 = vld [vmem:[#allocation2 + $0x14] sm:$0xf] }
 0x86b   :  { %5367 = vmatpush.bf16.msra.mxu2 %v12050_v49  ;;  %v11686_v49 = vor.u32 %v14813_v3, %v11683_v10  ;;  %v11763_v10 = vld [vmem:[#allocation2 + $0x1c8] sm:$0xf0] }
 0x86c   :  { %12128 = vmatmul.msk.bf16.vlgmr.msrb.gmra.mxu3 %vm12126_vm3, %v19218_v60 }
 0x86d   :  { %5373 = vmatpush.bf16.msra.mxu3 %v11598_v24  ;;  %12131 = vmatmul.msk.bf16.vlgmr.msrb.gmra.mxu1 %vm19268_vm15, %v19263_v61  ;;  %v11547_v24 = vld [vmem:[#allocation2 + $0x18] sm:$0xf0] }
 0x86e   :  { %5386 = vmatpush.bf16.msra.mxu1 %v11662_v52  ;;  %12134 = vmatmul.msk.bf16.vlgmr.msra.gmra.mxu2 %vm12132_vm11, %v19261_v17  ;;  %v14795_v52 = vld [vmem:[#allocation2 + $0x94] sm:$0xf]  ;;  %v11550_v59 = vor.u32 %v14779_v54, %v11547_v24  ;;  %v11755_v24 = vld [vmem:[#allocation2 + $0x1b8] sm:$0xf0] }
 0x86f   :  { %5399 = vmatpush.bf16.msrb.mxu2 %v11726_v46  ;;  %v11675_v46 = vld [vmem:[#allocation2 + $0x118] sm:$0xf0]  ;;  %v11614_v50 = vor.u32 %v14795_v52, %v11611_v40  ;;  %v14847_v52 = vld [vmem:[#allocation2 + $0x234] sm:$0xf] }
 0x870   :  { %v11819_v40 = vld [vmem:[#allocation2 + $0x238] sm:$0xf0] }
 0x871   :  { %5374 = vmatpush.bf16.msra.mxu3 %v11590_v15  ;;  %v14793_v15 = vld [vmem:[#allocation2 + $0x84] sm:$0xf] }
 0x872   :  { %5387 = vmatpush.bf16.msra.mxu1 %v11654_v56  ;;  %v11678_v56 = vor.u32 %v14811_v48, %v11675_v46  ;;  %v14863_v48 = vld [vmem:[#allocation2 + $0x2b4] sm:$0xf]  ;;  %v11883_v46 = vld [vmem:[#allocation2 + $0x2b8] sm:$0xf0] }
 0x873   :  { %5400 = vmatpush.bf16.msrb.mxu2 %v11718_v42  ;;  %v14809_v42 = vld [vmem:[#allocation2 + $0x104] sm:$0xf]  ;;  %v11886_v30 = vor.u32 %v14863_v48, %v11883_v46  ;;  %v14915_v48 = vld [vmem:[#allocation2 + $0x454] sm:$0xf]  ;;  %v12091_v46 = vld [vmem:[#allocation2 + $0x458] sm:$0xf0] }
 0x874   :  { %v11670_v35 = vor.u32 %v14809_v42, %v11667_v63  ;;  %v14861_v42 = vld [vmem:[#allocation2 + $0x2a4] sm:$0xf]  ;;  %v11875_v63 = vld [vmem:[#allocation2 + $0x2a8] sm:$0xf0] }
 0x875   :  { %5375 = vmatpush.bf16.msra.mxu3 %v11582_v33  ;;  %v14871_v33 = vld [vmem:[#allocation2 + $0x2f4] sm:$0xf]  ;;  %v11878_v2 = vor.u32 %v14861_v42, %v11875_v63 }
 0x876   :  { %5388 = vmatpush.bf16.msra.mxu1 %v11646_v7  ;;  %v11915_v7 = vld [vmem:[#allocation2 + $0x2f8] sm:$0xf0]  ;;  %v14879_v63 = vld [vmem:[#allocation2 + $0x334] sm:$0xf] }
 0x877   :  { %5401 = vmatpush.bf16.msrb.mxu2 %v11710_v27  ;;  %v11606_v27 = vor.u32 %v14793_v15, %v11603_v51  ;;  %v11918_v23 = vor.u32 %v14871_v33, %v11915_v7  ;;  %v11747_v15 = vld [vmem:[#allocation2 + $0x1a8] sm:$0xf0]  ;;  %v11739_v33 = vld [vmem:[#allocation2 + $0x198] sm:$0xf0]  ;;  %v14843_v7 = vld [vmem:[#allocation2 + $0x214] sm:$0xf] }
 0x878   :  { %v11811_v51 = vld [vmem:[#allocation2 + $0x228] sm:$0xf0]  ;;  %v11750_v25 = vor.u32 %v14829_v13, %v11747_v15  ;;  %v14897_v13 = vld [vmem:[#allocation2 + $0x3c4] sm:$0xf] }
 0x879   :  { %5376 = vmatpush.bf16.msra.mxu3 %v11574_v36  ;;  %v11779_v36 = vld [vmem:[#allocation2 + $0x1e8] sm:$0xf0] }
 0x87a   :  { %5389 = vmatpush.bf16.msra.mxu1 %v11638_v5  ;;  %v14853_v5 = vld [vmem:[#allocation2 + $0x264] sm:$0xf]  ;;  %v11782_v39 = vor.u32 %v14837_v28, %v11779_v36  ;;  %v11731_v36 = vld [vmem:[#allocation2 + $0x188] sm:$0xf0] }
 0x87b   :  { %5402 = vmatpush.bf16.msrb.mxu2 %v11702_v29  ;;  %v14869_v29 = vld [vmem:[#allocation2 + $0x2e4] sm:$0xf]  ;;  %v11846_v11 = vor.u32 %v14853_v5, %v11843_v12  ;;  %v11795_v12 = vld [vmem:[#allocation2 + $0x208] sm:$0xf0] }
 0x87c   :  { %v11910_v31 = vor.u32 %v14869_v29, %v11907_v44  ;;  %v14841_v5 = vld [vmem:[#allocation2 + $0x204] sm:$0xf]  ;;  %v11859_v44 = vld [vmem:[#allocation2 + $0x288] sm:$0xf0] }
 0x87d   :  { %5377 = vmatpush.bf16.msra.mxu3 %v11566_v41  ;;  %v11771_v41 = vld [vmem:[#allocation2 + $0x1d8] sm:$0xf0]  ;;  %v14857_v29 = vld [vmem:[#allocation2 + $0x284] sm:$0xf]  ;;  %v12019_v15 = vld [vmem:[#allocation2 + $0x3c8] sm:$0xf0] }
 0x87e   :  { %5390 = vmatpush.bf16.msra.mxu1 %v11630_v19  ;;  %v14851_v19 = vld [vmem:[#allocation2 + $0x254] sm:$0xf]  ;;  %v11774_v34 = vor.u32 %v14835_v4, %v11771_v41  ;;  %v12043_v4 = vld [vmem:[#allocation2 + $0x3f8] sm:$0xf0]  ;;  %v12022_v32 = vor.u32 %v14897_v13, %v12019_v15 }
 0x87f   :  { %5403 = vmatpush.bf16.msrb.mxu2 %v11694_v37  ;;  %v14867_v37 = vld [vmem:[#allocation2 + $0x2d4] sm:$0xf]  ;;  %v11838_v1 = vor.u32 %v14851_v19, %v11835_v47  ;;  %v12107_v47 = vld [vmem:[#allocation2 + $0x478] sm:$0xf0] }
 0x880   :  { %v11902_v3 = vor.u32 %v14867_v37, %v11899_v0  ;;  %v14919_v19 = vld [vmem:[#allocation2 + $0x474] sm:$0xf]  ;;  %v11798_v37 = vor.u32 %v14841_v5, %v11795_v12  ;;  %v11862_v0 = vor.u32 %v14857_v29, %v11859_v44  ;;  %v12003_v5 = vld [vmem:[#allocation2 + $0x3a8] sm:$0xf0]  ;;  %v14909_v12 = vld [vmem:[#allocation2 + $0x424] sm:$0xf] }
 0x881   :  { %5378 = vmatpush.bf16.msra.mxu3 %v11558_v21  ;;  %v11827_v21 = vld [vmem:[#allocation2 + $0x248] sm:$0xf0] }
 0x882   :  { %5391 = vmatpush.bf16.msra.mxu1 %v11622_v8  ;;  %v14865_v8 = vld [vmem:[#allocation2 + $0x2c4] sm:$0xf]  ;;  %v12067_v29 = vld [vmem:[#allocation2 + $0x428] sm:$0xf0] }
 0x883   :  { %5404 = vmatpush.bf16.msrb.mxu2 %v11686_v49  ;;  %v11894_v58 = vor.u32 %v14865_v8, %v11891_v6  ;;  %v14831_v49 = vld [vmem:[#allocation2 + $0x1b4] sm:$0xf]  ;;  %v14917_v8 = vld [vmem:[#allocation2 + $0x464] sm:$0xf]  ;;  %v12099_v6 = vld [vmem:[#allocation2 + $0x468] sm:$0xf0] }
 0x885   :  { %5379 = vmatpush.bf16.msra.mxu3 %v11550_v59  ;;  %v11758_v59 = vor.u32 %v14831_v49, %v11755_v24  ;;  %v12102_v49 = vor.u32 %v14917_v8, %v12099_v6  ;;  %v11963_v24 = vld [vmem:[#allocation2 + $0x358] sm:$0xf0]  ;;  %v14873_v8 = vld [vmem:[#allocation2 + $0x304] sm:$0xf] }
 0x886   :  { %5392 = vmatpush.bf16.msra.mxu1 %v11614_v50  ;;  %v11822_v50 = vor.u32 %v14847_v52, %v11819_v40  ;;  %v14899_v52 = vld [vmem:[#allocation2 + $0x3d4] sm:$0xf]  ;;  %v12027_v40 = vld [vmem:[#allocation2 + $0x3d8] sm:$0xf0] }
 0x887   :  { %5405 = vmatpush.bf16.msrb.mxu2 %v11678_v56  ;;  %v14845_v56 = vld [vmem:[#allocation2 + $0x224] sm:$0xf]  ;;  %v12030_v57 = vor.u32 %v14899_v52, %v12027_v40 }
 0x888   :  { %v11814_v45 = vor.u32 %v14845_v56, %v11811_v51  ;;  %v14913_v56 = vld [vmem:[#allocation2 + $0x444] sm:$0xf]  ;;  %v12083_v51 = vld [vmem:[#allocation2 + $0x448] sm:$0xf0] }
 0x889   :  { %5380 = vmatpush.bf16.msra.mxu3 %v11542_v18  ;;  %v11803_v18 = vld [vmem:[#allocation2 + $0x218] sm:$0xf0] }
 0x88a   :  { %5393 = vmatpush.bf16.msra.mxu1 %v11606_v27  ;;  %v14859_v27 = vld [vmem:[#allocation2 + $0x294] sm:$0xf] }
 0x88b   :  { %5406 = vmatpush.bf16.msrb.mxu2 %v11670_v35  ;;  %v11867_v35 = vld [vmem:[#allocation2 + $0x298] sm:$0xf0] }
 0x88c   :  { %12137 = vmatmul.msk.bf16.vlgmr.msra.gmra.mxu3 %vm12111_vm13, %v19155_v38  ;;  %v14849_v38 = vld [vmem:[#allocation2 + $0x244] sm:$0xf]  ;;  %v11870_v28 = vor.u32 %v14859_v27, %v11867_v35 }
 0x88d   :  { %5412 = vmatpush.bf16.msrb.mxu3 %v11790_v62  ;;  %12140 = vmatmul.msk.bf16.vlgmr.msra.gmra.mxu1 %vm19203_vm12, %v19175_v20  ;;  %v11766_v20 = vor.u32 %v14833_v14, %v11763_v10  ;;  %v11830_v54 = vor.u32 %v14849_v38, %v11827_v21  ;;  %v11742_v62 = vor.u32 %v14827_v43, %v11739_v33  ;;  %v11971_v10 = vld [vmem:[#allocation2 + $0x368] sm:$0xf0]  ;;  %v14901_v38 = vld [vmem:[#allocation2 + $0x3e4] sm:$0xf]  ;;  %v12011_v43 = vld [vmem:[#allocation2 + $0x3b8] sm:$0xf0] }
 0x88e   :  { %5425 = vmatpush.bf16.msrb.mxu1 %v11854_v53  ;;  %12143 = vmatmul.msk.bf16.vlgmr.msrb.gmra.mxu2 %vm12117_vm10, %v19170_v22  ;;  %v14825_v53 = vld [vmem:[#allocation2 + $0x184] sm:$0xf]  ;;  %v12110_v14 = vor.u32 %v14919_v19, %v12107_v47  ;;  %v12035_v21 = vld [vmem:[#allocation2 + $0x3e8] sm:$0xf0]  ;;  %v14911_v33 = vld [vmem:[#allocation2 + $0x434] sm:$0xf]  ;;  %v12070_v19 = vor.u32 %v14909_v12, %v12067_v29 }
 0x88f   :  { %5438 = vmatpush.bf16.msra.mxu2 %v11918_v23  ;;  %v11806_v23 = vor.u32 %v14843_v7, %v11803_v18  ;;  %v11734_v41 = vor.u32 %v14825_v53, %v11731_v36  ;;  %v12075_v7 = vld [vmem:[#allocation2 + $0x438] sm:$0xf0]  ;;  %v14877_v53 = vld [vmem:[#allocation2 + $0x324] sm:$0xf] }
 0x890   :  { %v14893_v36 = vld [vmem:[#allocation2 + $0x3a4] sm:$0xf]  ;;  %v11931_v47 = vld [vmem:[#allocation2 + $0x318] sm:$0xf0] }
 0x891   :  { %5413 = vmatpush.bf16.msrb.mxu3 %v11782_v39  ;;  %v14887_v39 = vld [vmem:[#allocation2 + $0x374] sm:$0xf] }
 0x892   :  { %5426 = vmatpush.bf16.msrb.mxu1 %v11846_v11  ;;  %v11979_v11 = vld [vmem:[#allocation2 + $0x378] sm:$0xf0] }
 0x893   :  { %5439 = vmatpush.bf16.msra.mxu2 %v11910_v31  ;;  %v14903_v31 = vld [vmem:[#allocation2 + $0x3f4] sm:$0xf] }
 0x895   :  { %5414 = vmatpush.bf16.msrb.mxu3 %v11774_v34  ;;  %v11982_v34 = vor.u32 %v14887_v39, %v11979_v11 }
 0x896   :  { %5427 = vmatpush.bf16.msrb.mxu1 %v11838_v1  ;;  %v12046_v1 = vor.u32 %v14903_v31, %v12043_v4  ;;  %v12006_v4 = vor.u32 %v14893_v36, %v12003_v5 }
 0x897   :  { %5440 = vmatpush.bf16.msra.mxu2 %v11902_v3  ;;  %v14885_v3 = vld [vmem:[#allocation2 + $0x364] sm:$0xf] }
 0x899   :  { %5415 = vmatpush.bf16.msrb.mxu3 %v11766_v20  ;;  %v11974_v20 = vor.u32 %v14885_v3, %v11971_v10  ;;  %v12059_v3 = vld [vmem:[#allocation2 + $0x418] sm:$0xf0] }
 0x89a   :  { %5428 = vmatpush.bf16.msrb.mxu1 %v11830_v54  ;;  %v12038_v54 = vor.u32 %v14901_v38, %v12035_v21 }
 0x89b   :  { %5441 = vmatpush.bf16.msra.mxu2 %v11894_v58  ;;  %v14883_v58 = vld [vmem:[#allocation2 + $0x354] sm:$0xf] }
 0x89d   :  { %5416 = vmatpush.bf16.msrb.mxu3 %v11758_v59  ;;  %v11966_v59 = vor.u32 %v14883_v58, %v11963_v24  ;;  %v11987_v58 = vld [vmem:[#allocation2 + $0x388] sm:$0xf0] }
 0x89e   :  { %5429 = vmatpush.bf16.msrb.mxu1 %v11822_v50  ;;  %v14881_v50 = vld [vmem:[#allocation2 + $0x344] sm:$0xf]  ;;  %v12051_v24 = vld [vmem:[#allocation2 + $0x408] sm:$0xf0] }
 0x89f   :  { %5442 = vmatpush.bf16.msra.mxu2 %v11886_v30  ;;  %v11955_v30 = vld [vmem:[#allocation2 + $0x348] sm:$0xf0] }
 0x8a0   :  { %v11958_v42 = vor.u32 %v14881_v50, %v11955_v30 }
 0x8a1   :  { %5417 = vmatpush.bf16.msrb.mxu3 %v11750_v25  ;;  %v12086_v25 = vor.u32 %v14913_v56, %v12083_v51 }
 0x8a2   :  { %5430 = vmatpush.bf16.msrb.mxu1 %v11814_v45  ;;  %v11947_v45 = vld [vmem:[#allocation2 + $0x338] sm:$0xf0] }
 0x8a3   :  { %5443 = vmatpush.bf16.msra.mxu2 %v11878_v2  ;;  %v14895_v2 = vld [vmem:[#allocation2 + $0x3b4] sm:$0xf]  ;;  %v11950_v35 = vor.u32 %v14879_v63, %v11947_v45 }
 0x8a5   :  { %5418 = vmatpush.bf16.msrb.mxu3 %v11742_v62  ;;  %v12014_v62 = vor.u32 %v14895_v2, %v12011_v43 }
 0x8a6   :  { %5431 = vmatpush.bf16.msrb.mxu1 %v11806_v23  ;;  %v12078_v23 = vor.u32 %v14911_v33, %v12075_v7 }
 0x8a7   :  { %5444 = vmatpush.bf16.msra.mxu2 %v11870_v28  ;;  %v11939_v28 = vld [vmem:[#allocation2 + $0x328] sm:$0xf0] }
 0x8a8   :  { %v11942_v31 = vor.u32 %v14877_v53, %v11939_v28 }
 0x8a9   :  { %5419 = vmatpush.bf16.msrb.mxu3 %v11734_v41  ;;  %v14875_v41 = vld [vmem:[#allocation2 + $0x314] sm:$0xf] }
 0x8aa   :  { %5432 = vmatpush.bf16.msrb.mxu1 %v11798_v37  ;;  %v5278_v18 = vpop.f32.mrf.mxu1  ;;  %v14891_v37 = vld [vmem:[#allocation2 + $0x394] sm:$0xf]  ;;  %v11934_v38 = vor.u32 %v14875_v41, %v11931_v47 }
 0x8ab   :  { %5445 = vmatpush.bf16.msra.mxu2 %v11862_v0  ;;  %v11995_v0 = vld [vmem:[#allocation2 + $0x398] sm:$0xf0] }
 0x8ac   :  { %12146 = vmatmul.msk.bf16.vlgmr.msrb.gmra.mxu3 %vm12120_vm14, %v19170_v22  ;;  %v12094_v22 = vor.u32 %v14915_v48, %v12091_v46  ;;  %v11998_v21 = vor.u32 %v14891_v37, %v11995_v0 }
 0x8ad   :  { %5451 = vmatpush.bf16.msra.mxu3 %v11982_v34  ;;  %5433 = vmatmul.bf16.vlgmr.msrb.gmra.mxu1 %v19213_v55  ;;  %v19318_v55 = vld [vmem:[%s20406_s10] sm:$0x3] }
 0x8ae   :  { %5464 = vmatpush.bf16.msra.mxu1 %v12046_v1  ;;  %12149 = vmatmul.msk.bf16.vlgmr.msra.gmra.mxu2 %vm12123_vm2, %v19218_v60  ;;  %v4532_v27 = vperm.slane %v19318_v55, 0  ;;  %v14907_v1 = vld [vmem:[#allocation2 + $0x414] sm:$0xf] }
 0x8af   :  { %5477 = vmatpush.bf16.msrb.mxu2 %v12110_v14  ;;  %v5265_v44 = vpop.f32.mrf.mxu3  ;;  %v12062_v6 = vor.u32 %v14907_v1, %v12059_v3 }
 0x8b0   :  { %v5266_v39 = vadd.f32 %v5265_v44, %v4532_v27 }
 0x8b1   :  { %5452 = vmatpush.bf16.msra.mxu3 %v11974_v20  ;;  %v5291_v11 = vpop.f32.mrf.mxu2  ;;  %v11923_v20 = vld [vmem:[#allocation2 + $0x308] sm:$0xf0] }
 0x8b2   :  { %5465 = vmatpush.bf16.msra.mxu1 %v12038_v54  ;;  %v5279_v34 = vadd.f32 %v5278_v18, %v5266_v39  ;;  %v5280_v14 = vpop.f32.mrf.mxu1  ;;  %v14889_v54 = vld [vmem:[#allocation2 + $0x384] sm:$0xf]  ;;  %v11926_v48 = vor.u32 %v14873_v8, %v11923_v20 }
 0x8b3   :  { %5478 = vmatpush.bf16.msrb.mxu2 %v12102_v49  ;;  %v14905_v49 = vld [vmem:[#allocation2 + $0x404] sm:$0xf]  ;;  %v11990_v46 = vor.u32 %v14889_v54, %v11987_v58 }
 0x8b4   :  { %v5292_v10 = vadd.f32 %v5291_v11, %v5279_v34 }
 0x8b5   :  { %5453 = vmatpush.bf16.msra.mxu3 %v11966_v59  ;;  %v12054_v59 = vor.u32 %v14905_v49, %v12051_v24 }
 0x8b6   :  { %5466 = vmatpush.bf16.msra.mxu1 %v12030_v57 }
 0x8b7   :  { %5479 = vmatpush.bf16.msrb.mxu2 %v12094_v22  ;;  %v5267_v52 = vpop.f32.mrf.mxu3 }
 0x8b9   :  { %5454 = vmatpush.bf16.msra.mxu3 %v11958_v42  ;;  %v5293_v40 = vpop.f32.mrf.mxu2 }
 0x8ba   :  { %5467 = vmatpush.bf16.msra.mxu1 %v12022_v32 }
 0x8bb   :  { %5480 = vmatpush.bf16.msrb.mxu2 %v12086_v25 }
 0x8bd   :  { %5455 = vmatpush.bf16.msra.mxu3 %v11950_v35 }
 0x8be   :  { %5468 = vmatpush.bf16.msra.mxu1 %v12014_v62 }
 0x8bf   :  { %5481 = vmatpush.bf16.msrb.mxu2 %v12078_v23  ;;  %v4533_v23 = vperm.slane %v19318_v55, 1 }
 0x8c1   :  { %5456 = vmatpush.bf16.msra.mxu3 %v11942_v31 }
 0x8c2   :  { %5469 = vmatpush.bf16.msra.mxu1 %v12006_v4 }
 0x8c3   :  { %5482 = vmatpush.bf16.msrb.mxu2 %v12070_v19 }
 0x8c5   :  { %5457 = vmatpush.bf16.msra.mxu3 %v11934_v38 }
 0x8c6   :  { %5470 = vmatpush.bf16.msra.mxu1 %v11998_v21 }
 0x8c7   :  { %5483 = vmatpush.bf16.msrb.mxu2 %v12062_v6 }
 0x8c9   :  { %5458 = vmatpush.bf16.msra.mxu3 %v11926_v48 }
 0x8ca   :  { %5471 = vmatpush.bf16.msra.mxu1 %v11990_v46  ;;  %v5317_v57 = vpop.f32.mrf.mxu1 }
 0x8cb   :  { %5484 = vmatpush.bf16.msrb.mxu2 %v12054_v59 }
 0x8cc   :  { %12152 = vmatmul.msk.bf16.vlgmr.msra.gmra.mxu3 %vm12126_vm3, %v19218_v60 }
 0x8cd   :  { %12155 = vmatmul.msk.bf16.vlgmr.msra.gmra.mxu1 %vm19268_vm15, %v19263_v61 }
 0x8ce   :  { %12158 = vmatmul.msk.bf16.vlgmr.msrb.gmra.mxu2 %vm12132_vm11, %v19261_v17 }
 0x8cf   :  { %v5304_v50 = vpop.f32.mrf.mxu3 }
 0x8d0   :  { %v5305_v22 = vadd.f32 %v5304_v50, %v5292_v10  ;;  %v5501_v50 = vld [vmem:[%s20407_s11] sm:$0x1] }
 0x8d1   :  { %v5330_v30 = vpop.f32.mrf.mxu2 }
 0x8d2   :  { %v5319_v13 = vpop.f32.mrf.mxu1  ;;  %v5318_v15 = vadd.f32 %v5317_v57, %v5305_v22 }
 0x8d4   :  { %v5331_v16 = vadd.f32 %v5330_v30, %v5318_v15 }
 0x8d7   :  { %v5306_v56 = vpop.f32.mrf.mxu3 }
 0x8d9   :  { %v5332_v60 = vpop.f32.mrf.mxu2 }
 0x8ea   :  { %v5356_v51 = vpop.f32.mrf.mxu1 }
 0x8ef   :  { %v5343_v42 = vpop.f32.mrf.mxu3 }
 0x8f0   :  { %v5344_v9 = vadd.f32 %v5343_v42, %v5331_v16 }
 0x8f1   :  { %v5369_v61 = vpop.f32.mrf.mxu2 }
 0x8f2   :  { %v5357_v32 = vadd.f32 %v5356_v51, %v5344_v9  ;;  %v5358_v63 = vpop.f32.mrf.mxu1 }
 0x8f4   :  { %v5370_v25 = vadd.f32 %v5369_v61, %v5357_v32 }
 0x8f6   :  { %v5490_v31 = vmax.f32 %v5370_v25, 0.0 }
 0x8f7   :  { %v5345_v45 = vpop.f32.mrf.mxu3 }
 0x8f8   :  { %v5492_v0 = vrot.slane %v5490_v31, 1 }
 0x8f9   :  { %v5371_v26 = vpop.f32.mrf.mxu2 }
 0x8fa   :  { %v5494_v3 = vmax.f32 %v5490_v31, %v5492_v0 }
 0x8fc   :  { %v5496_v21 = vrot.slane %v5494_v3, 2 }
 0x8fe   :  { %v5498_v20 = vmax.f32 %v5494_v3, %v5496_v21 }
 0x90a   :  { %v5395_v2 = vpop.f32.mrf.mxu1 }
 0x90f   :  { %v5382_v17 = vpop.f32.mrf.mxu3 }
 0x910   :  { %v5383_v36 = vadd.f32 %v5382_v17, %v4533_v23 }
 0x911   :  { %v5408_v43 = vpop.f32.mrf.mxu2 }
 0x912   :  { %v5397_v33 = vpop.f32.mrf.mxu1  ;;  %v5396_v12 = vadd.f32 %v5395_v2, %v5383_v36 }
 0x914   :  { %v5409_v29 = vadd.f32 %v5408_v43, %v5396_v12 }
 0x917   :  { %v5384_v7 = vpop.f32.mrf.mxu3 }
 0x919   :  { %v5410_v18 = vpop.f32.mrf.mxu2 }
 0x92a   :  { %v5434_v27 = vpop.f32.mrf.mxu1 }
 0x92f   :  { %v5421_v35 = vpop.f32.mrf.mxu3 }
 0x930   :  { %v5422_v44 = vadd.f32 %v5421_v35, %v5409_v29 }
 0x931   :  { %v5447_v62 = vpop.f32.mrf.mxu2 }
 0x932   :  { %v5436_v53 = vpop.f32.mrf.mxu1  ;;  %v5435_v11 = vadd.f32 %v5434_v27, %v5422_v44 }
 0x934   :  { %v5448_v4 = vadd.f32 %v5447_v62, %v5435_v11 }
 0x937   :  { %v5423_v28 = vpop.f32.mrf.mxu3 }
 0x939   :  { %v5449_v5 = vpop.f32.mrf.mxu2 }
 0x94a   :  { %v5473_v39 = vpop.f32.mrf.mxu1 }
 0x94f   :  { %v5460_v41 = vpop.f32.mrf.mxu3 }
 0x950   :  { %v5461_v19 = vadd.f32 %v5460_v41, %v5448_v4 }
 0x951   :  { %v5486_v47 = vpop.f32.mrf.mxu2 }
 0x952   :  { %v5475_v37 = vpop.f32.mrf.mxu1  ;;  %v5474_v34 = vadd.f32 %v5473_v39, %v5461_v19 }
 0x954   :  { %v5487_v1 = vadd.f32 %v5486_v47, %v5474_v34 }
 0x956   :  { %v5491_v14 = vmax.f32 %v5487_v1, 0.0 }
 0x957   :  { %v5462_v55 = vpop.f32.mrf.mxu3 }
 0x958   :  { %v5493_v10 = vrot.slane %v5491_v14, 1 }
 0x959   :  { %v5488_v38 = vpop.f32.mrf.mxu2 }
 0x95a   :  { %v5495_v8 = vmax.f32 %v5491_v14, %v5493_v10 }
 0x95c   :  { %v5497_v6 = vrot.slane %v5495_v8, 2 }
 0x95e   :  { %v5499_v54 = vmax.f32 %v5495_v8, %v5497_v6 }
 0x960   :  { %v5500_v58 = vpack.c.bf16 %v5499_v54, %v5498_v20 }
 0x962   :  { %v5503_v49 = vunpack.c.l.b16 %v5500_v58  ;;  %v5504_v24 = vunpack.c.h.b16 %v5500_v58 }
 0x964   :  { %v5505_v52 = vpack.c.b16 %v5503_v49, %v5503_v49  ;;  %v5506_v40 = vpack.c.b16 %v5504_v24, %v5504_v24 }
 0x966   :  { %v5513_v48 = vsel %vm5511_vm1, %v5505_v52, 0  ;;  %v5516_v46 = vsel %vm5511_vm1, %v5506_v40, 0  ;;  %v5544_v59 = vrot.slane %v5505_v52, 2  ;;  %v5545_v57 = vrot.slane %v5506_v40, 2 }
 0x967   :  { %5525 = vmatpush.bf16.msrb.mxu3 %v5513_v48 }
 0x968   :  { %v5547_v22 = vsel %vm5511_vm1, %v5544_v59, 0  ;;  %v5550_v30 = vsel %vm5511_vm1, %v5545_v57, 0 }
 0x969   :  { %5559 = vmatpush.bf16.msrb.mxu0 %v5547_v22  ;;  %5572 = vmatpush.bf16.msrb.mxu1 %v5550_v30 }
 0x96a   :  { %12159 = vmatmul.msk.bf16.vlgmr.msrb.gmra.mxu3 %vm5507_vm8, %v5501_v50 }
 0x96b   :  { %5538 = vmatpush.bf16.msra.mxu3 %v5516_v46 }
 0x96c   :  { %12161 = vmatmul.msk.bf16.vlgmr.msrb.gmra.mxu0 %vm5507_vm8, %v5501_v50  ;;  %12162 = vmatmul.msk.bf16.vlgmr.msrb.gmra.mxu1 %vm5507_vm8, %v5501_v50 }
 0x97a   :  { %12160 = vmatmul.msk.bf16.vlgmr.msra.gmra.mxu3 %vm5507_vm8, %v5501_v50 }
 0x9e9   :  { %v5561_v13 = vpop.f32.mrf.mxu0  ;;  %v5574_v15 = vpop.f32.mrf.mxu1 }
 0x9ea   :  { %v5580_v16 = vrot.slane %v5561_v13, 7  ;;  %v5581_v61 = vrot.slane %v5574_v15, 7 }
 0x9ed   :  { %v5527_v56 = vpop.f32.mrf.mxu3 }
 0x9ee   :  { %v19344_v60 = vsel %vm5584_vm7, %v5527_v56, %v5580_v16 }
 0x9f1   :  { %v5563_v51 = vpop.f32.mrf.mxu0  ;;  %v5576_v42 = vpop.f32.mrf.mxu1 }
 0x9f5   :  { %v5529_v9 = vpop.f32.mrf.mxu3 }
 0x9fd   :  { %v5540_v32 = vpop.f32.mrf.mxu3 }
 0x9fe   :  { %v19346_v63 = vsel %vm5584_vm7, %v5540_v32, %v5581_v61 }
 0xa05   :  { %v5542_v25 = vpop.f32.mrf.mxu3 }
 0xa06   :  { %15630 = dma.done.wait [#allocation6 + $0x1], 8192 }
 0xa07   :  { %15631 = vsyncadd [#allocation6 + $0x1], 4294959104  ;;  %v12277_v45 = vld [vmem:[#allocation3 + $0xe0] sm:$0xf]  ;;  %v14951_v26 = vld [vmem:[#allocation3 + $0xec] sm:$0xf0] }
 0xa08   :  { %v12405_v2 = vld [vmem:[#allocation3 + $0x1e0] sm:$0xf]  ;;  %v12278_v17 = vor.u32 %v14951_v26, %v12277_v45  ;;  %v14983_v43 = vld [vmem:[#allocation3 + $0x1ec] sm:$0xf0]  ;;  %v14949_v33 = vld [vmem:[#allocation3 + $0xe4] sm:$0xf] }
 0xa09   :  { %v12279_v7 = vld [vmem:[#allocation3 + $0xf0] sm:$0xf0]  ;;  %v12406_v18 = vor.u32 %v14983_v43, %v12405_v2  ;;  %v14981_v35 = vld [vmem:[#allocation3 + $0x1e4] sm:$0xf]  ;;  %v12261_v53 = vld [vmem:[#allocation3 + $0xc0] sm:$0xf] }
 0xa0a   :  { %v12282_v27 = vor.u32 %v14949_v33, %v12279_v7  ;;  %v12407_v62 = vld [vmem:[#allocation3 + $0x1f0] sm:$0xf0]  ;;  %5987 = vmatpush.bf16.msra.mxu2 %v12278_v17  ;;  %v14947_v28 = vld [vmem:[#allocation3 + $0xcc] sm:$0xf0]  ;;  %v12389_v36 = vld [vmem:[#allocation3 + $0x1c0] sm:$0xf] }
 0xa0b   :  { %v12410_v23 = vor.u32 %v14981_v35, %v12407_v62  ;;  %v14979_v5 = vld [vmem:[#allocation3 + $0x1cc] sm:$0xf0]  ;;  %6000 = vmatpush.bf16.msrb.mxu3 %v12406_v18  ;;  %v12262_v12 = vor.u32 %v14947_v28, %v12261_v53  ;;  %v14945_v44 = vld [vmem:[#allocation3 + $0xc4] sm:$0xf]  ;;  %v12263_v39 = vld [vmem:[#allocation3 + $0xd0] sm:$0xf0] }
 0xa0c   :  { %6013 = vmatpush.bf16.msra.mxu0 %v12282_v27  ;;  %v12390_v29 = vor.u32 %v14979_v5, %v12389_v36  ;;  %v14977_v11 = vld [vmem:[#allocation3 + $0x1c4] sm:$0xf]  ;;  %v12266_v31 = vor.u32 %v14945_v44, %v12263_v39  ;;  %v12391_v4 = vld [vmem:[#allocation3 + $0x1d0] sm:$0xf0]  ;;  %v12245_v41 = vld [vmem:[#allocation3 + $0xa0] sm:$0xf] }
 0xa0d   :  { %6026 = vmatpush.bf16.msra.mxu1 %v12410_v23  ;;  %v14943_v19 = vld [vmem:[#allocation3 + $0xac] sm:$0xf0]  ;;  %v12394_v47 = vor.u32 %v14977_v11, %v12391_v4  ;;  %v12373_v37 = vld [vmem:[#allocation3 + $0x1a0] sm:$0xf]  ;;  %v14941_v34 = vld [vmem:[#allocation3 + $0xa4] sm:$0xf] }
 0xa0e   :  { %v14975_v0 = vld [vmem:[#allocation3 + $0x1ac] sm:$0xf0]  ;;  %5988 = vmatpush.bf16.msra.mxu2 %v12262_v12  ;;  %v12246_v1 = vor.u32 %v14943_v19, %v12245_v41  ;;  %v12247_v3 = vld [vmem:[#allocation3 + $0xb0] sm:$0xf0]  ;;  %v14973_v14 = vld [vmem:[#allocation3 + $0x1a4] sm:$0xf] }
 0xa0f   :  { %v12375_v55 = vld [vmem:[#allocation3 + $0x1b0] sm:$0xf0]  ;;  %6001 = vmatpush.bf16.msrb.mxu3 %v12390_v29  ;;  %v12374_v10 = vor.u32 %v14975_v0, %v12373_v37  ;;  %v12250_v38 = vor.u32 %v14941_v34, %v12247_v3  ;;  %v12229_v21 = vld [vmem:[#allocation3 + $0x80] sm:$0xf]  ;;  %v14939_v8 = vld [vmem:[#allocation3 + $0x8c] sm:$0xf0] }
 0xa10   :  { %6014 = vmatpush.bf16.msra.mxu0 %v12266_v31  ;;  %v12357_v6 = vld [vmem:[#allocation3 + $0x180] sm:$0xf]  ;;  %v12378_v20 = vor.u32 %v14973_v14, %v12375_v55  ;;  %v14971_v54 = vld [vmem:[#allocation3 + $0x18c] sm:$0xf0]  ;;  %v14937_v58 = vld [vmem:[#allocation3 + $0x84] sm:$0xf]  ;;  %v12230_v40 = vor.u32 %v14939_v8, %v12229_v21 }
 0xa11   :  { %6027 = vmatpush.bf16.msra.mxu1 %v12394_v47  ;;  %v12231_v49 = vld [vmem:[#allocation3 + $0x90] sm:$0xf0]  ;;  %v14969_v24 = vld [vmem:[#allocation3 + $0x184] sm:$0xf]  ;;  %v12358_v48 = vor.u32 %v14971_v54, %v12357_v6  ;;  %v12213_v59 = vld [vmem:[#allocation3 + $0x60] sm:$0xf] }
 0xa12   :  { %v12359_v52 = vld [vmem:[#allocation3 + $0x190] sm:$0xf0]  ;;  %5989 = vmatpush.bf16.msra.mxu2 %v12246_v1  ;;  %v12234_v46 = vor.u32 %v14937_v58, %v12231_v49  ;;  %v14935_v57 = vld [vmem:[#allocation3 + $0x6c] sm:$0xf0]  ;;  %v12341_v50 = vld [vmem:[#allocation3 + $0x160] sm:$0xf] }
 0xa13   :  { %6002 = vmatpush.bf16.msrb.mxu3 %v12374_v10  ;;  %v12362_v22 = vor.u32 %v14969_v24, %v12359_v52  ;;  %v14967_v30 = vld [vmem:[#allocation3 + $0x16c] sm:$0xf0]  ;;  %v14933_v13 = vld [vmem:[#allocation3 + $0x64] sm:$0xf]  ;;  %v12215_v15 = vld [vmem:[#allocation3 + $0x70] sm:$0xf0]  ;;  %v12214_v51 = vor.u32 %v14935_v57, %v12213_v59 }
 0xa14   :  { %6015 = vmatpush.bf16.msra.mxu0 %v12250_v38  ;;  %v14965_v16 = vld [vmem:[#allocation3 + $0x164] sm:$0xf]  ;;  %v12343_v56 = vld [vmem:[#allocation3 + $0x170] sm:$0xf0]  ;;  %v12342_v42 = vor.u32 %v14967_v30, %v12341_v50  ;;  %v12218_v9 = vor.u32 %v14933_v13, %v12215_v15  ;;  %v12197_v61 = vld [vmem:[#allocation3 + $0x40] sm:$0xf]  ;;  %v19350_v13 = vpack.c.bf16 %v19344_v60, %v19344_v60 }
 0xa15   :  { %6028 = vmatpush.bf16.msra.mxu1 %v12378_v20  ;;  %v14931_v32 = vld [vmem:[#allocation3 + $0x4c] sm:$0xf0]  ;;  %v12325_v25 = vld [vmem:[#allocation3 + $0x140] sm:$0xf]  ;;  %v12346_v45 = vor.u32 %v14965_v16, %v12343_v56  ;;  %v14929_v2 = vld [vmem:[#allocation3 + $0x44] sm:$0xf]  ;;  %v19354_v56 = vpack.c.bf16 %v19346_v63, %v19346_v63 }
 0xa16   :  { %5990 = vmatpush.bf16.msra.mxu2 %v12230_v40  ;;  %v14963_v26 = vld [vmem:[#allocation3 + $0x14c] sm:$0xf0]  ;;  %v12199_v17 = vld [vmem:[#allocation3 + $0x50] sm:$0xf0]  ;;  %v14961_v43 = vld [vmem:[#allocation3 + $0x144] sm:$0xf]  ;;  %v12198_v7 = vor.u32 %v14931_v32, %v12197_v61 }
 0xa17   :  { %6003 = vmatpush.bf16.msrb.mxu3 %v12358_v48  ;;  %v12327_v33 = vld [vmem:[#allocation3 + $0x150] sm:$0xf0]  ;;  %v12326_v18 = vor.u32 %v14963_v26, %v12325_v25  ;;  %v12202_v27 = vor.u32 %v14929_v2, %v12199_v17  ;;  %v12181_v35 = vld [vmem:[#allocation3 + $0x20] sm:$0xf]  ;;  %v14927_v62 = vld [vmem:[#allocation3 + $0x2c] sm:$0xf0] }
 0xa18   :  { %6016 = vmatpush.bf16.msra.mxu0 %v12234_v46  ;;  %v12309_v53 = vld [vmem:[#allocation3 + $0x120] sm:$0xf]  ;;  %v12330_v23 = vor.u32 %v14961_v43, %v12327_v33  ;;  %v14959_v28 = vld [vmem:[#allocation3 + $0x12c] sm:$0xf0]  ;;  %v14925_v36 = vld [vmem:[#allocation3 + $0x24] sm:$0xf]  ;;  %v12182_v44 = vor.u32 %v14927_v62, %v12181_v35 }
 0xa19   :  { %6029 = vmatpush.bf16.msra.mxu1 %v12362_v22  ;;  %v12183_v5 = vld [vmem:[#allocation3 + $0x30] sm:$0xf0]  ;;  %v14957_v12 = vld [vmem:[#allocation3 + $0x124] sm:$0xf]  ;;  %v12165_v39 = vld [vmem:[#allocation3] sm:$0xf]  ;;  %v12310_v31 = vor.u32 %v14959_v28, %v12309_v53 }
 0xa1a   :  { %5991 = vmatpush.bf16.msra.mxu2 %v12214_v51  ;;  %v12311_v29 = vld [vmem:[#allocation3 + $0x130] sm:$0xf0]  ;;  %v14923_v11 = vld [vmem:[#allocation3 + $0xc] sm:$0xf0]  ;;  %v12186_v4 = vor.u32 %v14925_v36, %v12183_v5  ;;  %v12293_v41 = vld [vmem:[#allocation3 + $0x100] sm:$0xf] }
 0xa1b   :  { %6004 = vmatpush.bf16.msrb.mxu3 %v12342_v42  ;;  %v14955_v19 = vld [vmem:[#allocation3 + $0x10c] sm:$0xf0]  ;;  %v14921_v47 = vld [vmem:[#allocation3 + $0x4] sm:$0xf]  ;;  %v12314_v37 = vor.u32 %v14957_v12, %v12311_v29  ;;  %v12167_v0 = vld [vmem:[#allocation3 + $0x10] sm:$0xf0]  ;;  %v12166_v10 = vor.u32 %v14923_v11, %v12165_v39 }
 0xa1c   :  { %6017 = vmatpush.bf16.msra.mxu0 %v12218_v9  ;;  %v14953_v34 = vld [vmem:[#allocation3 + $0x104] sm:$0xf]  ;;  %v12295_v1 = vld [vmem:[#allocation3 + $0x110] sm:$0xf0]  ;;  %v12285_v3 = vld [vmem:[#allocation3 + $0xe8] sm:$0xf]  ;;  %v12294_v6 = vor.u32 %v14955_v19, %v12293_v41  ;;  %v12170_v20 = vor.u32 %v14921_v47, %v12167_v0 }
 0xa1d   :  { %6030 = vmatpush.bf16.msra.mxu1 %v12346_v45  ;;  %v14952_v14 = vld [vmem:[#allocation3 + $0xf4] sm:$0xf0]  ;;  %v12413_v55 = vld [vmem:[#allocation3 + $0x1e8] sm:$0xf]  ;;  %v14950_v21 = vld [vmem:[#allocation3 + $0xec] sm:$0xf]  ;;  %v12298_v49 = vor.u32 %v14953_v34, %v12295_v1 }
 0xa1e   :  { %5992 = vmatpush.bf16.msra.mxu2 %v12198_v7  ;;  %v14984_v38 = vld [vmem:[#allocation3 + $0x1f4] sm:$0xf0]  ;;  %v12287_v8 = vld [vmem:[#allocation3 + $0xf8] sm:$0xf0]  ;;  %v14982_v54 = vld [vmem:[#allocation3 + $0x1ec] sm:$0xf]  ;;  %v12286_v24 = vor.u32 %v14952_v14, %v12285_v3 }
 0xa1f   :  { %6005 = vmatpush.bf16.msrb.mxu3 %v12326_v18  ;;  %v12415_v58 = vld [vmem:[#allocation3 + $0x1f8] sm:$0xf0]  ;;  %v12414_v52 = vor.u32 %v14984_v38, %v12413_v55  ;;  %v12290_v40 = vor.u32 %v14950_v21, %v12287_v8  ;;  %v12269_v48 = vld [vmem:[#allocation3 + $0xc8] sm:$0xf]  ;;  %v14948_v46 = vld [vmem:[#allocation3 + $0xd4] sm:$0xf0] }
 0xa20   :  { %6018 = vmatpush.bf16.msra.mxu0 %v12202_v27  ;;  %v12397_v59 = vld [vmem:[#allocation3 + $0x1c8] sm:$0xf]  ;;  %v12418_v57 = vor.u32 %v14982_v54, %v12415_v58  ;;  %v14980_v50 = vld [vmem:[#allocation3 + $0x1d4] sm:$0xf0]  ;;  %v14946_v22 = vld [vmem:[#allocation3 + $0xcc] sm:$0xf]  ;;  %v12270_v51 = vor.u32 %v14948_v46, %v12269_v48 }
 0xa21   :  { %6031 = vmatpush.bf16.msra.mxu1 %v12330_v23  ;;  %v12271_v30 = vld [vmem:[#allocation3 + $0xd8] sm:$0xf0]  ;;  %v14978_v15 = vld [vmem:[#allocation3 + $0x1cc] sm:$0xf]  ;;  %v12398_v42 = vor.u32 %v14980_v50, %v12397_v59  ;;  %v12253_v61 = vld [vmem:[#allocation3 + $0xa8] sm:$0xf] }
 0xa22   :  { %5993 = vmatpush.bf16.msra.mxu2 %v12182_v44  ;;  %v12399_v16 = vld [vmem:[#allocation3 + $0x1d8] sm:$0xf0]  ;;  %v12274_v9 = vor.u32 %v14946_v22, %v12271_v30  ;;  %v14944_v32 = vld [vmem:[#allocation3 + $0xb4] sm:$0xf0]  ;;  %v12381_v25 = vld [vmem:[#allocation3 + $0x1a8] sm:$0xf] }
 0xa23   :  { %6006 = vmatpush.bf16.msrb.mxu3 %v12310_v31  ;;  %v12402_v60 = vor.u32 %v14978_v15, %v12399_v16  ;;  %v14976_v45 = vld [vmem:[#allocation3 + $0x1b4] sm:$0xf0]  ;;  %v14942_v26 = vld [vmem:[#allocation3 + $0xac] sm:$0xf]  ;;  %v12255_v2 = vld [vmem:[#allocation3 + $0xb8] sm:$0xf0]  ;;  %v12254_v43 = vor.u32 %v14944_v32, %v12253_v61 }
 0xa24   :  { %6019 = vmatpush.bf16.msra.mxu0 %v12186_v4  ;;  %v14974_v63 = vld [vmem:[#allocation3 + $0x1ac] sm:$0xf]  ;;  %v12383_v17 = vld [vmem:[#allocation3 + $0x1b8] sm:$0xf0]  ;;  %v12382_v33 = vor.u32 %v14976_v45, %v12381_v25  ;;  %v12258_v7 = vor.u32 %v14942_v26, %v12255_v2  ;;  %v12237_v18 = vld [vmem:[#allocation3 + $0x88] sm:$0xf] }
 0xa25   :  { %6032 = vmatpush.bf16.msra.mxu1 %v12314_v37  ;;  %v14940_v27 = vld [vmem:[#allocation3 + $0x94] sm:$0xf0]  ;;  %v12365_v35 = vld [vmem:[#allocation3 + $0x188] sm:$0xf]  ;;  %v12386_v62 = vor.u32 %v14974_v63, %v12383_v17  ;;  %v14938_v23 = vld [vmem:[#allocation3 + $0x8c] sm:$0xf] }
 0xa26   :  { %5994 = vmatpush.bf16.msra.mxu2 %v12166_v10  ;;  %v14972_v53 = vld [vmem:[#allocation3 + $0x194] sm:$0xf0]  ;;  %v12239_v28 = vld [vmem:[#allocation3 + $0x98] sm:$0xf0]  ;;  %v14970_v36 = vld [vmem:[#allocation3 + $0x18c] sm:$0xf]  ;;  %v12238_v12 = vor.u32 %v14940_v27, %v12237_v18 }
 0xa27   :  { %6007 = vmatpush.bf16.msrb.mxu3 %v12294_v6  ;;  %v12367_v5 = vld [vmem:[#allocation3 + $0x198] sm:$0xf0]  ;;  %v12366_v29 = vor.u32 %v14972_v53, %v12365_v35  ;;  %v12242_v44 = vor.u32 %v14938_v23, %v12239_v28  ;;  %v12221_v39 = vld [vmem:[#allocation3 + $0x68] sm:$0xf]  ;;  %v14936_v11 = vld [vmem:[#allocation3 + $0x74] sm:$0xf0] }
 0xa28   :  { %6020 = vmatpush.bf16.msra.mxu0 %v12170_v20  ;;  %v12349_v31 = vld [vmem:[#allocation3 + $0x168] sm:$0xf]  ;;  %v12370_v4 = vor.u32 %v14970_v36, %v12367_v5  ;;  %v14968_v41 = vld [vmem:[#allocation3 + $0x174] sm:$0xf0]  ;;  %v14934_v19 = vld [vmem:[#allocation3 + $0x6c] sm:$0xf]  ;;  %v12222_v34 = vor.u32 %v14936_v11, %v12221_v39 }
 0xa29   :  { %6033 = vmatpush.bf16.msra.mxu1 %v12298_v49  ;;  %5995 = vmatmul.bf16.vlgmr.msra.gmra.mxu2 %v19350_v13  ;;  %v12223_v47 = vld [vmem:[#allocation3 + $0x78] sm:$0xf0]  ;;  %v14966_v37 = vld [vmem:[#allocation3 + $0x16c] sm:$0xf]  ;;  %v12350_v1 = vor.u32 %v14968_v41, %v12349_v31  ;;  %v12205_v14 = vld [vmem:[#allocation3 + $0x48] sm:$0xf] }
 0xa2a   :  { %6039 = vmatpush.bf16.msrb.mxu2 %v12286_v24  ;;  %6008 = vmatmul.bf16.vlgmr.msrb.gmra.mxu3 %v19354_v56  ;;  %v12351_v0 = vld [vmem:[#allocation3 + $0x178] sm:$0xf0]  ;;  %v12226_v3 = vor.u32 %v14934_v19, %v12223_v47  ;;  %v14932_v55 = vld [vmem:[#allocation3 + $0x54] sm:$0xf0]  ;;  %v12333_v10 = vld [vmem:[#allocation3 + $0x148] sm:$0xf] }
 0xa2b   :  { %6052 = vmatpush.bf16.msra.mxu3 %v12414_v52  ;;  %6021 = vmatmul.bf16.vlgmr.msra.gmra.mxu0 %v19350_v13  ;;  %v12354_v38 = vor.u32 %v14966_v37, %v12351_v0  ;;  %v14964_v21 = vld [vmem:[#allocation3 + $0x154] sm:$0xf0]  ;;  %v14930_v8 = vld [vmem:[#allocation3 + $0x4c] sm:$0xf]  ;;  %v12207_v6 = vld [vmem:[#allocation3 + $0x58] sm:$0xf0]  ;;  %v12206_v58 = vor.u32 %v14932_v55, %v12205_v14 }
 0xa2c   :  { %6065 = vmatpush.bf16.msrb.mxu0 %v12290_v40  ;;  %6034 = vmatmul.bf16.vlgmr.msra.gmra.mxu1 %v19354_v56  ;;  %v14962_v20 = vld [vmem:[#allocation3 + $0x14c] sm:$0xf]  ;;  %v12335_v54 = vld [vmem:[#allocation3 + $0x158] sm:$0xf0]  ;;  %v12334_v49 = vor.u32 %v14964_v21, %v12333_v10  ;;  %v12210_v24 = vor.u32 %v14930_v8, %v12207_v6  ;;  %v12189_v52 = vld [vmem:[#allocation3 + $0x28] sm:$0xf] }
 0xa2d   :  { %6078 = vmatpush.bf16.msrb.mxu1 %v12418_v57  ;;  %v14928_v40 = vld [vmem:[#allocation3 + $0x34] sm:$0xf0]  ;;  %v12317_v48 = vld [vmem:[#allocation3 + $0x128] sm:$0xf]  ;;  %v12338_v46 = vor.u32 %v14962_v20, %v12335_v54  ;;  %v14926_v57 = vld [vmem:[#allocation3 + $0x2c] sm:$0xf] }
 0xa2e   :  { %6040 = vmatpush.bf16.msrb.mxu2 %v12270_v51  ;;  %v14960_v59 = vld [vmem:[#allocation3 + $0x134] sm:$0xf0]  ;;  %v12191_v50 = vld [vmem:[#allocation3 + $0x38] sm:$0xf0]  ;;  %v14958_v22 = vld [vmem:[#allocation3 + $0x12c] sm:$0xf]  ;;  %v12190_v15 = vor.u32 %v14928_v40, %v12189_v52 }
 0xa2f   :  { %6053 = vmatpush.bf16.msra.mxu3 %v12398_v42  ;;  %v12319_v30 = vld [vmem:[#allocation3 + $0x138] sm:$0xf0]  ;;  %v12318_v16 = vor.u32 %v14960_v59, %v12317_v48  ;;  %v12194_v51 = vor.u32 %v14926_v57, %v12191_v50  ;;  %v12173_v42 = vld [vmem:[#allocation3 + $0x8] sm:$0xf]  ;;  %v14956_v25 = vld [vmem:[#allocation3 + $0x114] sm:$0xf0] }
 0xa30   :  { %6066 = vmatpush.bf16.msrb.mxu0 %v12274_v9  ;;  %v14924_v9 = vld [vmem:[#allocation3 + $0x14] sm:$0xf0]  ;;  %v12301_v61 = vld [vmem:[#allocation3 + $0x108] sm:$0xf]  ;;  %v12322_v32 = vor.u32 %v14958_v22, %v12319_v30  ;;  %v12175_v45 = vld [vmem:[#allocation3 + $0x18] sm:$0xf0] }
 0xa31   :  { %6079 = vmatpush.bf16.msrb.mxu1 %v12402_v60  ;;  %v14922_v60 = vld [vmem:[#allocation3 + $0xc] sm:$0xf]  ;;  %v12303_v2 = vld [vmem:[#allocation3 + $0x118] sm:$0xf0]  ;;  %v12174_v63 = vor.u32 %v14924_v9, %v12173_v42  ;;  %v12302_v17 = vor.u32 %v14956_v25, %v12301_v61 }
 0xa32   :  { %6041 = vmatpush.bf16.msrb.mxu2 %v12254_v43  ;;  %v14954_v26 = vld [vmem:[#allocation3 + $0x10c] sm:$0xf]  ;;  %v12178_v43 = vor.u32 %v14922_v60, %v12175_v45 }
 0xa33   :  { %6054 = vmatpush.bf16.msra.mxu3 %v12382_v33  ;;  %v12306_v33 = vor.u32 %v14954_v26, %v12303_v2 }
 0xa34   :  { %6067 = vmatpush.bf16.msrb.mxu0 %v12258_v7  ;;  %v5657_v7 = vld [vmem:[%s20408_s12] sm:$0xf] }
 0xa35   :  { %6080 = vmatpush.bf16.msrb.mxu1 %v12386_v62  ;;  %v5660_v18 = vperm.slane %v5657_v7, 1  ;;  %v5659_v53 = vperm.slane %v5657_v7, 0  ;;  %v5662_v41 = vperm.slane %v5657_v7, 3  ;;  %v5661_v0 = vperm.slane %v5657_v7, 2 }
 0xa36   :  { %6042 = vmatpush.bf16.msrb.mxu2 %v12238_v12 }
 0xa37   :  { %6055 = vmatpush.bf16.msra.mxu3 %v12366_v29 }
 0xa38   :  { %6068 = vmatpush.bf16.msrb.mxu0 %v12242_v44 }
 0xa39   :  { %6081 = vmatpush.bf16.msrb.mxu1 %v12370_v4 }
 0xa3a   :  { %6043 = vmatpush.bf16.msrb.mxu2 %v12222_v34 }
 0xa3b   :  { %6056 = vmatpush.bf16.msra.mxu3 %v12350_v1 }
 0xa3c   :  { %6069 = vmatpush.bf16.msrb.mxu0 %v12226_v3 }
 0xa3d   :  { %6082 = vmatpush.bf16.msrb.mxu1 %v12354_v38 }
 0xa3e   :  { %6044 = vmatpush.bf16.msrb.mxu2 %v12206_v58 }
 0xa3f   :  { %6057 = vmatpush.bf16.msra.mxu3 %v12334_v49 }
 0xa40   :  { %6070 = vmatpush.bf16.msrb.mxu0 %v12210_v24 }
 0xa41   :  { %6083 = vmatpush.bf16.msrb.mxu1 %v12338_v46 }
 0xa42   :  { %6045 = vmatpush.bf16.msrb.mxu2 %v12190_v15 }
 0xa43   :  { %6058 = vmatpush.bf16.msra.mxu3 %v12318_v16 }
 0xa44   :  { %6071 = vmatpush.bf16.msrb.mxu0 %v12194_v51 }
 0xa45   :  { %6084 = vmatpush.bf16.msrb.mxu1 %v12322_v32 }
 0xa46   :  { %6046 = vmatpush.bf16.msrb.mxu2 %v12174_v63 }
 0xa47   :  { %6059 = vmatpush.bf16.msra.mxu3 %v12302_v17 }
 0xa48   :  { %6072 = vmatpush.bf16.msrb.mxu0 %v12178_v43 }
 0xa49   :  { %6085 = vmatpush.bf16.msrb.mxu1 %v12306_v33  ;;  %6047 = vmatmul.bf16.vlgmr.msrb.gmra.mxu2 %v19350_v13 }
 0xa4a   :  { %6060 = vmatmul.bf16.vlgmr.msra.gmra.mxu3 %v19354_v56 }
 0xa4b   :  { %6073 = vmatmul.bf16.vlgmr.msrb.gmra.mxu0 %v19350_v13 }
 0xa4c   :  { %6086 = vmatmul.bf16.vlgmr.msrb.gmra.mxu1 %v19354_v56 }
 0xaa8   :  { %v6022_v27 = vpop.f32.mrf.mxu0 }
 0xaa9   :  { %v6023_v35 = vadd.f32 %v6022_v27, %v5660_v18  ;;  %v6035_v62 = vpop.f32.mrf.mxu1 }
 0xaab   :  { %v6036_v23 = vadd.f32 %v6035_v62, %v6023_v35 }
 0xaac   :  { %v5996_v28 = vpop.f32.mrf.mxu2 }
 0xaad   :  { %v6092_v36 = vmax.f32 %v6036_v23, 0.0  ;;  %v5997_v5 = vadd.f32 %v5996_v28, %v5659_v53  ;;  %v6009_v12 = vpop.f32.mrf.mxu3 }
 0xaaf   :  { %v19367_v29 = vpack.c.bf16 %v6092_v36, %v6092_v36  ;;  %v6010_v44 = vadd.f32 %v6009_v12, %v5997_v5 }
 0xab0   :  { %v6024_v13 = vpop.f32.mrf.mxu0 }
 0xab1   :  { %v6037_v39 = vpop.f32.mrf.mxu1  ;;  %v6091_v56 = vmax.f32 %v6010_v44, 0.0 }
 0xab3   :  { %v19369_v11 = vpack.c.bf16 %v6091_v56, %v6091_v56 }
 0xab4   :  { %v5998_v31 = vpop.f32.mrf.mxu2 }
 0xab5   :  { %v6011_v4 = vpop.f32.mrf.mxu3 }
 0xac8   :  { %v6074_v19 = vpop.f32.mrf.mxu0 }
 0xac9   :  { %v6075_v47 = vadd.f32 %v6074_v19, %v5662_v41  ;;  %v6087_v37 = vpop.f32.mrf.mxu1 }
 0xacb   :  { %v6088_v34 = vadd.f32 %v6087_v37, %v6075_v47 }
 0xacc   :  { %v6048_v3 = vpop.f32.mrf.mxu2 }
 0xacd   :  { %v6094_v1 = vmax.f32 %v6088_v34, 0.0  ;;  %v6049_v14 = vadd.f32 %v6048_v3, %v5661_v0  ;;  %v6061_v55 = vpop.f32.mrf.mxu3 }
 0xacf   :  { %v19371_v10 = vpack.c.bf16 %v6094_v1, %v6094_v1  ;;  %v6062_v38 = vadd.f32 %v6061_v55, %v6049_v14 }
 0xad0   :  { %v6076_v21 = vpop.f32.mrf.mxu0 }
 0xad1   :  { %v6089_v8 = vpop.f32.mrf.mxu1  ;;  %v6093_v6 = vmax.f32 %v6062_v38, 0.0 }
 0xad3   :  { %v19373_v20 = vpack.c.bf16 %v6093_v6, %v6093_v6 }
 0xad4   :  { %v6050_v54 = vpop.f32.mrf.mxu2 }
 0xad5   :  { %v6063_v58 = vpop.f32.mrf.mxu3 }
 0xad6   :  { %15632 = dma.done.wait [#allocation6 + $0x2], 32768 }
 0xad7   :  { %15633 = vsyncadd [#allocation6 + $0x2], 4294934528  ;;  %v12645_v49 = vld [vmem:[#allocation4 + $0x1c0] sm:$0xf]  ;;  %vm9256_vm13 = vcmask 424960   ;;  %vm9722_vm4 = vcmask 1045508  }
 0xad8   :  { %v15045_v24 = vld [vmem:[#allocation4 + $0x1dc] sm:$0xf0] }
 0xad9   :  { %v12901_v52 = vld [vmem:[#allocation4 + $0x3c0] sm:$0xf]  ;;  %v12646_v40 = vor.u32 %v15045_v24, %v12645_v49 }
 0xada   :  { %v15109_v48 = vld [vmem:[#allocation4 + $0x3dc] sm:$0xf0] }
 0xadb   :  { %v13157_v46 = vld [vmem:[#allocation4 + $0x5c0] sm:$0xf]  ;;  %v12902_v57 = vor.u32 %v15109_v48, %v12901_v52  ;;  %7657 = vmatpush.bf16.msra.mxu2 %v12646_v40 }
 0xadc   :  { %v15173_v59 = vld [vmem:[#allocation4 + $0x5dc] sm:$0xf0] }
 0xadd   :  { %v13158_v50 = vor.u32 %v15173_v59, %v13157_v46  ;;  %v12613_v22 = vld [vmem:[#allocation4 + $0x180] sm:$0xf]  ;;  %7670 = vmatpush.bf16.msrb.mxu3 %v12902_v57 }
 0xade   :  { %v15037_v30 = vld [vmem:[#allocation4 + $0x19c] sm:$0xf0] }
 0xadf   :  { %v12869_v15 = vld [vmem:[#allocation4 + $0x380] sm:$0xf]  ;;  %v12614_v16 = vor.u32 %v15037_v30, %v12613_v22  ;;  %7683 = vmatpush.bf16.msra.mxu0 %v13158_v50 }
 0xae0   :  { %v15101_v51 = vld [vmem:[#allocation4 + $0x39c] sm:$0xf0] }
 0xae1   :  { %v13125_v42 = vld [vmem:[#allocation4 + $0x580] sm:$0xf]  ;;  %v12870_v61 = vor.u32 %v15101_v51, %v12869_v15  ;;  %7658 = vmatpush.bf16.msra.mxu2 %v12614_v16 }
 0xae2   :  { %v15165_v9 = vld [vmem:[#allocation4 + $0x59c] sm:$0xf0] }
 0xae3   :  { %v13126_v32 = vor.u32 %v15165_v9, %v13125_v42  ;;  %v13413_v25 = vld [vmem:[#allocation4 + $0x7c0] sm:$0xf]  ;;  %7671 = vmatpush.bf16.msrb.mxu3 %v12870_v61 }
 0xae4   :  { %v15237_v60 = vld [vmem:[#allocation4 + $0x7dc] sm:$0xf0] }
 0xae5   :  { %v12581_v45 = vld [vmem:[#allocation4 + $0x140] sm:$0xf]  ;;  %v13414_v26 = vor.u32 %v15237_v60, %v13413_v25  ;;  %7684 = vmatpush.bf16.msra.mxu0 %v13126_v32 }
 0xae6   :  { %v15029_v2 = vld [vmem:[#allocation4 + $0x15c] sm:$0xf0] }
 0xae7   :  { %v12837_v63 = vld [vmem:[#allocation4 + $0x340] sm:$0xf]  ;;  %7696 = vmatpush.bf16.msra.mxu1 %v13414_v26  ;;  %v12582_v18 = vor.u32 %v15029_v2, %v12581_v45 }
 0xae8   :  { %v15093_v17 = vld [vmem:[#allocation4 + $0x35c] sm:$0xf0] }
 0xae9   :  { %v13093_v43 = vld [vmem:[#allocation4 + $0x540] sm:$0xf]  ;;  %v12838_v53 = vor.u32 %v15093_v17, %v12837_v63  ;;  %7659 = vmatpush.bf16.msra.mxu2 %v12582_v18 }
 0xaea   :  { %v15157_v33 = vld [vmem:[#allocation4 + $0x55c] sm:$0xf0] }
 0xaeb   :  { %v13381_v7 = vld [vmem:[#allocation4 + $0x780] sm:$0xf]  ;;  %v13094_v23 = vor.u32 %v15157_v33, %v13093_v43  ;;  %7672 = vmatpush.bf16.msrb.mxu3 %v12838_v53  ;;  %v12903_v53 = vld [vmem:[#allocation4 + $0x3e0] sm:$0xf0] }
 0xaec   :  { %v15229_v27 = vld [vmem:[#allocation4 + $0x79c] sm:$0xf0] }
 0xaed   :  { %v12549_v35 = vld [vmem:[#allocation4 + $0x100] sm:$0xf]  ;;  %v13382_v28 = vor.u32 %v15229_v27, %v13381_v7  ;;  %7685 = vmatpush.bf16.msra.mxu0 %v13094_v23  ;;  %v15041_v27 = vld [vmem:[#allocation4 + $0x1c4] sm:$0xf] }
 0xaee   :  { %v15021_v62 = vld [vmem:[#allocation4 + $0x11c] sm:$0xf0] }
 0xaef   :  { %v12805_v36 = vld [vmem:[#allocation4 + $0x300] sm:$0xf]  ;;  %7697 = vmatpush.bf16.msra.mxu1 %v13382_v28  ;;  %v12550_v56 = vor.u32 %v15021_v62, %v12549_v35  ;;  %v12647_v35 = vld [vmem:[#allocation4 + $0x1e0] sm:$0xf0] }
 0xaf0   :  { %v15085_v5 = vld [vmem:[#allocation4 + $0x31c] sm:$0xf0]  ;;  %v15105_v62 = vld [vmem:[#allocation4 + $0x3c4] sm:$0xf] }
 0xaf1   :  { %v13061_v12 = vld [vmem:[#allocation4 + $0x500] sm:$0xf]  ;;  %v12806_v19 = vor.u32 %v15085_v5, %v12805_v36  ;;  %7660 = vmatpush.bf16.msra.mxu2 %v12550_v56  ;;  %v15169_v36 = vld [vmem:[#allocation4 + $0x5c4] sm:$0xf]  ;;  %v12650_v56 = vor.u32 %v15041_v27, %v12647_v35 }
 0xaf2   :  { %v15149_v44 = vld [vmem:[#allocation4 + $0x51c] sm:$0xf0]  ;;  %v13159_v5 = vld [vmem:[#allocation4 + $0x5e0] sm:$0xf0] }
 0xaf3   :  { %v13349_v13 = vld [vmem:[#allocation4 + $0x740] sm:$0xf]  ;;  %v13062_v47 = vor.u32 %v15149_v44, %v13061_v12  ;;  %7673 = vmatpush.bf16.msrb.mxu3 %v12806_v19  ;;  %v13415_v19 = vld [vmem:[#allocation4 + $0x7e0] sm:$0xf0] }
 0xaf4   :  { %v15221_v39 = vld [vmem:[#allocation4 + $0x75c] sm:$0xf0] }
 0xaf5   :  { %v13350_v31 = vor.u32 %v15221_v39, %v13349_v13  ;;  %v12517_v4 = vld [vmem:[#allocation4 + $0xc0] sm:$0xf]  ;;  %7686 = vmatpush.bf16.msra.mxu0 %v13062_v47  ;;  %v13162_v47 = vor.u32 %v15169_v36, %v13159_v5  ;;  %v12487_v5 = vld [vmem:[#allocation4 + $0xa0] sm:$0xf0] }
 0xaf6   :  { %v15013_v41 = vld [vmem:[#allocation4 + $0xdc] sm:$0xf0] }
 0xaf7   :  { %v12773_v37 = vld [vmem:[#allocation4 + $0x2c0] sm:$0xf]  ;;  %7698 = vmatpush.bf16.msra.mxu1 %v13350_v31  ;;  %v12518_v55 = vor.u32 %v15013_v41, %v12517_v4  ;;  %v12906_v31 = vor.u32 %v15105_v62, %v12903_v53  ;;  %v15033_v4 = vld [vmem:[#allocation4 + $0x184] sm:$0xf] }
 0xaf8   :  { %v13317_v0 = vld [vmem:[#allocation4 + $0x700] sm:$0xf]  ;;  %v15233_v41 = vld [vmem:[#allocation4 + $0x7c4] sm:$0xf] }
 0xaf9   :  { %v15213_v34 = vld [vmem:[#allocation4 + $0x71c] sm:$0xf0]  ;;  %7661 = vmatpush.bf16.msra.mxu2 %v12518_v55  ;;  %v13418_v55 = vor.u32 %v15233_v41, %v13415_v19  ;;  %v15001_v53 = vld [vmem:[#allocation4 + $0x84] sm:$0xf] }
 0xafa   :  { %v15077_v1 = vld [vmem:[#allocation4 + $0x2dc] sm:$0xf0]  ;;  %v13318_v38 = vor.u32 %v15213_v34, %v13317_v0  ;;  %v15097_v0 = vld [vmem:[#allocation4 + $0x384] sm:$0xf] }
 0xafb   :  { %v13029_v3 = vld [vmem:[#allocation4 + $0x4c0] sm:$0xf]  ;;  %v12774_v6 = vor.u32 %v15077_v1, %v12773_v37  ;;  %v12615_v37 = vld [vmem:[#allocation4 + $0x1a0] sm:$0xf0] }
 0xafc   :  { %v15141_v14 = vld [vmem:[#allocation4 + $0x4dc] sm:$0xf0]  ;;  %7699 = vmatpush.bf16.msra.mxu1 %v13318_v38  ;;  %v12871_v34 = vld [vmem:[#allocation4 + $0x3a0] sm:$0xf0]  ;;  %v12618_v38 = vor.u32 %v15033_v4, %v12615_v37 }
 0xafd   :  { %v12485_v21 = vld [vmem:[#allocation4 + $0x80] sm:$0xf]  ;;  %v13030_v54 = vor.u32 %v15141_v14, %v13029_v3  ;;  %7674 = vmatpush.bf16.msrb.mxu3 %v12774_v6  ;;  %v15161_v3 = vld [vmem:[#allocation4 + $0x584] sm:$0xf] }
 0xafe   :  { %v15005_v8 = vld [vmem:[#allocation4 + $0x9c] sm:$0xf0]  ;;  %v13127_v14 = vld [vmem:[#allocation4 + $0x5a0] sm:$0xf0] }
 0xaff   :  { %v12741_v58 = vld [vmem:[#allocation4 + $0x280] sm:$0xf]  ;;  %v12486_v46 = vor.u32 %v15005_v8, %v12485_v21  ;;  %7687 = vmatpush.bf16.msra.mxu0 %v13030_v54  ;;  %v12874_v21 = vor.u32 %v15097_v0, %v12871_v34  ;;  %v15025_v8 = vld [vmem:[#allocation4 + $0x144] sm:$0xf] }
 0xb00   :  { %v13285_v49 = vld [vmem:[#allocation4 + $0x6c0] sm:$0xf]  ;;  %v15225_v6 = vld [vmem:[#allocation4 + $0x784] sm:$0xf] }
 0xb01   :  { %v15205_v24 = vld [vmem:[#allocation4 + $0x6dc] sm:$0xf0]  ;;  %7662 = vmatpush.bf16.msra.mxu2 %v12486_v46  ;;  %v13383_v54 = vld [vmem:[#allocation4 + $0x7a0] sm:$0xf0] }
 0xb02   :  { %v15069_v52 = vld [vmem:[#allocation4 + $0x29c] sm:$0xf0]  ;;  %v13286_v59 = vor.u32 %v15205_v24, %v13285_v49  ;;  %v12583_v49 = vld [vmem:[#allocation4 + $0x160] sm:$0xf0]  ;;  %v13386_v46 = vor.u32 %v15225_v6, %v13383_v54 }
 0xb03   :  { %v12997_v40 = vld [vmem:[#allocation4 + $0x480] sm:$0xf]  ;;  %v12742_v22 = vor.u32 %v15069_v52, %v12741_v58  ;;  %v13130_v58 = vor.u32 %v15161_v3, %v13127_v14  ;;  %v15089_v24 = vld [vmem:[#allocation4 + $0x344] sm:$0xf] }
 0xb04   :  { %v15133_v48 = vld [vmem:[#allocation4 + $0x49c] sm:$0xf0]  ;;  %7700 = vmatpush.bf16.msra.mxu1 %v13286_v59  ;;  %v12839_v52 = vld [vmem:[#allocation4 + $0x360] sm:$0xf0]  ;;  %v12586_v59 = vor.u32 %v15025_v8, %v12583_v49 }
 0xb05   :  { %v12453_v57 = vld [vmem:[#allocation4 + $0x40] sm:$0xf]  ;;  %v12998_v30 = vor.u32 %v15133_v48, %v12997_v40  ;;  %7675 = vmatpush.bf16.msrb.mxu3 %v12742_v22  ;;  %v15153_v40 = vld [vmem:[#allocation4 + $0x544] sm:$0xf] }
 0xb06   :  { %v14997_v50 = vld [vmem:[#allocation4 + $0x5c] sm:$0xf0]  ;;  %v13095_v48 = vld [vmem:[#allocation4 + $0x560] sm:$0xf0] }
 0xb07   :  { %v12709_v15 = vld [vmem:[#allocation4 + $0x240] sm:$0xf]  ;;  %v12454_v32 = vor.u32 %v14997_v50, %v12453_v57  ;;  %7688 = vmatpush.bf16.msra.mxu0 %v12998_v30  ;;  %v12842_v57 = vor.u32 %v15089_v24, %v12839_v52  ;;  %v15017_v50 = vld [vmem:[#allocation4 + $0x104] sm:$0xf] }
 0xb08   :  { %v13253_v16 = vld [vmem:[#allocation4 + $0x680] sm:$0xf]  ;;  %v15217_v22 = vld [vmem:[#allocation4 + $0x744] sm:$0xf] }
 0xb09   :  { %v15197_v51 = vld [vmem:[#allocation4 + $0x69c] sm:$0xf0]  ;;  %7663 = vmatpush.bf16.msra.mxu2 %v12454_v32  ;;  %v13351_v30 = vld [vmem:[#allocation4 + $0x760] sm:$0xf0] }
 0xb0a   :  { %v15061_v42 = vld [vmem:[#allocation4 + $0x25c] sm:$0xf0]  ;;  %v13254_v25 = vor.u32 %v15197_v51, %v13253_v16  ;;  %v12551_v16 = vld [vmem:[#allocation4 + $0x120] sm:$0xf0]  ;;  %v13354_v32 = vor.u32 %v15217_v22, %v13351_v30  ;;  %v15110_v22 = vld [vmem:[#allocation4 + $0x3e4] sm:$0xf0] }
 0xb0b   :  { %v12965_v9 = vld [vmem:[#allocation4 + $0x440] sm:$0xf]  ;;  %v12710_v2 = vor.u32 %v15061_v42, %v12709_v15  ;;  %v13098_v15 = vor.u32 %v15153_v40, %v13095_v48  ;;  %v15081_v51 = vld [vmem:[#allocation4 + $0x304] sm:$0xf]  ;;  %v13165_v30 = vld [vmem:[#allocation4 + $0x5c8] sm:$0xf] }
 0xb0c   :  { %v15125_v61 = vld [vmem:[#allocation4 + $0x45c] sm:$0xf0]  ;;  %7701 = vmatpush.bf16.msra.mxu1 %v13254_v25  ;;  %v12807_v42 = vld [vmem:[#allocation4 + $0x320] sm:$0xf0]  ;;  %v12554_v25 = vor.u32 %v15017_v50, %v12551_v16 }
 0xb0d   :  { %v12421_v60 = vld [vmem:[#allocation4] sm:$0xf]  ;;  %v12966_v63 = vor.u32 %v15125_v61, %v12965_v9  ;;  %7676 = vmatpush.bf16.msrb.mxu3 %v12710_v2  ;;  %v15145_v9 = vld [vmem:[#allocation4 + $0x504] sm:$0xf] }
 0xb0e   :  { %v14989_v45 = vld [vmem:[#allocation4 + $0x1c] sm:$0xf0]  ;;  %v13063_v61 = vld [vmem:[#allocation4 + $0x520] sm:$0xf0] }
 0xb0f   :  { %v12677_v26 = vld [vmem:[#allocation4 + $0x200] sm:$0xf]  ;;  %v12422_v23 = vor.u32 %v14989_v45, %v12421_v60  ;;  %7689 = vmatpush.bf16.msra.mxu0 %v12966_v63  ;;  %v12810_v60 = vor.u32 %v15081_v51, %v12807_v42  ;;  %v15009_v45 = vld [vmem:[#allocation4 + $0xc4] sm:$0xf]  ;;  %v13066_v63 = vor.u32 %v15145_v9, %v13063_v61 }
 0xb10   :  { %v15053_v17 = vld [vmem:[#allocation4 + $0x21c] sm:$0xf0]  ;;  %v13319_v2 = vld [vmem:[#allocation4 + $0x720] sm:$0xf0] }
 0xb11   :  { %v13221_v43 = vld [vmem:[#allocation4 + $0x640] sm:$0xf]  ;;  %v12678_v12 = vor.u32 %v15053_v17, %v12677_v26  ;;  %7664 = vmatpush.bf16.msra.mxu2 %v12422_v23  ;;  %v15209_v26 = vld [vmem:[#allocation4 + $0x704] sm:$0xf] }
 0xb12   :  { %v15189_v33 = vld [vmem:[#allocation4 + $0x65c] sm:$0xf0]  ;;  %v12519_v17 = vld [vmem:[#allocation4 + $0xe0] sm:$0xf0]  ;;  %v13322_v27 = vor.u32 %v15209_v26, %v13319_v2  ;;  %v12621_v2 = vld [vmem:[#allocation4 + $0x188] sm:$0xf] }
 0xb13   :  { %v12933_v7 = vld [vmem:[#allocation4 + $0x400] sm:$0xf]  ;;  %v13222_v28 = vor.u32 %v15189_v33, %v13221_v43  ;;  %7677 = vmatpush.bf16.msrb.mxu3 %v12678_v12  ;;  %v15073_v43 = vld [vmem:[#allocation4 + $0x2c4] sm:$0xf]  ;;  %v12522_v35 = vor.u32 %v15009_v45, %v12519_v17  ;;  %v12877_v17 = vld [vmem:[#allocation4 + $0x388] sm:$0xf] }
 0xb14   :  { %v15117_v18 = vld [vmem:[#allocation4 + $0x41c] sm:$0xf0]  ;;  %7665 = vmatmul.bf16.vlgmr.msra.gmra.mxu2 %v19369_v11  ;;  %v12775_v33 = vld [vmem:[#allocation4 + $0x2e0] sm:$0xf0] }
 0xb15   :  { %v12934_v44 = vor.u32 %v15117_v18, %v12933_v7  ;;  %v13189_v13 = vld [vmem:[#allocation4 + $0x600] sm:$0xf]  ;;  %7702 = vmatpush.bf16.msra.mxu1 %v13222_v28  ;;  %7709 = vmatpush.bf16.msrb.mxu2 %v12650_v56  ;;  %v15137_v7 = vld [vmem:[#allocation4 + $0x4c4] sm:$0xf]  ;;  %v12778_v62 = vor.u32 %v15073_v43, %v12775_v33  ;;  %v15102_v33 = vld [vmem:[#allocation4 + $0x3a4] sm:$0xf0] }
 0xb16   :  { %v15181_v39 = vld [vmem:[#allocation4 + $0x61c] sm:$0xf0]  ;;  %7678 = vmatmul.bf16.vlgmr.msrb.gmra.mxu3 %v19367_v29  ;;  %v13031_v18 = vld [vmem:[#allocation4 + $0x4e0] sm:$0xf0] }
 0xb17   :  { %v13190_v1 = vor.u32 %v15181_v39, %v13189_v13  ;;  %7690 = vmatpush.bf16.msra.mxu0 %v12934_v44  ;;  %7722 = vmatpush.bf16.msra.mxu3 %v12906_v31  ;;  %v15201_v23 = vld [vmem:[#allocation4 + $0x6c4] sm:$0xf]  ;;  %v13034_v36 = vor.u32 %v15137_v7, %v13031_v18  ;;  %v12490_v31 = vor.u32 %v15001_v53, %v12487_v5  ;;  %v13133_v7 = vld [vmem:[#allocation4 + $0x588] sm:$0xf] }
 0xb18   :  { %v13287_v28 = vld [vmem:[#allocation4 + $0x6e0] sm:$0xf0]  ;;  %v15166_v18 = vld [vmem:[#allocation4 + $0x5a4] sm:$0xf0] }
 0xb19   :  { %7703 = vmatpush.bf16.msra.mxu1 %v13190_v1  ;;  %7710 = vmatpush.bf16.msrb.mxu2 %v12618_v38  ;;  %v15065_v12 = vld [vmem:[#allocation4 + $0x284] sm:$0xf]  ;;  %v13290_v56 = vor.u32 %v15201_v23, %v13287_v28  ;;  %v15230_v53 = vld [vmem:[#allocation4 + $0x7a4] sm:$0xf0]  ;;  %v12878_v23 = vor.u32 %v15102_v33, %v12877_v17  ;;  %v13134_v28 = vor.u32 %v15166_v18, %v13133_v7 }
 0xb1a   :  { %7691 = vmatmul.bf16.vlgmr.msra.gmra.mxu0 %v19373_v20  ;;  %v12743_v44 = vld [vmem:[#allocation4 + $0x2a0] sm:$0xf0]  ;;  %v15030_v5 = vld [vmem:[#allocation4 + $0x164] sm:$0xf0] }
 0xb1b   :  { %7735 = vmatpush.bf16.msrb.mxu0 %v13162_v47  ;;  %7723 = vmatpush.bf16.msra.mxu3 %v12874_v21  ;;  %v15129_v13 = vld [vmem:[#allocation4 + $0x484] sm:$0xf]  ;;  %v12746_v4 = vor.u32 %v15065_v12, %v12743_v44  ;;  %v12845_v12 = vld [vmem:[#allocation4 + $0x348] sm:$0xf] }
 0xb1c   :  { %7704 = vmatmul.bf16.vlgmr.msra.gmra.mxu1 %v19371_v10  ;;  %v12999_v39 = vld [vmem:[#allocation4 + $0x4a0] sm:$0xf0]  ;;  %v15094_v44 = vld [vmem:[#allocation4 + $0x364] sm:$0xf0] }
 0xb1d   :  { %7748 = vmatpush.bf16.msrb.mxu1 %v13418_v55  ;;  %7711 = vmatpush.bf16.msrb.mxu2 %v12586_v59  ;;  %v14993_v41 = vld [vmem:[#allocation4 + $0x44] sm:$0xf]  ;;  %v13002_v37 = vor.u32 %v15129_v13, %v12999_v39  ;;  %v15046_v59 = vld [vmem:[#allocation4 + $0x1e4] sm:$0xf0] }
 0xb1e   :  { %v15193_v19 = vld [vmem:[#allocation4 + $0x684] sm:$0xf]  ;;  %v13101_v13 = vld [vmem:[#allocation4 + $0x548] sm:$0xf] }
 0xb1f   :  { %7736 = vmatpush.bf16.msrb.mxu0 %v13130_v58  ;;  %7724 = vmatpush.bf16.msra.mxu3 %v12842_v57  ;;  %v13255_v47 = vld [vmem:[#allocation4 + $0x6a0] sm:$0xf0]  ;;  %v12909_v57 = vld [vmem:[#allocation4 + $0x3c8] sm:$0xf] }
 0xb20   :  { %v12455_v0 = vld [vmem:[#allocation4 + $0x60] sm:$0xf0]  ;;  %v13258_v55 = vor.u32 %v15193_v19, %v13255_v47  ;;  %v12910_v45 = vor.u32 %v15110_v22, %v12909_v57  ;;  %v15158_v39 = vld [vmem:[#allocation4 + $0x564] sm:$0xf0]  ;;  %v12846_v19 = vor.u32 %v15094_v44, %v12845_v12 }
 0xb21   :  { %7749 = vmatpush.bf16.msrb.mxu1 %v13386_v46  ;;  %7712 = vmatpush.bf16.msrb.mxu2 %v12554_v25  ;;  %v15057_v34 = vld [vmem:[#allocation4 + $0x244] sm:$0xf]  ;;  %v12458_v8 = vor.u32 %v14993_v41, %v12455_v0  ;;  %v12653_v46 = vld [vmem:[#allocation4 + $0x1c8] sm:$0xf]  ;;  %v13102_v47 = vor.u32 %v15158_v39, %v13101_v13 }
 0xb22   :  { %v12711_v1 = vld [vmem:[#allocation4 + $0x260] sm:$0xf0]  ;;  %v13421_v25 = vld [vmem:[#allocation4 + $0x7c8] sm:$0xf] }
 0xb23   :  { %7737 = vmatpush.bf16.msrb.mxu0 %v13098_v15  ;;  %7725 = vmatpush.bf16.msra.mxu3 %v12810_v60  ;;  %v15121_v3 = vld [vmem:[#allocation4 + $0x444] sm:$0xf]  ;;  %v12714_v6 = vor.u32 %v15057_v34, %v12711_v1  ;;  %v15174_v15 = vld [vmem:[#allocation4 + $0x5e4] sm:$0xf0] }
 0xb24   :  { %v12967_v14 = vld [vmem:[#allocation4 + $0x460] sm:$0xf0]  ;;  %v15238_v60 = vld [vmem:[#allocation4 + $0x7e4] sm:$0xf0]  ;;  %v13166_v26 = vor.u32 %v15174_v15, %v13165_v30 }
 0xb25   :  { %7750 = vmatpush.bf16.msrb.mxu1 %v13354_v32  ;;  %7713 = vmatpush.bf16.msrb.mxu2 %v12522_v35  ;;  %v14985_v38 = vld [vmem:[#allocation4 + $0x4] sm:$0xf]  ;;  %v12970_v24 = vor.u32 %v15121_v3, %v12967_v14  ;;  %v12654_v32 = vor.u32 %v15046_v59, %v12653_v46  ;;  %v15222_v41 = vld [vmem:[#allocation4 + $0x764] sm:$0xf0] }
 0xb26   :  { %v12423_v21 = vld [vmem:[#allocation4 + $0x20] sm:$0xf0]  ;;  %v15022_v0 = vld [vmem:[#allocation4 + $0x124] sm:$0xf0] }
 0xb27   :  { %7738 = vmatpush.bf16.msrb.mxu0 %v13066_v63  ;;  %7726 = vmatpush.bf16.msra.mxu3 %v12778_v62  ;;  %v15049_v54 = vld [vmem:[#allocation4 + $0x204] sm:$0xf]  ;;  %v12426_v16 = vor.u32 %v14985_v38, %v12423_v21  ;;  %v15038_v63 = vld [vmem:[#allocation4 + $0x1a4] sm:$0xf0] }
 0xb28   :  { %v15185_v58 = vld [vmem:[#allocation4 + $0x644] sm:$0xf]  ;;  %v12622_v35 = vor.u32 %v15038_v63, %v12621_v2  ;;  %v13389_v62 = vld [vmem:[#allocation4 + $0x788] sm:$0xf] }
 0xb29   :  { %7751 = vmatpush.bf16.msrb.mxu1 %v13322_v27  ;;  %7714 = vmatpush.bf16.msrb.mxu2 %v12490_v31  ;;  %v13223_v49 = vld [vmem:[#allocation4 + $0x660] sm:$0xf0]  ;;  %v13422_v27 = vor.u32 %v15238_v60, %v13421_v25  ;;  %v12813_v34 = vld [vmem:[#allocation4 + $0x308] sm:$0xf] }
 0xb2a   :  { %v12679_v52 = vld [vmem:[#allocation4 + $0x220] sm:$0xf0]  ;;  %v13226_v50 = vor.u32 %v15185_v58, %v13223_v49  ;;  %v15086_v1 = vld [vmem:[#allocation4 + $0x324] sm:$0xf0] }
 0xb2b   :  { %7739 = vmatpush.bf16.msrb.mxu0 %v13034_v36  ;;  %7727 = vmatpush.bf16.msra.mxu3 %v12746_v4  ;;  %v15113_v40 = vld [vmem:[#allocation4 + $0x404] sm:$0xf]  ;;  %v12682_v51 = vor.u32 %v15049_v54, %v12679_v52  ;;  %v12589_v36 = vld [vmem:[#allocation4 + $0x148] sm:$0xf] }
 0xb2c   :  { %v12935_v48 = vld [vmem:[#allocation4 + $0x420] sm:$0xf0]  ;;  %v12590_v31 = vor.u32 %v15030_v5, %v12589_v36  ;;  %v13357_v4 = vld [vmem:[#allocation4 + $0x748] sm:$0xf] }
 0xb2d   :  { %7752 = vmatpush.bf16.msrb.mxu1 %v13290_v56  ;;  %7715 = vmatpush.bf16.msrb.mxu2 %v12458_v8  ;;  %v15177_v42 = vld [vmem:[#allocation4 + $0x604] sm:$0xf]  ;;  %v12938_v61 = vor.u32 %v15113_v40, %v12935_v48  ;;  %v13390_v56 = vor.u32 %v15230_v53, %v13389_v62  ;;  %v13069_v3 = vld [vmem:[#allocation4 + $0x508] sm:$0xf] }
 0xb2e   :  { %v13191_v9 = vld [vmem:[#allocation4 + $0x620] sm:$0xf0]  ;;  %v15150_v14 = vld [vmem:[#allocation4 + $0x524] sm:$0xf0] }
 0xb2f   :  { %7740 = vmatpush.bf16.msrb.mxu0 %v13002_v37  ;;  %7728 = vmatpush.bf16.msra.mxu3 %v12714_v6  ;;  %v13194_v43 = vor.u32 %v15177_v42, %v13191_v9  ;;  %v12557_v37 = vld [vmem:[#allocation4 + $0x108] sm:$0xf]  ;;  %v12814_v6 = vor.u32 %v15086_v1, %v12813_v34  ;;  %v13070_v54 = vor.u32 %v15150_v14, %v13069_v3 }
 0xb30   :  { %v12558_v38 = vor.u32 %v15022_v0, %v12557_v37  ;;  %v13325_v21 = vld [vmem:[#allocation4 + $0x708] sm:$0xf]  ;;  %v13167_v0 = vld [vmem:[#allocation4 + $0x5e8] sm:$0xf0] }
 0xb31   :  { %7753 = vmatpush.bf16.msrb.mxu1 %v13258_v55  ;;  %7716 = vmatpush.bf16.msrb.mxu2 %v12426_v16  ;;  %v13358_v55 = vor.u32 %v15222_v41, %v13357_v4  ;;  %v15214_v8 = vld [vmem:[#allocation4 + $0x724] sm:$0xf0]  ;;  %v15106_v41 = vld [vmem:[#allocation4 + $0x3cc] sm:$0xf] }
 0xb32   :  { %v12525_v58 = vld [vmem:[#allocation4 + $0xc8] sm:$0xf]  ;;  %v13326_v46 = vor.u32 %v15214_v8, %v13325_v21 }
 0xb33   :  { %7741 = vmatpush.bf16.msrb.mxu0 %v12970_v24  ;;  %7729 = vmatpush.bf16.msra.mxu3 %v12682_v51  ;;  %v15014_v49 = vld [vmem:[#allocation4 + $0xe4] sm:$0xf0] }
 0xb34   :  { %7717 = vmatmul.bf16.vlgmr.msrb.gmra.mxu2 %v19369_v11  ;;  %v12781_v24 = vld [vmem:[#allocation4 + $0x2c8] sm:$0xf]  ;;  %v12526_v59 = vor.u32 %v15014_v49, %v12525_v58  ;;  %v12623_v49 = vld [vmem:[#allocation4 + $0x1a8] sm:$0xf0] }
 0xb35   :  { %7754 = vmatpush.bf16.msrb.mxu1 %v13226_v50  ;;  %7761 = vmatpush.bf16.msra.mxu2 %v12654_v32  ;;  %v15078_v52 = vld [vmem:[#allocation4 + $0x2e4] sm:$0xf0] }
 0xb36   :  { %7730 = vmatmul.bf16.vlgmr.msra.gmra.mxu3 %v19367_v29  ;;  %v13037_v40 = vld [vmem:[#allocation4 + $0x4c8] sm:$0xf]  ;;  %v12782_v30 = vor.u32 %v15078_v52, %v12781_v24  ;;  %v15098_v24 = vld [vmem:[#allocation4 + $0x38c] sm:$0xf] }
 0xb37   :  { %7742 = vmatpush.bf16.msrb.mxu0 %v12938_v61  ;;  %7774 = vmatpush.bf16.msrb.mxu3 %v12910_v45  ;;  %v15142_v48 = vld [vmem:[#allocation4 + $0x4e4] sm:$0xf0]  ;;  %v12879_v52 = vld [vmem:[#allocation4 + $0x3a8] sm:$0xf0] }
 0xb38   :  { %v12493_v57 = vld [vmem:[#allocation4 + $0x88] sm:$0xf]  ;;  %v13038_v15 = vor.u32 %v15142_v48, %v13037_v40  ;;  %v15162_v40 = vld [vmem:[#allocation4 + $0x58c] sm:$0xf] }
 0xb39   :  { %7755 = vmatpush.bf16.msrb.mxu1 %v13194_v43  ;;  %7762 = vmatpush.bf16.msra.mxu2 %v12622_v35  ;;  %v13293_v50 = vld [vmem:[#allocation4 + $0x6c8] sm:$0xf]  ;;  %v13135_v48 = vld [vmem:[#allocation4 + $0x5a8] sm:$0xf0] }
 0xb3a   :  { %7743 = vmatmul.bf16.vlgmr.msrb.gmra.mxu0 %v19373_v20  ;;  %v15206_v22 = vld [vmem:[#allocation4 + $0x6e4] sm:$0xf0] }
 0xb3b   :  { %7787 = vmatpush.bf16.msra.mxu0 %v13166_v26  ;;  %7775 = vmatpush.bf16.msrb.mxu3 %v12878_v23  ;;  %v15006_v16 = vld [vmem:[#allocation4 + $0xa4] sm:$0xf0]  ;;  %v13294_v32 = vor.u32 %v15206_v22, %v13293_v50  ;;  %v12882_v22 = vor.u32 %v15098_v24, %v12879_v52  ;;  %v15058_v24 = vld [vmem:[#allocation4 + $0x24c] sm:$0xf] }
 0xb3c   :  { %7756 = vmatmul.bf16.vlgmr.msrb.gmra.mxu1 %v19371_v10  ;;  %v12749_v51 = vld [vmem:[#allocation4 + $0x288] sm:$0xf]  ;;  %v12494_v25 = vor.u32 %v15006_v16, %v12493_v57  ;;  %v13391_v57 = vld [vmem:[#allocation4 + $0x7a8] sm:$0xf0] }
 0xb3d   :  { %7800 = vmatpush.bf16.msra.mxu1 %v13422_v27  ;;  %7763 = vmatpush.bf16.msra.mxu2 %v12590_v31  ;;  %v15070_v42 = vld [vmem:[#allocation4 + $0x2a4] sm:$0xf0]  ;;  %v12655_v31 = vld [vmem:[#allocation4 + $0x1e8] sm:$0xf0] }
 0xb3e   :  { %v13005_v9 = vld [vmem:[#allocation4 + $0x488] sm:$0xf]  ;;  %v12750_v26 = vor.u32 %v15070_v42, %v12749_v51  ;;  %v12591_v16 = vld [vmem:[#allocation4 + $0x168] sm:$0xf0] }
 0xb3f   :  { %7788 = vmatpush.bf16.msra.mxu0 %v13134_v28  ;;  %7776 = vmatpush.bf16.msrb.mxu3 %v12846_v19  ;;  %v15134_v61 = vld [vmem:[#allocation4 + $0x4a4] sm:$0xf0]  ;;  %v12911_v19 = vld [vmem:[#allocation4 + $0x3e8] sm:$0xf0] }
 0xb40   :  { %v13261_v60 = vld [vmem:[#allocation4 + $0x688] sm:$0xf]  ;;  %v13006_v2 = vor.u32 %v15134_v61, %v13005_v9  ;;  %v12914_v8 = vor.u32 %v15106_v41, %v12911_v19  ;;  %v15090_v51 = vld [vmem:[#allocation4 + $0x34c] sm:$0xf] }
 0xb41   :  { %7801 = vmatpush.bf16.msra.mxu1 %v13390_v56  ;;  %7764 = vmatpush.bf16.msra.mxu2 %v12558_v38  ;;  %v15198_v45 = vld [vmem:[#allocation4 + $0x6a4] sm:$0xf0]  ;;  %v15042_v56 = vld [vmem:[#allocation4 + $0x1cc] sm:$0xf] }
 0xb42   :  { %v12461_v63 = vld [vmem:[#allocation4 + $0x48] sm:$0xf]  ;;  %v13262_v27 = vor.u32 %v15198_v45, %v13261_v60  ;;  %v13423_v38 = vld [vmem:[#allocation4 + $0x7e8] sm:$0xf0]  ;;  %v12658_v21 = vor.u32 %v15042_v56, %v12655_v31 }
 0xb43   :  { %7789 = vmatpush.bf16.msra.mxu0 %v13102_v47  ;;  %7777 = vmatpush.bf16.msrb.mxu3 %v12814_v6  ;;  %v14998_v17 = vld [vmem:[#allocation4 + $0x64] sm:$0xf0]  ;;  %v15170_v47 = vld [vmem:[#allocation4 + $0x5cc] sm:$0xf] }
 0xb44   :  { %v12717_v43 = vld [vmem:[#allocation4 + $0x248] sm:$0xf]  ;;  %v12462_v62 = vor.u32 %v14998_v17, %v12461_v63  ;;  %v15034_v6 = vld [vmem:[#allocation4 + $0x18c] sm:$0xf] }
 0xb45   :  { %7802 = vmatpush.bf16.msra.mxu1 %v13358_v55  ;;  %7765 = vmatpush.bf16.msra.mxu2 %v12526_v59  ;;  %v15062_v33 = vld [vmem:[#allocation4 + $0x264] sm:$0xf0]  ;;  %v15234_v55 = vld [vmem:[#allocation4 + $0x7cc] sm:$0xf]  ;;  %v12626_v50 = vor.u32 %v15034_v6, %v12623_v49 }
 0xb46   :  { %v12973_v7 = vld [vmem:[#allocation4 + $0x448] sm:$0xf]  ;;  %v12718_v36 = vor.u32 %v15062_v33, %v12717_v43  ;;  %v15226_v59 = vld [vmem:[#allocation4 + $0x78c] sm:$0xf] }
 0xb47   :  { %7790 = vmatpush.bf16.msra.mxu0 %v13070_v54  ;;  %7778 = vmatpush.bf16.msrb.mxu3 %v12782_v30  ;;  %v15126_v18 = vld [vmem:[#allocation4 + $0x464] sm:$0xf0]  ;;  %v13170_v54 = vor.u32 %v15170_v47, %v13167_v0  ;;  %v15026_v30 = vld [vmem:[#allocation4 + $0x14c] sm:$0xf] }
 0xb48   :  { %v12429_v35 = vld [vmem:[#allocation4 + $0x8] sm:$0xf]  ;;  %v12974_v5 = vor.u32 %v15126_v18, %v12973_v7  ;;  %v12847_v42 = vld [vmem:[#allocation4 + $0x368] sm:$0xf0]  ;;  %v12594_v45 = vor.u32 %v15026_v30, %v12591_v16 }
 0xb49   :  { %7803 = vmatpush.bf16.msra.mxu1 %v13326_v46  ;;  %7766 = vmatpush.bf16.msra.mxu2 %v12494_v25  ;;  %v14990_v53 = vld [vmem:[#allocation4 + $0x24] sm:$0xf0]  ;;  %v13426_v46 = vor.u32 %v15234_v55, %v13423_v38  ;;  %v15154_v9 = vld [vmem:[#allocation4 + $0x54c] sm:$0xf] }
 0xb4a   :  { %v13229_v23 = vld [vmem:[#allocation4 + $0x648] sm:$0xf]  ;;  %v12430_v37 = vor.u32 %v14990_v53, %v12429_v35  ;;  %v13103_v61 = vld [vmem:[#allocation4 + $0x568] sm:$0xf0] }
 0xb4b   :  { %7791 = vmatpush.bf16.msra.mxu0 %v13038_v15  ;;  %v15190_v28 = vld [vmem:[#allocation4 + $0x664] sm:$0xf0]  ;;  %7779 = vmatpush.bf16.msrb.mxu3 %v12750_v26  ;;  %v13138_v15 = vor.u32 %v15162_v40, %v13135_v48  ;;  %v15218_v25 = vld [vmem:[#allocation4 + $0x74c] sm:$0xf]  ;;  %v12850_v26 = vor.u32 %v15090_v51, %v12847_v42  ;;  %v13106_v63 = vor.u32 %v15154_v9, %v13103_v61 }
 0xb4c   :  { %v12685_v12 = vld [vmem:[#allocation4 + $0x208] sm:$0xf]  ;;  %v13230_v4 = vor.u32 %v15190_v28, %v13229_v23  ;;  %v13359_v60 = vld [vmem:[#allocation4 + $0x768] sm:$0xf0] }
 0xb4d   :  { %7804 = vmatpush.bf16.msra.mxu1 %v13294_v32  ;;  %v15054_v44 = vld [vmem:[#allocation4 + $0x224] sm:$0xf0]  ;;  %7767 = vmatpush.bf16.msra.mxu2 %v12462_v62  ;;  %v13394_v32 = vor.u32 %v15226_v59, %v13391_v57  ;;  %v12559_v17 = vld [vmem:[#allocation4 + $0x128] sm:$0xf0] }
 0xb4e   :  { %v12941_v13 = vld [vmem:[#allocation4 + $0x408] sm:$0xf]  ;;  %v12686_v3 = vor.u32 %v15054_v44, %v12685_v12  ;;  %v15082_v43 = vld [vmem:[#allocation4 + $0x30c] sm:$0xf] }
 0xb4f   :  { %7792 = vmatpush.bf16.msra.mxu0 %v13006_v2  ;;  %v15118_v39 = vld [vmem:[#allocation4 + $0x424] sm:$0xf0]  ;;  %7780 = vmatpush.bf16.msrb.mxu3 %v12718_v36  ;;  %v15018_v2 = vld [vmem:[#allocation4 + $0x10c] sm:$0xf] }
 0xb50   :  { %v13197_v34 = vld [vmem:[#allocation4 + $0x608] sm:$0xf]  ;;  %v12942_v14 = vor.u32 %v15118_v39, %v12941_v13  ;;  %v12815_v33 = vld [vmem:[#allocation4 + $0x328] sm:$0xf0]  ;;  %v12562_v53 = vor.u32 %v15018_v2, %v12559_v17  ;;  %v13173_v2 = vld [vmem:[#allocation4 + $0x5d0] sm:$0xf] }
 0xb51   :  { %7805 = vmatpush.bf16.msra.mxu1 %v13262_v27  ;;  %v15182_v1 = vld [vmem:[#allocation4 + $0x624] sm:$0xf0]  ;;  %7768 = vmatpush.bf16.msra.mxu2 %v12430_v37  ;;  %v15146_v7 = vld [vmem:[#allocation4 + $0x50c] sm:$0xf]  ;;  %v13362_v27 = vor.u32 %v15218_v25, %v13359_v60  ;;  %v12818_v23 = vor.u32 %v15082_v43, %v12815_v33  ;;  %v12661_v25 = vld [vmem:[#allocation4 + $0x1d0] sm:$0xf] }
 0xb52   :  { %v13198_v58 = vor.u32 %v15182_v1, %v13197_v34  ;;  %v13071_v18 = vld [vmem:[#allocation4 + $0x528] sm:$0xf0]  ;;  %v15047_v60 = vld [vmem:[#allocation4 + $0x1ec] sm:$0xf0] }
 0xb53   :  { %7793 = vmatpush.bf16.msra.mxu0 %v12974_v5  ;;  %7781 = vmatpush.bf16.msrb.mxu3 %v12686_v3  ;;  %v15210_v35 = vld [vmem:[#allocation4 + $0x70c] sm:$0xf]  ;;  %v13074_v36 = vor.u32 %v15146_v7, %v13071_v18 }
 0xb54   :  { %7769 = vmatmul.bf16.vlgmr.msra.gmra.mxu2 %v19369_v11  ;;  %v13327_v62 = vld [vmem:[#allocation4 + $0x728] sm:$0xf0] }
 0xb55   :  { %7806 = vmatpush.bf16.msra.mxu1 %v13230_v4  ;;  %7813 = vmatpush.bf16.msrb.mxu2 %v12658_v21  ;;  %v15010_v28 = vld [vmem:[#allocation4 + $0xcc] sm:$0xf]  ;;  %v13330_v56 = vor.u32 %v15210_v35, %v13327_v62  ;;  %v13429_v35 = vld [vmem:[#allocation4 + $0x7d0] sm:$0xf] }
 0xb56   :  { %7782 = vmatmul.bf16.vlgmr.msrb.gmra.mxu3 %v19367_v29  ;;  %v12527_v5 = vld [vmem:[#allocation4 + $0xe8] sm:$0xf0]  ;;  %v15239_v62 = vld [vmem:[#allocation4 + $0x7ec] sm:$0xf0] }
 0xb57   :  { %7794 = vmatpush.bf16.msra.mxu0 %v12942_v14  ;;  %7826 = vmatpush.bf16.msra.mxu3 %v12914_v8  ;;  %v15074_v12 = vld [vmem:[#allocation4 + $0x2cc] sm:$0xf]  ;;  %v12530_v41 = vor.u32 %v15010_v28, %v12527_v5  ;;  %v12629_v28 = vld [vmem:[#allocation4 + $0x190] sm:$0xf] }
 0xb58   :  { %v12783_v44 = vld [vmem:[#allocation4 + $0x2e8] sm:$0xf0]  ;;  %v12885_v5 = vld [vmem:[#allocation4 + $0x390] sm:$0xf] }
 0xb59   :  { %7807 = vmatpush.bf16.msra.mxu1 %v13198_v58  ;;  %7814 = vmatpush.bf16.msrb.mxu2 %v12626_v50  ;;  %v15138_v13 = vld [vmem:[#allocation4 + $0x4cc] sm:$0xf]  ;;  %v12786_v19 = vor.u32 %v15074_v12, %v12783_v44  ;;  %v15103_v44 = vld [vmem:[#allocation4 + $0x3ac] sm:$0xf0] }
 0xb5a   :  { %7795 = vmatmul.bf16.vlgmr.msra.gmra.mxu0 %v19373_v20  ;;  %v13039_v39 = vld [vmem:[#allocation4 + $0x4e8] sm:$0xf0] }
 0xb5b   :  { %7839 = vmatpush.bf16.msrb.mxu0 %v13170_v54  ;;  %7827 = vmatpush.bf16.msra.mxu3 %v12882_v22  ;;  %v15202_v31 = vld [vmem:[#allocation4 + $0x6cc] sm:$0xf]  ;;  %v13042_v37 = vor.u32 %v15138_v13, %v13039_v39  ;;  %v13141_v13 = vld [vmem:[#allocation4 + $0x590] sm:$0xf] }
 0xb5c   :  { %7808 = vmatmul.bf16.vlgmr.msra.gmra.mxu1 %v19371_v10  ;;  %v13295_v4 = vld [vmem:[#allocation4 + $0x6e8] sm:$0xf0]  ;;  %v15167_v39 = vld [vmem:[#allocation4 + $0x5ac] sm:$0xf0] }
 0xb5d   :  { %7852 = vmatpush.bf16.msrb.mxu1 %v13426_v46  ;;  %7815 = vmatpush.bf16.msrb.mxu2 %v12594_v45  ;;  %v15002_v47 = vld [vmem:[#allocation4 + $0x8c] sm:$0xf]  ;;  %v13298_v55 = vor.u32 %v15202_v31, %v13295_v4  ;;  %v12917_v45 = vld [vmem:[#allocation4 + $0x3d0] sm:$0xf] }
 0xb5e   :  { %v12495_v0 = vld [vmem:[#allocation4 + $0xa8] sm:$0xf0]  ;;  %v13397_v4 = vld [vmem:[#allocation4 + $0x790] sm:$0xf] }
 0xb5f   :  { %7840 = vmatpush.bf16.msrb.mxu0 %v13138_v15  ;;  %7828 = vmatpush.bf16.msra.mxu3 %v12850_v26  ;;  %v15066_v34 = vld [vmem:[#allocation4 + $0x28c] sm:$0xf]  ;;  %v12498_v8 = vor.u32 %v15002_v47, %v12495_v0  ;;  %v15111_v26 = vld [vmem:[#allocation4 + $0x3ec] sm:$0xf0]  ;;  %v13142_v47 = vor.u32 %v15167_v39, %v13141_v13 }
 0xb60   :  { %v12751_v1 = vld [vmem:[#allocation4 + $0x2a8] sm:$0xf0]  ;;  %v15031_v0 = vld [vmem:[#allocation4 + $0x16c] sm:$0xf0] }
 0xb61   :  { %7853 = vmatpush.bf16.msrb.mxu1 %v13394_v32  ;;  %7816 = vmatpush.bf16.msrb.mxu2 %v12562_v53  ;;  %v15130_v3 = vld [vmem:[#allocation4 + $0x48c] sm:$0xf]  ;;  %v12754_v6 = vor.u32 %v15066_v34, %v12751_v1  ;;  %v12918_v53 = vor.u32 %v15111_v26, %v12917_v45  ;;  %v12853_v34 = vld [vmem:[#allocation4 + $0x350] sm:$0xf] }
 0xb62   :  { %v13007_v14 = vld [vmem:[#allocation4 + $0x4a8] sm:$0xf0]  ;;  %v15095_v1 = vld [vmem:[#allocation4 + $0x36c] sm:$0xf0] }
 0xb63   :  { %7841 = vmatpush.bf16.msrb.mxu0 %v13106_v63  ;;  %7829 = vmatpush.bf16.msra.mxu3 %v12818_v23  ;;  %v15194_v38 = vld [vmem:[#allocation4 + $0x68c] sm:$0xf]  ;;  %v13010_v58 = vor.u32 %v15130_v3, %v13007_v14  ;;  %v15175_v63 = vld [vmem:[#allocation4 + $0x5ec] sm:$0xf0] }
 0xb64   :  { %v13263_v21 = vld [vmem:[#allocation4 + $0x6a8] sm:$0xf0]  ;;  %v13174_v23 = vor.u32 %v15175_v63, %v13173_v2  ;;  %v13109_v3 = vld [vmem:[#allocation4 + $0x550] sm:$0xf] }
 0xb65   :  { %7854 = vmatpush.bf16.msrb.mxu1 %v13362_v27  ;;  %7817 = vmatpush.bf16.msrb.mxu2 %v12530_v41  ;;  %v14994_v54 = vld [vmem:[#allocation4 + $0x4c] sm:$0xf]  ;;  %v13266_v46 = vor.u32 %v15194_v38, %v13263_v21  ;;  %v12662_v27 = vor.u32 %v15047_v60, %v12661_v25  ;;  %v15231_v41 = vld [vmem:[#allocation4 + $0x7ac] sm:$0xf0] }
 0xb66   :  { %v12463_v49 = vld [vmem:[#allocation4 + $0x68] sm:$0xf0]  ;;  %v15159_v14 = vld [vmem:[#allocation4 + $0x56c] sm:$0xf0] }
 0xb67   :  { %7842 = vmatpush.bf16.msrb.mxu0 %v13074_v36  ;;  %7830 = vmatpush.bf16.msra.mxu3 %v12786_v19  ;;  %v12719_v52 = vld [vmem:[#allocation4 + $0x268] sm:$0xf0]  ;;  %v12466_v50 = vor.u32 %v14994_v54, %v12463_v49  ;;  %v15039_v36 = vld [vmem:[#allocation4 + $0x1ac] sm:$0xf0]  ;;  %v12886_v19 = vor.u32 %v15103_v44, %v12885_v5  ;;  %v13110_v54 = vor.u32 %v15159_v14, %v13109_v3 }
 0xb68   :  { %v15122_v40 = vld [vmem:[#allocation4 + $0x44c] sm:$0xf]  ;;  %v12722_v22 = vor.u32 %v15058_v24, %v12719_v52  ;;  %v12630_v31 = vor.u32 %v15039_v36, %v12629_v28  ;;  %v13365_v21 = vld [vmem:[#allocation4 + $0x750] sm:$0xf] }
 0xb69   :  { %7855 = vmatpush.bf16.msrb.mxu1 %v13330_v56  ;;  %v12975_v48 = vld [vmem:[#allocation4 + $0x468] sm:$0xf0]  ;;  %7818 = vmatpush.bf16.msrb.mxu2 %v12498_v8  ;;  %v13430_v56 = vor.u32 %v15239_v62, %v13429_v35  ;;  %v15223_v8 = vld [vmem:[#allocation4 + $0x76c] sm:$0xf0] }
 0xb6a   :  { %v15186_v59 = vld [vmem:[#allocation4 + $0x64c] sm:$0xf]  ;;  %v12978_v51 = vor.u32 %v15122_v40, %v12975_v48  ;;  %v15023_v49 = vld [vmem:[#allocation4 + $0x12c] sm:$0xf0] }
 0xb6b   :  { %7843 = vmatpush.bf16.msrb.mxu0 %v13042_v37  ;;  %v13231_v57 = vld [vmem:[#allocation4 + $0x668] sm:$0xf0]  ;;  %7831 = vmatpush.bf16.msra.mxu3 %v12754_v6  ;;  %v12597_v37 = vld [vmem:[#allocation4 + $0x150] sm:$0xf]  ;;  %v12854_v6 = vor.u32 %v15095_v1, %v12853_v34 }
 0xb6c   :  { %v14986_v30 = vld [vmem:[#allocation4 + $0xc] sm:$0xf]  ;;  %v13234_v32 = vor.u32 %v15186_v59, %v13231_v57  ;;  %v12598_v38 = vor.u32 %v15031_v0, %v12597_v37  ;;  %v12821_v24 = vld [vmem:[#allocation4 + $0x310] sm:$0xf] }
 0xb6d   :  { %7856 = vmatpush.bf16.msrb.mxu1 %v13298_v55  ;;  %v12431_v15 = vld [vmem:[#allocation4 + $0x28] sm:$0xf0]  ;;  %7819 = vmatpush.bf16.msrb.mxu2 %v12466_v50  ;;  %v13398_v55 = vor.u32 %v15231_v41, %v13397_v4  ;;  %v15087_v52 = vld [vmem:[#allocation4 + $0x32c] sm:$0xf0] }
 0xb6e   :  { %v15050_v16 = vld [vmem:[#allocation4 + $0x20c] sm:$0xf]  ;;  %v12434_v17 = vor.u32 %v14986_v30, %v12431_v15  ;;  %v13077_v40 = vld [vmem:[#allocation4 + $0x510] sm:$0xf] }
 0xb6f   :  { %7844 = vmatpush.bf16.msrb.mxu0 %v13010_v58  ;;  %v12687_v42 = vld [vmem:[#allocation4 + $0x228] sm:$0xf0]  ;;  %7832 = vmatpush.bf16.msra.mxu3 %v12722_v22  ;;  %v12565_v58 = vld [vmem:[#allocation4 + $0x110] sm:$0xf]  ;;  %v12822_v22 = vor.u32 %v15087_v52, %v12821_v24 }
 0xb70   :  { %v15114_v9 = vld [vmem:[#allocation4 + $0x40c] sm:$0xf]  ;;  %v12690_v43 = vor.u32 %v15050_v16, %v12687_v42  ;;  %v15151_v48 = vld [vmem:[#allocation4 + $0x52c] sm:$0xf0]  ;;  %v12566_v59 = vor.u32 %v15023_v49, %v12565_v58  ;;  %v15171_v58 = vld [vmem:[#allocation4 + $0x5d4] sm:$0xf] }
 0xb71   :  { %v12943_v61 = vld [vmem:[#allocation4 + $0x428] sm:$0xf0]  ;;  %7857 = vmatpush.bf16.msrb.mxu1 %v13266_v46  ;;  %7820 = vmatpush.bf16.msrb.mxu2 %v12434_v17  ;;  %v13366_v46 = vor.u32 %v15223_v8, %v13365_v21  ;;  %v13333_v57 = vld [vmem:[#allocation4 + $0x710] sm:$0xf]  ;;  %v13078_v30 = vor.u32 %v15151_v48, %v13077_v40  ;;  %v12663_v21 = vld [vmem:[#allocation4 + $0x1f0] sm:$0xf0] }
 0xb72   :  { %v15178_v33 = vld [vmem:[#allocation4 + $0x60c] sm:$0xf]  ;;  %v12946_v18 = vor.u32 %v15114_v9, %v12943_v61  ;;  %v15215_v50 = vld [vmem:[#allocation4 + $0x72c] sm:$0xf0]  ;;  %v15107_v8 = vld [vmem:[#allocation4 + $0x3d4] sm:$0xf] }
 0xb73   :  { %v13199_v7 = vld [vmem:[#allocation4 + $0x628] sm:$0xf0]  ;;  %7845 = vmatpush.bf16.msrb.mxu0 %v12978_v51  ;;  %7833 = vmatpush.bf16.msra.mxu3 %v12690_v43  ;;  %v12533_v15 = vld [vmem:[#allocation4 + $0xd0] sm:$0xf]  ;;  %v13175_v49 = vld [vmem:[#allocation4 + $0x5f0] sm:$0xf0] }
 0xb74   :  { %v13202_v12 = vor.u32 %v15178_v33, %v13199_v7  ;;  %7821 = vmatmul.bf16.vlgmr.msrb.gmra.mxu2 %v19369_v11  ;;  %v15015_v16 = vld [vmem:[#allocation4 + $0xec] sm:$0xf0] }
 0xb75   :  { %7858 = vmatpush.bf16.msrb.mxu1 %v13234_v32  ;;  %7865 = vmatpush.bf16.msra.mxu2 %v12662_v27  ;;  %v12789_v51 = vld [vmem:[#allocation4 + $0x2d0] sm:$0xf]  ;;  %v13334_v32 = vor.u32 %v15215_v50, %v13333_v57  ;;  %v12534_v25 = vor.u32 %v15015_v16, %v12533_v15  ;;  %v15035_v57 = vld [vmem:[#allocation4 + $0x194] sm:$0xf] }
 0xb76   :  { %7834 = vmatmul.bf16.vlgmr.msra.gmra.mxu3 %v19367_v29  ;;  %v15079_v42 = vld [vmem:[#allocation4 + $0x2ec] sm:$0xf0]  ;;  %v15235_v50 = vld [vmem:[#allocation4 + $0x7d4] sm:$0xf] }
 0xb77   :  { %7846 = vmatpush.bf16.msrb.mxu0 %v12946_v18  ;;  %7878 = vmatpush.bf16.msrb.mxu3 %v12918_v53  ;;  %v13045_v9 = vld [vmem:[#allocation4 + $0x4d0] sm:$0xf]  ;;  %v12790_v26 = vor.u32 %v15079_v42, %v12789_v51  ;;  %v12631_v15 = vld [vmem:[#allocation4 + $0x1b0] sm:$0xf0] }
 0xb78   :  { %v15143_v61 = vld [vmem:[#allocation4 + $0x4ec] sm:$0xf0]  ;;  %v15099_v16 = vld [vmem:[#allocation4 + $0x394] sm:$0xf] }
 0xb79   :  { %7859 = vmatpush.bf16.msrb.mxu1 %v13202_v12  ;;  %7866 = vmatpush.bf16.msra.mxu2 %v12630_v31  ;;  %v13301_v60 = vld [vmem:[#allocation4 + $0x6d0] sm:$0xf]  ;;  %v13046_v2 = vor.u32 %v15143_v61, %v13045_v9  ;;  %v12887_v51 = vld [vmem:[#allocation4 + $0x3b0] sm:$0xf0] }
 0xb7a   :  { %7847 = vmatmul.bf16.vlgmr.msrb.gmra.mxu0 %v19373_v20  ;;  %v15207_v45 = vld [vmem:[#allocation4 + $0x6ec] sm:$0xf0]  ;;  %v15163_v9 = vld [vmem:[#allocation4 + $0x594] sm:$0xf] }
 0xb7b   :  { %7891 = vmatpush.bf16.msra.mxu0 %v13174_v23  ;;  %7879 = vmatpush.bf16.msrb.mxu3 %v12886_v19  ;;  %v12501_v63 = vld [vmem:[#allocation4 + $0x90] sm:$0xf]  ;;  %v13302_v27 = vor.u32 %v15207_v45, %v13301_v60  ;;  %v13143_v61 = vld [vmem:[#allocation4 + $0x5b0] sm:$0xf0]  ;;  %v12890_v60 = vor.u32 %v15099_v16, %v12887_v51 }
 0xb7c   :  { %7860 = vmatmul.bf16.vlgmr.msrb.gmra.mxu1 %v19371_v10  ;;  %v15007_v17 = vld [vmem:[#allocation4 + $0xac] sm:$0xf0]  ;;  %v15027_v45 = vld [vmem:[#allocation4 + $0x154] sm:$0xf] }
 0xb7d   :  { %7904 = vmatpush.bf16.msra.mxu1 %v13430_v56  ;;  %7867 = vmatpush.bf16.msra.mxu2 %v12598_v38  ;;  %v12757_v43 = vld [vmem:[#allocation4 + $0x290] sm:$0xf]  ;;  %v12502_v35 = vor.u32 %v15007_v17, %v12501_v63  ;;  %v13146_v63 = vor.u32 %v15163_v9, %v13143_v61  ;;  %v12599_v17 = vld [vmem:[#allocation4 + $0x170] sm:$0xf0] }
 0xb7e   :  { %v15071_v33 = vld [vmem:[#allocation4 + $0x2ac] sm:$0xf0]  ;;  %v14995_v9 = vld [vmem:[#allocation4 + $0x54] sm:$0xf] }
 0xb7f   :  { %7892 = vmatpush.bf16.msra.mxu0 %v13142_v47  ;;  %7880 = vmatpush.bf16.msrb.mxu3 %v12854_v6  ;;  %v13013_v7 = vld [vmem:[#allocation4 + $0x490] sm:$0xf]  ;;  %v12758_v23 = vor.u32 %v15071_v33, %v12757_v43  ;;  %v12919_v6 = vld [vmem:[#allocation4 + $0x3f0] sm:$0xf0] }
 0xb80   :  { %v15135_v18 = vld [vmem:[#allocation4 + $0x4ac] sm:$0xf0]  ;;  %v15091_v43 = vld [vmem:[#allocation4 + $0x354] sm:$0xf] }
 0xb81   :  { %7905 = vmatpush.bf16.msra.mxu1 %v13398_v55  ;;  %7868 = vmatpush.bf16.msra.mxu2 %v12566_v59  ;;  %v13269_v62 = vld [vmem:[#allocation4 + $0x690] sm:$0xf]  ;;  %v13014_v28 = vor.u32 %v15135_v18, %v13013_v7  ;;  %v15043_v55 = vld [vmem:[#allocation4 + $0x1d4] sm:$0xf]  ;;  %v12922_v59 = vor.u32 %v15107_v8, %v12919_v6 }
 0xb82   :  { %v15199_v53 = vld [vmem:[#allocation4 + $0x6ac] sm:$0xf0]  ;;  %v12855_v33 = vld [vmem:[#allocation4 + $0x370] sm:$0xf0] }
 0xb83   :  { %7893 = vmatpush.bf16.msra.mxu0 %v13110_v54  ;;  %7881 = vmatpush.bf16.msrb.mxu3 %v12822_v22  ;;  %v12469_v36 = vld [vmem:[#allocation4 + $0x50] sm:$0xf]  ;;  %v13270_v56 = vor.u32 %v15199_v53, %v13269_v62  ;;  %v13431_v22 = vld [vmem:[#allocation4 + $0x7f0] sm:$0xf0]  ;;  %v12858_v62 = vor.u32 %v15091_v43, %v12855_v33 }
 0xb84   :  { %v14999_v5 = vld [vmem:[#allocation4 + $0x6c] sm:$0xf0]  ;;  %v15155_v7 = vld [vmem:[#allocation4 + $0x554] sm:$0xf] }
 0xb85   :  { %7906 = vmatpush.bf16.msra.mxu1 %v13366_v46  ;;  %7869 = vmatpush.bf16.msra.mxu2 %v12534_v25  ;;  %v12725_v12 = vld [vmem:[#allocation4 + $0x250] sm:$0xf]  ;;  %v12470_v31 = vor.u32 %v14999_v5, %v12469_v36  ;;  %v12666_v46 = vor.u32 %v15043_v55, %v12663_v21  ;;  %v12634_v25 = vor.u32 %v15035_v57, %v12631_v15  ;;  %v13111_v18 = vld [vmem:[#allocation4 + $0x570] sm:$0xf0] }
 0xb86   :  { %v15063_v44 = vld [vmem:[#allocation4 + $0x26c] sm:$0xf0]  ;;  %v15019_v53 = vld [vmem:[#allocation4 + $0x114] sm:$0xf]  ;;  %v13114_v36 = vor.u32 %v15155_v7, %v13111_v18 }
 0xb87   :  { %7894 = vmatpush.bf16.msra.mxu0 %v13078_v30  ;;  %7882 = vmatpush.bf16.msrb.mxu3 %v12790_v26  ;;  %v12981_v13 = vld [vmem:[#allocation4 + $0x450] sm:$0xf]  ;;  %v12726_v47 = vor.u32 %v15063_v44, %v12725_v12  ;;  %v13178_v30 = vor.u32 %v15171_v58, %v13175_v49  ;;  %v15227_v26 = vld [vmem:[#allocation4 + $0x794] sm:$0xf] }
 0xb88   :  { %v15127_v39 = vld [vmem:[#allocation4 + $0x46c] sm:$0xf0]  ;;  %v12567_v5 = vld [vmem:[#allocation4 + $0x130] sm:$0xf0] }
 0xb89   :  { %7907 = vmatpush.bf16.msra.mxu1 %v13334_v32  ;;  %7870 = vmatpush.bf16.msra.mxu2 %v12502_v35  ;;  %v12437_v4 = vld [vmem:[#allocation4 + $0x10] sm:$0xf]  ;;  %v12982_v37 = vor.u32 %v15127_v39, %v12981_v13  ;;  %v13434_v32 = vor.u32 %v15235_v50, %v13431_v22  ;;  %v12602_v35 = vor.u32 %v15027_v45, %v12599_v17  ;;  %v15083_v12 = vld [vmem:[#allocation4 + $0x314] sm:$0xf] }
 0xb8a   :  { %v13237_v41 = vld [vmem:[#allocation4 + $0x650] sm:$0xf]  ;;  %v12823_v44 = vld [vmem:[#allocation4 + $0x330] sm:$0xf0] }
 0xb8b   :  { %7895 = vmatpush.bf16.msra.mxu0 %v13046_v2  ;;  %v15191_v19 = vld [vmem:[#allocation4 + $0x66c] sm:$0xf0]  ;;  %7883 = vmatpush.bf16.msrb.mxu3 %v12758_v23  ;;  %v13399_v2 = vld [vmem:[#allocation4 + $0x7b0] sm:$0xf0] }
 0xb8c   :  { %v14991_v0 = vld [vmem:[#allocation4 + $0x2c] sm:$0xf0]  ;;  %v13238_v38 = vor.u32 %v15191_v19, %v13237_v41  ;;  %v15219_v23 = vld [vmem:[#allocation4 + $0x754] sm:$0xf]  ;;  %v12826_v41 = vor.u32 %v15083_v12, %v12823_v44 }
 0xb8d   :  { %7908 = vmatpush.bf16.msra.mxu1 %v13302_v27  ;;  %v12693_v34 = vld [vmem:[#allocation4 + $0x210] sm:$0xf]  ;;  %7871 = vmatpush.bf16.msra.mxu2 %v12470_v31  ;;  %v12438_v54 = vor.u32 %v14991_v0, %v12437_v4  ;;  %v13402_v27 = vor.u32 %v15227_v26, %v13399_v2  ;;  %v15147_v13 = vld [vmem:[#allocation4 + $0x514] sm:$0xf]  ;;  %v12570_v4 = vor.u32 %v15019_v53, %v12567_v5 }
 0xb8e   :  { %v15055_v1 = vld [vmem:[#allocation4 + $0x22c] sm:$0xf0]  ;;  %v13079_v39 = vld [vmem:[#allocation4 + $0x530] sm:$0xf0] }
 0xb8f   :  { %7896 = vmatpush.bf16.msra.mxu0 %v13014_v28  ;;  %v12949_v3 = vld [vmem:[#allocation4 + $0x410] sm:$0xf]  ;;  %7884 = vmatpush.bf16.msrb.mxu3 %v12726_v47  ;;  %v12694_v24 = vor.u32 %v15055_v1, %v12693_v34  ;;  %v13367_v28 = vld [vmem:[#allocation4 + $0x770] sm:$0xf0]  ;;  %v13082_v0 = vor.u32 %v15147_v13, %v13079_v39 }
 0xb90   :  { %v15119_v14 = vld [vmem:[#allocation4 + $0x42c] sm:$0xf0]  ;;  %v15011_v31 = vld [vmem:[#allocation4 + $0xd4] sm:$0xf] }
 0xb91   :  { %7909 = vmatpush.bf16.msra.mxu1 %v13270_v56  ;;  %v12950_v52 = vor.u32 %v15119_v14, %v12949_v3  ;;  %v13205_v40 = vld [vmem:[#allocation4 + $0x610] sm:$0xf]  ;;  %7872 = vmatpush.bf16.msra.mxu2 %v12438_v54  ;;  %v13370_v56 = vor.u32 %v15219_v23, %v13367_v28  ;;  %v15211_v19 = vld [vmem:[#allocation4 + $0x714] sm:$0xf] }
 0xb92   :  { %v15183_v48 = vld [vmem:[#allocation4 + $0x62c] sm:$0xf0]  ;;  %v13335_v47 = vld [vmem:[#allocation4 + $0x730] sm:$0xf0] }
 0xb93   :  { %7897 = vmatpush.bf16.msra.mxu0 %v12982_v37  ;;  %v13206_v42 = vor.u32 %v15183_v48, %v13205_v40  ;;  %7885 = vmatpush.bf16.msrb.mxu3 %v12694_v24  ;;  %v19398_v37 = vld [vmem:[%s20409_s13] sm:$0xff]  ;;  %v12535_v34 = vld [vmem:[#allocation4 + $0xf0] sm:$0xf0]  ;;  %v13338_v21 = vor.u32 %v15211_v19, %v13335_v47  ;;  %v15112_v47 = vld [vmem:[#allocation4 + $0x3f4] sm:$0xf0] }
 0xb94   :  { %7873 = vmatmul.bf16.vlgmr.msra.gmra.mxu2 %v19369_v11  ;;  %v15075_v1 = vld [vmem:[#allocation4 + $0x2d4] sm:$0xf]  ;;  %v6361_v8 = vperm.slane %v19398_v37, 0  ;;  %v12538_v6 = vor.u32 %v15011_v31, %v12535_v34  ;;  %v15048_v31 = vld [vmem:[#allocation4 + $0x1f4] sm:$0xf0] }
 0xb95   :  { %7910 = vmatpush.bf16.msra.mxu1 %v13238_v38  ;;  %7917 = vmatpush.bf16.msrb.mxu2 %v12666_v46  ;;  %v12791_v3 = vld [vmem:[#allocation4 + $0x2f0] sm:$0xf0]  ;;  %v15176_v34 = vld [vmem:[#allocation4 + $0x5f4] sm:$0xf0] }
 0xb96   :  { %7886 = vmatmul.bf16.vlgmr.msrb.gmra.mxu3 %v19367_v29  ;;  %v15139_v14 = vld [vmem:[#allocation4 + $0x4d4] sm:$0xf]  ;;  %v12794_v54 = vor.u32 %v15075_v1, %v12791_v3 }
 0xb97   :  { %7898 = vmatpush.bf16.msra.mxu0 %v12950_v52  ;;  %7930 = vmatpush.bf16.msra.mxu3 %v12922_v59  ;;  %v13047_v55 = vld [vmem:[#allocation4 + $0x4f0] sm:$0xf0]  ;;  %v7692_v38 = vpop.f32.mrf.mxu0  ;;  %v7666_v22 = vpop.f32.mrf.mxu2 }
 0xb98   :  { %v15003_v58 = vld [vmem:[#allocation4 + $0x94] sm:$0xf]  ;;  %v13050_v40 = vor.u32 %v15139_v14, %v13047_v55  ;;  %v7667_v15 = vadd.f32 %v7666_v22, %v6361_v8 }
 0xb99   :  { %7911 = vmatpush.bf16.msra.mxu1 %v13206_v42  ;;  %7918 = vmatpush.bf16.msrb.mxu2 %v12634_v25  ;;  %v15203_v49 = vld [vmem:[#allocation4 + $0x6d4] sm:$0xf]  ;;  %v7705_v52 = vpop.f32.mrf.mxu1  ;;  %v7679_v16 = vpop.f32.mrf.mxu3 }
 0xb9a   :  { %7899 = vmatmul.bf16.vlgmr.msra.gmra.mxu0 %v19373_v20  ;;  %v13303_v24 = vld [vmem:[#allocation4 + $0x6f0] sm:$0xf0]  ;;  %v7680_v2 = vadd.f32 %v7679_v16, %v7667_v15  ;;  %v15232_v15 = vld [vmem:[#allocation4 + $0x7b4] sm:$0xf0] }
 0xb9b   :  { %7943 = vmatpush.bf16.msrb.mxu0 %v13178_v30  ;;  %7931 = vmatpush.bf16.msra.mxu3 %v12890_v60  ;;  %v12503_v48 = vld [vmem:[#allocation4 + $0xb0] sm:$0xf0]  ;;  %v13306_v30 = vor.u32 %v15203_v49, %v13303_v24  ;;  %v12637_v24 = vld [vmem:[#allocation4 + $0x198] sm:$0xf] }
 0xb9c   :  { %7912 = vmatmul.bf16.vlgmr.msra.gmra.mxu1 %v19371_v10  ;;  %v15067_v46 = vld [vmem:[#allocation4 + $0x294] sm:$0xf]  ;;  %v12506_v51 = vor.u32 %v15003_v58, %v12503_v48 }
 0xb9d   :  { %7956 = vmatpush.bf16.msrb.mxu1 %v13434_v32  ;;  %7919 = vmatpush.bf16.msrb.mxu2 %v12602_v35  ;;  %v12759_v59 = vld [vmem:[#allocation4 + $0x2b0] sm:$0xf0] }
 0xb9e   :  { %v15131_v57 = vld [vmem:[#allocation4 + $0x494] sm:$0xf]  ;;  %v12762_v42 = vor.u32 %v15067_v46, %v12759_v59  ;;  %v15104_v46 = vld [vmem:[#allocation4 + $0x3b4] sm:$0xf0] }
 0xb9f   :  { %7944 = vmatpush.bf16.msrb.mxu0 %v13146_v63  ;;  %7932 = vmatpush.bf16.msra.mxu3 %v12858_v62  ;;  %v13015_v50 = vld [vmem:[#allocation4 + $0x4b0] sm:$0xf0]  ;;  %v7694_v43 = vpop.f32.mrf.mxu0  ;;  %v13149_v59 = vld [vmem:[#allocation4 + $0x598] sm:$0xf] }
 0xba0   :  { %v15195_v61 = vld [vmem:[#allocation4 + $0x694] sm:$0xf]  ;;  %v13018_v25 = vor.u32 %v15131_v57, %v13015_v50  ;;  %v15168_v57 = vld [vmem:[#allocation4 + $0x5b4] sm:$0xf0] }
 0xba1   :  { %7957 = vmatpush.bf16.msrb.mxu1 %v13402_v27  ;;  %7920 = vmatpush.bf16.msrb.mxu2 %v12570_v4  ;;  %v13271_v32 = vld [vmem:[#allocation4 + $0x6b0] sm:$0xf0]  ;;  %v7693_v27 = vadd.f32 %v7692_v38, %v7680_v2  ;;  %v12925_v4 = vld [vmem:[#allocation4 + $0x3d8] sm:$0xf]  ;;  %v7681_v1 = vpop.f32.mrf.mxu3 }
 0xba2   :  { %v12471_v60 = vld [vmem:[#allocation4 + $0x70] sm:$0xf0]  ;;  %v13274_v33 = vor.u32 %v15195_v61, %v13271_v32  ;;  %v12926_v58 = vor.u32 %v15112_v47, %v12925_v4  ;;  %v12861_v61 = vld [vmem:[#allocation4 + $0x358] sm:$0xf] }
 0xba3   :  { %7945 = vmatpush.bf16.msrb.mxu0 %v13114_v36  ;;  %7933 = vmatpush.bf16.msra.mxu3 %v12826_v41  ;;  %v15059_v45 = vld [vmem:[#allocation4 + $0x254] sm:$0xf]  ;;  %v12474_v35 = vor.u32 %v14995_v9, %v12471_v60  ;;  %v7707_v36 = vpop.f32.mrf.mxu1  ;;  %v19401_v39 = vadd.f32 %v7705_v52, %v7693_v27  ;;  %v7668_v41 = vpop.f32.mrf.mxu2  ;;  %v15040_v52 = vld [vmem:[#allocation4 + $0x1b4] sm:$0xf0] }
 0xba4   :  { %v12727_v26 = vld [vmem:[#allocation4 + $0x270] sm:$0xf0]  ;;  %v12638_v22 = vor.u32 %v15040_v52, %v12637_v24  ;;  %v15032_v9 = vld [vmem:[#allocation4 + $0x174] sm:$0xf0] }
 0xba5   :  { %7958 = vmatpush.bf16.msrb.mxu1 %v13370_v56  ;;  %7921 = vmatpush.bf16.msrb.mxu2 %v12538_v6  ;;  %v15123_v63 = vld [vmem:[#allocation4 + $0x454] sm:$0xf]  ;;  %v12730_v62 = vor.u32 %v15059_v45, %v12727_v26  ;;  %v12669_v56 = vld [vmem:[#allocation4 + $0x1d8] sm:$0xf] }
 0xba6   :  { %v12983_v17 = vld [vmem:[#allocation4 + $0x470] sm:$0xf0]  ;;  %v12670_v8 = vor.u32 %v15048_v31, %v12669_v56  ;;  %v13437_v6 = vld [vmem:[#allocation4 + $0x7d8] sm:$0xf] }
 0xba7   :  { %7946 = vmatpush.bf16.msrb.mxu0 %v13082_v0  ;;  %7934 = vmatpush.bf16.msra.mxu3 %v12794_v54  ;;  %v14987_v7 = vld [vmem:[#allocation4 + $0x14] sm:$0xf]  ;;  %v12986_v5 = vor.u32 %v15123_v63, %v12983_v17  ;;  %v13181_v0 = vld [vmem:[#allocation4 + $0x5d8] sm:$0xf] }
 0xba8   :  { %v12439_v18 = vld [vmem:[#allocation4 + $0x30] sm:$0xf0]  ;;  %v15240_v54 = vld [vmem:[#allocation4 + $0x7f4] sm:$0xf0]  ;;  %v13182_v49 = vor.u32 %v15176_v34, %v13181_v0 }
 0xba9   :  { %7959 = vmatpush.bf16.msrb.mxu1 %v13338_v21  ;;  %7922 = vmatpush.bf16.msrb.mxu2 %v12506_v51  ;;  %v15051_v53 = vld [vmem:[#allocation4 + $0x214] sm:$0xf]  ;;  %v12442_v3 = vor.u32 %v14987_v7, %v12439_v18  ;;  %v13438_v50 = vor.u32 %v15240_v54, %v13437_v6  ;;  %v13150_v51 = vor.u32 %v15168_v57, %v13149_v59  ;;  %v15096_v32 = vld [vmem:[#allocation4 + $0x374] sm:$0xf0] }
 0xbaa   :  { %v15187_v23 = vld [vmem:[#allocation4 + $0x654] sm:$0xf]  ;;  %v15160_v60 = vld [vmem:[#allocation4 + $0x574] sm:$0xf0]  ;;  %v12862_v17 = vor.u32 %v15096_v32, %v12861_v61 }
 0xbab   :  { %7947 = vmatpush.bf16.msrb.mxu0 %v13050_v40  ;;  %7935 = vmatpush.bf16.msra.mxu3 %v12762_v42  ;;  %v13239_v28 = vld [vmem:[#allocation4 + $0x670] sm:$0xf0]  ;;  %v12893_v40 = vld [vmem:[#allocation4 + $0x398] sm:$0xf] }
 0xbac   :  { %v12695_v12 = vld [vmem:[#allocation4 + $0x230] sm:$0xf0]  ;;  %v13242_v19 = vor.u32 %v15187_v23, %v13239_v28  ;;  %v12894_v16 = vor.u32 %v15104_v46, %v12893_v40  ;;  %v12605_v42 = vld [vmem:[#allocation4 + $0x158] sm:$0xf] }
 0xbad   :  { %7960 = vmatpush.bf16.msrb.mxu1 %v13306_v30  ;;  %v15115_v44 = vld [vmem:[#allocation4 + $0x414] sm:$0xf]  ;;  %7923 = vmatpush.bf16.msrb.mxu2 %v12474_v35  ;;  %v12698_v14 = vor.u32 %v15051_v53, %v12695_v12  ;;  %v13405_v30 = vld [vmem:[#allocation4 + $0x798] sm:$0xf]  ;;  %v12606_v26 = vor.u32 %v15032_v9, %v12605_v42 }
 0xbae   :  { %v12951_v13 = vld [vmem:[#allocation4 + $0x430] sm:$0xf0]  ;;  %v13406_v45 = vor.u32 %v15232_v15, %v13405_v30  ;;  %v13373_v2 = vld [vmem:[#allocation4 + $0x758] sm:$0xf] }
 0xbaf   :  { %7948 = vmatpush.bf16.msrb.mxu0 %v13018_v25  ;;  %7936 = vmatpush.bf16.msra.mxu3 %v12730_v62  ;;  %v15179_v55 = vld [vmem:[#allocation4 + $0x614] sm:$0xf]  ;;  %v12954_v21 = vor.u32 %v15115_v44, %v12951_v13  ;;  %v13117_v25 = vld [vmem:[#allocation4 + $0x558] sm:$0xf] }
 0xbb0   :  { %v13207_v38 = vld [vmem:[#allocation4 + $0x630] sm:$0xf0]  ;;  %v15224_v63 = vld [vmem:[#allocation4 + $0x774] sm:$0xf0]  ;;  %v13118_v43 = vor.u32 %v15160_v60, %v13117_v25 }
 0xbb1   :  { %7961 = vmatpush.bf16.msrb.mxu1 %v13274_v33  ;;  %v13210_v48 = vor.u32 %v15179_v55, %v13207_v38  ;;  %7924 = vmatpush.bf16.msrb.mxu2 %v12442_v3  ;;  %v12573_v33 = vld [vmem:[#allocation4 + $0x118] sm:$0xf]  ;;  %v13374_v53 = vor.u32 %v15224_v63, %v13373_v2  ;;  %v6362_v3 = vperm.slane %v19398_v37, 1 }
 0xbb2   :  { %v15024_v7 = vld [vmem:[#allocation4 + $0x134] sm:$0xf0] }
 0xbb3   :  { %7949 = vmatpush.bf16.msrb.mxu0 %v12986_v5  ;;  %7937 = vmatpush.bf16.msra.mxu3 %v12698_v14  ;;  %v12829_v18 = vld [vmem:[#allocation4 + $0x318] sm:$0xf]  ;;  %v12574_v23 = vor.u32 %v15024_v7, %v12573_v33 }
 0xbb4   :  { %7925 = vmatmul.bf16.vlgmr.msrb.gmra.mxu2 %v19369_v11  ;;  %v15088_v27 = vld [vmem:[#allocation4 + $0x334] sm:$0xf0] }
 0xbb5   :  { %7962 = vmatpush.bf16.msrb.mxu1 %v13242_v19  ;;  %7969 = vmatpush.bf16.msra.mxu2 %v12670_v8  ;;  %v13085_v35 = vld [vmem:[#allocation4 + $0x518] sm:$0xf]  ;;  %v12830_v5 = vor.u32 %v15088_v27, %v12829_v18 }
 0xbb6   :  { %7938 = vmatmul.bf16.vlgmr.msra.gmra.mxu3 %v19367_v29  ;;  %v15152_v62 = vld [vmem:[#allocation4 + $0x534] sm:$0xf0] }
 0xbb7   :  { %7950 = vmatpush.bf16.msrb.mxu0 %v12954_v21  ;;  %7982 = vmatpush.bf16.msrb.mxu3 %v12926_v58  ;;  %v13341_v28 = vld [vmem:[#allocation4 + $0x718] sm:$0xf]  ;;  %v13086_v12 = vor.u32 %v15152_v62, %v13085_v35  ;;  %v7744_v47 = vpop.f32.mrf.mxu0  ;;  %v7718_v52 = vpop.f32.mrf.mxu2 }
 0xbb8   :  { %v15216_v36 = vld [vmem:[#allocation4 + $0x734] sm:$0xf0]  ;;  %v7719_v59 = vadd.f32 %v7718_v52, %v6362_v3  ;;  %v15036_v3 = vld [vmem:[#allocation4 + $0x19c] sm:$0xf] }
 0xbb9   :  { %7963 = vmatpush.bf16.msrb.mxu1 %v13210_v48  ;;  %7970 = vmatpush.bf16.msra.mxu2 %v12638_v22  ;;  %v12541_v44 = vld [vmem:[#allocation4 + $0xd8] sm:$0xf]  ;;  %v13342_v19 = vor.u32 %v15216_v36, %v13341_v28  ;;  %v7757_v6 = vpop.f32.mrf.mxu1  ;;  %v7731_v57 = vpop.f32.mrf.mxu3  ;;  %v12671_v36 = vld [vmem:[#allocation4 + $0x1f8] sm:$0xf0] }
 0xbba   :  { %7951 = vmatmul.bf16.vlgmr.msrb.gmra.mxu0 %v19373_v20  ;;  %v15016_v13 = vld [vmem:[#allocation4 + $0xf4] sm:$0xf0]  ;;  %v7732_v61 = vadd.f32 %v7731_v57, %v7719_v59  ;;  %v13407_v59 = vld [vmem:[#allocation4 + $0x7b8] sm:$0xf0] }
 0xbbb   :  { %7995 = vmatpush.bf16.msra.mxu0 %v13182_v49  ;;  %7983 = vmatpush.bf16.msrb.mxu3 %v12894_v16  ;;  %v12797_v56 = vld [vmem:[#allocation4 + $0x2d8] sm:$0xf]  ;;  %v12542_v0 = vor.u32 %v15016_v13, %v12541_v44 }
 0xbbc   :  { %7964 = vmatmul.bf16.vlgmr.msrb.gmra.mxu1 %v19371_v10  ;;  %v15080_v31 = vld [vmem:[#allocation4 + $0x2f4] sm:$0xf0]  ;;  %v7745_v63 = vadd.f32 %v7744_v47, %v7732_v61  ;;  %v15020_v61 = vld [vmem:[#allocation4 + $0x11c] sm:$0xf] }
 0xbbd   :  { %8008 = vmatpush.bf16.msra.mxu1 %v13438_v50  ;;  %7971 = vmatpush.bf16.msra.mxu2 %v12606_v26  ;;  %v13053_v4 = vld [vmem:[#allocation4 + $0x4d8] sm:$0xf]  ;;  %v12798_v14 = vor.u32 %v15080_v31, %v12797_v56  ;;  %v15172_v56 = vld [vmem:[#allocation4 + $0x5dc] sm:$0xf] }
 0xbbe   :  { %v15144_v41 = vld [vmem:[#allocation4 + $0x4f4] sm:$0xf0]  ;;  %v13183_v31 = vld [vmem:[#allocation4 + $0x5f8] sm:$0xf0] }
 0xbbf   :  { %7996 = vmatpush.bf16.msra.mxu0 %v13150_v51  ;;  %7984 = vmatpush.bf16.msrb.mxu3 %v12862_v17  ;;  %v13309_v34 = vld [vmem:[#allocation4 + $0x6d8] sm:$0xf]  ;;  %v13054_v55 = vor.u32 %v15144_v41, %v13053_v4  ;;  %v7746_v25 = vpop.f32.mrf.mxu0  ;;  %v7720_v44 = vpop.f32.mrf.mxu2 }
 0xbc0   :  { %v15208_v1 = vld [vmem:[#allocation4 + $0x6f4] sm:$0xf0]  ;;  %v13375_v25 = vld [vmem:[#allocation4 + $0x778] sm:$0xf0] }
 0xbc1   :  { %8009 = vmatpush.bf16.msra.mxu1 %v13406_v45  ;;  %7972 = vmatpush.bf16.msra.mxu2 %v12574_v23  ;;  %v12509_v38 = vld [vmem:[#allocation4 + $0x98] sm:$0xf]  ;;  %v13310_v24 = vor.u32 %v15208_v1, %v13309_v34  ;;  %v7759_v27 = vpop.f32.mrf.mxu1  ;;  %v19408_v23 = vadd.f32 %v7757_v6, %v7745_v63  ;;  %v7733_v4 = vpop.f32.mrf.mxu3  ;;  %v12895_v6 = vld [vmem:[#allocation4 + $0x3b8] sm:$0xf0] }
 0xbc2   :  { %v15008_v21 = vld [vmem:[#allocation4 + $0xb4] sm:$0xf0]  ;;  %v15148_v63 = vld [vmem:[#allocation4 + $0x51c] sm:$0xf] }
 0xbc3   :  { %7997 = vmatpush.bf16.msra.mxu0 %v13118_v43  ;;  %7985 = vmatpush.bf16.msrb.mxu3 %v12830_v5  ;;  %v12765_v8 = vld [vmem:[#allocation4 + $0x298] sm:$0xf]  ;;  %v12510_v40 = vor.u32 %v15008_v21, %v12509_v38  ;;  %v15108_v5 = vld [vmem:[#allocation4 + $0x3dc] sm:$0xf]  ;;  %v13186_v38 = vor.u32 %v15172_v56, %v13183_v31 }
 0xbc4   :  { %v15072_v54 = vld [vmem:[#allocation4 + $0x2b4] sm:$0xf0]  ;;  %v12639_v21 = vld [vmem:[#allocation4 + $0x1b8] sm:$0xf0] }
 0xbc5   :  { %8010 = vmatpush.bf16.msra.mxu1 %v13374_v53  ;;  %v13021_v58 = vld [vmem:[#allocation4 + $0x498] sm:$0xf]  ;;  %7973 = vmatpush.bf16.msra.mxu2 %v12542_v0  ;;  %v12766_v50 = vor.u32 %v15072_v54, %v12765_v8  ;;  %v15044_v53 = vld [vmem:[#allocation4 + $0x1dc] sm:$0xf]  ;;  %v12642_v52 = vor.u32 %v15036_v3, %v12639_v21 }
 0xbc6   :  { %v15136_v49 = vld [vmem:[#allocation4 + $0x4b4] sm:$0xf0]  ;;  %v12674_v34 = vor.u32 %v15044_v53, %v12671_v36  ;;  %v15100_v8 = vld [vmem:[#allocation4 + $0x39c] sm:$0xf] }
 0xbc7   :  { %7998 = vmatpush.bf16.msra.mxu0 %v13086_v12  ;;  %v13277_v48 = vld [vmem:[#allocation4 + $0x698] sm:$0xf]  ;;  %7986 = vmatpush.bf16.msrb.mxu3 %v12798_v14  ;;  %v13022_v22 = vor.u32 %v15136_v49, %v13021_v58  ;;  %v12927_v12 = vld [vmem:[#allocation4 + $0x3f8] sm:$0xf0] }
 0xbc8   :  { %v15200_v46 = vld [vmem:[#allocation4 + $0x6b4] sm:$0xf0]  ;;  %v12930_v1 = vor.u32 %v15108_v5, %v12927_v12  ;;  %v15236_v14 = vld [vmem:[#allocation4 + $0x7dc] sm:$0xf] }
 0xbc9   :  { %8011 = vmatpush.bf16.msra.mxu1 %v13342_v19  ;;  %v12477_v30 = vld [vmem:[#allocation4 + $0x58] sm:$0xf]  ;;  %v13278_v32 = vor.u32 %v15200_v46, %v13277_v48  ;;  %7974 = vmatpush.bf16.msra.mxu2 %v12510_v40  ;;  %v15164_v58 = vld [vmem:[#allocation4 + $0x59c] sm:$0xf]  ;;  %v12898_v40 = vor.u32 %v15100_v8, %v12895_v6 }
 0xbca   :  { %v15000_v15 = vld [vmem:[#allocation4 + $0x74] sm:$0xf0]  ;;  %v13151_v49 = vld [vmem:[#allocation4 + $0x5b8] sm:$0xf0] }
 0xbcb   :  { %7999 = vmatpush.bf16.msra.mxu0 %v13054_v55  ;;  %v12733_v16 = vld [vmem:[#allocation4 + $0x258] sm:$0xf]  ;;  %v12478_v60 = vor.u32 %v15000_v15, %v12477_v30  ;;  %7987 = vmatpush.bf16.msrb.mxu3 %v12766_v50  ;;  %v13439_v55 = vld [vmem:[#allocation4 + $0x7f8] sm:$0xf0]  ;;  %v13154_v57 = vor.u32 %v15164_v58, %v13151_v49 }
 0xbcc   :  { %v15064_v51 = vld [vmem:[#allocation4 + $0x274] sm:$0xf0]  ;;  %v15028_v48 = vld [vmem:[#allocation4 + $0x15c] sm:$0xf] }
 0xbcd   :  { %v12989_v42 = vld [vmem:[#allocation4 + $0x458] sm:$0xf]  ;;  %8012 = vmatpush.bf16.msra.mxu1 %v13310_v24  ;;  %v12734_v17 = vor.u32 %v15064_v51, %v12733_v16  ;;  %7975 = vmatpush.bf16.msra.mxu2 %v12478_v60  ;;  %v13442_v24 = vor.u32 %v15236_v14, %v13439_v55  ;;  %v15228_v46 = vld [vmem:[#allocation4 + $0x79c] sm:$0xf] }
 0xbce   :  { %v15128_v9 = vld [vmem:[#allocation4 + $0x474] sm:$0xf0]  ;;  %v12607_v50 = vld [vmem:[#allocation4 + $0x178] sm:$0xf0]  ;;  %v13410_v51 = vor.u32 %v15228_v46, %v13407_v59 }
 0xbcf   :  { %v12445_v45 = vld [vmem:[#allocation4 + $0x18] sm:$0xf]  ;;  %8000 = vmatpush.bf16.msra.mxu0 %v13022_v22  ;;  %v12990_v43 = vor.u32 %v15128_v9, %v12989_v42  ;;  %7988 = vmatpush.bf16.msrb.mxu3 %v12734_v17  ;;  %v15092_v22 = vld [vmem:[#allocation4 + $0x35c] sm:$0xf]  ;;  %v12610_v42 = vor.u32 %v15028_v48, %v12607_v50 }
 0xbd0   :  { %v13245_v26 = vld [vmem:[#allocation4 + $0x658] sm:$0xf]  ;;  %v12863_v30 = vld [vmem:[#allocation4 + $0x378] sm:$0xf0] }
 0xbd1   :  { %v15192_v2 = vld [vmem:[#allocation4 + $0x674] sm:$0xf0]  ;;  %8013 = vmatpush.bf16.msra.mxu1 %v13278_v32  ;;  %v15156_v15 = vld [vmem:[#allocation4 + $0x55c] sm:$0xf]  ;;  %v12866_v9 = vor.u32 %v15092_v22, %v12863_v30 }
 0xbd2   :  { %v14992_v33 = vld [vmem:[#allocation4 + $0x34] sm:$0xf0]  ;;  %v13246_v28 = vor.u32 %v15192_v2, %v13245_v26  ;;  %v13119_v16 = vld [vmem:[#allocation4 + $0x578] sm:$0xf0] }
 0xbd3   :  { %v12701_v7 = vld [vmem:[#allocation4 + $0x218] sm:$0xf]  ;;  %v12446_v13 = vor.u32 %v14992_v33, %v12445_v45  ;;  %8001 = vmatpush.bf16.msra.mxu0 %v12990_v43  ;;  %v15220_v32 = vld [vmem:[#allocation4 + $0x75c] sm:$0xf]  ;;  %v13122_v60 = vor.u32 %v15156_v15, %v13119_v16 }
 0xbd4   :  { %v15056_v18 = vld [vmem:[#allocation4 + $0x234] sm:$0xf0]  ;;  %v12575_v45 = vld [vmem:[#allocation4 + $0x138] sm:$0xf0]  ;;  %v13378_v43 = vor.u32 %v15220_v32, %v13375_v25 }
 0xbd5   :  { %v12957_v35 = vld [vmem:[#allocation4 + $0x418] sm:$0xf]  ;;  %v12702_v41 = vor.u32 %v15056_v18, %v12701_v7  ;;  %8014 = vmatpush.bf16.msra.mxu1 %v13246_v28  ;;  %7976 = vmatpush.bf16.msra.mxu2 %v12446_v13  ;;  %v15084_v26 = vld [vmem:[#allocation4 + $0x31c] sm:$0xf]  ;;  %v12578_v33 = vor.u32 %v15020_v61, %v12575_v45 }
 0xbd6   :  { %v15120_v62 = vld [vmem:[#allocation4 + $0x434] sm:$0xf0]  ;;  %v12831_v2 = vld [vmem:[#allocation4 + $0x338] sm:$0xf0] }
 0xbd7   :  { %v12958_v19 = vor.u32 %v15120_v62, %v12957_v35  ;;  %v13213_v47 = vld [vmem:[#allocation4 + $0x618] sm:$0xf]  ;;  %7989 = vmatpush.bf16.msrb.mxu3 %v12702_v41  ;;  %v13087_v17 = vld [vmem:[#allocation4 + $0x538] sm:$0xf0]  ;;  %v12834_v7 = vor.u32 %v15084_v26, %v12831_v2  ;;  %v19414_v44 = vpop.f32.mrf.mxu0  ;;  %v19418_v21 = vpop.f32.mrf.mxu2 }
 0xbd8   :  { %v15184_v0 = vld [vmem:[#allocation4 + $0x634] sm:$0xf0]  ;;  %7977 = vmatmul.bf16.vlgmr.msra.gmra.mxu2 %v19369_v11  ;;  %v15012_v18 = vld [vmem:[#allocation4 + $0xdc] sm:$0xf]  ;;  %v13090_v62 = vor.u32 %v15148_v63, %v13087_v17 }
 0xbd9   :  { %v13214_v54 = vor.u32 %v15184_v0, %v13213_v47  ;;  %8002 = vmatpush.bf16.msra.mxu0 %v12958_v19  ;;  %8021 = vmatpush.bf16.msrb.mxu2 %v12674_v34  ;;  %v15212_v27 = vld [vmem:[#allocation4 + $0x71c] sm:$0xf]  ;;  %v19416_v47 = vpop.f32.mrf.mxu1 }
 0xbda   :  { %7990 = vmatmul.bf16.vlgmr.msrb.gmra.mxu3 %v19367_v29  ;;  %v13343_v35 = vld [vmem:[#allocation4 + $0x738] sm:$0xf0] }
 0xbdb   :  { %8034 = vmatpush.bf16.msra.mxu3 %v12930_v1  ;;  %8015 = vmatpush.bf16.msra.mxu1 %v13214_v54  ;;  %v12543_v53 = vld [vmem:[#allocation4 + $0xf8] sm:$0xf0]  ;;  %v13346_v13 = vor.u32 %v15212_v27, %v13343_v35 }
 0xbdc   :  { %8003 = vmatmul.bf16.vlgmr.msra.gmra.mxu0 %v19373_v20  ;;  %v15076_v28 = vld [vmem:[#allocation4 + $0x2dc] sm:$0xf]  ;;  %v12546_v56 = vor.u32 %v15012_v18, %v12543_v53 }
 0xbdd   :  { %8047 = vmatpush.bf16.msrb.mxu0 %v13186_v38  ;;  %8022 = vmatpush.bf16.msrb.mxu2 %v12642_v52  ;;  %v12799_v36 = vld [vmem:[#allocation4 + $0x2f8] sm:$0xf0] }
 0xbde   :  { %8016 = vmatmul.bf16.vlgmr.msra.gmra.mxu1 %v19371_v10  ;;  %v15140_v5 = vld [vmem:[#allocation4 + $0x4dc] sm:$0xf]  ;;  %v12802_v31 = vor.u32 %v15076_v28, %v12799_v36  ;;  %v15247_v36 = vld [vmem:[%s20410_s14 + $0x30] sm:$0xff] }
 0xbdf   :  { %8060 = vmatpush.bf16.msrb.mxu1 %v13442_v24  ;;  %8035 = vmatpush.bf16.msra.mxu3 %v12898_v40  ;;  %v13055_v12 = vld [vmem:[#allocation4 + $0x4f8] sm:$0xf0]  ;;  %v19420_v24 = vpop.f32.mrf.mxu3  ;;  %v7798_v50 = vpop.f32.mrf.mxu0 }
 0xbe0   :  { %v15004_v4 = vld [vmem:[#allocation4 + $0x9c] sm:$0xf]  ;;  %v13058_v0 = vor.u32 %v15140_v5, %v13055_v12  ;;  %v7772_v63 = vpop.f32.mrf.mxu2  ;;  %v15255_v12 = vld [vmem:[%s20410_s14 + $0x70] sm:$0xff] }
 0xbe1   :  { %8048 = vmatpush.bf16.msrb.mxu0 %v13154_v57  ;;  %8023 = vmatpush.bf16.msrb.mxu2 %v12610_v42  ;;  %v15204_v41 = vld [vmem:[#allocation4 + $0x6dc] sm:$0xf]  ;;  %v15257_v63 = vld [vmem:[%s20410_s14 + $0x80] sm:$0xff] }
 0xbe2   :  { %v13311_v19 = vld [vmem:[#allocation4 + $0x6f8] sm:$0xf0] }
 0xbe3   :  { %8061 = vmatpush.bf16.msrb.mxu1 %v13410_v51  ;;  %8036 = vmatpush.bf16.msra.mxu3 %v12866_v9  ;;  %v12511_v34 = vld [vmem:[#allocation4 + $0xb8] sm:$0xf0]  ;;  %v13314_v38 = vor.u32 %v15204_v41, %v13311_v19  ;;  %v7811_v9 = vpop.f32.mrf.mxu1  ;;  %v15262_v41 = vld [vmem:[%s20410_s14 + $0xa8] sm:$0xff]  ;;  %v6363_v19 = vperm.slane %v19398_v37, 2 }
 0xbe4   :  { %v15068_v1 = vld [vmem:[#allocation4 + $0x29c] sm:$0xf]  ;;  %v12514_v8 = vor.u32 %v15004_v4, %v12511_v34  ;;  %v15254_v4 = vld [vmem:[%s20410_s14 + $0x68] sm:$0xff] }
 0xbe5   :  { %8049 = vmatpush.bf16.msrb.mxu0 %v13122_v60  ;;  %8024 = vmatpush.bf16.msrb.mxu2 %v12578_v33  ;;  %v12767_v3 = vld [vmem:[#allocation4 + $0x2b8] sm:$0xf0]  ;;  %v15270_v34 = vld [vmem:[%s20410_s14 + $0xe8] sm:$0xff] }
 0xbe6   :  { %v15132_v14 = vld [vmem:[#allocation4 + $0x49c] sm:$0xf]  ;;  %v12770_v6 = vor.u32 %v15068_v1, %v12767_v3  ;;  %v15253_v1 = vld [vmem:[%s20410_s14 + $0x60] sm:$0xff] }
 0xbe7   :  { %8062 = vmatpush.bf16.msrb.mxu1 %v13378_v43  ;;  %8037 = vmatpush.bf16.msra.mxu3 %v12834_v7  ;;  %v13023_v55 = vld [vmem:[#allocation4 + $0x4b8] sm:$0xf0]  ;;  %v7785_v33 = vpop.f32.mrf.mxu3  ;;  %v15261_v3 = vld [vmem:[%s20410_s14 + $0xa0] sm:$0xff] }
 0xbe8   :  { %v14996_v54 = vld [vmem:[#allocation4 + $0x5c] sm:$0xf]  ;;  %v13026_v52 = vor.u32 %v15132_v14, %v13023_v55  ;;  %v7771_v14 = vadd.f32 %v19418_v21, %v6363_v19 }
 0xbe9   :  { %8050 = vmatpush.bf16.msrb.mxu0 %v13090_v62  ;;  %8025 = vmatpush.bf16.msrb.mxu2 %v12546_v56  ;;  %v15196_v58 = vld [vmem:[#allocation4 + $0x69c] sm:$0xf]  ;;  %v15246_v56 = vld [vmem:[%s20410_s14 + $0x28] sm:$0xff] }
 0xbea   :  { %v13279_v49 = vld [vmem:[#allocation4 + $0x6b8] sm:$0xf0] }
 0xbeb   :  { %8063 = vmatpush.bf16.msrb.mxu1 %v13346_v13  ;;  %8038 = vmatpush.bf16.msra.mxu3 %v12802_v31  ;;  %v12479_v40 = vld [vmem:[#allocation4 + $0x78] sm:$0xf0]  ;;  %v13282_v22 = vor.u32 %v15196_v58, %v13279_v49  ;;  %v15263_v13 = vld [vmem:[%s20410_s14 + $0xb0] sm:$0xff]  ;;  %v7784_v49 = vadd.f32 %v19420_v24, %v7771_v14 }
 0xbec   :  { %v15060_v48 = vld [vmem:[#allocation4 + $0x25c] sm:$0xf]  ;;  %v12482_v30 = vor.u32 %v14996_v54, %v12479_v40  ;;  %v15271_v31 = vld [vmem:[%s20410_s14 + $0xf0] sm:$0xff] }
 0xbed   :  { %8051 = vmatpush.bf16.msrb.mxu0 %v13058_v0  ;;  %v12735_v46 = vld [vmem:[#allocation4 + $0x278] sm:$0xf0]  ;;  %8026 = vmatpush.bf16.msrb.mxu2 %v12514_v8  ;;  %v15245_v0 = vld [vmem:[%s20410_s14 + $0x20] sm:$0xff]  ;;  %v15243_v40 = vld [vmem:[%s20410_s14 + $0x10] sm:$0xff]  ;;  %v7797_v50 = vadd.f32 %v19414_v44, %v7784_v49 }
 0xbee   :  { %v15124_v59 = vld [vmem:[#allocation4 + $0x45c] sm:$0xf]  ;;  %v12738_v15 = vor.u32 %v15060_v48, %v12735_v46  ;;  %v15269_v8 = vld [vmem:[%s20410_s14 + $0xe0] sm:$0xff]  ;;  %v15259_v24 = vld [vmem:[%s20410_s14 + $0x90] sm:$0xff] }
 0xbef   :  { %v12991_v57 = vld [vmem:[#allocation4 + $0x478] sm:$0xf0]  ;;  %8064 = vmatpush.bf16.msrb.mxu1 %v13314_v38  ;;  %8039 = vmatpush.bf16.msra.mxu3 %v12770_v6  ;;  %v6364_v6 = vperm.slane %v19398_v37, 3  ;;  %v15258_v44 = vld [vmem:[%s20410_s14 + $0x88] sm:$0xff] }
 0xbf0   :  { %v14988_v16 = vld [vmem:[#allocation4 + $0x1c] sm:$0xf]  ;;  %v12994_v61 = vor.u32 %v15124_v59, %v12991_v57  ;;  %v15251_v57 = vld [vmem:[%s20410_s14 + $0x50] sm:$0xff] }
 0xbf1   :  { %v15188_v51 = vld [vmem:[#allocation4 + $0x65c] sm:$0xf]  ;;  %8052 = vmatpush.bf16.msrb.mxu0 %v13026_v52  ;;  %8027 = vmatpush.bf16.msrb.mxu2 %v12482_v30 }
 0xbf2   :  { %v13247_v42 = vld [vmem:[#allocation4 + $0x678] sm:$0xf0] }
 0xbf3   :  { %v12447_v32 = vld [vmem:[#allocation4 + $0x38] sm:$0xf0]  ;;  %8065 = vmatpush.bf16.msrb.mxu1 %v13282_v22  ;;  %v13250_v2 = vor.u32 %v15188_v51, %v13247_v42  ;;  %8040 = vmatpush.bf16.msra.mxu3 %v12738_v15  ;;  %v15242_v15 = vld [vmem:[%s20410_s14 + $0x8] sm:$0xff] }
 0xbf4   :  { %v15052_v25 = vld [vmem:[#allocation4 + $0x21c] sm:$0xf]  ;;  %v12450_v17 = vor.u32 %v14988_v16, %v12447_v32  ;;  %v15267_v16 = vld [vmem:[%s20410_s14 + $0xd0] sm:$0xff]  ;;  %v15250_v42 = vld [vmem:[%s20410_s14 + $0x48] sm:$0xff] }
 0xbf5   :  { %v12703_v60 = vld [vmem:[#allocation4 + $0x238] sm:$0xf0]  ;;  %8053 = vmatpush.bf16.msrb.mxu0 %v12994_v61  ;;  %v7810_v61 = vadd.f32 %v19416_v47, %v7797_v50  ;;  %v15249_v47 = vld [vmem:[%s20410_s14 + $0x40] sm:$0xff] }
 0xbf6   :  { %v15116_v45 = vld [vmem:[#allocation4 + $0x41c] sm:$0xf]  ;;  %v12706_v43 = vor.u32 %v15052_v25, %v12703_v60  ;;  %8028 = vmatpush.bf16.msrb.mxu2 %v12450_v17  ;;  %v15241_v25 = vld [vmem:[%s20410_s14] sm:$0xff]  ;;  %v8074_v17 = vmax.f32 %v19408_v23, 0.0 }
 0xbf7   :  { %v12959_v26 = vld [vmem:[#allocation4 + $0x438] sm:$0xf0]  ;;  %8066 = vmatpush.bf16.msrb.mxu1 %v13250_v2  ;;  %v7848_v55 = vpop.f32.mrf.mxu0  ;;  %v7822_v52 = vpop.f32.mrf.mxu2  ;;  %v8073_v2 = vmax.f32 %v19401_v39, 0.0  ;;  %v15293_v50 = vld [vmem:[%s20410_s14 + $0x1a0] sm:$0xff] }
 0xbf8   :  { %v12962_v7 = vor.u32 %v15116_v45, %v12959_v26  ;;  %v15248_v18 = vld [vmem:[%s20410_s14 + $0x38] sm:$0xff]  ;;  %8041 = vmatpush.bf16.msra.mxu3 %v12706_v43  ;;  %v7823_v46 = vadd.f32 %v7822_v52, %v6364_v6  ;;  %v15266_v45 = vld [vmem:[%s20410_s14 + $0xc8] sm:$0xff]  ;;  %v8075_v43 = vmax.f32 %v7810_v61, 0.0  ;;  %v8082_v23 = vpack.c.bf16 %v8074_v17, %v8074_v17 }
 0xbf9   :  { %v15180_v27 = vld [vmem:[#allocation4 + $0x61c] sm:$0xf]  ;;  %8029 = vmatmul.bf16.vlgmr.msrb.gmra.mxu2 %v19369_v11  ;;  %v7861_v58 = vpop.f32.mrf.mxu1  ;;  %v7835_v59 = vpop.f32.mrf.mxu3 }
 0xbfa   :  { %v13215_v35 = vld [vmem:[#allocation4 + $0x638] sm:$0xf0]  ;;  %8054 = vmatpush.bf16.msrb.mxu0 %v12962_v7  ;;  %8605 = vmatpush.bf16.msra.mxu2 %v15248_v18  ;;  %v7836_v22 = vadd.f32 %v7835_v59, %v7823_v46  ;;  %v8081_v18 = vpack.c.bf16 %v8073_v2, %v8073_v2  ;;  %v15281_v46 = vld [vmem:[%s20410_s14 + $0x140] sm:$0xff]  ;;  %v15295_v59 = vld [vmem:[%s20410_s14 + $0x1b0] sm:$0xff] }
 0xbfb   :  { %v15256_v62 = vld [vmem:[%s20410_s14 + $0x78] sm:$0xff]  ;;  %v13218_v28 = vor.u32 %v15180_v27, %v13215_v35  ;;  %8042 = vmatmul.bf16.vlgmr.msra.gmra.mxu3 %v19367_v29  ;;  %v15265_v27 = vld [vmem:[%s20410_s14 + $0xc0] sm:$0xff]  ;;  %v8083_v35 = vpack.c.bf16 %v8075_v43, %v8075_v43 }
 0xbfc   :  { %v15264_v53 = vld [vmem:[%s20410_s14 + $0xb8] sm:$0xff]  ;;  %8618 = vmatpush.bf16.msrb.mxu3 %v15256_v62  ;;  %v7849_v51 = vadd.f32 %v7848_v55, %v7836_v22  ;;  %v15279_v62 = vld [vmem:[%s20410_s14 + $0x130] sm:$0xff] }
 0xbfd   :  { %v15272_v5 = vld [vmem:[%s20410_s14 + $0xf8] sm:$0xff]  ;;  %8067 = vmatpush.bf16.msrb.mxu1 %v13218_v28  ;;  %8055 = vmatmul.bf16.vlgmr.msrb.gmra.mxu0 %v19373_v20 }
 0xbfe   :  { %8631 = vmatpush.bf16.msra.mxu0 %v15264_v53  ;;  %8606 = vmatpush.bf16.msra.mxu2 %v15247_v36  ;;  %v15244_v38 = vld [vmem:[%s20410_s14 + $0x18] sm:$0xff]  ;;  %v7862_v60 = vadd.f32 %v7861_v58, %v7849_v51  ;;  %v15287_v53 = vld [vmem:[%s20410_s14 + $0x170] sm:$0xff]  ;;  %v15278_v36 = vld [vmem:[%s20410_s14 + $0x128] sm:$0xff] }
 0xbff   :  { %v15252_v54 = vld [vmem:[%s20410_s14 + $0x58] sm:$0xff]  ;;  %v7850_v30 = vpop.f32.mrf.mxu0  ;;  %v7824_v32 = vpop.f32.mrf.mxu2 }
 0xc00   :  { %8619 = vmatpush.bf16.msrb.mxu3 %v15255_v12  ;;  %8068 = vmatmul.bf16.vlgmr.msrb.gmra.mxu1 %v19371_v10  ;;  %v15260_v21 = vld [vmem:[%s20410_s14 + $0x98] sm:$0xff]  ;;  %v8076_v7 = vmax.f32 %v7862_v60, 0.0  ;;  %v15277_v12 = vld [vmem:[%s20410_s14 + $0x120] sm:$0xff] }
 0xc01   :  { %8644 = vmatpush.bf16.msra.mxu1 %v15272_v5  ;;  %v15268_v48 = vld [vmem:[%s20410_s14 + $0xd8] sm:$0xff]  ;;  %v7863_v9 = vpop.f32.mrf.mxu1  ;;  %v7837_v26 = vpop.f32.mrf.mxu3  ;;  %v15286_v5 = vld [vmem:[%s20410_s14 + $0x168] sm:$0xff] }
 0xc02   :  { %8632 = vmatpush.bf16.msra.mxu0 %v15263_v13  ;;  %8607 = vmatpush.bf16.msra.mxu2 %v15246_v56  ;;  %v15280_v33 = vld [vmem:[%s20410_s14 + $0x138] sm:$0xff]  ;;  %v8084_v28 = vpack.c.bf16 %v8076_v7, %v8076_v7  ;;  %v15285_v13 = vld [vmem:[%s20410_s14 + $0x160] sm:$0xff] }
 0xc03   :  { %v15288_v39 = vld [vmem:[%s20410_s14 + $0x178] sm:$0xff] }
 0xc04   :  { %8620 = vmatpush.bf16.msrb.mxu3 %v15254_v4  ;;  %v15276_v4 = vld [vmem:[%s20410_s14 + $0x118] sm:$0xff] }
 0xc05   :  { %8645 = vmatpush.bf16.msra.mxu1 %v15271_v31  ;;  %v6365_v31 = vperm.slane %v19398_v37, 4  ;;  %v15284_v19 = vld [vmem:[%s20410_s14 + $0x158] sm:$0xff]  ;;  %v15283_v37 = vld [vmem:[%s20410_s14 + $0x150] sm:$0xff] }
 0xc06   :  { %8633 = vmatpush.bf16.msra.mxu0 %v15262_v41  ;;  %8608 = vmatpush.bf16.msra.mxu2 %v15245_v0  ;;  %v15292_v22 = vld [vmem:[%s20410_s14 + $0x198] sm:$0xff] }
 0xc07   :  { %v15304_v17 = vld [vmem:[%s20410_s14 + $0x1f8] sm:$0xff] }
 0xc08   :  { %8621 = vmatpush.bf16.msrb.mxu3 %v15253_v1 }
 0xc09   :  { %8646 = vmatpush.bf16.msra.mxu1 %v15270_v34 }
 0xc0a   :  { %8634 = vmatpush.bf16.msra.mxu0 %v15261_v3  ;;  %8609 = vmatpush.bf16.msra.mxu2 %v15244_v38  ;;  %v15275_v3 = vld [vmem:[%s20410_s14 + $0x110] sm:$0xff] }
 0xc0c   :  { %8622 = vmatpush.bf16.msrb.mxu3 %v15252_v54  ;;  %v15282_v54 = vld [vmem:[%s20410_s14 + $0x148] sm:$0xff] }
 0xc0d   :  { %8647 = vmatpush.bf16.msra.mxu1 %v15269_v8  ;;  %v15274_v8 = vld [vmem:[%s20410_s14 + $0x108] sm:$0xff] }
 0xc0e   :  { %8635 = vmatpush.bf16.msra.mxu0 %v15260_v21  ;;  %8610 = vmatpush.bf16.msra.mxu2 %v15243_v40  ;;  %v15296_v40 = vld [vmem:[%s20410_s14 + $0x1b8] sm:$0xff] }
 0xc10   :  { %8623 = vmatpush.bf16.msrb.mxu3 %v15251_v57 }
 0xc11   :  { %8648 = vmatpush.bf16.msra.mxu1 %v15268_v48  ;;  %v15273_v48 = vld [vmem:[%s20410_s14 + $0x100] sm:$0xff] }
 0xc12   :  { %8636 = vmatpush.bf16.msra.mxu0 %v15259_v24  ;;  %8611 = vmatpush.bf16.msra.mxu2 %v15242_v15  ;;  %v15294_v24 = vld [vmem:[%s20410_s14 + $0x1a8] sm:$0xff]  ;;  %v15554_v15 = vld [vmem:[%s20409_s13] sm:$0xff] }
 0xc14   :  { %8624 = vmatpush.bf16.msrb.mxu3 %v15250_v42  ;;  %v15291_v42 = vld [vmem:[%s20410_s14 + $0x190] sm:$0xff] }
 0xc15   :  { %8649 = vmatpush.bf16.msra.mxu1 %v15267_v16  ;;  %v6366_v16 = vperm.slane %v15554_v15, 5 }
 0xc16   :  { %8637 = vmatpush.bf16.msra.mxu0 %v15258_v44  ;;  %8612 = vmatpush.bf16.msra.mxu2 %v15241_v25  ;;  %v15290_v25 = vld [vmem:[%s20410_s14 + $0x188] sm:$0xff] }
 0xc17   :  { %v7900_v56 = vpop.f32.mrf.mxu0  ;;  %v7874_v0 = vpop.f32.mrf.mxu2 }
 0xc18   :  { %8625 = vmatpush.bf16.msrb.mxu3 %v15249_v47  ;;  %v7875_v34 = vadd.f32 %v7874_v0, %v6365_v31  ;;  %v15289_v47 = vld [vmem:[%s20410_s14 + $0x180] sm:$0xff] }
 0xc19   :  { %8650 = vmatpush.bf16.msra.mxu1 %v15266_v45  ;;  %8613 = vmatmul.bf16.vlgmr.msra.gmra.mxu2 %v8081_v18  ;;  %v7913_v41 = vpop.f32.mrf.mxu1  ;;  %v7887_v1 = vpop.f32.mrf.mxu3  ;;  %v15302_v18 = vld [vmem:[%s20410_s14 + $0x1e8] sm:$0xff]  ;;  %v15297_v0 = vld [vmem:[%s20410_s14 + $0x1c0] sm:$0xff] }
 0xc1a   :  { %8638 = vmatpush.bf16.msra.mxu0 %v15257_v63  ;;  %8657 = vmatpush.bf16.msrb.mxu2 %v15280_v33  ;;  %v7888_v14 = vadd.f32 %v7887_v1, %v7875_v34 }
 0xc1b   :  { %8626 = vmatmul.bf16.vlgmr.msrb.gmra.mxu3 %v8082_v23  ;;  %v15300_v23 = vld [vmem:[%s20410_s14 + $0x1d8] sm:$0xff] }
 0xc1c   :  { %8670 = vmatpush.bf16.msra.mxu3 %v15288_v39  ;;  %v7901_v38 = vadd.f32 %v7900_v56, %v7888_v14  ;;  %v15303_v39 = vld [vmem:[%s20410_s14 + $0x1f0] sm:$0xff]  ;;  %v15298_v56 = vld [vmem:[%s20410_s14 + $0x1c8] sm:$0xff] }
 0xc1d   :  { %8639 = vmatmul.bf16.vlgmr.msra.gmra.mxu0 %v8083_v35  ;;  %8651 = vmatpush.bf16.msra.mxu1 %v15265_v27  ;;  %v15301_v27 = vld [vmem:[%s20410_s14 + $0x1e0] sm:$0xff] }
 0xc1e   :  { %8658 = vmatpush.bf16.msrb.mxu2 %v15279_v62  ;;  %v7914_v21 = vadd.f32 %v7913_v41, %v7901_v38  ;;  %8683 = vmatpush.bf16.msrb.mxu0 %v15296_v40  ;;  %v6367_v62 = vperm.slane %v15554_v15, 6 }
 0xc1f   :  { %v7902_v55 = vpop.f32.mrf.mxu0  ;;  %v7876_v58 = vpop.f32.mrf.mxu2 }
 0xc20   :  { %8671 = vmatpush.bf16.msra.mxu3 %v15287_v53  ;;  %8652 = vmatmul.bf16.vlgmr.msra.gmra.mxu1 %v8084_v28  ;;  %v8077_v49 = vmax.f32 %v7914_v21, 0.0  ;;  %v15299_v28 = vld [vmem:[%s20410_s14 + $0x1d0] sm:$0xff]  ;;  %v6368_v55 = vperm.slane %v15554_v15, 7 }
 0xc21   :  { %v7915_v6 = vpop.f32.mrf.mxu1  ;;  %v7889_v52 = vpop.f32.mrf.mxu3  ;;  %8696 = vmatpush.bf16.msrb.mxu1 %v15304_v17 }
 0xc22   :  { %8659 = vmatpush.bf16.msrb.mxu2 %v15278_v36  ;;  %v8085_v57 = vpack.c.bf16 %v8077_v49, %v8077_v49  ;;  %8684 = vmatpush.bf16.msrb.mxu0 %v15295_v59 }
 0xc24   :  { %8672 = vmatpush.bf16.msra.mxu3 %v15286_v5 }
 0xc25   :  { %8697 = vmatpush.bf16.msrb.mxu1 %v15303_v39 }
 0xc26   :  { %8660 = vmatpush.bf16.msrb.mxu2 %v15277_v12  ;;  %8685 = vmatpush.bf16.msrb.mxu0 %v15294_v24 }
 0xc28   :  { %8673 = vmatpush.bf16.msra.mxu3 %v15285_v13 }
 0xc29   :  { %8698 = vmatpush.bf16.msrb.mxu1 %v15302_v18  ;;  %v15370_v18 = vld [vmem:[%s20412_s16 + $0x204] sm:$0xf0] }
 0xc2a   :  { %8661 = vmatpush.bf16.msrb.mxu2 %v15276_v4  ;;  %8686 = vmatpush.bf16.msrb.mxu0 %v15293_v50  ;;  %v15553_v50 = vld [vmem:[%s20411_s15] ss:$0 sm:$0xff] }
 0xc2c   :  { %8674 = vmatpush.bf16.msra.mxu3 %v15284_v19 }
 0xc2d   :  { %8699 = vmatpush.bf16.msrb.mxu1 %v15301_v27 }
 0xc2e   :  { %8662 = vmatpush.bf16.msrb.mxu2 %v15275_v3  ;;  %8687 = vmatpush.bf16.msrb.mxu0 %v15292_v22 }
 0xc30   :  { %8675 = vmatpush.bf16.msra.mxu3 %v15283_v37 }
 0xc31   :  { %8700 = vmatpush.bf16.msrb.mxu1 %v15300_v23 }
 0xc32   :  { %8663 = vmatpush.bf16.msrb.mxu2 %v15274_v8  ;;  %8688 = vmatpush.bf16.msrb.mxu0 %v15291_v42 }
 0xc34   :  { %8676 = vmatpush.bf16.msra.mxu3 %v15282_v54 }
 0xc35   :  { %8701 = vmatpush.bf16.msrb.mxu1 %v15299_v28  ;;  %v13911_v28 = vld [vmem:[%s20412_s16 + $0x208] sm:$0xf0] }
 0xc36   :  { %8664 = vmatpush.bf16.msrb.mxu2 %v15273_v48  ;;  %8689 = vmatpush.bf16.msrb.mxu0 %v15290_v25 }
 0xc37   :  { %v7952_v30 = vpop.f32.mrf.mxu0  ;;  %v7926_v44 = vpop.f32.mrf.mxu2 }
 0xc38   :  { %8677 = vmatpush.bf16.msra.mxu3 %v15281_v46  ;;  %v7927_v9 = vadd.f32 %v7926_v44, %v6366_v16 }
 0xc39   :  { %8665 = vmatmul.bf16.vlgmr.msrb.gmra.mxu2 %v8085_v57  ;;  %v7965_v51 = vpop.f32.mrf.mxu1  ;;  %v7939_v61 = vpop.f32.mrf.mxu3  ;;  %8702 = vmatpush.bf16.msrb.mxu1 %v15298_v56 }
 0xc3a   :  { %v7940_v32 = vadd.f32 %v7939_v61, %v7927_v9  ;;  %8690 = vmatpush.bf16.msrb.mxu0 %v15289_v47  ;;  %v8789_v47 = vld [vmem:[%s20412_s16 + $0x278] sm:$0x33] }
 0xc3b   :  { %v9051_v39 = vunpack.c.h.b16 %v8789_v47 }
 0xc3c   :  { %v7953_v45 = vadd.f32 %v7952_v30, %v7940_v32 }
 0xc3d   :  { %8703 = vmatpush.bf16.msrb.mxu1 %v15297_v0 }
 0xc3e   :  { %v7966_v2 = vadd.f32 %v7965_v51, %v7953_v45 }
 0xc3f   :  { %v7954_v60 = vpop.f32.mrf.mxu0  ;;  %v7928_v63 = vpop.f32.mrf.mxu2 }
 0xc40   :  { %v8078_v43 = vmax.f32 %v7966_v2, 0.0  ;;  %v8788_v2 = vld [vmem:[%s20412_s16 + $0x270] sm:$0x33] }
 0xc41   :  { %v7967_v26 = vpop.f32.mrf.mxu1  ;;  %v7941_v33 = vpop.f32.mrf.mxu3  ;;  %v9048_v17 = vunpack.c.l.b16 %v8788_v2 }
 0xc42   :  { %v8086_v7 = vpack.c.bf16 %v8078_v43, %v8078_v43  ;;  %v9049_v43 = vunpack.c.h.b16 %v8788_v2  ;;  %v9050_v33 = vunpack.c.l.b16 %v8789_v47 }
 0xc43   :  { %v9152_v27 = vpack.c.b16 %v9048_v17, %v9048_v17 }
 0xc44   :  { %8678 = vmatmul.bf16.vlgmr.msra.gmra.mxu3 %v8086_v7  ;;  %v13909_v7 = vld [vmem:[%s20412_s16 + $0x1a0] sm:$0xf]  ;;  %v9153_v23 = vpack.c.b16 %v9049_v43, %v9049_v43 }
 0xc45   :  { %v9261_v56 = vsel %vm5511_vm1, %v9152_v27, 0  ;;  %v13925_v27 = vld [vmem:[%s20412_s16 + $0x1b0] sm:$0xf] }
 0xc46   :  { %9342 = vmatpush.bf16.msra.mxu2 %v9261_v56 }
 0xc59   :  { %v8004_v35 = vpop.f32.mrf.mxu0 }
 0xc5b   :  { %v8017_v53 = vpop.f32.mrf.mxu1  ;;  %v7978_v36 = vpop.f32.mrf.mxu2 }
 0xc5c   :  { %v7979_v5 = vadd.f32 %v7978_v36, %v6367_v62  ;;  %v9155_v62 = vpack.c.b16 %v9051_v39, %v9051_v39  ;;  %v13917_v36 = vld [vmem:[%s20412_s16 + $0x1a8] sm:$0xf] }
 0xc5d   :  { %v7991_v12 = vpop.f32.mrf.mxu3 }
 0xc5e   :  { %v7992_v13 = vadd.f32 %v7991_v12, %v7979_v5  ;;  %v15371_v5 = vld [vmem:[%s20412_s16 + $0x20c] sm:$0xf0]  ;;  %v15358_v12 = vld [vmem:[%s20412_s16 + $0x1ac] sm:$0xf] }
 0xc60   :  { %v8005_v4 = vadd.f32 %v8004_v35, %v7992_v13  ;;  %v9154_v35 = vpack.c.b16 %v9050_v33, %v9050_v33  ;;  %v13919_v13 = vld [vmem:[%s20412_s16 + $0x210] sm:$0xf0] }
 0xc61   :  { %v8006_v31 = vpop.f32.mrf.mxu0 }
 0xc62   :  { %v8018_v19 = vadd.f32 %v8017_v53, %v8005_v4  ;;  %v15357_v53 = vld [vmem:[%s20412_s16 + $0x1a4] sm:$0xf]  ;;  %v9264_v31 = vsel %vm5511_vm1, %v9153_v23, 0  ;;  %v9267_v4 = vsel %vm5511_vm1, %v9154_v35, 0  ;;  %v15372_v23 = vld [vmem:[%s20412_s16 + $0x214] sm:$0xf0] }
 0xc63   :  { %v8019_v41 = vpop.f32.mrf.mxu1  ;;  %v7980_v34 = vpop.f32.mrf.mxu2  ;;  %9355 = vmatpush.bf16.msrb.mxu3 %v9264_v31  ;;  %v13914_v0 = vor.u32 %v15357_v53, %v13911_v28  ;;  %9368 = vmatpush.bf16.msra.mxu0 %v9267_v4  ;;  %v15359_v35 = vld [vmem:[%s20412_s16 + $0x1b4] sm:$0xf]  ;;  %v13926_v28 = vor.u32 %v15372_v23, %v13925_v27  ;;  %v13935_v31 = vld [vmem:[%s20412_s16 + $0x220] sm:$0xf0]  ;;  %v13821_v4 = vld [vmem:[%s20412_s16 + $0xe0] sm:$0xf] }
 0xc64   :  { %v8079_v1 = vmax.f32 %v8018_v19, 0.0  ;;  %v9270_v41 = vsel %vm5511_vm1, %v9155_v62, 0  ;;  %v13910_v19 = vor.u32 %v15370_v18, %v13909_v7  ;;  %v13805_v34 = vld [vmem:[%s20412_s16 + $0xd0] sm:$0xf]  ;;  %v13927_v62 = vld [vmem:[%s20412_s16 + $0x218] sm:$0xf0] }
 0xc65   :  { %v7993_v3 = vpop.f32.mrf.mxu3  ;;  %9381 = vmatpush.bf16.msra.mxu1 %v9270_v41  ;;  %v15346_v41 = vld [vmem:[%s20412_s16 + $0x144] sm:$0xf0]  ;;  %v15375_v23 = vld [vmem:[%s20412_s16 + $0x22c] sm:$0xf0] }
 0xc66   :  { %v8087_v37 = vpack.c.bf16 %v8079_v1, %v8079_v1  ;;  %v15344_v1 = vld [vmem:[%s20412_s16 + $0x134] sm:$0xf0]  ;;  %v13918_v3 = vor.u32 %v15371_v5, %v13917_v36  ;;  %9343 = vmatpush.bf16.msra.mxu2 %v13910_v19  ;;  %v13930_v36 = vor.u32 %v15359_v35, %v13927_v62  ;;  %v13949_v27 = vld [vmem:[%s20412_s16 + $0x1c8] sm:$0xf]  ;;  %v15362_v35 = vld [vmem:[%s20412_s16 + $0x1cc] sm:$0xf] }
 0xc67   :  { %9356 = vmatpush.bf16.msrb.mxu3 %v13914_v0  ;;  %v13933_v5 = vld [vmem:[%s20412_s16 + $0x1b8] sm:$0xf]  ;;  %v13822_v0 = vor.u32 %v15346_v41, %v13821_v4  ;;  %v13951_v62 = vld [vmem:[%s20412_s16 + $0x230] sm:$0xf0]  ;;  %v13839_v41 = vld [vmem:[%s20412_s16 + $0x158] sm:$0xf0] }
 0xc68   :  { %8691 = vmatmul.bf16.vlgmr.msrb.gmra.mxu0 %v8087_v37  ;;  %v13922_v37 = vor.u32 %v15358_v12, %v13919_v13  ;;  %v15373_v12 = vld [vmem:[%s20412_s16 + $0x21c] sm:$0xf0]  ;;  %v15360_v13 = vld [vmem:[%s20412_s16 + $0x1bc] sm:$0xf]  ;;  %v13954_v4 = vor.u32 %v15362_v35, %v13951_v62 }
 0xc69   :  { %9369 = vmatpush.bf16.msra.mxu0 %v13918_v3  ;;  %v13934_v56 = vor.u32 %v15373_v12, %v13933_v5  ;;  %v13938_v19 = vor.u32 %v15360_v13, %v13935_v31  ;;  %v13829_v3 = vld [vmem:[%s20412_s16 + $0xe8] sm:$0xf]  ;;  %v15348_v5 = vld [vmem:[%s20412_s16 + $0x154] sm:$0xf0]  ;;  %v15335_v12 = vld [vmem:[%s20412_s16 + $0xf4] sm:$0xf]  ;;  %v13950_v31 = vor.u32 %v15375_v23, %v13949_v27 }
 0xc6a   :  { %9382 = vmatpush.bf16.msra.mxu1 %v13922_v37  ;;  %v8794_v13 = vld [vmem:[%s20412_s16 + $0x2a0] sm:$0x33]  ;;  %v8796_v23 = vld [vmem:[%s20412_s16 + $0x2b0] sm:$0x33] }
 0xc6b   :  { %v15337_v27 = vld [vmem:[%s20412_s16 + $0x104] sm:$0xf] }
 0xc7a   :  { %v8056_v14 = vpop.f32.mrf.mxu0 }
 0xc7c   :  { %v8030_v8 = vpop.f32.mrf.mxu2 }
 0xc7d   :  { %v8069_v38 = vpop.f32.mrf.mxu1  ;;  %v8031_v54 = vadd.f32 %v8030_v8, %v6368_v55  ;;  %v13807_v55 = vld [vmem:[%s20412_s16 + $0x138] sm:$0xf0]  ;;  %v15345_v8 = vld [vmem:[%s20412_s16 + $0x13c] sm:$0xf0] }
 0xc7e   :  { %v8043_v6 = vpop.f32.mrf.mxu3 }
 0xc7f   :  { %v8044_v21 = vadd.f32 %v8043_v6, %v8031_v54  ;;  %v15332_v6 = vld [vmem:[%s20412_s16 + $0xdc] sm:$0xf]  ;;  %v13815_v54 = vld [vmem:[%s20412_s16 + $0x140] sm:$0xf0] }
 0xc81   :  { %v8057_v49 = vadd.f32 %v8056_v14, %v8044_v21  ;;  %v15331_v14 = vld [vmem:[%s20412_s16 + $0xd4] sm:$0xf] }
 0xc82   :  { %v8058_v58 = vpop.f32.mrf.mxu0 }
 0xc83   :  { %v8070_v40 = vadd.f32 %v8069_v38, %v8057_v49  ;;  %v13813_v38 = vld [vmem:[%s20412_s16 + $0xd8] sm:$0xf]  ;;  %v13806_v58 = vor.u32 %v15344_v1, %v13805_v34  ;;  %v13810_v49 = vor.u32 %v15331_v14, %v13807_v55  ;;  %v15333_v34 = vld [vmem:[%s20412_s16 + $0xe4] sm:$0xf]  ;;  %v13823_v1 = vld [vmem:[%s20412_s16 + $0x148] sm:$0xf0] }
 0xc84   :  { %v8032_v48 = vpop.f32.mrf.mxu2  ;;  %v13826_v37 = vor.u32 %v15333_v34, %v13823_v1  ;;  %v15347_v14 = vld [vmem:[%s20412_s16 + $0x14c] sm:$0xf0]  ;;  %v15334_v55 = vld [vmem:[%s20412_s16 + $0xec] sm:$0xf]  ;;  %v15349_v34 = vld [vmem:[%s20412_s16 + $0x15c] sm:$0xf0] }
 0xc85   :  { %v8071_v52 = vpop.f32.mrf.mxu1  ;;  %v8080_v59 = vmax.f32 %v8070_v40, 0.0  ;;  %v13818_v40 = vor.u32 %v15332_v6, %v13815_v54  ;;  %9344 = vmatpush.bf16.msra.mxu2 %v13806_v58  ;;  %9357 = vmatpush.bf16.msrb.mxu3 %v13810_v49  ;;  %v13701_v48 = vld [vmem:[%s20412_s16] sm:$0xf]  ;;  %v13717_v54 = vld [vmem:[%s20412_s16 + $0x10] sm:$0xf] }
 0xc86   :  { %v8045_v46 = vpop.f32.mrf.mxu3  ;;  %v13814_v52 = vor.u32 %v15345_v8, %v13813_v38  ;;  %v13831_v38 = vld [vmem:[%s20412_s16 + $0x150] sm:$0xf0]  ;;  %v13830_v8 = vor.u32 %v15347_v14, %v13829_v3  ;;  %v13719_v49 = vld [vmem:[%s20412_s16 + $0x78] sm:$0xf0]  ;;  %v13847_v3 = vld [vmem:[%s20412_s16 + $0x160] sm:$0xf0]  ;;  %v9061_v14 = vunpack.c.h.b16 %v8794_v13 }
 0xc87   :  { %v8088_v57 = vpack.c.bf16 %v8080_v59, %v8080_v59  ;;  %9383 = vmatpush.bf16.msra.mxu1 %v13818_v40  ;;  %v15318_v46 = vld [vmem:[%s20412_s16 + $0x64] sm:$0xf0]  ;;  %v15305_v59 = vld [vmem:[%s20412_s16 + $0x4] sm:$0xf]  ;;  %v13834_v6 = vor.u32 %v15334_v55, %v13831_v38  ;;  %v15307_v58 = vld [vmem:[%s20412_s16 + $0x14] sm:$0xf]  ;;  %v13842_v38 = vor.u32 %v15335_v12, %v13839_v41 }
 0xc88   :  { %9370 = vmatpush.bf16.msra.mxu0 %v13814_v52  ;;  %v13725_v52 = vld [vmem:[%s20412_s16 + $0x18] sm:$0xf]  ;;  %v15321_v40 = vld [vmem:[%s20412_s16 + $0x7c] sm:$0xf0]  ;;  %v15336_v1 = vld [vmem:[%s20412_s16 + $0xfc] sm:$0xf] }
 0xc89   :  { %8704 = vmatmul.bf16.vlgmr.msrb.gmra.mxu1 %v8088_v57  ;;  %v13702_v57 = vor.u32 %v15318_v46, %v13701_v48  ;;  %v15308_v46 = vld [vmem:[%s20412_s16 + $0x1c] sm:$0xf]  ;;  %v15338_v12 = vld [vmem:[%s20412_s16 + $0x10c] sm:$0xf] }
 0xc8b   :  { %9345 = vmatpush.bf16.msra.mxu2 %v13702_v57  ;;  %v13722_v57 = vor.u32 %v15307_v58, %v13719_v49  ;;  %v13850_v49 = vor.u32 %v15336_v1, %v13847_v3 }
 0xc9a   :  { %v8640_v24 = vpop.f32.mrf.mxu0 }
 0xc9c   :  { %v8614_v30 = vpop.f32.mrf.mxu2 }
 0xc9d   :  { %v8653_v22 = vpop.f32.mrf.mxu1  ;;  %v8615_v15 = vadd.f32 %v15553_v50, %v8614_v30  ;;  %v13709_v50 = vld [vmem:[%s20412_s16 + $0x8] sm:$0xf] }
 0xc9e   :  { %v8627_v16 = vpop.f32.mrf.mxu3 }
 0xc9f   :  { %v8628_v51 = vadd.f32 %v8627_v16, %v8615_v15 }
 0xca1   :  { %v8641_v44 = vadd.f32 %v8640_v24, %v8628_v51  ;;  %v13703_v24 = vld [vmem:[%s20412_s16 + $0x68] sm:$0xf0] }
 0xca2   :  { %v8642_v42 = vpop.f32.mrf.mxu0  ;;  %v13706_v15 = vor.u32 %v15305_v59, %v13703_v24  ;;  %v15306_v51 = vld [vmem:[%s20412_s16 + $0xc] sm:$0xf]  ;;  %v13727_v59 = vld [vmem:[%s20412_s16 + $0x80] sm:$0xf0]  ;;  %v13726_v24 = vor.u32 %v15321_v40, %v13725_v52 }
 0xca3   :  { %v8654_v9 = vadd.f32 %v8653_v22, %v8641_v44  ;;  %v15319_v22 = vld [vmem:[%s20412_s16 + $0x6c] sm:$0xf0]  ;;  %v13711_v42 = vld [vmem:[%s20412_s16 + $0x70] sm:$0xf0]  ;;  %v8790_v44 = vld [vmem:[%s20412_s16 + $0x280] sm:$0x33] }
 0xca4   :  { %v8616_v32 = vpop.f32.mrf.mxu2  ;;  %v13710_v16 = vor.u32 %v15319_v22, %v13709_v50  ;;  %9358 = vmatpush.bf16.msrb.mxu3 %v13706_v15  ;;  %v13730_v50 = vor.u32 %v15308_v46, %v13727_v59  ;;  %v8792_v22 = vld [vmem:[%s20412_s16 + $0x290] sm:$0x33]  ;;  %v8793_v15 = vld [vmem:[%s20412_s16 + $0x298] sm:$0x33]  ;;  %v15309_v52 = vld [vmem:[%s20412_s16 + $0x24] sm:$0xf] }
 0xca5   :  { %v8655_v61 = vpop.f32.mrf.mxu1  ;;  %v8791_v32 = vld [vmem:[%s20412_s16 + $0x288] sm:$0x33]  ;;  %v15323_v46 = vld [vmem:[%s20412_s16 + $0x8c] sm:$0xf0] }
 0xca6   :  { %v8629_v25 = vpop.f32.mrf.mxu3  ;;  %v9052_v61 = vunpack.c.l.b16 %v8790_v44  ;;  %9371 = vmatpush.bf16.msra.mxu0 %v13710_v16  ;;  %v9056_v16 = vunpack.c.l.b16 %v8792_v22  ;;  %v13735_v40 = vld [vmem:[%s20412_s16 + $0x88] sm:$0xf0] }
 0xca7   :  { %v9053_v25 = vunpack.c.h.b16 %v8790_v44  ;;  %v9059_v44 = vunpack.c.h.b16 %v8793_v15  ;;  %v15310_v59 = vld [vmem:[%s20412_s16 + $0x2c] sm:$0xf] }
 0xca8   :  { %v9156_v2 = vpack.c.b16 %v9052_v61, %v9052_v61  ;;  %v9160_v61 = vpack.c.b16 %v9056_v16, %v9056_v16 }
 0xca9   :  { %v9157_v47 = vpack.c.b16 %v9053_v25, %v9053_v25 }
 0xcaa   :  { %v9273_v33 = vsel %vm5511_vm1, %v9156_v2, 0 }
 0xcab   :  { %9394 = vmatpush.bf16.msrb.mxu2 %v9273_v33  ;;  %v9276_v39 = vsel %vm5511_vm1, %v9157_v47, 0 }
 0xcac   :  { %9407 = vmatpush.bf16.msra.mxu3 %v9276_v39 }
 0xcaf   :  { %9395 = vmatpush.bf16.msrb.mxu2 %v13926_v28 }
 0xcb0   :  { %9408 = vmatpush.bf16.msra.mxu3 %v13930_v36 }
 0xcb3   :  { %9396 = vmatpush.bf16.msrb.mxu2 %v13822_v0  ;;  %v8795_v0 = vld [vmem:[%s20412_s16 + $0x2a8] sm:$0x33] }
 0xcb4   :  { %9409 = vmatpush.bf16.msra.mxu3 %v13826_v37  ;;  %v9060_v37 = vunpack.c.l.b16 %v8794_v13  ;;  %v13863_v13 = vld [vmem:[%s20412_s16 + $0x170] sm:$0xf0] }
 0xcb8   :  { %9410 = vmatpush.bf16.msra.mxu3 %v13722_v57  ;;  %v13743_v57 = vld [vmem:[%s20412_s16 + $0x90] sm:$0xf0] }
 0xcbc   :  { %v8666_v60 = vpop.f32.mrf.mxu2 }
 0xcbd   :  { %v19633_v45 = vadd.f32 %v8666_v60, %v8654_v9  ;;  %v13714_v9 = vor.u32 %v15306_v51, %v13711_v42  ;;  %v9054_v60 = vunpack.c.l.b16 %v8791_v32  ;;  %v9057_v51 = vunpack.c.h.b16 %v8792_v22 }
 0xcbe   :  { %v9058_v42 = vunpack.c.l.b16 %v8793_v15  ;;  %v9165_v22 = vpack.c.b16 %v9061_v14, %v9061_v14  ;;  %v13738_v15 = vor.u32 %v15309_v52, %v13735_v40  ;;  %v15311_v14 = vld [vmem:[%s20412_s16 + $0x34] sm:$0xf] }
 0xcbf   :  { %9384 = vmatpush.bf16.msra.mxu1 %v13714_v9  ;;  %v9158_v17 = vpack.c.b16 %v9054_v60, %v9054_v60 }
 0xcc0   :  { %v9162_v60 = vpack.c.b16 %v9058_v42, %v9058_v42 }
 0xcc1   :  { %v9279_v7 = vsel %vm5511_vm1, %v9158_v17, 0  ;;  %v9285_v17 = vsel %vm5511_vm1, %v9160_v61, 0  ;;  %v9300_v61 = vsel %vm5511_vm1, %v9165_v22, 0 }
 0xcc2   :  { %9420 = vmatpush.bf16.msrb.mxu0 %v9279_v7  ;;  %v9291_v39 = vsel %vm5511_vm1, %v9162_v60, 0  ;;  %v13957_v60 = vld [vmem:[%s20412_s16 + $0x1d0] sm:$0xf] }
 0xcc4   :  { %v8668_v26 = vpop.f32.mrf.mxu2 }
 0xcc5   :  { %v9055_v26 = vunpack.c.h.b16 %v8791_v32  ;;  %v9161_v32 = vpack.c.b16 %v9057_v51, %v9057_v51 }
 0xcc6   :  { %9421 = vmatpush.bf16.msrb.mxu0 %v13934_v56 }
 0xcc7   :  { %v19641_v63 = vpop.f32.mrf.mxu3  ;;  %v9159_v43 = vpack.c.b16 %v9055_v26, %v9055_v26  ;;  %v9163_v26 = vpack.c.b16 %v9059_v44, %v9059_v44  ;;  %v13746_v44 = vor.u32 %v15310_v59, %v13743_v57 }
 0xcc8   :  { %v8680_v9 = vadd.f32 %v19641_v63, %v19633_v45  ;;  %v13941_v45 = vld [vmem:[%s20412_s16 + $0x1c0] sm:$0xf]  ;;  %v15374_v63 = vld [vmem:[%s20412_s16 + $0x224] sm:$0xf0] }
 0xcc9   :  { %v9282_v18 = vsel %vm5511_vm1, %v9159_v43, 0  ;;  %v9288_v43 = vsel %vm5511_vm1, %v9161_v32, 0  ;;  %v9294_v7 = vsel %vm5511_vm1, %v9163_v26, 0  ;;  %v13942_v28 = vor.u32 %v15374_v63, %v13941_v45  ;;  %v15376_v26 = vld [vmem:[%s20412_s16 + $0x234] sm:$0xf0] }
 0xcca   :  { %9433 = vmatpush.bf16.msrb.mxu1 %v9282_v18  ;;  %9422 = vmatpush.bf16.msrb.mxu0 %v13830_v8  ;;  %v13943_v18 = vld [vmem:[%s20412_s16 + $0x228] sm:$0xf0]  ;;  %v13733_v8 = vld [vmem:[%s20412_s16 + $0x20] sm:$0xf]  ;;  %v13958_v63 = vor.u32 %v15376_v26, %v13957_v60 }
 0xccb   :  { %v13853_v45 = vld [vmem:[%s20412_s16 + $0x100] sm:$0xf] }
 0xcce   :  { %9434 = vmatpush.bf16.msrb.mxu1 %v13938_v19  ;;  %9423 = vmatpush.bf16.msrb.mxu0 %v13726_v24  ;;  %v13845_v19 = vld [vmem:[%s20412_s16 + $0xf8] sm:$0xf] }
 0xccf   :  { %v8681_v21 = vpop.f32.mrf.mxu3  ;;  %v13846_v58 = vor.u32 %v15349_v34, %v13845_v19  ;;  %v13749_v19 = vld [vmem:[%s20412_s16 + $0x30] sm:$0xf] }
 0xcd0   :  { %v15320_v21 = vld [vmem:[%s20412_s16 + $0x74] sm:$0xf0] }
 0xcd1   :  { %v13718_v48 = vor.u32 %v15320_v21, %v13717_v54  ;;  %v9062_v54 = vunpack.c.l.b16 %v8795_v0  ;;  %v9063_v21 = vunpack.c.h.b16 %v8795_v0  ;;  %v15324_v0 = vld [vmem:[%s20412_s16 + $0x94] sm:$0xf0] }
 0xcd2   :  { %9435 = vmatpush.bf16.msrb.mxu1 %v13834_v6  ;;  %v15322_v6 = vld [vmem:[%s20412_s16 + $0x84] sm:$0xf0] }
 0xcd3   :  { %9397 = vmatpush.bf16.msrb.mxu2 %v13718_v48  ;;  %v13741_v48 = vld [vmem:[%s20412_s16 + $0x28] sm:$0xf]  ;;  %v13734_v24 = vor.u32 %v15322_v6, %v13733_v8  ;;  %v9166_v16 = vpack.c.b16 %v9062_v54, %v9062_v54  ;;  %v9167_v51 = vpack.c.b16 %v9063_v21, %v9063_v21  ;;  %v15325_v8 = vld [vmem:[%s20412_s16 + $0x9c] sm:$0xf0]  ;;  %v15312_v6 = vld [vmem:[%s20412_s16 + $0x3c] sm:$0xf]  ;;  %v13750_v21 = vor.u32 %v15324_v0, %v13749_v19 }
 0xcd4   :  { %v13742_v42 = vor.u32 %v15323_v46, %v13741_v48  ;;  %v13759_v54 = vld [vmem:[%s20412_s16 + $0xa0] sm:$0xf0]  ;;  %v15327_v19 = vld [vmem:[%s20412_s16 + $0xac] sm:$0xf0]  ;;  %v15314_v0 = vld [vmem:[%s20412_s16 + $0x4c] sm:$0xf] }
 0xcd5   :  { %v9303_v32 = vsel %vm5511_vm1, %v9166_v16, 0  ;;  %v13762_v59 = vor.u32 %v15312_v6, %v13759_v54  ;;  %v15378_v16 = vld [vmem:[%s20412_s16 + $0x244] sm:$0xf0] }
 0xcd6   :  { %9436 = vmatpush.bf16.msrb.mxu1 %v13730_v50  ;;  %v9164_v50 = vpack.c.b16 %v9060_v37, %v9060_v37  ;;  %v13866_v37 = vor.u32 %v15338_v12, %v13863_v13 }
 0xce5   :  { %v19713_v30 = vpop.f32.mrf.mxu0 }
 0xce6   :  { %v8693_v25 = vadd.f32 %v19713_v30, %v8680_v9  ;;  %v15361_v30 = vld [vmem:[%s20412_s16 + $0x1c4] sm:$0xf]  ;;  %v9297_v9 = vsel %vm5511_vm1, %v9164_v50, 0 }
 0xce7   :  { %v13946_v36 = vor.u32 %v15361_v30, %v13943_v18  ;;  %v15350_v18 = vld [vmem:[%s20412_s16 + $0x164] sm:$0xf0] }
 0xced   :  { %v8694_v53 = vpop.f32.mrf.mxu0 }
 0xcee   :  { %v13837_v53 = vld [vmem:[%s20412_s16 + $0xf0] sm:$0xf] }
 0xcef   :  { %v13838_v55 = vor.u32 %v15348_v5, %v13837_v53  ;;  %v13855_v53 = vld [vmem:[%s20412_s16 + $0x168] sm:$0xf0]  ;;  %v15351_v5 = vld [vmem:[%s20412_s16 + $0x16c] sm:$0xf0] }
 0xcf0   :  { %v13858_v41 = vor.u32 %v15337_v27, %v13855_v53  ;;  %v13879_v27 = vld [vmem:[%s20412_s16 + $0x180] sm:$0xf0] }
 0xd06   :  { %v8705_v2 = vpop.f32.mrf.mxu1 }
 0xd07   :  { %v8706_v47 = vadd.f32 %v8705_v2, %v8693_v25  ;;  %v9306_v25 = vsel %vm5511_vm1, %v9167_v51, 0  ;;  %v15363_v2 = vld [vmem:[%s20412_s16 + $0x1d4] sm:$0xf]  ;;  %v15365_v51 = vld [vmem:[%s20412_s16 + $0x1e4] sm:$0xf] }
 0xd09   :  { %v19814_v33 = vpack.c.bf16 %v8706_v47, %v8706_v47  ;;  %v13959_v47 = vld [vmem:[%s20412_s16 + $0x238] sm:$0xf0] }
 0xd0a   :  { %v13962_v30 = vor.u32 %v15363_v2, %v13959_v47  ;;  %v15352_v2 = vld [vmem:[%s20412_s16 + $0x174] sm:$0xf0]  ;;  %v15339_v47 = vld [vmem:[%s20412_s16 + $0x114] sm:$0xf] }
 0xd0b   :  { %14011 = vmatmul.msk.bf16.vlgmr.msra.gmra.mxu2 %vm9256_vm13, %v19814_v33  ;;  %14012 = vmatmul.msk.bf16.vlgmr.msrb.gmra.mxu3 %vm9256_vm13, %v19814_v33 }
 0xd0c   :  { %14013 = vmatmul.msk.bf16.vlgmr.msra.gmra.mxu0 %vm9256_vm13, %v19814_v33  ;;  %14014 = vmatmul.msk.bf16.vlgmr.msra.gmra.mxu1 %vm9256_vm13, %v19814_v33 }
 0xd0d   :  { %9446 = vmatpush.bf16.msra.mxu2 %v9285_v17  ;;  %9459 = vmatpush.bf16.msrb.mxu3 %v9288_v43  ;;  %v13965_v17 = vld [vmem:[%s20412_s16 + $0x1d8] sm:$0xf]  ;;  %v15377_v43 = vld [vmem:[%s20412_s16 + $0x23c] sm:$0xf0] }
 0xd0e   :  { %v8707_v56 = vpop.f32.mrf.mxu1  ;;  %9472 = vmatpush.bf16.msra.mxu0 %v9291_v39  ;;  %9485 = vmatpush.bf16.msra.mxu1 %v9294_v7  ;;  %v15364_v39 = vld [vmem:[%s20412_s16 + $0x1dc] sm:$0xf]  ;;  %v13967_v7 = vld [vmem:[%s20412_s16 + $0x240] sm:$0xf0]  ;;  %v13966_v35 = vor.u32 %v15377_v43, %v13965_v17 }
 0xd0f   :  { %v13970_v62 = vor.u32 %v15364_v39, %v13967_v7  ;;  %v9064_v56 = vunpack.c.l.b16 %v8796_v23  ;;  %v8798_v17 = vld [vmem:[%s20412_s16 + $0x2c0] sm:$0x33]  ;;  %v13871_v7 = vld [vmem:[%s20412_s16 + $0x178] sm:$0xf0] }
 0xd10   :  { %v13874_v53 = vor.u32 %v15339_v47, %v13871_v7 }
 0xd11   :  { %9447 = vmatpush.bf16.msra.mxu2 %v13942_v28  ;;  %9460 = vmatpush.bf16.msrb.mxu3 %v13946_v36  ;;  %v13861_v28 = vld [vmem:[%s20412_s16 + $0x108] sm:$0xf]  ;;  %v8797_v36 = vld [vmem:[%s20412_s16 + $0x2b8] sm:$0x33] }
 0xd12   :  { %9473 = vmatpush.bf16.msra.mxu0 %v13950_v31  ;;  %9486 = vmatpush.bf16.msra.mxu1 %v13954_v4  ;;  %v9065_v31 = vunpack.c.h.b16 %v8796_v23  ;;  %v13854_v4 = vor.u32 %v15350_v18, %v13853_v45  ;;  %v9066_v34 = vunpack.c.l.b16 %v8797_v36  ;;  %v9067_v1 = vunpack.c.h.b16 %v8797_v36  ;;  %v13877_v45 = vld [vmem:[%s20412_s16 + $0x118] sm:$0xf]  ;;  %v15340_v18 = vld [vmem:[%s20412_s16 + $0x11c] sm:$0xf]  ;;  %v15326_v36 = vld [vmem:[%s20412_s16 + $0xa4] sm:$0xf0] }
 0xd13   :  { %v13862_v3 = vor.u32 %v15351_v5, %v13861_v28  ;;  %v9068_v23 = vunpack.c.l.b16 %v8798_v17  ;;  %v13765_v28 = vld [vmem:[%s20412_s16 + $0x40] sm:$0xf] }
 0xd14   :  { %v9170_v40 = vpack.c.b16 %v9066_v34, %v9066_v34  ;;  %v9171_v48 = vpack.c.b16 %v9067_v1, %v9067_v1  ;;  %v13775_v34 = vld [vmem:[%s20412_s16 + $0xb0] sm:$0xf0]  ;;  %v13766_v1 = vor.u32 %v15326_v36, %v13765_v28 }
 0xd15   :  { %9448 = vmatpush.bf16.msra.mxu2 %v13838_v55  ;;  %9461 = vmatpush.bf16.msrb.mxu3 %v13842_v38  ;;  %v13751_v55 = vld [vmem:[%s20412_s16 + $0x98] sm:$0xf0]  ;;  %v13757_v38 = vld [vmem:[%s20412_s16 + $0x38] sm:$0xf]  ;;  %v13778_v6 = vor.u32 %v15314_v0, %v13775_v34  ;;  %v15369_v0 = vld [vmem:[%s20412_s16 + $0x204] sm:$0xf] }
 0xd16   :  { %9474 = vmatpush.bf16.msra.mxu0 %v13846_v58  ;;  %9487 = vmatpush.bf16.msra.mxu1 %v13850_v49  ;;  %v9168_v58 = vpack.c.b16 %v9064_v56, %v9064_v56  ;;  %v9169_v49 = vpack.c.b16 %v9065_v31, %v9065_v31  ;;  %v13754_v52 = vor.u32 %v15311_v14, %v13751_v55  ;;  %v9315_v50 = vsel %vm5511_vm1, %v9170_v40, 0  ;;  %v15313_v31 = vld [vmem:[%s20412_s16 + $0x44] sm:$0xf]  ;;  %v15380_v40 = vld [vmem:[%s20412_s16 + $0x254] sm:$0xf0] }
 0xd17   :  { %v13758_v46 = vor.u32 %v15325_v8, %v13757_v38  ;;  %v9318_v22 = vsel %vm5511_vm1, %v9171_v48, 0  ;;  %v13882_v56 = vor.u32 %v15340_v18, %v13879_v27  ;;  %v15367_v48 = vld [vmem:[%s20412_s16 + $0x1f4] sm:$0xf]  ;;  %v13783_v27 = vld [vmem:[%s20412_s16 + $0xb8] sm:$0xf0] }
 0xd18   :  { %v9309_v57 = vsel %vm5511_vm1, %v9168_v58, 0  ;;  %v15315_v18 = vld [vmem:[%s20412_s16 + $0x54] sm:$0xf]  ;;  %v14007_v34 = vld [vmem:[%s20412_s16 + $0x268] sm:$0xf0] }
 0xd19   :  { %9449 = vmatpush.bf16.msra.mxu2 %v13734_v24  ;;  %9462 = vmatpush.bf16.msrb.mxu3 %v13738_v15  ;;  %v9312_v24 = vsel %vm5511_vm1, %v9169_v49, 0  ;;  %v13973_v15 = vld [vmem:[%s20412_s16 + $0x1e0] sm:$0xf]  ;;  %v13786_v36 = vor.u32 %v15315_v18, %v13783_v27 }
 0xd1a   :  { %9475 = vmatpush.bf16.msra.mxu0 %v13742_v42  ;;  %9488 = vmatpush.bf16.msra.mxu1 %v13746_v44  ;;  %v13975_v42 = vld [vmem:[%s20412_s16 + $0x248] sm:$0xf0]  ;;  %v13981_v44 = vld [vmem:[%s20412_s16 + $0x1e8] sm:$0xf]  ;;  %v13974_v60 = vor.u32 %v15378_v16, %v13973_v15  ;;  %v13885_v16 = vld [vmem:[%s20412_s16 + $0x120] sm:$0xf] }
 0xd1b   :  { %14015 = vmatmul.msk.bf16.vlgmr.msrb.gmra.mxu2 %vm9256_vm13, %v19814_v33  ;;  %14016 = vmatmul.msk.bf16.vlgmr.msra.gmra.mxu3 %vm9256_vm13, %v19814_v33  ;;  %v13978_v26 = vor.u32 %v15365_v51, %v13975_v42  ;;  %v15354_v51 = vld [vmem:[%s20412_s16 + $0x184] sm:$0xf0]  ;;  %v15341_v42 = vld [vmem:[%s20412_s16 + $0x124] sm:$0xf] }
 0xd1c   :  { %14017 = vmatmul.msk.bf16.vlgmr.msrb.gmra.mxu0 %vm9256_vm13, %v19814_v33  ;;  %14018 = vmatmul.msk.bf16.vlgmr.msrb.gmra.mxu1 %vm9256_vm13, %v19814_v33  ;;  %v13886_v47 = vor.u32 %v15354_v51, %v13885_v16 }
 0xd1d   :  { %9498 = vmatpush.bf16.msrb.mxu2 %v9297_v9  ;;  %9511 = vmatpush.bf16.msra.mxu3 %v9300_v61  ;;  %v15379_v9 = vld [vmem:[%s20412_s16 + $0x24c] sm:$0xf0]  ;;  %v15366_v61 = vld [vmem:[%s20412_s16 + $0x1ec] sm:$0xf] }
 0xd1e   :  { %9524 = vmatpush.bf16.msrb.mxu0 %v9303_v32  ;;  %9537 = vmatpush.bf16.msrb.mxu1 %v9306_v25  ;;  %v13983_v32 = vld [vmem:[%s20412_s16 + $0x250] sm:$0xf0]  ;;  %v13869_v25 = vld [vmem:[%s20412_s16 + $0x110] sm:$0xf]  ;;  %v13982_v43 = vor.u32 %v15379_v9, %v13981_v44 }
 0xd1f   :  { %v13986_v39 = vor.u32 %v15366_v61, %v13983_v32  ;;  %v13887_v61 = vld [vmem:[%s20412_s16 + $0x188] sm:$0xf0]  ;;  %v13893_v32 = vld [vmem:[%s20412_s16 + $0x128] sm:$0xf] }
 0xd21   :  { %9499 = vmatpush.bf16.msrb.mxu2 %v13958_v63  ;;  %9512 = vmatpush.bf16.msra.mxu3 %v13962_v30  ;;  %v8799_v63 = vld [vmem:[%s20412_s16 + $0x2c8] sm:$0x33]  ;;  %v15353_v30 = vld [vmem:[%s20412_s16 + $0x17c] sm:$0xf0] }
 0xd22   :  { %9525 = vmatpush.bf16.msrb.mxu0 %v13966_v35  ;;  %9538 = vmatpush.bf16.msrb.mxu1 %v13970_v62  ;;  %v9069_v35 = vunpack.c.h.b16 %v8798_v17  ;;  %v13870_v62 = vor.u32 %v15352_v2, %v13869_v25  ;;  %v9070_v5 = vunpack.c.l.b16 %v8799_v63  ;;  %v9071_v12 = vunpack.c.h.b16 %v8799_v63  ;;  %v8800_v25 = vld [vmem:[%s20412_s16 + $0x2d0] sm:$0x33] }
 0xd23   :  { %v13878_v13 = vor.u32 %v15353_v30, %v13877_v45  ;;  %v13895_v2 = vld [vmem:[%s20412_s16 + $0x190] sm:$0xf0]  ;;  %v13890_v17 = vor.u32 %v15341_v42, %v13887_v61  ;;  %v9072_v7 = vunpack.c.l.b16 %v8800_v25  ;;  %v9073_v45 = vunpack.c.h.b16 %v8800_v25 }
 0xd24   :  { %v9174_v55 = vpack.c.b16 %v9070_v5, %v9070_v5  ;;  %v9175_v38 = vpack.c.b16 %v9071_v12, %v9071_v12 }
 0xd25   :  { %9500 = vmatpush.bf16.msrb.mxu2 %v13854_v4  ;;  %9513 = vmatpush.bf16.msra.mxu3 %v13858_v41  ;;  %v13767_v4 = vld [vmem:[%s20412_s16 + $0xa8] sm:$0xf0]  ;;  %v13773_v41 = vld [vmem:[%s20412_s16 + $0x48] sm:$0xf]  ;;  %v9176_v5 = vpack.c.b16 %v9072_v7, %v9072_v7  ;;  %v9177_v12 = vpack.c.b16 %v9073_v45, %v9073_v45 }
 0xd26   :  { %9526 = vmatpush.bf16.msrb.mxu0 %v13862_v3  ;;  %9539 = vmatpush.bf16.msrb.mxu1 %v13866_v37  ;;  %v9172_v3 = vpack.c.b16 %v9068_v23, %v9068_v23  ;;  %v9173_v37 = vpack.c.b16 %v9069_v35, %v9069_v35  ;;  %v13770_v14 = vor.u32 %v15313_v31, %v13767_v4  ;;  %v9327_v58 = vsel %vm5511_vm1, %v9174_v55, 0  ;;  %v13789_v23 = vld [vmem:[%s20412_s16 + $0x58] sm:$0xf]  ;;  %v15329_v35 = vld [vmem:[%s20412_s16 + $0xbc] sm:$0xf0] }
 0xd27   :  { %v13774_v8 = vor.u32 %v15327_v19, %v13773_v41  ;;  %v9330_v49 = vsel %vm5511_vm1, %v9175_v38, 0  ;;  %v9333_v31 = vsel %vm5511_vm1, %v9176_v5, 0  ;;  %v9336_v4 = vsel %vm5511_vm1, %v9177_v12, 0  ;;  %v14005_v41 = vld [vmem:[%s20412_s16 + $0x200] sm:$0xf] }
 0xd28   :  { %v9321_v54 = vsel %vm5511_vm1, %v9172_v3, 0  ;;  %v15382_v19 = vld [vmem:[%s20412_s16 + $0x264] sm:$0xf0]  ;;  %v14010_v3 = vor.u32 %v15369_v0, %v14007_v34  ;;  %v15343_v55 = vld [vmem:[%s20412_s16 + $0x134] sm:$0xf] }
 0xd29   :  { %9501 = vmatpush.bf16.msrb.mxu2 %v13750_v21  ;;  %9514 = vmatpush.bf16.msra.mxu3 %v13754_v52  ;;  %v9324_v21 = vsel %vm5511_vm1, %v9173_v37, 0  ;;  %v13989_v52 = vld [vmem:[%s20412_s16 + $0x1f0] sm:$0xf]  ;;  %v13903_v38 = vld [vmem:[%s20412_s16 + $0x198] sm:$0xf0] }
 0xd2a   :  { %9527 = vmatpush.bf16.msrb.mxu0 %v13758_v46  ;;  %9540 = vmatpush.bf16.msrb.mxu1 %v13762_v59  ;;  %v13991_v46 = vld [vmem:[%s20412_s16 + $0x258] sm:$0xf0]  ;;  %v13997_v59 = vld [vmem:[%s20412_s16 + $0x1f8] sm:$0xf]  ;;  %v13901_v37 = vld [vmem:[%s20412_s16 + $0x130] sm:$0xf] }
 0xd2b   :  { %14019 = vmatmul.msk.bf16.vlgmr.msra.gmra.mxu2 %vm9256_vm13, %v19814_v33  ;;  %14020 = vmatmul.msk.bf16.vlgmr.msrb.gmra.mxu3 %vm9256_vm13, %v19814_v33  ;;  %v13994_v15 = vor.u32 %v15367_v48, %v13991_v46 }
 0xd2c   :  { %14021 = vmatmul.msk.bf16.vlgmr.msra.gmra.mxu0 %vm9256_vm13, %v19814_v33  ;;  %14022 = vmatmul.msk.bf16.vlgmr.msra.gmra.mxu1 %vm9256_vm13, %v19814_v33 }
 0xd2d   :  { %9550 = vmatpush.bf16.msra.mxu2 %v9309_v57  ;;  %9563 = vmatpush.bf16.msrb.mxu3 %v9312_v24  ;;  %v15381_v57 = vld [vmem:[%s20412_s16 + $0x25c] sm:$0xf0]  ;;  %v15368_v24 = vld [vmem:[%s20412_s16 + $0x1fc] sm:$0xf] }
 0xd2e   :  { %9576 = vmatpush.bf16.msra.mxu0 %v9315_v50  ;;  %9589 = vmatpush.bf16.msra.mxu1 %v9318_v22  ;;  %v13999_v50 = vld [vmem:[%s20412_s16 + $0x260] sm:$0xf0]  ;;  %v13990_v22 = vor.u32 %v15380_v40, %v13989_v52  ;;  %v13998_v44 = vor.u32 %v15381_v57, %v13997_v59 }
 0xd2f   :  { %v14002_v9 = vor.u32 %v15368_v24, %v13999_v50 }
 0xd31   :  { %9551 = vmatpush.bf16.msra.mxu2 %v13974_v60  ;;  %9564 = vmatpush.bf16.msrb.mxu3 %v13978_v26  ;;  %v15355_v60 = vld [vmem:[%s20412_s16 + $0x18c] sm:$0xf0]  ;;  %v15342_v26 = vld [vmem:[%s20412_s16 + $0x12c] sm:$0xf] }
 0xd32   :  { %9577 = vmatpush.bf16.msra.mxu0 %v13982_v43  ;;  %9590 = vmatpush.bf16.msra.mxu1 %v13986_v39  ;;  %v13781_v43 = vld [vmem:[%s20412_s16 + $0x50] sm:$0xf]  ;;  %v15328_v39 = vld [vmem:[%s20412_s16 + $0xb4] sm:$0xf0]  ;;  %v13894_v63 = vor.u32 %v15355_v60, %v13893_v32  ;;  %v13898_v30 = vor.u32 %v15342_v26, %v13895_v2 }
 0xd33   :  { %v13782_v28 = vor.u32 %v15328_v39, %v13781_v43 }
 0xd35   :  { %9552 = vmatpush.bf16.msra.mxu2 %v13870_v62  ;;  %9565 = vmatpush.bf16.msrb.mxu3 %v13874_v53  ;;  %v15316_v62 = vld [vmem:[%s20412_s16 + $0x5c] sm:$0xf]  ;;  %v13791_v53 = vld [vmem:[%s20412_s16 + $0xc0] sm:$0xf0] }
 0xd36   :  { %9578 = vmatpush.bf16.msra.mxu0 %v13878_v13  ;;  %9591 = vmatpush.bf16.msra.mxu1 %v13882_v56  ;;  %v13790_v13 = vor.u32 %v15329_v35, %v13789_v23  ;;  %v13794_v56 = vor.u32 %v15316_v62, %v13791_v53 }
 0xd39   :  { %9553 = vmatpush.bf16.msra.mxu2 %v13766_v1  ;;  %9566 = vmatpush.bf16.msrb.mxu3 %v13770_v14  ;;  %v14006_v1 = vor.u32 %v15382_v19, %v14005_v41  ;;  %v15356_v14 = vld [vmem:[%s20412_s16 + $0x194] sm:$0xf0] }
 0xd3a   :  { %9579 = vmatpush.bf16.msra.mxu0 %v13774_v8  ;;  %9592 = vmatpush.bf16.msra.mxu1 %v13778_v6  ;;  %v13902_v8 = vor.u32 %v15356_v14, %v13901_v37  ;;  %v13906_v6 = vor.u32 %v15343_v55, %v13903_v38 }
 0xd3b   :  { %14023 = vmatmul.msk.bf16.vlgmr.msrb.gmra.mxu2 %vm9256_vm13, %v19814_v33  ;;  %14024 = vmatmul.msk.bf16.vlgmr.msra.gmra.mxu3 %vm9256_vm13, %v19814_v33 }
 0xd3c   :  { %14025 = vmatmul.msk.bf16.vlgmr.msrb.gmra.mxu0 %vm9256_vm13, %v19814_v33  ;;  %14026 = vmatmul.msk.bf16.vlgmr.msrb.gmra.mxu1 %vm9256_vm13, %v19814_v33 }
 0xd3d   :  { %9602 = vmatpush.bf16.msrb.mxu2 %v9321_v54  ;;  %9615 = vmatpush.bf16.msra.mxu3 %v9324_v21  ;;  %v13797_v54 = vld [vmem:[%s20412_s16 + $0x60] sm:$0xf]  ;;  %v15330_v21 = vld [vmem:[%s20412_s16 + $0xc4] sm:$0xf0] }
 0xd3e   :  { %9628 = vmatpush.bf16.msrb.mxu0 %v9327_v58  ;;  %9641 = vmatpush.bf16.msrb.mxu1 %v9330_v49  ;;  %v15317_v58 = vld [vmem:[%s20412_s16 + $0x64] sm:$0xf]  ;;  %v13799_v49 = vld [vmem:[%s20412_s16 + $0xc8] sm:$0xf0]  ;;  %v13798_v52 = vor.u32 %v15330_v21, %v13797_v54 }
 0xd3f   :  { %v13802_v40 = vor.u32 %v15317_v58, %v13799_v49 }
 0xd41   :  { %9603 = vmatpush.bf16.msrb.mxu2 %v13990_v22  ;;  %9616 = vmatpush.bf16.msra.mxu3 %v13994_v15 }
 0xd42   :  { %9629 = vmatpush.bf16.msrb.mxu0 %v13998_v44  ;;  %9642 = vmatpush.bf16.msrb.mxu1 %v14002_v9 }
 0xd45   :  { %9604 = vmatpush.bf16.msrb.mxu2 %v13886_v47  ;;  %9617 = vmatpush.bf16.msra.mxu3 %v13890_v17 }
 0xd46   :  { %9630 = vmatpush.bf16.msrb.mxu0 %v13894_v63  ;;  %9643 = vmatpush.bf16.msrb.mxu1 %v13898_v30 }
 0xd49   :  { %9605 = vmatpush.bf16.msrb.mxu2 %v13782_v28  ;;  %9618 = vmatpush.bf16.msra.mxu3 %v13786_v36 }
 0xd4a   :  { %9631 = vmatpush.bf16.msrb.mxu0 %v13790_v13  ;;  %9644 = vmatpush.bf16.msrb.mxu1 %v13794_v56 }
 0xd4b   :  { %14027 = vmatmul.msk.bf16.vlgmr.msra.gmra.mxu2 %vm9256_vm13, %v19814_v33  ;;  %14028 = vmatmul.msk.bf16.vlgmr.msrb.gmra.mxu3 %vm9256_vm13, %v19814_v33 }
 0xd4c   :  { %14029 = vmatmul.msk.bf16.vlgmr.msra.gmra.mxu0 %vm9256_vm13, %v19814_v33  ;;  %14030 = vmatmul.msk.bf16.vlgmr.msra.gmra.mxu1 %vm9256_vm13, %v19814_v33 }
 0xd4d   :  { %9654 = vmatpush.bf16.msra.mxu2 %v9333_v31  ;;  %9667 = vmatpush.bf16.msrb.mxu3 %v9336_v4 }
 0xd51   :  { %9655 = vmatpush.bf16.msra.mxu2 %v14006_v1  ;;  %9668 = vmatpush.bf16.msrb.mxu3 %v14010_v3 }
 0xd55   :  { %9656 = vmatpush.bf16.msra.mxu2 %v13902_v8  ;;  %9669 = vmatpush.bf16.msrb.mxu3 %v13906_v6 }
 0xd59   :  { %9657 = vmatpush.bf16.msra.mxu2 %v13798_v52  ;;  %9670 = vmatpush.bf16.msrb.mxu3 %v13802_v40 }
 0xd5b   :  { %14031 = vmatmul.msk.bf16.vlgmr.msrb.gmra.mxu2 %vm9256_vm13, %v19814_v33  ;;  %14032 = vmatmul.msk.bf16.vlgmr.msra.gmra.mxu3 %vm9256_vm13, %v19814_v33 }
 0xd5c   :  { %14033 = vmatmul.msk.bf16.vlgmr.msrb.gmra.mxu0 %vm9256_vm13, %v19814_v33  ;;  %14034 = vmatmul.msk.bf16.vlgmr.msrb.gmra.mxu1 %vm9256_vm13, %v19814_v33 }
 0xd6b   :  { %14035 = vmatmul.msk.bf16.vlgmr.msra.gmra.mxu2 %vm9256_vm13, %v19814_v33  ;;  %14036 = vmatmul.msk.bf16.vlgmr.msrb.gmra.mxu3 %vm9256_vm13, %v19814_v33 }
 0xd89   :  { %v9373_v48 = vpop.f32.mrf.mxu0  ;;  %v9386_v46 = vpop.f32.mrf.mxu1 }
 0xd8a   :  { %v9703_v59 = vrot.slane %v9373_v48, 4  ;;  %v9704_v57 = vrot.slane %v9386_v46, 2 }
 0xd8c   :  { %v9723_v16 = vsel %vm9722_vm4, %v9703_v59, %v9704_v57 }
 0xd8e   :  { %v9347_v24 = vpop.f32.mrf.mxu2  ;;  %v9360_v50 = vpop.f32.mrf.mxu3 }
 0xd8f   :  { %v9702_v22 = vrot.slane %v9360_v50, 6 }
 0xd91   :  { %v9721_v15 = vsel %vm5511_vm1, %v9347_v24, %v9702_v22  ;;  %v9375_v51 = vpop.f32.mrf.mxu0  ;;  %v9388_v42 = vpop.f32.mrf.mxu1 }
 0xd92   :  { %v9724_v44 = vsel %vm4330_vm9, %v9721_v15, %v9723_v16 }
 0xd93   :  { %9748 = vst [vmem:[%s20417_s24] sm:$0xff] %v9724_v44 }
 0xd96   :  { %v9349_v33 = vpop.f32.mrf.mxu2  ;;  %v9362_v9 = vpop.f32.mrf.mxu3 }
 0xd99   :  { %v9425_v61 = vpop.f32.mrf.mxu0  ;;  %v9438_v32 = vpop.f32.mrf.mxu1 }
 0xd9a   :  { %v9706_v25 = vrot.slane %v9425_v61, 4  ;;  %v9707_v60 = vrot.slane %v9438_v32, 2 }
 0xd9c   :  { %v9726_v43 = vsel %vm9722_vm4, %v9706_v25, %v9707_v60 }
 0xd9e   :  { %v9399_v26 = vpop.f32.mrf.mxu2  ;;  %v9412_v2 = vpop.f32.mrf.mxu3 }
 0xd9f   :  { %v9705_v47 = vrot.slane %v9412_v2, 6 }
 0xda1   :  { %v9725_v17 = vsel %vm5511_vm1, %v9399_v26, %v9705_v47  ;;  %v9427_v39 = vpop.f32.mrf.mxu0  ;;  %v9440_v7 = vpop.f32.mrf.mxu1 }
 0xda2   :  { %v9727_v45 = vsel %vm4330_vm9, %v9725_v17, %v9726_v43 }
 0xda3   :  { %9749 = vst [vmem:[%s20417_s24 + $0x8] sm:$0xff] %v9727_v45 }
 0xda6   :  { %v9401_v63 = vpop.f32.mrf.mxu2  ;;  %v9414_v30 = vpop.f32.mrf.mxu3 }
 0xda9   :  { %v9477_v18 = vpop.f32.mrf.mxu0  ;;  %v9490_v27 = vpop.f32.mrf.mxu1 }
 0xdaa   :  { %v9709_v23 = vrot.slane %v9477_v18, 4  ;;  %v9710_v35 = vrot.slane %v9490_v27, 2 }
 0xdac   :  { %v9729_v5 = vsel %vm9722_vm4, %v9709_v23, %v9710_v35 }
 0xdae   :  { %v9451_v62 = vpop.f32.mrf.mxu2  ;;  %v9464_v53 = vpop.f32.mrf.mxu3 }
 0xdaf   :  { %v9708_v28 = vrot.slane %v9464_v53, 6 }
 0xdb1   :  { %v9728_v36 = vsel %vm5511_vm1, %v9451_v62, %v9708_v28  ;;  %v9479_v12 = vpop.f32.mrf.mxu0  ;;  %v9492_v13 = vpop.f32.mrf.mxu1 }
 0xdb2   :  { %v9730_v56 = vsel %vm4330_vm9, %v9728_v36, %v9729_v5 }
 0xdb3   :  { %9750 = vst [vmem:[%s20417_s24 + $0x10] sm:$0xff] %v9730_v56 }
 0xdb6   :  { %v9453_v31 = vpop.f32.mrf.mxu2  ;;  %v9466_v4 = vpop.f32.mrf.mxu3 }
 0xdb9   :  { %v9529_v41 = vpop.f32.mrf.mxu0  ;;  %v9542_v19 = vpop.f32.mrf.mxu1 }
 0xdba   :  { %v9712_v0 = vrot.slane %v9529_v41, 4  ;;  %v9713_v34 = vrot.slane %v9542_v19, 2 }
 0xdbc   :  { %v9732_v55 = vsel %vm9722_vm4, %v9712_v0, %v9713_v34 }
 0xdbe   :  { %v9503_v1 = vpop.f32.mrf.mxu2  ;;  %v9516_v3 = vpop.f32.mrf.mxu3 }
 0xdbf   :  { %v9711_v37 = vrot.slane %v9516_v3, 6 }
 0xdc1   :  { %v9731_v14 = vsel %vm5511_vm1, %v9503_v1, %v9711_v37  ;;  %v9531_v38 = vpop.f32.mrf.mxu0  ;;  %v9544_v8 = vpop.f32.mrf.mxu1 }
 0xdc2   :  { %v9733_v6 = vsel %vm4330_vm9, %v9731_v14, %v9732_v55 }
 0xdc3   :  { %9751 = vst [vmem:[%s20417_s24 + $0x18] sm:$0xff] %v9733_v6 }
 0xdc6   :  { %v9505_v54 = vpop.f32.mrf.mxu2  ;;  %v9518_v21 = vpop.f32.mrf.mxu3 }
 0xdc9   :  { %v9581_v58 = vpop.f32.mrf.mxu0  ;;  %v9594_v49 = vpop.f32.mrf.mxu1 }
 0xdca   :  { %v9715_v52 = vrot.slane %v9581_v58, 4  ;;  %v9716_v40 = vrot.slane %v9594_v49, 2 }
 0xdcc   :  { %v9735_v24 = vsel %vm9722_vm4, %v9715_v52, %v9716_v40 }
 0xdce   :  { %v9555_v48 = vpop.f32.mrf.mxu2  ;;  %v9568_v46 = vpop.f32.mrf.mxu3 }
 0xdcf   :  { %v9714_v59 = vrot.slane %v9568_v46, 6 }
 0xdd1   :  { %v9734_v57 = vsel %vm5511_vm1, %v9555_v48, %v9714_v59  ;;  %v9583_v50 = vpop.f32.mrf.mxu0  ;;  %v9596_v22 = vpop.f32.mrf.mxu1 }
 0xdd2   :  { %v9736_v15 = vsel %vm4330_vm9, %v9734_v57, %v9735_v24 }
 0xdd3   :  { %9752 = vst [vmem:[%s20417_s24 + $0x20] sm:$0xff] %v9736_v15 }
 0xdd6   :  { %v9557_v16 = vpop.f32.mrf.mxu2  ;;  %v9570_v51 = vpop.f32.mrf.mxu3 }
 0xdd9   :  { %v9633_v42 = vpop.f32.mrf.mxu0  ;;  %v9646_v44 = vpop.f32.mrf.mxu1 }
 0xdda   :  { %v9718_v33 = vrot.slane %v9633_v42, 4  ;;  %v9719_v9 = vrot.slane %v9646_v44, 2 }
 0xddc   :  { %v9738_v26 = vsel %vm9722_vm4, %v9718_v33, %v9719_v9 }
 0xdde   :  { %v9607_v61 = vpop.f32.mrf.mxu2  ;;  %v9620_v32 = vpop.f32.mrf.mxu3 }
 0xddf   :  { %v9717_v25 = vrot.slane %v9620_v32, 6 }
 0xde1   :  { %v9737_v60 = vsel %vm5511_vm1, %v9607_v61, %v9717_v25  ;;  %v9635_v2 = vpop.f32.mrf.mxu0  ;;  %v9648_v47 = vpop.f32.mrf.mxu1 }
 0xde2   :  { %v9739_v17 = vsel %vm4330_vm9, %v9737_v60, %v9738_v26 }
 0xde3   :  { %9753 = vst [vmem:[%s20417_s24 + $0x28] sm:$0xff] %v9739_v17 }
 0xde6   :  { %v9609_v43 = vpop.f32.mrf.mxu2  ;;  %v9622_v39 = vpop.f32.mrf.mxu3 }
 0xdee   :  { %v9659_v7 = vpop.f32.mrf.mxu2  ;;  %v9672_v45 = vpop.f32.mrf.mxu3 }
 0xdef   :  { %v9720_v63 = vrot.slane %v9672_v45, 6 }
 0xdf1   :  { %v9740_v30 = vsel %vm5511_vm1, %v9659_v7, %v9720_v63 }
 0xdf2   :  { %9754 = vst [vmem:[%s20417_s24 + $0x30] sm:$0xf] %v9740_v30 }
 0xdf6   :  { %v9661_v18 = vpop.f32.mrf.mxu2  ;;  %v9674_v27 = vpop.f32.mrf.mxu3 }
 0xdf7   :  { %15634 = dma.done.wait [#allocation6 + $0x3], 16384 }
 0xdf8   :  { %15635 = vsyncadd [#allocation6 + $0x3], 4294950912  ;;  %v14151_v23 = vld [vmem:[#allocation5 + $0xe0] sm:$0xf]  ;;  %v15413_v35 = vld [vmem:[#allocation5 + $0xec] sm:$0xf0] }
 0xdf9   :  { %v14279_v62 = vld [vmem:[#allocation5 + $0x1e0] sm:$0xf]  ;;  %v14152_v53 = vor.u32 %v15413_v35, %v14151_v23  ;;  %v15445_v28 = vld [vmem:[#allocation5 + $0x1ec] sm:$0xf0]  ;;  %s21082_s3 = sld [smem:[#allocation98_spill]]  ;;  %vm11064_vm9 = vcmask 33792  }
 0xdfa   :  { %v14407_v36 = vld [vmem:[#allocation5 + $0x2e0] sm:$0xf]  ;;  %v15477_v5 = vld [vmem:[#allocation5 + $0x2ec] sm:$0xf0]  ;;  %v14280_v12 = vor.u32 %v15445_v28, %v14279_v62 }
 0xdfb   :  { %v14408_v13 = vor.u32 %v15477_v5, %v14407_v36  ;;  %v14535_v56 = vld [vmem:[#allocation5 + $0x3e0] sm:$0xf]  ;;  %v15509_v31 = vld [vmem:[#allocation5 + $0x3ec] sm:$0xf0]  ;;  %10536 = vmatpush.bf16.msra.mxu0 %v14152_v53 }
 0xdfc   :  { %v14135_v4 = vld [vmem:[#allocation5 + $0xc0] sm:$0xf]  ;;  %v14536_v41 = vor.u32 %v15509_v31, %v14535_v56  ;;  %v15409_v19 = vld [vmem:[#allocation5 + $0xcc] sm:$0xf0]  ;;  %10549 = vmatpush.bf16.msra.mxu1 %v14280_v12 }
 0xdfd   :  { %v14263_v0 = vld [vmem:[#allocation5 + $0x1c0] sm:$0xf]  ;;  %v15441_v34 = vld [vmem:[#allocation5 + $0x1cc] sm:$0xf0]  ;;  %10562 = vmatpush.bf16.msrb.mxu2 %v14408_v13  ;;  %v14136_v1 = vor.u32 %v15409_v19, %v14135_v4 }
 0xdfe   :  { %v14264_v3 = vor.u32 %v15441_v34, %v14263_v0  ;;  %v14391_v37 = vld [vmem:[#allocation5 + $0x2c0] sm:$0xf]  ;;  %v15473_v14 = vld [vmem:[#allocation5 + $0x2cc] sm:$0xf0]  ;;  %10575 = vmatpush.bf16.msra.mxu3 %v14536_v41 }
 0xdff   :  { %v14519_v55 = vld [vmem:[#allocation5 + $0x3c0] sm:$0xf]  ;;  %v14392_v38 = vor.u32 %v15473_v14, %v14391_v37  ;;  %v15505_v8 = vld [vmem:[#allocation5 + $0x3cc] sm:$0xf0]  ;;  %10537 = vmatpush.bf16.msra.mxu0 %v14136_v1 }
 0xe00   :  { %v14119_v6 = vld [vmem:[#allocation5 + $0xa0] sm:$0xf]  ;;  %v15405_v54 = vld [vmem:[#allocation5 + $0xac] sm:$0xf0]  ;;  %v14520_v21 = vor.u32 %v15505_v8, %v14519_v55  ;;  %10550 = vmatpush.bf16.msra.mxu1 %v14264_v3 }
 0xe01   :  { %v14247_v58 = vld [vmem:[#allocation5 + $0x1a0] sm:$0xf]  ;;  %v15437_v49 = vld [vmem:[#allocation5 + $0x1ac] sm:$0xf0]  ;;  %v14120_v40 = vor.u32 %v15405_v54, %v14119_v6  ;;  %10563 = vmatpush.bf16.msrb.mxu2 %v14392_v38 }
 0xe02   :  { %v14375_v52 = vld [vmem:[#allocation5 + $0x2a0] sm:$0xf]  ;;  %v15469_v48 = vld [vmem:[#allocation5 + $0x2ac] sm:$0xf0]  ;;  %v14248_v57 = vor.u32 %v15437_v49, %v14247_v58  ;;  %10576 = vmatpush.bf16.msra.mxu3 %v14520_v21 }
 0xe03   :  { %v14503_v46 = vld [vmem:[#allocation5 + $0x3a0] sm:$0xf]  ;;  %v15501_v59 = vld [vmem:[#allocation5 + $0x3ac] sm:$0xf0]  ;;  %v14376_v24 = vor.u32 %v15469_v48, %v14375_v52  ;;  %10538 = vmatpush.bf16.msra.mxu0 %v14120_v40 }
 0xe04   :  { %v14103_v50 = vld [vmem:[#allocation5 + $0x80] sm:$0xf]  ;;  %v15401_v22 = vld [vmem:[#allocation5 + $0x8c] sm:$0xf0]  ;;  %v14504_v16 = vor.u32 %v15501_v59, %v14503_v46  ;;  %10551 = vmatpush.bf16.msra.mxu1 %v14248_v57  ;;  %v15411_v59 = vld [vmem:[#allocation5 + $0xe4] sm:$0xf] }
 0xe05   :  { %v14231_v15 = vld [vmem:[#allocation5 + $0x180] sm:$0xf]  ;;  %v15433_v51 = vld [vmem:[#allocation5 + $0x18c] sm:$0xf0]  ;;  %v14104_v61 = vor.u32 %v15401_v22, %v14103_v50  ;;  %10564 = vmatpush.bf16.msrb.mxu2 %v14376_v24  ;;  %v14153_v57 = vld [vmem:[#allocation5 + $0xf0] sm:$0xf0] }
 0xe06   :  { %v14359_v42 = vld [vmem:[#allocation5 + $0x280] sm:$0xf]  ;;  %v15465_v44 = vld [vmem:[#allocation5 + $0x28c] sm:$0xf0]  ;;  %v14232_v32 = vor.u32 %v15433_v51, %v14231_v15  ;;  %10577 = vmatpush.bf16.msra.mxu3 %v14504_v16  ;;  %v15443_v24 = vld [vmem:[#allocation5 + $0x1e4] sm:$0xf] }
 0xe07   :  { %v14487_v33 = vld [vmem:[#allocation5 + $0x380] sm:$0xf]  ;;  %v15497_v9 = vld [vmem:[#allocation5 + $0x38c] sm:$0xf0]  ;;  %v14360_v25 = vor.u32 %v15465_v44, %v14359_v42  ;;  %10539 = vmatpush.bf16.msra.mxu0 %v14104_v61  ;;  %v14281_v22 = vld [vmem:[#allocation5 + $0x1f0] sm:$0xf0]  ;;  %v14156_v61 = vor.u32 %v15411_v59, %v14153_v57 }
 0xe08   :  { %v14087_v60 = vld [vmem:[#allocation5 + $0x60] sm:$0xf]  ;;  %v15397_v26 = vld [vmem:[#allocation5 + $0x6c] sm:$0xf0]  ;;  %v14488_v47 = vor.u32 %v15497_v9, %v14487_v33  ;;  %10552 = vmatpush.bf16.msra.mxu1 %v14232_v32  ;;  %v15475_v15 = vld [vmem:[#allocation5 + $0x2e4] sm:$0xf]  ;;  %v14284_v32 = vor.u32 %v15443_v24, %v14281_v22 }
 0xe09   :  { %v14215_v2 = vld [vmem:[#allocation5 + $0x160] sm:$0xf]  ;;  %v15429_v17 = vld [vmem:[#allocation5 + $0x16c] sm:$0xf0]  ;;  %v14088_v63 = vor.u32 %v15397_v26, %v14087_v60  ;;  %10565 = vmatpush.bf16.msrb.mxu2 %v14360_v25  ;;  %v14409_v16 = vld [vmem:[#allocation5 + $0x2f0] sm:$0xf0] }
 0xe0a   :  { %v14343_v43 = vld [vmem:[#allocation5 + $0x260] sm:$0xf]  ;;  %v15461_v39 = vld [vmem:[#allocation5 + $0x26c] sm:$0xf0]  ;;  %v14216_v30 = vor.u32 %v15429_v17, %v14215_v2  ;;  %10578 = vmatpush.bf16.msra.mxu3 %v14488_v47  ;;  %v15507_v44 = vld [vmem:[#allocation5 + $0x3e4] sm:$0xf]  ;;  %v14412_v25 = vor.u32 %v15475_v15, %v14409_v16 }
 0xe0b   :  { %v14471_v7 = vld [vmem:[#allocation5 + $0x360] sm:$0xf]  ;;  %v15493_v45 = vld [vmem:[#allocation5 + $0x36c] sm:$0xf0]  ;;  %v14344_v18 = vor.u32 %v15461_v39, %v14343_v43  ;;  %10540 = vmatpush.bf16.msra.mxu0 %v14088_v63  ;;  %v14537_v33 = vld [vmem:[#allocation5 + $0x3f0] sm:$0xf0] }
 0xe0c   :  { %v14071_v27 = vld [vmem:[#allocation5 + $0x40] sm:$0xf]  ;;  %v15393_v23 = vld [vmem:[#allocation5 + $0x4c] sm:$0xf0]  ;;  %v14472_v62 = vor.u32 %v15493_v45, %v14471_v7  ;;  %10553 = vmatpush.bf16.msra.mxu1 %v14216_v30  ;;  %v15407_v60 = vld [vmem:[#allocation5 + $0xc4] sm:$0xf]  ;;  %v14540_v47 = vor.u32 %v15507_v44, %v14537_v33 }
 0xe0d   :  { %v14199_v35 = vld [vmem:[#allocation5 + $0x140] sm:$0xf]  ;;  %v15425_v53 = vld [vmem:[#allocation5 + $0x14c] sm:$0xf0]  ;;  %v14072_v13 = vor.u32 %v15393_v23, %v14071_v27  ;;  %10566 = vmatpush.bf16.msrb.mxu2 %v14344_v18  ;;  %v14137_v26 = vld [vmem:[#allocation5 + $0xd0] sm:$0xf0] }
 0xe0e   :  { %v14327_v28 = vld [vmem:[#allocation5 + $0x240] sm:$0xf]  ;;  %v15457_v36 = vld [vmem:[#allocation5 + $0x24c] sm:$0xf0]  ;;  %v14200_v56 = vor.u32 %v15425_v53, %v14199_v35  ;;  %10579 = vmatpush.bf16.msra.mxu3 %v14472_v62  ;;  %v15439_v2 = vld [vmem:[#allocation5 + $0x1c4] sm:$0xf]  ;;  %v14140_v63 = vor.u32 %v15407_v60, %v14137_v26 }
 0xe0f   :  { %v14455_v5 = vld [vmem:[#allocation5 + $0x340] sm:$0xf]  ;;  %v15489_v12 = vld [vmem:[#allocation5 + $0x34c] sm:$0xf0]  ;;  %v14328_v31 = vor.u32 %v15457_v36, %v14327_v28  ;;  %10541 = vmatpush.bf16.msra.mxu0 %v14072_v13  ;;  %v14265_v17 = vld [vmem:[#allocation5 + $0x1d0] sm:$0xf0] }
 0xe10   :  { %v14055_v4 = vld [vmem:[#allocation5 + $0x20] sm:$0xf]  ;;  %v15389_v41 = vld [vmem:[#allocation5 + $0x2c] sm:$0xf0]  ;;  %v14456_v0 = vor.u32 %v15489_v12, %v14455_v5  ;;  %10554 = vmatpush.bf16.msra.mxu1 %v14200_v56  ;;  %v15471_v43 = vld [vmem:[#allocation5 + $0x2c4] sm:$0xf]  ;;  %v14268_v30 = vor.u32 %v15439_v2, %v14265_v17 }
 0xe11   :  { %v14183_v19 = vld [vmem:[#allocation5 + $0x120] sm:$0xf]  ;;  %v15421_v34 = vld [vmem:[#allocation5 + $0x12c] sm:$0xf0]  ;;  %v14056_v55 = vor.u32 %v15389_v41, %v14055_v4  ;;  %10567 = vmatpush.bf16.msrb.mxu2 %v14328_v31  ;;  %v14393_v39 = vld [vmem:[#allocation5 + $0x2d0] sm:$0xf0] }
 0xe12   :  { %v14311_v1 = vld [vmem:[#allocation5 + $0x220] sm:$0xf]  ;;  %v15453_v3 = vld [vmem:[#allocation5 + $0x22c] sm:$0xf0]  ;;  %v14184_v6 = vor.u32 %v15421_v34, %v14183_v19  ;;  %10580 = vmatpush.bf16.msra.mxu3 %v14456_v0  ;;  %v15503_v7 = vld [vmem:[#allocation5 + $0x3c4] sm:$0xf]  ;;  %v14396_v18 = vor.u32 %v15471_v43, %v14393_v39 }
 0xe13   :  { %v14439_v37 = vld [vmem:[#allocation5 + $0x320] sm:$0xf]  ;;  %v15485_v14 = vld [vmem:[#allocation5 + $0x32c] sm:$0xf0]  ;;  %v14312_v54 = vor.u32 %v15453_v3, %v14311_v1  ;;  %10542 = vmatpush.bf16.msra.mxu0 %v14056_v55  ;;  %v14521_v45 = vld [vmem:[#allocation5 + $0x3d0] sm:$0xf0] }
 0xe14   :  { %v14039_v38 = vld [vmem:[#allocation5] sm:$0xf]  ;;  %v15385_v8 = vld [vmem:[#allocation5 + $0xc] sm:$0xf0]  ;;  %v14440_v52 = vor.u32 %v15485_v14, %v14439_v37  ;;  %10555 = vmatpush.bf16.msra.mxu1 %v14184_v6  ;;  %v15403_v27 = vld [vmem:[#allocation5 + $0xa4] sm:$0xf]  ;;  %v14524_v62 = vor.u32 %v15503_v7, %v14521_v45 }
 0xe15   :  { %v14167_v21 = vld [vmem:[#allocation5 + $0x100] sm:$0xf]  ;;  %v15417_v58 = vld [vmem:[#allocation5 + $0x10c] sm:$0xf0]  ;;  %v14040_v50 = vor.u32 %v15385_v8, %v14039_v38  ;;  %10568 = vmatpush.bf16.msrb.mxu2 %v14312_v54  ;;  %v14121_v23 = vld [vmem:[#allocation5 + $0xb0] sm:$0xf0] }
 0xe16   :  { %v14295_v49 = vld [vmem:[#allocation5 + $0x200] sm:$0xf]  ;;  %v15449_v40 = vld [vmem:[#allocation5 + $0x20c] sm:$0xf0]  ;;  %v14168_v51 = vor.u32 %v15417_v58, %v14167_v21  ;;  %10581 = vmatpush.bf16.msra.mxu3 %v14440_v52  ;;  %v15435_v35 = vld [vmem:[#allocation5 + $0x1a4] sm:$0xf]  ;;  %v14124_v13 = vor.u32 %v15403_v27, %v14121_v23 }
 0xe17   :  { %v14423_v48 = vld [vmem:[#allocation5 + $0x300] sm:$0xf]  ;;  %v15481_v46 = vld [vmem:[#allocation5 + $0x30c] sm:$0xf0]  ;;  %v14296_v42 = vor.u32 %v15449_v40, %v14295_v49  ;;  %10543 = vmatpush.bf16.msra.mxu0 %v14040_v50  ;;  %v14249_v53 = vld [vmem:[#allocation5 + $0x1b0] sm:$0xf0] }
 0xe18   :  { %v14424_v9 = vor.u32 %v15481_v46, %v14423_v48  ;;  %10556 = vmatpush.bf16.msra.mxu1 %v14168_v51  ;;  %v15467_v28 = vld [vmem:[#allocation5 + $0x2a4] sm:$0xf]  ;;  %v14377_v36 = vld [vmem:[#allocation5 + $0x2b0] sm:$0xf0]  ;;  %v14252_v56 = vor.u32 %v15435_v35, %v14249_v53 }
 0xe19   :  { %10569 = vmatpush.bf16.msrb.mxu2 %v14296_v42  ;;  %v15499_v5 = vld [vmem:[#allocation5 + $0x3a4] sm:$0xf]  ;;  %v14505_v12 = vld [vmem:[#allocation5 + $0x3b0] sm:$0xf0]  ;;  %v14380_v31 = vor.u32 %v15467_v28, %v14377_v36 }
 0xe1a   :  { %10582 = vmatpush.bf16.msra.mxu3 %v14424_v9  ;;  %10544 = vmatmul.bf16.vlgmr.msra.gmra.mxu0 %v19369_v11  ;;  %v15399_v4 = vld [vmem:[#allocation5 + $0x84] sm:$0xf]  ;;  %v14105_v41 = vld [vmem:[#allocation5 + $0x90] sm:$0xf0]  ;;  %v14508_v0 = vor.u32 %v15499_v5, %v14505_v12 }
 0xe1b   :  { %10588 = vmatpush.bf16.msrb.mxu0 %v14156_v61  ;;  %10557 = vmatmul.bf16.vlgmr.msra.gmra.mxu1 %v19367_v29  ;;  %v15431_v19 = vld [vmem:[#allocation5 + $0x184] sm:$0xf]  ;;  %v14233_v34 = vld [vmem:[#allocation5 + $0x190] sm:$0xf0]  ;;  %v14108_v55 = vor.u32 %v15399_v4, %v14105_v41  ;;  %v15446_v41 = vld [vmem:[#allocation5 + $0x1f4] sm:$0xf0] }
 0xe1c   :  { %10601 = vmatpush.bf16.msrb.mxu1 %v14284_v32  ;;  %10570 = vmatmul.bf16.vlgmr.msrb.gmra.mxu2 %v19373_v20  ;;  %v15463_v1 = vld [vmem:[#allocation5 + $0x284] sm:$0xf]  ;;  %v14361_v3 = vld [vmem:[#allocation5 + $0x290] sm:$0xf0]  ;;  %v14236_v38 = vor.u32 %v15431_v19, %v14233_v34  ;;  %v14415_v19 = vld [vmem:[#allocation5 + $0x2e8] sm:$0xf] }
 0xe1d   :  { %10614 = vmatpush.bf16.msra.mxu2 %v14412_v25  ;;  %10583 = vmatmul.bf16.vlgmr.msra.gmra.mxu3 %v19371_v10  ;;  %v15495_v37 = vld [vmem:[#allocation5 + $0x384] sm:$0xf]  ;;  %v14489_v14 = vld [vmem:[#allocation5 + $0x390] sm:$0xf0]  ;;  %v14364_v8 = vor.u32 %v15463_v1, %v14361_v3  ;;  %v14543_v3 = vld [vmem:[#allocation5 + $0x3e8] sm:$0xf] }
 0xe1e   :  { %10627 = vmatpush.bf16.msrb.mxu3 %v14540_v47  ;;  %v15395_v6 = vld [vmem:[#allocation5 + $0x64] sm:$0xf]  ;;  %v14089_v54 = vld [vmem:[#allocation5 + $0x70] sm:$0xf0]  ;;  %v14492_v58 = vor.u32 %v15495_v37, %v14489_v14  ;;  %v15510_v37 = vld [vmem:[#allocation5 + $0x3f4] sm:$0xf0] }
 0xe1f   :  { %10589 = vmatpush.bf16.msrb.mxu0 %v14140_v63  ;;  %v15427_v21 = vld [vmem:[#allocation5 + $0x164] sm:$0xf]  ;;  %v14217_v49 = vld [vmem:[#allocation5 + $0x170] sm:$0xf0]  ;;  %v14092_v59 = vor.u32 %v15395_v6, %v14089_v54  ;;  %v14143_v6 = vld [vmem:[#allocation5 + $0xc8] sm:$0xf] }
 0xe20   :  { %10602 = vmatpush.bf16.msrb.mxu1 %v14268_v30  ;;  %v15459_v52 = vld [vmem:[#allocation5 + $0x264] sm:$0xf]  ;;  %v14345_v40 = vld [vmem:[#allocation5 + $0x270] sm:$0xf0]  ;;  %v14220_v57 = vor.u32 %v15427_v21, %v14217_v49  ;;  %v15410_v54 = vld [vmem:[#allocation5 + $0xd4] sm:$0xf0] }
 0xe21   :  { %10615 = vmatpush.bf16.msra.mxu2 %v14396_v18  ;;  %v15491_v48 = vld [vmem:[#allocation5 + $0x364] sm:$0xf]  ;;  %v14473_v46 = vld [vmem:[#allocation5 + $0x370] sm:$0xf0]  ;;  %v14348_v24 = vor.u32 %v15459_v52, %v14345_v40  ;;  %v14271_v21 = vld [vmem:[#allocation5 + $0x1c8] sm:$0xf] }
 0xe22   :  { %10628 = vmatpush.bf16.msrb.mxu3 %v14524_v62  ;;  %v15391_v50 = vld [vmem:[#allocation5 + $0x44] sm:$0xf]  ;;  %v14073_v22 = vld [vmem:[#allocation5 + $0x50] sm:$0xf0]  ;;  %v14476_v16 = vor.u32 %v15491_v48, %v14473_v46  ;;  %v15442_v49 = vld [vmem:[#allocation5 + $0x1d4] sm:$0xf0] }
 0xe23   :  { %10590 = vmatpush.bf16.msrb.mxu0 %v14124_v13  ;;  %v15423_v15 = vld [vmem:[#allocation5 + $0x144] sm:$0xf]  ;;  %v14201_v51 = vld [vmem:[#allocation5 + $0x150] sm:$0xf0]  ;;  %v14076_v61 = vor.u32 %v15391_v50, %v14073_v22  ;;  %v14159_v13 = vld [vmem:[#allocation5 + $0xe8] sm:$0xf] }
 0xe24   :  { %10603 = vmatpush.bf16.msrb.mxu1 %v14252_v56  ;;  %v15455_v42 = vld [vmem:[#allocation5 + $0x244] sm:$0xf]  ;;  %v14329_v44 = vld [vmem:[#allocation5 + $0x250] sm:$0xf0]  ;;  %v14204_v32 = vor.u32 %v15423_v15, %v14201_v51  ;;  %v15414_v56 = vld [vmem:[#allocation5 + $0xf4] sm:$0xf0] }
 0xe25   :  { %10616 = vmatpush.bf16.msra.mxu2 %v14380_v31  ;;  %v15487_v33 = vld [vmem:[#allocation5 + $0x344] sm:$0xf]  ;;  %v14457_v9 = vld [vmem:[#allocation5 + $0x350] sm:$0xf0]  ;;  %v14332_v25 = vor.u32 %v15455_v42, %v14329_v44  ;;  %v14287_v31 = vld [vmem:[#allocation5 + $0x1e8] sm:$0xf] }
 0xe26   :  { %10629 = vmatpush.bf16.msrb.mxu3 %v14508_v0  ;;  %v15387_v60 = vld [vmem:[#allocation5 + $0x24] sm:$0xf]  ;;  %v14057_v26 = vld [vmem:[#allocation5 + $0x30] sm:$0xf0]  ;;  %v14460_v47 = vor.u32 %v15487_v33, %v14457_v9  ;;  %v15478_v0 = vld [vmem:[#allocation5 + $0x2f4] sm:$0xf0] }
 0xe27   :  { %10591 = vmatpush.bf16.msrb.mxu0 %v14108_v55  ;;  %v15419_v2 = vld [vmem:[#allocation5 + $0x124] sm:$0xf]  ;;  %v14185_v17 = vld [vmem:[#allocation5 + $0x130] sm:$0xf0]  ;;  %v14060_v63 = vor.u32 %v15387_v60, %v14057_v26  ;;  %v14160_v55 = vor.u32 %v15414_v56, %v14159_v13  ;;  %v14399_v52 = vld [vmem:[#allocation5 + $0x2c8] sm:$0xf] }
 0xe28   :  { %10604 = vmatpush.bf16.msrb.mxu1 %v14236_v38  ;;  %v15451_v43 = vld [vmem:[#allocation5 + $0x224] sm:$0xf]  ;;  %v14313_v39 = vld [vmem:[#allocation5 + $0x230] sm:$0xf0]  ;;  %v14188_v27 = vor.u32 %v15419_v2, %v14185_v17  ;;  %v14288_v38 = vor.u32 %v15446_v41, %v14287_v31  ;;  %v15474_v40 = vld [vmem:[#allocation5 + $0x2d4] sm:$0xf0] }
 0xe29   :  { %10617 = vmatpush.bf16.msra.mxu2 %v14364_v8  ;;  %v15483_v7 = vld [vmem:[#allocation5 + $0x324] sm:$0xf]  ;;  %v14441_v45 = vld [vmem:[#allocation5 + $0x330] sm:$0xf0]  ;;  %v14316_v23 = vor.u32 %v15451_v43, %v14313_v39  ;;  %v14416_v8 = vor.u32 %v15478_v0, %v14415_v19  ;;  %v14527_v48 = vld [vmem:[#allocation5 + $0x3c8] sm:$0xf] }
 0xe2a   :  { %10630 = vmatpush.bf16.msrb.mxu3 %v14492_v58  ;;  %v15383_v30 = vld [vmem:[#allocation5 + $0x4] sm:$0xf]  ;;  %v14041_v18 = vld [vmem:[#allocation5 + $0x10] sm:$0xf0]  ;;  %v14444_v28 = vor.u32 %v15483_v7, %v14441_v45  ;;  %v14544_v58 = vor.u32 %v15510_v37, %v14543_v3  ;;  %v15506_v46 = vld [vmem:[#allocation5 + $0x3d4] sm:$0xf0] }
 0xe2b   :  { %10592 = vmatpush.bf16.msrb.mxu0 %v14092_v59  ;;  %v15415_v35 = vld [vmem:[#allocation5 + $0x104] sm:$0xf]  ;;  %v14169_v62 = vld [vmem:[#allocation5 + $0x110] sm:$0xf0]  ;;  %v14044_v4 = vor.u32 %v15383_v30, %v14041_v18  ;;  %v14144_v59 = vor.u32 %v15410_v54, %v14143_v6  ;;  %v14127_v50 = vld [vmem:[#allocation5 + $0xa8] sm:$0xf] }
 0xe2c   :  { %10605 = vmatpush.bf16.msrb.mxu1 %v14220_v57  ;;  %v15447_v53 = vld [vmem:[#allocation5 + $0x204] sm:$0xf]  ;;  %v14297_v36 = vld [vmem:[#allocation5 + $0x210] sm:$0xf0]  ;;  %v14172_v34 = vor.u32 %v15415_v35, %v14169_v62  ;;  %v14272_v57 = vor.u32 %v15442_v49, %v14271_v21  ;;  %v15406_v22 = vld [vmem:[#allocation5 + $0xb4] sm:$0xf0] }
 0xe2d   :  { %10618 = vmatpush.bf16.msra.mxu2 %v14348_v24  ;;  %v15479_v5 = vld [vmem:[#allocation5 + $0x304] sm:$0xf]  ;;  %v14425_v12 = vld [vmem:[#allocation5 + $0x310] sm:$0xf0]  ;;  %v14300_v1 = vor.u32 %v15447_v53, %v14297_v36  ;;  %v14400_v24 = vor.u32 %v15474_v40, %v14399_v52  ;;  %v14255_v15 = vld [vmem:[#allocation5 + $0x1a8] sm:$0xf] }
 0xe2e   :  { %10631 = vmatpush.bf16.msrb.mxu3 %v14476_v16  ;;  %v14428_v14 = vor.u32 %v15479_v5, %v14425_v12  ;;  %v14528_v16 = vor.u32 %v15506_v46, %v14527_v48  ;;  %v15438_v51 = vld [vmem:[#allocation5 + $0x1b4] sm:$0xf0]  ;;  %v14383_v42 = vld [vmem:[#allocation5 + $0x2a8] sm:$0xf] }
 0xe2f   :  { %10593 = vmatpush.bf16.msrb.mxu0 %v14076_v61  ;;  %v15470_v44 = vld [vmem:[#allocation5 + $0x2b4] sm:$0xf0]  ;;  %v14511_v33 = vld [vmem:[#allocation5 + $0x3a8] sm:$0xf]  ;;  %v14128_v61 = vor.u32 %v15406_v22, %v14127_v50 }
 0xe30   :  { %10606 = vmatpush.bf16.msrb.mxu1 %v14204_v32  ;;  %v15502_v9 = vld [vmem:[#allocation5 + $0x3b4] sm:$0xf0]  ;;  %v14256_v32 = vor.u32 %v15438_v51, %v14255_v15  ;;  %v14111_v60 = vld [vmem:[#allocation5 + $0x88] sm:$0xf] }
 0xe31   :  { %10619 = vmatpush.bf16.msra.mxu2 %v14332_v25  ;;  %v14384_v25 = vor.u32 %v15470_v44, %v14383_v42  ;;  %v15402_v26 = vld [vmem:[#allocation5 + $0x94] sm:$0xf0]  ;;  %v14239_v2 = vld [vmem:[#allocation5 + $0x188] sm:$0xf] }
 0xe32   :  { %10632 = vmatpush.bf16.msrb.mxu3 %v14460_v47  ;;  %v14512_v47 = vor.u32 %v15502_v9, %v14511_v33  ;;  %v15434_v17 = vld [vmem:[#allocation5 + $0x194] sm:$0xf0]  ;;  %v14367_v43 = vld [vmem:[#allocation5 + $0x288] sm:$0xf] }
 0xe33   :  { %10594 = vmatpush.bf16.msrb.mxu0 %v14060_v63  ;;  %v15466_v39 = vld [vmem:[#allocation5 + $0x294] sm:$0xf0]  ;;  %v14495_v7 = vld [vmem:[#allocation5 + $0x388] sm:$0xf]  ;;  %v14112_v63 = vor.u32 %v15402_v26, %v14111_v60  ;;  %v14240_v30 = vor.u32 %v15434_v17, %v14239_v2  ;;  %v14289_v26 = vld [vmem:[#allocation5 + $0x1f8] sm:$0xf0] }
 0xe34   :  { %10607 = vmatpush.bf16.msrb.mxu1 %v14188_v27  ;;  %v15498_v45 = vld [vmem:[#allocation5 + $0x394] sm:$0xf0]  ;;  %v14368_v18 = vor.u32 %v15466_v39, %v14367_v43  ;;  %v14095_v27 = vld [vmem:[#allocation5 + $0x68] sm:$0xf]  ;;  %v15476_v2 = vld [vmem:[#allocation5 + $0x2ec] sm:$0xf] }
 0xe35   :  { %10620 = vmatpush.bf16.msra.mxu2 %v14316_v23  ;;  %v15398_v23 = vld [vmem:[#allocation5 + $0x74] sm:$0xf0]  ;;  %v14223_v35 = vld [vmem:[#allocation5 + $0x168] sm:$0xf]  ;;  %v14496_v62 = vor.u32 %v15498_v45, %v14495_v7  ;;  %v15508_v39 = vld [vmem:[#allocation5 + $0x3ec] sm:$0xf] }
 0xe36   :  { %10633 = vmatpush.bf16.msrb.mxu3 %v14444_v28  ;;  %v15430_v53 = vld [vmem:[#allocation5 + $0x174] sm:$0xf0]  ;;  %v14351_v28 = vld [vmem:[#allocation5 + $0x268] sm:$0xf]  ;;  %v14096_v13 = vor.u32 %v15398_v23, %v14095_v27  ;;  %v14545_v7 = vld [vmem:[#allocation5 + $0x3f8] sm:$0xf0] }
 0xe37   :  { %10595 = vmatpush.bf16.msrb.mxu0 %v14044_v4  ;;  %v15462_v36 = vld [vmem:[#allocation5 + $0x274] sm:$0xf0]  ;;  %v14479_v5 = vld [vmem:[#allocation5 + $0x368] sm:$0xf]  ;;  %v14224_v56 = vor.u32 %v15430_v53, %v14223_v35  ;;  %v15408_v27 = vld [vmem:[#allocation5 + $0xcc] sm:$0xf] }
 0xe38   :  { %10608 = vmatpush.bf16.msrb.mxu1 %v14172_v34  ;;  %v15494_v12 = vld [vmem:[#allocation5 + $0x374] sm:$0xf0]  ;;  %v14352_v31 = vor.u32 %v15462_v36, %v14351_v28  ;;  %v14079_v4 = vld [vmem:[#allocation5 + $0x48] sm:$0xf]  ;;  %v14145_v23 = vld [vmem:[#allocation5 + $0xd8] sm:$0xf0] }
 0xe39   :  { %10621 = vmatpush.bf16.msra.mxu2 %v14300_v1  ;;  %v15394_v41 = vld [vmem:[#allocation5 + $0x54] sm:$0xf0]  ;;  %v14207_v19 = vld [vmem:[#allocation5 + $0x148] sm:$0xf]  ;;  %v14480_v0 = vor.u32 %v15494_v12, %v14479_v5  ;;  %v15440_v35 = vld [vmem:[#allocation5 + $0x1cc] sm:$0xf] }
 0xe3a   :  { %10634 = vmatpush.bf16.msrb.mxu3 %v14428_v14  ;;  %10596 = vmatmul.bf16.vlgmr.msrb.gmra.mxu0 %v19369_v11  ;;  %v15426_v34 = vld [vmem:[#allocation5 + $0x154] sm:$0xf0]  ;;  %v14335_v1 = vld [vmem:[#allocation5 + $0x248] sm:$0xf]  ;;  %v14273_v53 = vld [vmem:[#allocation5 + $0x1d8] sm:$0xf0] }
 0xe3b   :  { %10640 = vmatpush.bf16.msra.mxu0 %v14160_v55  ;;  %10609 = vmatmul.bf16.vlgmr.msrb.gmra.mxu1 %v19367_v29  ;;  %v15458_v3 = vld [vmem:[#allocation5 + $0x254] sm:$0xf0]  ;;  %v14463_v37 = vld [vmem:[#allocation5 + $0x348] sm:$0xf]  ;;  %v14080_v55 = vor.u32 %v15394_v41, %v14079_v4  ;;  %v15472_v28 = vld [vmem:[#allocation5 + $0x2cc] sm:$0xf] }
 0xe3c   :  { %10653 = vmatpush.bf16.msra.mxu1 %v14288_v38  ;;  %10622 = vmatmul.bf16.vlgmr.msra.gmra.mxu2 %v19373_v20  ;;  %v15490_v14 = vld [vmem:[#allocation5 + $0x354] sm:$0xf0]  ;;  %v14208_v38 = vor.u32 %v15426_v34, %v14207_v19  ;;  %v14063_v6 = vld [vmem:[#allocation5 + $0x28] sm:$0xf]  ;;  %v14401_v36 = vld [vmem:[#allocation5 + $0x2d8] sm:$0xf0] }
 0xe3d   :  { %10666 = vmatpush.bf16.msrb.mxu2 %v14416_v8  ;;  %10635 = vmatmul.bf16.vlgmr.msrb.gmra.mxu3 %v19371_v10  ;;  %v14336_v8 = vor.u32 %v15458_v3, %v14335_v1  ;;  %v15390_v54 = vld [vmem:[#allocation5 + $0x34] sm:$0xf0]  ;;  %v14191_v21 = vld [vmem:[#allocation5 + $0x128] sm:$0xf]  ;;  %v15504_v5 = vld [vmem:[#allocation5 + $0x3cc] sm:$0xf] }
 0xe3e   :  { %10679 = vmatpush.bf16.msra.mxu3 %v14544_v58  ;;  %v14464_v58 = vor.u32 %v15490_v14, %v14463_v37  ;;  %v15422_v49 = vld [vmem:[#allocation5 + $0x134] sm:$0xf0]  ;;  %v14319_v52 = vld [vmem:[#allocation5 + $0x228] sm:$0xf]  ;;  %v14529_v12 = vld [vmem:[#allocation5 + $0x3d8] sm:$0xf0] }
 0xe3f   :  { %10641 = vmatpush.bf16.msra.mxu0 %v14144_v59  ;;  %v15454_v40 = vld [vmem:[#allocation5 + $0x234] sm:$0xf0]  ;;  %v14447_v48 = vld [vmem:[#allocation5 + $0x328] sm:$0xf]  ;;  %v14064_v59 = vor.u32 %v15390_v54, %v14063_v6  ;;  %v14192_v50 = vor.u32 %v15422_v49, %v14191_v21  ;;  %v15404_v4 = vld [vmem:[#allocation5 + $0xac] sm:$0xf] }
 0xe40   :  { %10654 = vmatpush.bf16.msra.mxu1 %v14272_v57  ;;  %v15486_v46 = vld [vmem:[#allocation5 + $0x334] sm:$0xf0]  ;;  %v14047_v57 = vld [vmem:[#allocation5 + $0x8] sm:$0xf]  ;;  %v14320_v22 = vor.u32 %v15454_v40, %v14319_v52  ;;  %v14129_v41 = vld [vmem:[#allocation5 + $0xb8] sm:$0xf0] }
 0xe41   :  { %10667 = vmatpush.bf16.msrb.mxu2 %v14400_v24  ;;  %v15386_v24 = vld [vmem:[#allocation5 + $0x14] sm:$0xf0]  ;;  %v14175_v15 = vld [vmem:[#allocation5 + $0x108] sm:$0xf]  ;;  %v14448_v42 = vor.u32 %v15486_v46, %v14447_v48  ;;  %v15436_v19 = vld [vmem:[#allocation5 + $0x1ac] sm:$0xf] }
 0xe42   :  { %10680 = vmatpush.bf16.msra.mxu3 %v14528_v16  ;;  %v15418_v16 = vld [vmem:[#allocation5 + $0x114] sm:$0xf0]  ;;  %v14303_v51 = vld [vmem:[#allocation5 + $0x208] sm:$0xf]  ;;  %v14048_v60 = vor.u32 %v15386_v24, %v14047_v57  ;;  %v14257_v34 = vld [vmem:[#allocation5 + $0x1b8] sm:$0xf0] }
 0xe43   :  { %10642 = vmatpush.bf16.msra.mxu0 %v14128_v61  ;;  %v15450_v44 = vld [vmem:[#allocation5 + $0x214] sm:$0xf0]  ;;  %v14431_v33 = vld [vmem:[#allocation5 + $0x308] sm:$0xf]  ;;  %v15412_v61 = vld [vmem:[#allocation5 + $0xec] sm:$0xf]  ;;  %v14176_v17 = vor.u32 %v15418_v16, %v14175_v15 }
 0xe44   :  { %10655 = vmatpush.bf16.msra.mxu1 %v14256_v32  ;;  %v15482_v9 = vld [vmem:[#allocation5 + $0x314] sm:$0xf0]  ;;  %v14161_v32 = vld [vmem:[#allocation5 + $0xf8] sm:$0xf0]  ;;  %v14304_v43 = vor.u32 %v15450_v44, %v14303_v51  ;;  %v15468_v1 = vld [vmem:[#allocation5 + $0x2ac] sm:$0xf] }
 0xe45   :  { %10668 = vmatpush.bf16.msrb.mxu2 %v14384_v25  ;;  %v15444_v25 = vld [vmem:[#allocation5 + $0x1ec] sm:$0xf]  ;;  %v14432_v45 = vor.u32 %v15482_v9, %v14431_v33  ;;  %v14385_v3 = vld [vmem:[#allocation5 + $0x2b8] sm:$0xf0] }
 0xe46   :  { %10681 = vmatpush.bf16.msra.mxu3 %v14512_v47  ;;  %v14417_v47 = vld [vmem:[#allocation5 + $0x2f8] sm:$0xf0]  ;;  %v15500_v37 = vld [vmem:[#allocation5 + $0x3ac] sm:$0xf] }
 0xe47   :  { %10643 = vmatpush.bf16.msra.mxu0 %v14112_v63  ;;  %v14164_v63 = vor.u32 %v15412_v61, %v14161_v32  ;;  %v14513_v14 = vld [vmem:[#allocation5 + $0x3b8] sm:$0xf0]  ;;  %v15400_v6 = vld [vmem:[#allocation5 + $0x8c] sm:$0xf] }
 0xe48   :  { %10656 = vmatpush.bf16.msra.mxu1 %v14240_v30  ;;  %v14292_v30 = vor.u32 %v15444_v25, %v14289_v26  ;;  %v14113_v54 = vld [vmem:[#allocation5 + $0x98] sm:$0xf0]  ;;  %v15432_v21 = vld [vmem:[#allocation5 + $0x18c] sm:$0xf] }
 0xe49   :  { %10669 = vmatpush.bf16.msrb.mxu2 %v14368_v18  ;;  %v14420_v18 = vor.u32 %v15476_v2, %v14417_v47  ;;  %v14241_v49 = vld [vmem:[#allocation5 + $0x198] sm:$0xf0]  ;;  %v15464_v52 = vld [vmem:[#allocation5 + $0x28c] sm:$0xf] }
 0xe4a   :  { %10682 = vmatpush.bf16.msra.mxu3 %v14496_v62  ;;  %v14548_v62 = vor.u32 %v15508_v39, %v14545_v7  ;;  %v14369_v40 = vld [vmem:[#allocation5 + $0x298] sm:$0xf0]  ;;  %v15496_v48 = vld [vmem:[#allocation5 + $0x38c] sm:$0xf]  ;;  %v14244_v57 = vor.u32 %v15432_v21, %v14241_v49 }
 0xe4b   :  { %10644 = vmatpush.bf16.msra.mxu0 %v14096_v13  ;;  %v14148_v13 = vor.u32 %v15408_v27, %v14145_v23  ;;  %v14497_v46 = vld [vmem:[#allocation5 + $0x398] sm:$0xf0]  ;;  %v14372_v24 = vor.u32 %v15464_v52, %v14369_v40  ;;  %v15428_v15 = vld [vmem:[#allocation5 + $0x16c] sm:$0xf]  ;;  %v15515_v52 = vld [vmem:[%s20414_s18 + $0x20] sm:$0xff] }
 0xe4c   :  { %10657 = vmatpush.bf16.msra.mxu1 %v14224_v56  ;;  %v14276_v56 = vor.u32 %v15440_v35, %v14273_v53  ;;  %v14500_v16 = vor.u32 %v15496_v48, %v14497_v46  ;;  %v14225_v51 = vld [vmem:[#allocation5 + $0x178] sm:$0xf0]  ;;  %v15492_v33 = vld [vmem:[#allocation5 + $0x36c] sm:$0xf]  ;;  %v15523_v40 = vld [vmem:[%s20414_s18 + $0x60] sm:$0xff] }
 0xe4d   :  { %10670 = vmatpush.bf16.msrb.mxu2 %v14352_v31  ;;  %v14404_v31 = vor.u32 %v15472_v28, %v14401_v36  ;;  %v14353_v44 = vld [vmem:[#allocation5 + $0x278] sm:$0xf0]  ;;  %v14228_v32 = vor.u32 %v15428_v15, %v14225_v51  ;;  %v15424_v2 = vld [vmem:[#allocation5 + $0x14c] sm:$0xf] }
 0xe4e   :  { %10683 = vmatpush.bf16.msra.mxu3 %v14480_v0  ;;  %v14532_v0 = vor.u32 %v15504_v5, %v14529_v12  ;;  %v14481_v9 = vld [vmem:[#allocation5 + $0x378] sm:$0xf0]  ;;  %v15488_v7 = vld [vmem:[#allocation5 + $0x34c] sm:$0xf] }
 0xe4f   :  { %10645 = vmatpush.bf16.msra.mxu0 %v14080_v55  ;;  %v14132_v55 = vor.u32 %v15404_v4, %v14129_v41  ;;  %v14081_v26 = vld [vmem:[#allocation5 + $0x58] sm:$0xf0]  ;;  %v14484_v47 = vor.u32 %v15492_v33, %v14481_v9  ;;  %v15388_v27 = vld [vmem:[#allocation5 + $0x2c] sm:$0xf] }
 0xe50   :  { %10658 = vmatpush.bf16.msra.mxu1 %v14208_v38  ;;  %v14260_v38 = vor.u32 %v15436_v19, %v14257_v34  ;;  %v14337_v39 = vld [vmem:[#allocation5 + $0x258] sm:$0xf0]  ;;  %v15420_v35 = vld [vmem:[#allocation5 + $0x12c] sm:$0xf] }
 0xe51   :  { %10671 = vmatpush.bf16.msrb.mxu2 %v14336_v8  ;;  %v14388_v8 = vor.u32 %v15468_v1, %v14385_v3  ;;  %v14065_v23 = vld [vmem:[#allocation5 + $0x38] sm:$0xf0]  ;;  %v15452_v28 = vld [vmem:[#allocation5 + $0x22c] sm:$0xf] }
 0xe52   :  { %10684 = vmatpush.bf16.msra.mxu3 %v14464_v58  ;;  %v14516_v58 = vor.u32 %v15500_v37, %v14513_v14  ;;  %v14193_v53 = vld [vmem:[#allocation5 + $0x138] sm:$0xf0]  ;;  %v15484_v5 = vld [vmem:[#allocation5 + $0x32c] sm:$0xf] }
 0xe53   :  { %10646 = vmatpush.bf16.msra.mxu0 %v14064_v59  ;;  %v14116_v59 = vor.u32 %v15400_v6, %v14113_v54  ;;  %v14321_v36 = vld [vmem:[#allocation5 + $0x238] sm:$0xf0]  ;;  %v15384_v4 = vld [vmem:[#allocation5 + $0xc] sm:$0xf] }
 0xe54   :  { %10659 = vmatpush.bf16.msra.mxu1 %v14192_v50  ;;  %v15396_v50 = vld [vmem:[#allocation5 + $0x6c] sm:$0xf]  ;;  %v14449_v12 = vld [vmem:[#allocation5 + $0x338] sm:$0xf0] }
 0xe55   :  { %10672 = vmatpush.bf16.msrb.mxu2 %v14320_v22  ;;  %v14097_v22 = vld [vmem:[#allocation5 + $0x78] sm:$0xf0]  ;;  %v15416_v19 = vld [vmem:[#allocation5 + $0x10c] sm:$0xf] }
 0xe56   :  { %10685 = vmatpush.bf16.msra.mxu3 %v14448_v42  ;;  %v15460_v42 = vld [vmem:[#allocation5 + $0x26c] sm:$0xf]  ;;  %v14100_v61 = vor.u32 %v15396_v50, %v14097_v22  ;;  %v14049_v41 = vld [vmem:[#allocation5 + $0x18] sm:$0xf0] }
 0xe57   :  { %10647 = vmatpush.bf16.msra.mxu0 %v14048_v60  ;;  %v14356_v25 = vor.u32 %v15460_v42, %v14353_v44  ;;  %v15392_v60 = vld [vmem:[#allocation5 + $0x4c] sm:$0xf]  ;;  %v14177_v34 = vld [vmem:[#allocation5 + $0x118] sm:$0xf0] }
 0xe58   :  { %10660 = vmatpush.bf16.msra.mxu1 %v14176_v17  ;;  %v14209_v17 = vld [vmem:[#allocation5 + $0x158] sm:$0xf0]  ;;  %v15448_v1 = vld [vmem:[#allocation5 + $0x20c] sm:$0xf] }
 0xe59   :  { %10673 = vmatpush.bf16.msrb.mxu2 %v14304_v43  ;;  %v15456_v43 = vld [vmem:[#allocation5 + $0x24c] sm:$0xf]  ;;  %v14305_v3 = vld [vmem:[#allocation5 + $0x218] sm:$0xf0] }
 0xe5a   :  { %10686 = vmatpush.bf16.msra.mxu3 %v14432_v45  ;;  %10648 = vmatmul.bf16.vlgmr.msra.gmra.mxu0 %v19369_v11  ;;  %v14465_v45 = vld [vmem:[#allocation5 + $0x358] sm:$0xf0]  ;;  %v15480_v37 = vld [vmem:[#allocation5 + $0x30c] sm:$0xf] }
 0xe5b   :  { %10692 = vmatpush.bf16.msrb.mxu0 %v14164_v63  ;;  %10661 = vmatmul.bf16.vlgmr.msra.gmra.mxu1 %v19367_v29  ;;  %v14084_v63 = vor.u32 %v15392_v60, %v14081_v26  ;;  %v14433_v14 = vld [vmem:[#allocation5 + $0x318] sm:$0xf0]  ;;  %v15516_v49 = vld [vmem:[%s20414_s18 + $0x28] sm:$0xff]  ;;  %v15519_v26 = vld [vmem:[%s20414_s18 + $0x40] sm:$0xff] }
 0xe5c   :  { %10705 = vmatpush.bf16.msrb.mxu1 %v14292_v30  ;;  %10674 = vmatmul.bf16.vlgmr.msrb.gmra.mxu2 %v19373_v20  ;;  %v14212_v30 = vor.u32 %v15424_v2, %v14209_v17  ;;  %v14436_v6 = vor.u32 %v15480_v37, %v14433_v14  ;;  %v15518_v54 = vld [vmem:[%s20414_s18 + $0x38] sm:$0xff]  ;;  %v15512_v48 = vld [vmem:[%s20414_s18 + $0x8] sm:$0xff]  ;;  %v15533_v17 = vld [vmem:[%s20414_s18 + $0xb0] sm:$0xff] }
 0xe5d   :  { %10718 = vmatpush.bf16.msra.mxu2 %v14420_v18  ;;  %10687 = vmatmul.bf16.vlgmr.msra.gmra.mxu3 %v19371_v10  ;;  %v14340_v18 = vor.u32 %v15456_v43, %v14337_v39  ;;  %v15526_v21 = vld [vmem:[%s20414_s18 + $0x78] sm:$0xff]  ;;  %v15520_v9 = vld [vmem:[%s20414_s18 + $0x48] sm:$0xff]  ;;  %v15539_v37 = vld [vmem:[%s20414_s18 + $0xe0] sm:$0xff] }
 0xe5e   :  { %10731 = vmatpush.bf16.msrb.mxu3 %v14548_v62  ;;  %v14468_v62 = vor.u32 %v15488_v7, %v14465_v45  ;;  %v15522_v46 = vld [vmem:[%s20414_s18 + $0x58] sm:$0xff]  ;;  %v15532_v7 = vld [vmem:[%s20414_s18 + $0xa8] sm:$0xff]  ;;  %v15531_v45 = vld [vmem:[%s20414_s18 + $0xa0] sm:$0xff] }
 0xe5f   :  { %10693 = vmatpush.bf16.msrb.mxu0 %v14148_v13  ;;  %v14068_v13 = vor.u32 %v15388_v27, %v14065_v23  ;;  %v15534_v2 = vld [vmem:[%s20414_s18 + $0xb8] sm:$0xff] }
 0xe60   :  { %10706 = vmatpush.bf16.msrb.mxu1 %v14276_v56  ;;  %v14196_v56 = vor.u32 %v15420_v35, %v14193_v53  ;;  %v15529_v35 = vld [vmem:[%s20414_s18 + $0x90] sm:$0xff]  ;;  %v15538_v14 = vld [vmem:[%s20414_s18 + $0xd8] sm:$0xff] }
 0xe61   :  { %10719 = vmatpush.bf16.msra.mxu2 %v14404_v31  ;;  %v14324_v31 = vor.u32 %v15452_v28, %v14321_v36  ;;  %v15528_v28 = vld [vmem:[%s20414_s18 + $0x88] sm:$0xff] }
 0xe62   :  { %10732 = vmatpush.bf16.msrb.mxu3 %v14532_v0  ;;  %v14452_v0 = vor.u32 %v15484_v5, %v14449_v12 }
 0xe63   :  { %10694 = vmatpush.bf16.msrb.mxu0 %v14132_v55  ;;  %v14052_v55 = vor.u32 %v15384_v4, %v14049_v41  ;;  %v15542_v41 = vld [vmem:[%s20414_s18 + $0xf8] sm:$0xff] }
 0xe64   :  { %10707 = vmatpush.bf16.msrb.mxu1 %v14260_v38  ;;  %v14180_v38 = vor.u32 %v15416_v19, %v14177_v34 }
 0xe65   :  { %10720 = vmatpush.bf16.msra.mxu2 %v14388_v8  ;;  %v14308_v8 = vor.u32 %v15448_v1, %v14305_v3  ;;  %v15540_v3 = vld [vmem:[%s20414_s18 + $0xe8] sm:$0xff] }
 0xe66   :  { %10733 = vmatpush.bf16.msrb.mxu3 %v14516_v58  ;;  %v15517_v58 = vld [vmem:[%s20414_s18 + $0x30] sm:$0xff] }
 0xe67   :  { %10695 = vmatpush.bf16.msrb.mxu0 %v14116_v59  ;;  %v20324_v59 = vld [vmem:[%s20413_s17] sm:$0xf] }
 0xe68   :  { %10708 = vmatpush.bf16.msrb.mxu1 %v14244_v57  ;;  %v9888_v57 = vperm.slane %v20324_v59, 0 }
 0xe69   :  { %10721 = vmatpush.bf16.msra.mxu2 %v14372_v24  ;;  %v15511_v24 = vld [vmem:[%s20414_s18] sm:$0xff] }
 0xe6a   :  { %10734 = vmatpush.bf16.msrb.mxu3 %v14500_v16  ;;  %v15521_v16 = vld [vmem:[%s20414_s18 + $0x50] sm:$0xff] }
 0xe6b   :  { %10696 = vmatpush.bf16.msrb.mxu0 %v14100_v61 }
 0xe6c   :  { %10709 = vmatpush.bf16.msrb.mxu1 %v14228_v32 }
 0xe6d   :  { %10722 = vmatpush.bf16.msra.mxu2 %v14356_v25 }
 0xe6e   :  { %10735 = vmatpush.bf16.msrb.mxu3 %v14484_v47 }
 0xe6f   :  { %10697 = vmatpush.bf16.msrb.mxu0 %v14084_v63  ;;  %v15530_v63 = vld [vmem:[%s20414_s18 + $0x98] sm:$0xff] }
 0xe70   :  { %10710 = vmatpush.bf16.msrb.mxu1 %v14212_v30  ;;  %v9889_v30 = vperm.slane %v20324_v59, 1 }
 0xe71   :  { %10723 = vmatpush.bf16.msra.mxu2 %v14340_v18 }
 0xe72   :  { %10736 = vmatpush.bf16.msrb.mxu3 %v14468_v62 }
 0xe73   :  { %10698 = vmatpush.bf16.msrb.mxu0 %v14068_v13 }
 0xe74   :  { %10711 = vmatpush.bf16.msrb.mxu1 %v14196_v56 }
 0xe75   :  { %10724 = vmatpush.bf16.msra.mxu2 %v14324_v31  ;;  %v15527_v31 = vld [vmem:[%s20414_s18 + $0x80] sm:$0xff] }
 0xe76   :  { %10737 = vmatpush.bf16.msrb.mxu3 %v14452_v0  ;;  %v15541_v0 = vld [vmem:[%s20414_s18 + $0xf0] sm:$0xff] }
 0xe77   :  { %10699 = vmatpush.bf16.msrb.mxu0 %v14052_v55  ;;  %v9890_v55 = vperm.slane %v20324_v59, 2 }
 0xe78   :  { %10712 = vmatpush.bf16.msrb.mxu1 %v14180_v38  ;;  %v15537_v38 = vld [vmem:[%s20414_s18 + $0xd0] sm:$0xff] }
 0xe79   :  { %10725 = vmatpush.bf16.msra.mxu2 %v14308_v8 }
 0xe7a   :  { %10738 = vmatpush.bf16.msrb.mxu3 %v14436_v6  ;;  %10700 = vmatmul.bf16.vlgmr.msrb.gmra.mxu0 %v19369_v11  ;;  %v15525_v11 = vld [vmem:[%s20414_s18 + $0x70] sm:$0xff] }
 0xe7b   :  { %11012 = vmatpush.bf16.msra.mxu0 %v15518_v54  ;;  %10713 = vmatmul.bf16.vlgmr.msrb.gmra.mxu1 %v19367_v29  ;;  %v15514_v29 = vld [vmem:[%s20414_s18 + $0x18] sm:$0xff] }
 0xe7c   :  { %11025 = vmatpush.bf16.msra.mxu1 %v15526_v21  ;;  %10726 = vmatmul.bf16.vlgmr.msra.gmra.mxu2 %v19373_v20  ;;  %v15513_v20 = vld [vmem:[%s20414_s18 + $0x10] sm:$0xff] }
 0xe7d   :  { %10739 = vmatmul.bf16.vlgmr.msrb.gmra.mxu3 %v19371_v10  ;;  %v15524_v10 = vld [vmem:[%s20414_s18 + $0x68] sm:$0xff]  ;;  %11038 = vmatpush.bf16.msrb.mxu2 %v15534_v2 }
 0xe7e   :  { %11051 = vmatpush.bf16.msra.mxu3 %v15542_v41 }
 0xe7f   :  { %11013 = vmatpush.bf16.msra.mxu0 %v15517_v58  ;;  %v15536_v58 = vld [vmem:[%s20414_s18 + $0xc8] sm:$0xff] }
 0xe80   :  { %11026 = vmatpush.bf16.msra.mxu1 %v15525_v11 }
 0xe81   :  { %11039 = vmatpush.bf16.msrb.mxu2 %v15533_v17 }
 0xe82   :  { %11052 = vmatpush.bf16.msra.mxu3 %v15541_v0 }
 0xe83   :  { %11014 = vmatpush.bf16.msra.mxu0 %v15516_v49 }
 0xe84   :  { %11027 = vmatpush.bf16.msra.mxu1 %v15524_v10 }
 0xe85   :  { %11040 = vmatpush.bf16.msrb.mxu2 %v15532_v7 }
 0xe86   :  { %11053 = vmatpush.bf16.msra.mxu3 %v15540_v3 }
 0xe87   :  { %11015 = vmatpush.bf16.msra.mxu0 %v15515_v52 }
 0xe88   :  { %11028 = vmatpush.bf16.msra.mxu1 %v15523_v40 }
 0xe89   :  { %11041 = vmatpush.bf16.msrb.mxu2 %v15531_v45  ;;  %v15555_v45 = vld [vmem:[%s21082_s3] ss:$0 sm:$0xff] }
 0xe8a   :  { %11054 = vmatpush.bf16.msra.mxu3 %v15539_v37 }
 0xe8b   :  { %11016 = vmatpush.bf16.msra.mxu0 %v15514_v29 }
 0xe8c   :  { %11029 = vmatpush.bf16.msra.mxu1 %v15522_v46 }
 0xe8d   :  { %11042 = vmatpush.bf16.msrb.mxu2 %v15530_v63 }
 0xe8e   :  { %11055 = vmatpush.bf16.msra.mxu3 %v15538_v14 }
 0xe8f   :  { %11017 = vmatpush.bf16.msra.mxu0 %v15513_v20  ;;  %v15535_v20 = vld [vmem:[%s20414_s18 + $0xc0] sm:$0xff] }
 0xe90   :  { %11030 = vmatpush.bf16.msra.mxu1 %v15521_v16 }
 0xe91   :  { %11043 = vmatpush.bf16.msrb.mxu2 %v15529_v35 }
 0xe92   :  { %11056 = vmatpush.bf16.msra.mxu3 %v15537_v38 }
 0xe93   :  { %11018 = vmatpush.bf16.msra.mxu0 %v15512_v48 }
 0xe94   :  { %11031 = vmatpush.bf16.msra.mxu1 %v15520_v9 }
 0xe95   :  { %11044 = vmatpush.bf16.msrb.mxu2 %v15528_v28 }
 0xe96   :  { %11057 = vmatpush.bf16.msra.mxu3 %v15536_v58 }
 0xe97   :  { %v10545_v50 = vpop.f32.mrf.mxu0  ;;  %11019 = vmatpush.bf16.msra.mxu0 %v15511_v24 }
 0xe98   :  { %v10546_v22 = vadd.f32 %v10545_v50, %v9888_v57  ;;  %v10558_v15 = vpop.f32.mrf.mxu1  ;;  %11032 = vmatpush.bf16.msra.mxu1 %v15519_v26  ;;  %v9891_v50 = vperm.slane %v20324_v59, 3 }
 0xe99   :  { %11045 = vmatpush.bf16.msrb.mxu2 %v15527_v31 }
 0xe9a   :  { %v10559_v51 = vadd.f32 %v10558_v15, %v10546_v22  ;;  %11058 = vmatpush.bf16.msra.mxu3 %v15535_v20 }
 0xe9f   :  { %v10571_v42 = vpop.f32.mrf.mxu2  ;;  %v10547_v32 = vpop.f32.mrf.mxu0 }
 0xea0   :  { %v10572_v44 = vadd.f32 %v10571_v42, %v10559_v51  ;;  %v10584_v33 = vpop.f32.mrf.mxu3  ;;  %v10560_v25 = vpop.f32.mrf.mxu1 }
 0xea2   :  { %v10585_v61 = vadd.f32 %v10584_v33, %v10572_v44 }
 0xea4   :  { %v10744_v60 = vmax.f32 %v10585_v61, 0.0 }
 0xea6   :  { %v10748_v47 = vpack.c.bf16 %v10744_v60, %v10744_v60 }
 0xea7   :  { %v10573_v43 = vpop.f32.mrf.mxu2 }
 0xea8   :  { %v10586_v39 = vpop.f32.mrf.mxu3  ;;  %11020 = vmatmul.bf16.vlgmr.msra.gmra.mxu0 %v10748_v47 }
 0xeb7   :  { %v10597_v18 = vpop.f32.mrf.mxu0 }
 0xeb8   :  { %v10598_v27 = vadd.f32 %v10597_v18, %v9889_v30  ;;  %v10610_v23 = vpop.f32.mrf.mxu1 }
 0xeba   :  { %v10611_v62 = vadd.f32 %v10610_v23, %v10598_v27 }
 0xebf   :  { %v10623_v53 = vpop.f32.mrf.mxu2  ;;  %v10599_v13 = vpop.f32.mrf.mxu0 }
 0xec0   :  { %v10624_v36 = vadd.f32 %v10623_v53, %v10611_v62  ;;  %v10636_v5 = vpop.f32.mrf.mxu3  ;;  %v10612_v56 = vpop.f32.mrf.mxu1 }
 0xec2   :  { %v10637_v12 = vadd.f32 %v10636_v5, %v10624_v36 }
 0xec4   :  { %v10745_v4 = vmax.f32 %v10637_v12, 0.0 }
 0xec6   :  { %v10749_v19 = vpack.c.bf16 %v10745_v4, %v10745_v4 }
 0xec7   :  { %v10625_v34 = vpop.f32.mrf.mxu2 }
 0xec8   :  { %11033 = vmatmul.bf16.vlgmr.msra.gmra.mxu1 %v10749_v19  ;;  %v10638_v1 = vpop.f32.mrf.mxu3 }
 0xed7   :  { %v10649_v8 = vpop.f32.mrf.mxu0 }
 0xed8   :  { %v10650_v6 = vadd.f32 %v10649_v8, %v9890_v55  ;;  %v10662_v54 = vpop.f32.mrf.mxu1 }
 0xeda   :  { %v10663_v21 = vadd.f32 %v10662_v54, %v10650_v6 }
 0xedf   :  { %v10675_v49 = vpop.f32.mrf.mxu2  ;;  %v10651_v10 = vpop.f32.mrf.mxu0 }
 0xee0   :  { %v10676_v52 = vadd.f32 %v10675_v49, %v10663_v21  ;;  %v10688_v11 = vpop.f32.mrf.mxu3  ;;  %v10664_v40 = vpop.f32.mrf.mxu1 }
 0xee2   :  { %v10689_v29 = vadd.f32 %v10688_v11, %v10676_v52 }
 0xee4   :  { %v10746_v48 = vmax.f32 %v10689_v29, 0.0 }
 0xee6   :  { %v10750_v46 = vpack.c.bf16 %v10746_v48, %v10746_v48 }
 0xee7   :  { %v10677_v57 = vpop.f32.mrf.mxu2 }
 0xee8   :  { %11046 = vmatmul.bf16.vlgmr.msrb.gmra.mxu2 %v10750_v46  ;;  %v10690_v24 = vpop.f32.mrf.mxu3 }
 0xef7   :  { %v10701_v22 = vpop.f32.mrf.mxu0 }
 0xef8   :  { %v10702_v15 = vadd.f32 %v10701_v22, %v9891_v50  ;;  %v10714_v16 = vpop.f32.mrf.mxu1 }
 0xefa   :  { %v10715_v51 = vadd.f32 %v10714_v16, %v10702_v15 }
 0xeff   :  { %v10727_v42 = vpop.f32.mrf.mxu2  ;;  %v10703_v9 = vpop.f32.mrf.mxu0 }
 0xf00   :  { %v10728_v44 = vadd.f32 %v10727_v42, %v10715_v51  ;;  %v10740_v33 = vpop.f32.mrf.mxu3  ;;  %v10716_v61 = vpop.f32.mrf.mxu1 }
 0xf02   :  { %v10741_v32 = vadd.f32 %v10740_v33, %v10728_v44 }
 0xf04   :  { %v10747_v25 = vmax.f32 %v10741_v32, 0.0 }
 0xf06   :  { %v10751_v60 = vpack.c.bf16 %v10747_v25, %v10747_v25 }
 0xf07   :  { %v10729_v26 = vpop.f32.mrf.mxu2 }
 0xf08   :  { %v10742_v2 = vpop.f32.mrf.mxu3  ;;  %11059 = vmatmul.bf16.vlgmr.msra.gmra.mxu3 %v10751_v60 }
 0xf25   :  { %v11021_v47 = vpop.f32.mrf.mxu0 }
 0xf26   :  { %v11022_v63 = vadd.f32 %v15555_v45, %v11021_v47 }
 0xf2d   :  { %v11023_v17 = vpop.f32.mrf.mxu0 }
 0xf45   :  { %v11034_v43 = vpop.f32.mrf.mxu1 }
 0xf46   :  { %v11035_v30 = vadd.f32 %v11034_v43, %v11022_v63 }
 0xf4d   :  { %v11036_v39 = vpop.f32.mrf.mxu1 }
 0xf6b   :  { %v11047_v59 = vpop.f32.mrf.mxu2 }
 0xf6c   :  { %v11048_v18 = vadd.f32 %v11047_v59, %v11035_v30 }
 0xf73   :  { %v11049_v7 = vpop.f32.mrf.mxu2 }
 0xf8b   :  { %v11060_v27 = vpop.f32.mrf.mxu3 }
 0xf8c   :  { %v11061_v23 = vadd.f32 %v11060_v27, %v11048_v18 }
 0xf8e   :  { %11065 = vst.msk [vmem:[%s20418_s25] sm:$0x3] %vm11064_vm9, %v11061_v23 }
 0xf93   :  { %v11062_v35 = vpop.f32.mrf.mxu3 }
 0xf94   :  { %11074 = vsyncmov [#allocation6] }
 0xf97   :  { %s11075_s14 = vpop.sfrf %11074 }
 0xf98   :  { %p14677_p0 = scmp.ne.s32.totalorder %s11075_s14, 0 }
 0xf9a   :  { %11079 = shalt.err (%p14677_p0)  }
 0xf9b   :  { %11081 = vsyncmov [#allocation6 + $0x1] }
 0xf9e   :  { %s11082_s1 = vpop.sfrf %11081 }
 0xf9f   :  { %p14678_p1 = scmp.ne.s32.totalorder %s11082_s1, 0 }
 0xfa1   :  { %11086 = shalt.err (%p14678_p1)  }
 0xfa2   :  { %11088 = vsyncmov [#allocation6 + $0x2] }
 0xfa5   :  { %s11089_s16 = vpop.sfrf %11088 }
 0xfa6   :  { %p14679_p2 = scmp.ne.s32.totalorder %s11089_s16, 0 }
 0xfa8   :  { %11093 = shalt.err (%p14679_p2)  }
 0xfa9   :  { %11095 = vsyncmov [#allocation6 + $0x3] }
 0xfac   :  { %s11096_s4 = vpop.sfrf %11095 }
 0xfad   :  { %p14680_p3 = scmp.ne.s32.totalorder %s11096_s4, 0 }
 0xfaf   :  { %11100 = shalt.err (%p14680_p3)  }

</bundles_post_ra>
